<compile_context>
chip_gen: v5e
topology: v5e:2x2
jax: 0.10.0
libtpu: 0.0.40
codegen_flags: <defaults>
</compile_context>

<pallas_src>
import functools

import jax
import jax.numpy as jnp
from jax.experimental import pallas as pl
from jax.experimental.pallas import tpu as pltpu

_LANES = 128


def _round_up(x, m):
    return (x + m - 1) // m * m


def _cpad(c):
    return _round_up(max(c, 1), _LANES)


def _pick_tile(m, max_tm=512):
    return max_tm if m >= max_tm else _round_up(m, 8)


def _pad_channels(x, cp):
    c = x.shape[-1]
    if c == cp:
        return x
    return jnp.pad(x, [(0, 0)] * (x.ndim - 1) + [(0, cp - c)])


# ------------------------------------------------------------------------------- kernels
def _matmul_kernel(a_ref, b_ref, o_ref, *, activation):
    acc = jnp.dot(a_ref[...], b_ref[...], preferred_element_type=jnp.float32)
    if activation == "tanh":
        acc = jnp.tanh(acc)
    o_ref[...] = acc.astype(o_ref.dtype)


def _matmul_stats_kernel(a_ref, b_ref, o_ref, stats_ref):
    """Matmul tile + fused per-tile BatchNorm partials (row 0 = sum, row 1 = sum of squares)."""
    acc = jnp.dot(a_ref[...], b_ref[...], preferred_element_type=jnp.float32)
    o_ref[...] = acc.astype(o_ref.dtype)
    s = jnp.sum(acc, axis=0, keepdims=True)
    ss = jnp.sum(acc * acc, axis=0, keepdims=True)
    pad = jnp.zeros((6, acc.shape[1]), jnp.float32)
    stats_ref[...] = jnp.concatenate([s, ss, pad], axis=0)


def _scale_shift_relu_kernel(x_ref, scale_ref, shift_ref, o_ref):
    y = x_ref[...].astype(jnp.float32) * scale_ref[...] + shift_ref[...]
    o_ref[...] = jnp.maximum(y, 0.0).astype(o_ref.dtype)


# ------------------------------------------------------------------------------ wrappers
def pallas_matmul(a, b, *, activation=None, with_stats=False, out_dtype=jnp.bfloat16):
    """a: (M, K) bf16, b: (K, N) bf16 (K, N lane/tile aligned).  B stays resident in VMEM.

    Returns out (M, N) [, stats (2, N) f32 = per-lane sum / sum-of-squares over the M rows].
    """
    M, K = a.shape
    Kb, Np = b.shape
    assert K == Kb
    tm = _pick_tile(M)
    Mp = _round_up(M, tm)
    if Mp != M:
        a = jnp.pad(a, ((0, Mp - M), (0, 0)))     # zero rows: harmless for stats too
    n_tiles = Mp // tm

    in_specs = [pl.BlockSpec((tm, K), lambda i: (i, 0)),
                pl.BlockSpec((K, Np), lambda i: (0, 0))]   # whole B, fetched once

    if with_stats:
        kernel = _matmul_stats_kernel
        out_shape = (jax.ShapeDtypeStruct((Mp, Np), out_dtype),
                     jax.ShapeDtypeStruct((n_tiles * 8, Np), jnp.float32))
        out_specs = (pl.BlockSpec((tm, Np), lambda i: (i, 0)),
                     pl.BlockSpec((8, Np), lambda i: (i, 0)))
    else:
        kernel = functools.partial(_matmul_kernel, activation=activation)
        out_shape = jax.ShapeDtypeStruct((Mp, Np), out_dtype)
        out_specs = pl.BlockSpec((tm, Np), lambda i: (i, 0))

    res = pl.pallas_call(
        kernel,
        out_shape=out_shape,
        grid_spec=pltpu.PrefetchScalarGridSpec(
            num_scalar_prefetch=0,
            grid=(n_tiles,),
            in_specs=in_specs,
            out_specs=out_specs),
        compiler_params=pltpu.CompilerParams(dimension_semantics=("parallel",)),
    )(a, b)

    if with_stats:
        out, st = res
        st = st.reshape(n_tiles, 8, Np)
        stats = jnp.stack([st[:, 0, :].sum(axis=0), st[:, 1, :].sum(axis=0)], axis=0)
        return out[:M], stats
    return res[:M]


def pallas_bn_relu(x, scale, shift):
    """x: (M, C) bf16; scale/shift: (C,) f32.  Tiled max(x*scale + shift, 0)."""
    M, C = x.shape
    tm = _pick_tile(M)
    Mp = _round_up(M, tm)
    if Mp != M:
        x = jnp.pad(x, ((0, Mp - M), (0, 0)))
    out = pl.pallas_call(
        _scale_shift_relu_kernel,
        out_shape=jax.ShapeDtypeStruct((Mp, C), x.dtype),
        grid_spec=pltpu.PrefetchScalarGridSpec(
            num_scalar_prefetch=0,
            grid=(Mp // tm,),
            in_specs=[pl.BlockSpec((tm, C), lambda i: (i, 0)),
                      pl.BlockSpec((1, C), lambda i: (0, 0)),
                      pl.BlockSpec((1, C), lambda i: (0, 0))],
            out_specs=pl.BlockSpec((tm, C), lambda i: (i, 0))),
        compiler_params=pltpu.CompilerParams(dimension_semantics=("parallel",)),
    )(x, scale.reshape(1, C).astype(jnp.float32), shift.reshape(1, C).astype(jnp.float32))
    return out[:M]


# ------------------------------------------------------------- conv-transpose lowering glue
def _phase_im2col(x_pad, r, s):
    """x_pad: (N, H+2, W+2, Cp) NHWC.  4-tap im2col operand for sub-pixel phase (r, s) of a
    k=4 / stride=2 / pad=1 ConvTranspose: shape (N*H*W, 4*Cp), taps ordered (dh, dw)."""
    n, hp2, wp2, cp = x_pad.shape
    h, w = hp2 - 2, wp2 - 2
    taps = []
    for dh in range(2):
        for dw in range(2):
            taps.append(
                x_pad[:, r + dh:r + dh + h, s + dw:s + dw + w, :].reshape(n * h * w, cp))
    return jnp.concatenate(taps, axis=1)


def _phase_weight(w, r, s, cp_in, cp_out):
    """w: PyTorch ConvTranspose2d weight (C_in, C_out, 4, 4).  (4*cp_in, cp_out) bf16 operand
    for sub-pixel phase (r, s); tap dh uses kernel row 3-r-2*dh, tap dw uses col 3-s-2*dw."""
    c_in, c_out = w.shape[0], w.shape[1]
    wsub = w[:, :, (3 - r)::-2, (3 - s)::-2]          # (C_in, C_out, 2, 2) -> [ci, co, dh, dw]
    wsub = jnp.transpose(wsub, (2, 3, 0, 1))          # (2, 2, C_in, C_out)
    b = jnp.zeros((2, 2, cp_in, cp_out), jnp.float32)
    b = b.at[:, :, :c_in, :c_out].set(wsub)
    return b.reshape(4 * cp_in, cp_out).astype(jnp.bfloat16)


def _layer0_weight(w, nz_pad, cp_out):
    """ConvTranspose2d(nz, C_out, 4, 1, 0) on a 1x1 input is a plain matmul:
    out[n, y, x, co] = sum_ci z[n, ci] * w[ci, co, y, x]."""
    c_in, c_out = w.shape[0], w.shape[1]
    b = jnp.zeros((nz_pad, 4, 4, cp_out), jnp.float32)
    b = b.at[:c_in, :, :, :c_out].set(jnp.transpose(w, (0, 2, 3, 1)))
    return b.reshape(nz_pad, 16 * cp_out).astype(jnp.bfloat16)


def _bn_scale_shift(stats, count, gamma, beta, cp):
    """Training-mode BatchNorm (biased batch variance) folded into scale/shift vectors."""
    mean = stats[0] / count
    var = jnp.maximum(stats[1] / count - mean * mean, 0.0)
    inv = jax.lax.rsqrt(var + 1e-5)
    g = _pad_channels(gamma.astype(jnp.float32), cp)      # padded channels -> scale/shift = 0
    bt = _pad_channels(beta.astype(jnp.float32), cp)
    scale = g * inv
    shift = bt - mean * scale
    return scale, shift


# ----------------------------------------------------------------------------- generator
def init_params(key, nz=100, ngf=64, nc=3):
    chans = [nz, ngf * 8, ngf * 4, ngf * 2, ngf, nc]
    params = {}
    for i in range(5):
        key, sub = jax.random.split(key)
        # PyTorch ConvTranspose2d weight layout: (C_in, C_out, kH, kW); DCGAN-style N(0, 0.02)
        params[f"w{i}"] = 0.02 * jax.random.normal(
            sub, (chans[i], chans[i + 1], 4, 4), jnp.float32)
        if i < 4:  # BatchNorm2d default init
            params[f"gamma{i}"] = jnp.ones((chans[i + 1],), jnp.float32)
            params[f"beta{i}"] = jnp.zeros((chans[i + 1],), jnp.float32)
    return params


def generator_forward(z, params):
    """z: (N, nz, 1, 1) NCHW -> (N, nc, 64, 64) NCHW float32, matching the PyTorch module."""
    n, nz = z.shape[0], z.shape[1]
    nz_pad = _cpad(nz)

    # ---- layer 0: ConvTranspose2d(nz, ngf*8, 4, 1, 0) + BN + ReLU   (1x1 -> 4x4)
    w0 = params["w0"]
    c1p = _cpad(w0.shape[1])
    a0 = _pad_channels(z.reshape(n, nz).astype(jnp.bfloat16), nz_pad)
    b0 = _layer0_weight(w0, nz_pad, c1p)
    y0, st0 = pallas_matmul(a0, b0, with_stats=True)              # (n, 16*c1p)
    st0 = st0.reshape(2, 16, c1p).sum(axis=1)                     # fold 4x4 spatial lanes
    scale, shift = _bn_scale_shift(st0, n * 16, params["gamma0"], params["beta0"], c1p)
    x = pallas_bn_relu(y0.reshape(n * 16, c1p), scale, shift).reshape(n, 4, 4, c1p)

    # ---- layers 1..4: ConvTranspose2d(k=4, s=2, p=1) via 4 sub-pixel phase matmuls
    for li in range(1, 5):
        w = params[f"w{li}"]
        cop = _cpad(w.shape[1])
        _, h, wd, cip = x.shape
        m = n * h * wd
        last = li == 4
        x_pad = jnp.pad(x, ((0, 0), (1, 1), (1, 1), (0, 0)))      # zero pad = correct (pre-pad
                                                                  # activation is exact zeros)
        phase_out = []
        stats = jnp.zeros((2, cop), jnp.float32)
        for r in range(2):
            for s in range(2):
                a = _phase_im2col(x_pad, r, s)                    # (m, 4*cip) bf16
                b = _phase_weight(w, r, s, cip, cop)              # (4*cip, cop) bf16
                if last:
                    o = pallas_matmul(a, b, activation="tanh")
                else:
                    o, st = pallas_matmul(a, b, with_stats=True)
                    stats = stats + st
                phase_out.append(o.reshape(n, h, wd, cop))

        # interleave phases: out[:, 2a+r, 2b+s, :] = phase[r*2+s][:, a, b, :]
        y = jnp.stack(phase_out, axis=0).reshape(2, 2, n, h, wd, cop)
        y = jnp.transpose(y, (2, 3, 0, 4, 1, 5)).reshape(n, 2 * h, 2 * wd, cop)

        if last:
            x = y
        else:
            scale, shift = _bn_scale_shift(stats, 4 * m, params[f"gamma{li}"],
                                           params[f"beta{li}"], cop)
            x = pallas_bn_relu(y.reshape(4 * m, cop), scale, shift).reshape(
                n, 2 * h, 2 * wd, cop)

    nc = params["w4"].shape[1]
    return jnp.transpose(x[:, :, :, :nc], (0, 3, 1, 2)).astype(jnp.float32)


# ----------------------------------------------------------------------------- reference
def reference_forward(z, params):
    """Pure-JAX f32 reference matching the PyTorch module (training-mode BatchNorm)."""
    x = z.astype(jnp.float32)
    cfg = [(1, 0), (2, 1), (2, 1), (2, 1), (2, 1)]
    for i, (stride, pad) in enumerate(cfg):
        w = params[f"w{i}"].astype(jnp.float32)
        rhs = jnp.transpose(w, (1, 0, 2, 3))[:, :, ::-1, ::-1]    # OIHW, flipped
        x = jax.lax.conv_general_dilated(
            x, rhs, window_strides=(1, 1),
            padding=[(3 - pad, 3 - pad)] * 2,
            lhs_dilation=(stride, stride),
            dimension_numbers=("NCHW", "OIHW", "NCHW"),
            precision=jax.lax.Precision.HIGHEST)
        if i < 4:
            mean = x.mean(axis=(0, 2, 3), keepdims=True)
            var = ((x - mean) ** 2).mean(axis=(0, 2, 3), keepdims=True)
            xh = (x - mean) * jax.lax.rsqrt(var + 1e-5)
            g = params[f"gamma{i}"].reshape(1, -1, 1, 1)
            b = params[f"beta{i}"].reshape(1, -1, 1, 1)
            x = jnp.maximum(xh * g + b, 0.0)
        else:
            x = jnp.tanh(x)
    return x


if __name__ == "__main__":
    # Small shapes consistent with the module: batch=2, nz=16, ngf=8, nc=3 -> (2, 3, 64, 64)
    NZ, NGF, NC, BATCH = 16, 8, 3, 2
    key = jax.random.PRNGKey(0)
    key, zkey = jax.random.split(key)
    params = init_params(key, nz=NZ, ngf=NGF, nc=NC)
    z = jax.random.normal(zkey, (BATCH, NZ, 1, 1), jnp.float32)

    out = jax.block_until_ready(jax.jit(generator_forward)(z, params))
    assert out.shape == (BATCH, NC, 64, 64), out.shape
    assert bool(jnp.all(jnp.isfinite(out)))

    ref = jax.block_until_ready(jax.jit(reference_forward)(z, params))
    err = float(jnp.max(jnp.abs(out - ref)))
    assert err < 5e-2, f"max |pallas - reference| = {err}"
    print("KERNEL_OK")
</pallas_src>

<mosaic_0001>
module attributes {stable_mosaic.version = 11 : i64} {
  func.func @_matmul_stats_kernel(%arg0: i32, %arg1: memref<8x128xbf16, #tpu.memory_space<vmem>>, %arg2: memref<128x2048xbf16, #tpu.memory_space<vmem>>, %arg3: memref<8x2048xbf16, #tpu.memory_space<vmem>>, %arg4: memref<8x2048xf32, #tpu.memory_space<vmem>>) attributes {dimension_semantics = [#tpu.dimension_semantics<parallel>], iteration_bounds = array<i64: 1>, scalar_prefetch = 0 : i64, scratch_operands = 0 : i64, tpu.core_type = #tpu.core_type<tc>, window_params = [{transform_indices = @transform_0, window_bounds = array<i64: 8, 128>}, {pipeline_mode = #tpu.pipeline_mode<synchronous>, transform_indices = @transform_1, window_bounds = array<i64: 128, 2048>}, {transform_indices = @transform_2, window_bounds = array<i64: 8, 2048>}, {transform_indices = @transform_3, window_bounds = array<i64: 8, 2048>}]} {
    %c0 = arith.constant 0 : index
    %c0_0 = arith.constant 0 : index
    %0 = vector.load %arg1[%c0, %c0_0] : memref<8x128xbf16, #tpu.memory_space<vmem>>, vector<8x128xbf16>
    %c0_1 = arith.constant 0 : index
    %c0_2 = arith.constant 0 : index
    %1 = vector.load %arg2[%c0_1, %c0_2] : memref<128x2048xbf16, #tpu.memory_space<vmem>>, vector<128x2048xbf16>
    %cst = arith.constant dense<0.000000e+00> : vector<8x2048xf32>
    %2 = tpu.matmul %0, %1, %cst {dimension_numbers = #tpu.dot_dimension_numbers<[1], [0], [0], [1], [0, 0, 1, 1], [], []>} : vector<8x128xbf16>, vector<128x2048xbf16>, vector<8x2048xf32> -> vector<8x2048xf32>
    %3 = arith.truncf %2 : vector<8x2048xf32> to vector<8x2048xbf16>
    %c0_3 = arith.constant 0 : index
    %c0_4 = arith.constant 0 : index
    %4 = vector.load %arg3[%c0_3, %c0_4] : memref<8x2048xbf16, #tpu.memory_space<vmem>>, vector<8x2048xbf16>
    tpu.vector_store %arg3[%c0_3, %c0_4], %3 {strides = array<i32>} : memref<8x2048xbf16, #tpu.memory_space<vmem>>, vector<8x2048xbf16>,
    %cst_5 = arith.constant dense<0.000000e+00> : vector<2048xf32>
    %5 = vector.multi_reduction <add>, %2, %cst_5 [0] : vector<8x2048xf32> to vector<2048xf32>
    %6 = vector.shape_cast %5 : vector<2048xf32> to vector<1x2048xf32>
    %7 = arith.mulf %2, %2 : vector<8x2048xf32>
    %cst_6 = arith.constant dense<0.000000e+00> : vector<2048xf32>
    %8 = vector.multi_reduction <add>, %7, %cst_6 [0] : vector<8x2048xf32> to vector<2048xf32>
    %9 = vector.shape_cast %8 : vector<2048xf32> to vector<1x2048xf32>
    %cst_7 = arith.constant 0.000000e+00 : f32
    %10 = vector.broadcast %cst_7 : f32 to vector<6x2048xf32>
    %11 = tpu.concatenate %6, %9, %10 in 0 : vector<1x2048xf32>, vector<1x2048xf32>, vector<6x2048xf32> -> vector<8x2048xf32>
    %c0_8 = arith.constant 0 : index
    %c0_9 = arith.constant 0 : index
    %12 = vector.load %arg4[%c0_8, %c0_9] : memref<8x2048xf32, #tpu.memory_space<vmem>>, vector<8x2048xf32>
    tpu.vector_store %arg4[%c0_8, %c0_9], %11 {strides = array<i32>} : memref<8x2048xf32, #tpu.memory_space<vmem>>, vector<8x2048xf32>,
    return
  }
  func.func @transform_0(%arg0: i32) -> (i32, i32) {
    %c0_i32 = arith.constant 0 : i32
    %c0_i32_0 = arith.constant 0 : i32
    return %arg0, %c0_i32 : i32, i32
  }
  func.func @transform_1(%arg0: i32) -> (i32, i32) {
    %c0_i32 = arith.constant 0 : i32
    %c0_i32_0 = arith.constant 0 : i32
    %c0_i32_1 = arith.constant 0 : i32
    return %c0_i32, %c0_i32_0 : i32, i32
  }
  func.func @transform_2(%arg0: i32) -> (i32, i32) {
    %c0_i32 = arith.constant 0 : i32
    %c0_i32_0 = arith.constant 0 : i32
    return %arg0, %c0_i32 : i32, i32
  }
  func.func @transform_3(%arg0: i32) -> (i32, i32) {
    %c0_i32 = arith.constant 0 : i32
    %c0_i32_0 = arith.constant 0 : i32
    return %arg0, %c0_i32 : i32, i32
  }
}

module attributes {stable_mosaic.version = 11 : i64} {
  func.func @_scale_shift_relu_kernel(%arg0: i32, %arg1: memref<32x128xbf16, #tpu.memory_space<vmem>>, %arg2: memref<1x128xf32, #tpu.memory_space<vmem>>, %arg3: memref<1x128xf32, #tpu.memory_space<vmem>>, %arg4: memref<32x128xbf16, #tpu.memory_space<vmem>>) attributes {dimension_semantics = [#tpu.dimension_semantics<parallel>], iteration_bounds = array<i64: 1>, scalar_prefetch = 0 : i64, scratch_operands = 0 : i64, tpu.core_type = #tpu.core_type<tc>, window_params = [{transform_indices = @transform_0, window_bounds = array<i64: 32, 128>}, {pipeline_mode = #tpu.pipeline_mode<synchronous>, transform_indices = @transform_1, window_bounds = array<i64: 1, 128>}, {pipeline_mode = #tpu.pipeline_mode<synchronous>, transform_indices = @transform_2, window_bounds = array<i64: 1, 128>}, {transform_indices = @transform_3, window_bounds = array<i64: 32, 128>}]} {
    %c0 = arith.constant 0 : index
    %c0_0 = arith.constant 0 : index
    %0 = vector.load %arg1[%c0, %c0_0] : memref<32x128xbf16, #tpu.memory_space<vmem>>, vector<32x128xbf16>
    %1 = arith.extf %0 : vector<32x128xbf16> to vector<32x128xf32>
    %c0_1 = arith.constant 0 : index
    %c0_2 = arith.constant 0 : index
    %2 = vector.load %arg2[%c0_1, %c0_2] : memref<1x128xf32, #tpu.memory_space<vmem>>, vector<1x128xf32>
    %3 = vector.broadcast %2 : vector<1x128xf32> to vector<32x128xf32>
    %4 = arith.mulf %1, %3 : vector<32x128xf32>
    %c0_3 = arith.constant 0 : index
    %c0_4 = arith.constant 0 : index
    %5 = vector.load %arg3[%c0_3, %c0_4] : memref<1x128xf32, #tpu.memory_space<vmem>>, vector<1x128xf32>
    %6 = vector.broadcast %5 : vector<1x128xf32> to vector<32x128xf32>
    %7 = arith.addf %4, %6 : vector<32x128xf32>
    %cst = arith.constant 0.000000e+00 : f32
    %8 = vector.broadcast %cst : f32 to vector<32x128xf32>
    %9 = arith.maximumf %7, %8 : vector<32x128xf32>
    %10 = arith.truncf %9 : vector<32x128xf32> to vector<32x128xbf16>
    %c0_5 = arith.constant 0 : index
    %c0_6 = arith.constant 0 : index
    %11 = vector.load %arg4[%c0_5, %c0_6] : memref<32x128xbf16, #tpu.memory_space<vmem>>, vector<32x128xbf16>
    tpu.vector_store %arg4[%c0_5, %c0_6], %10 {strides = array<i32>} : memref<32x128xbf16, #tpu.memory_space<vmem>>, vector<32x128xbf16>,
    return
  }
  func.func @transform_0(%arg0: i32) -> (i32, i32) {
    %c0_i32 = arith.constant 0 : i32
    %c0_i32_0 = arith.constant 0 : i32
    return %arg0, %c0_i32 : i32, i32
  }
  func.func @transform_1(%arg0: i32) -> (i32, i32) {
    %c0_i32 = arith.constant 0 : i32
    %c0_i32_0 = arith.constant 0 : i32
    %c0_i32_1 = arith.constant 0 : i32
    return %c0_i32, %c0_i32_0 : i32, i32
  }
  func.func @transform_2(%arg0: i32) -> (i32, i32) {
    %c0_i32 = arith.constant 0 : i32
    %c0_i32_0 = arith.constant 0 : i32
    %c0_i32_1 = arith.constant 0 : i32
    return %c0_i32, %c0_i32_0 : i32, i32
  }
  func.func @transform_3(%arg0: i32) -> (i32, i32) {
    %c0_i32 = arith.constant 0 : i32
    %c0_i32_0 = arith.constant 0 : i32
    return %arg0, %c0_i32 : i32, i32
  }
}

module attributes {stable_mosaic.version = 11 : i64} {
  func.func @_matmul_stats_kernel(%arg0: i32, %arg1: memref<32x512xbf16, #tpu.memory_space<vmem>>, %arg2: memref<512x128xbf16, #tpu.memory_space<vmem>>, %arg3: memref<32x128xbf16, #tpu.memory_space<vmem>>, %arg4: memref<8x128xf32, #tpu.memory_space<vmem>>) attributes {dimension_semantics = [#tpu.dimension_semantics<parallel>], iteration_bounds = array<i64: 1>, scalar_prefetch = 0 : i64, scratch_operands = 0 : i64, tpu.core_type = #tpu.core_type<tc>, window_params = [{transform_indices = @transform_0, window_bounds = array<i64: 32, 512>}, {pipeline_mode = #tpu.pipeline_mode<synchronous>, transform_indices = @transform_1, window_bounds = array<i64: 512, 128>}, {transform_indices = @transform_2, window_bounds = array<i64: 32, 128>}, {transform_indices = @transform_3, window_bounds = array<i64: 8, 128>}]} {
    %c0 = arith.constant 0 : index
    %c0_0 = arith.constant 0 : index
    %0 = vector.load %arg1[%c0, %c0_0] : memref<32x512xbf16, #tpu.memory_space<vmem>>, vector<32x512xbf16>
    %c0_1 = arith.constant 0 : index
    %c0_2 = arith.constant 0 : index
    %1 = vector.load %arg2[%c0_1, %c0_2] : memref<512x128xbf16, #tpu.memory_space<vmem>>, vector<512x128xbf16>
    %cst = arith.constant dense<0.000000e+00> : vector<32x128xf32>
    %2 = tpu.matmul %0, %1, %cst {dimension_numbers = #tpu.dot_dimension_numbers<[1], [0], [0], [1], [0, 0, 1, 1], [], []>} : vector<32x512xbf16>, vector<512x128xbf16>, vector<32x128xf32> -> vector<32x128xf32>
    %3 = arith.truncf %2 : vector<32x128xf32> to vector<32x128xbf16>
    %c0_3 = arith.constant 0 : index
    %c0_4 = arith.constant 0 : index
    %4 = vector.load %arg3[%c0_3, %c0_4] : memref<32x128xbf16, #tpu.memory_space<vmem>>, vector<32x128xbf16>
    tpu.vector_store %arg3[%c0_3, %c0_4], %3 {strides = array<i32>} : memref<32x128xbf16, #tpu.memory_space<vmem>>, vector<32x128xbf16>,
    %cst_5 = arith.constant dense<0.000000e+00> : vector<128xf32>
    %5 = vector.multi_reduction <add>, %2, %cst_5 [0] : vector<32x128xf32> to vector<128xf32>
    %6 = vector.shape_cast %5 : vector<128xf32> to vector<1x128xf32>
    %7 = arith.mulf %2, %2 : vector<32x128xf32>
    %cst_6 = arith.constant dense<0.000000e+00> : vector<128xf32>
    %8 = vector.multi_reduction <add>, %7, %cst_6 [0] : vector<32x128xf32> to vector<128xf32>
    %9 = vector.shape_cast %8 : vector<128xf32> to vector<1x128xf32>
    %cst_7 = arith.constant 0.000000e+00 : f32
    %10 = vector.broadcast %cst_7 : f32 to vector<6x128xf32>
    %11 = tpu.concatenate %6, %9, %10 in 0 : vector<1x128xf32>, vector<1x128xf32>, vector<6x128xf32> -> vector<8x128xf32>
    %c0_8 = arith.constant 0 : index
    %c0_9 = arith.constant 0 : index
    %12 = vector.load %arg4[%c0_8, %c0_9] : memref<8x128xf32, #tpu.memory_space<vmem>>, vector<8x128xf32>
    tpu.vector_store %arg4[%c0_8, %c0_9], %11 {strides = array<i32>} : memref<8x128xf32, #tpu.memory_space<vmem>>, vector<8x128xf32>,
    return
  }
  func.func @transform_0(%arg0: i32) -> (i32, i32) {
    %c0_i32 = arith.constant 0 : i32
    %c0_i32_0 = arith.constant 0 : i32
    return %arg0, %c0_i32 : i32, i32
  }
  func.func @transform_1(%arg0: i32) -> (i32, i32) {
    %c0_i32 = arith.constant 0 : i32
    %c0_i32_0 = arith.constant 0 : i32
    %c0_i32_1 = arith.constant 0 : i32
    return %c0_i32, %c0_i32_0 : i32, i32
  }
  func.func @transform_2(%arg0: i32) -> (i32, i32) {
    %c0_i32 = arith.constant 0 : i32
    %c0_i32_0 = arith.constant 0 : i32
    return %arg0, %c0_i32 : i32, i32
  }
  func.func @transform_3(%arg0: i32) -> (i32, i32) {
    %c0_i32 = arith.constant 0 : i32
    %c0_i32_0 = arith.constant 0 : i32
    return %arg0, %c0_i32 : i32, i32
  }
}

module attributes {stable_mosaic.version = 11 : i64} {
  func.func @_scale_shift_relu_kernel(%arg0: i32, %arg1: memref<128x128xbf16, #tpu.memory_space<vmem>>, %arg2: memref<1x128xf32, #tpu.memory_space<vmem>>, %arg3: memref<1x128xf32, #tpu.memory_space<vmem>>, %arg4: memref<128x128xbf16, #tpu.memory_space<vmem>>) attributes {dimension_semantics = [#tpu.dimension_semantics<parallel>], iteration_bounds = array<i64: 1>, scalar_prefetch = 0 : i64, scratch_operands = 0 : i64, tpu.core_type = #tpu.core_type<tc>, window_params = [{transform_indices = @transform_0, window_bounds = array<i64: 128, 128>}, {pipeline_mode = #tpu.pipeline_mode<synchronous>, transform_indices = @transform_1, window_bounds = array<i64: 1, 128>}, {pipeline_mode = #tpu.pipeline_mode<synchronous>, transform_indices = @transform_2, window_bounds = array<i64: 1, 128>}, {transform_indices = @transform_3, window_bounds = array<i64: 128, 128>}]} {
    %c0 = arith.constant 0 : index
    %c0_0 = arith.constant 0 : index
    %0 = vector.load %arg1[%c0, %c0_0] : memref<128x128xbf16, #tpu.memory_space<vmem>>, vector<128x128xbf16>
    %1 = arith.extf %0 : vector<128x128xbf16> to vector<128x128xf32>
    %c0_1 = arith.constant 0 : index
    %c0_2 = arith.constant 0 : index
    %2 = vector.load %arg2[%c0_1, %c0_2] : memref<1x128xf32, #tpu.memory_space<vmem>>, vector<1x128xf32>
    %3 = vector.broadcast %2 : vector<1x128xf32> to vector<128x128xf32>
    %4 = arith.mulf %1, %3 : vector<128x128xf32>
    %c0_3 = arith.constant 0 : index
    %c0_4 = arith.constant 0 : index
    %5 = vector.load %arg3[%c0_3, %c0_4] : memref<1x128xf32, #tpu.memory_space<vmem>>, vector<1x128xf32>
    %6 = vector.broadcast %5 : vector<1x128xf32> to vector<128x128xf32>
    %7 = arith.addf %4, %6 : vector<128x128xf32>
    %cst = arith.constant 0.000000e+00 : f32
    %8 = vector.broadcast %cst : f32 to vector<128x128xf32>
    %9 = arith.maximumf %7, %8 : vector<128x128xf32>
    %10 = arith.truncf %9 : vector<128x128xf32> to vector<128x128xbf16>
    %c0_5 = arith.constant 0 : index
    %c0_6 = arith.constant 0 : index
    %11 = vector.load %arg4[%c0_5, %c0_6] : memref<128x128xbf16, #tpu.memory_space<vmem>>, vector<128x128xbf16>
    tpu.vector_store %arg4[%c0_5, %c0_6], %10 {strides = array<i32>} : memref<128x128xbf16, #tpu.memory_space<vmem>>, vector<128x128xbf16>,
    return
  }
  func.func @transform_0(%arg0: i32) -> (i32, i32) {
    %c0_i32 = arith.constant 0 : i32
    %c0_i32_0 = arith.constant 0 : i32
    return %arg0, %c0_i32 : i32, i32
  }
  func.func @transform_1(%arg0: i32) -> (i32, i32) {
    %c0_i32 = arith.constant 0 : i32
    %c0_i32_0 = arith.constant 0 : i32
    %c0_i32_1 = arith.constant 0 : i32
    return %c0_i32, %c0_i32_0 : i32, i32
  }
  func.func @transform_2(%arg0: i32) -> (i32, i32) {
    %c0_i32 = arith.constant 0 : i32
    %c0_i32_0 = arith.constant 0 : i32
    %c0_i32_1 = arith.constant 0 : i32
    return %c0_i32, %c0_i32_0 : i32, i32
  }
  func.func @transform_3(%arg0: i32) -> (i32, i32) {
    %c0_i32 = arith.constant 0 : i32
    %c0_i32_0 = arith.constant 0 : i32
    return %arg0, %c0_i32 : i32, i32
  }
}

module attributes {stable_mosaic.version = 11 : i64} {
  func.func @_matmul_stats_kernel(%arg0: i32, %arg1: memref<128x512xbf16, #tpu.memory_space<vmem>>, %arg2: memref<512x128xbf16, #tpu.memory_space<vmem>>, %arg3: memref<128x128xbf16, #tpu.memory_space<vmem>>, %arg4: memref<8x128xf32, #tpu.memory_space<vmem>>) attributes {dimension_semantics = [#tpu.dimension_semantics<parallel>], iteration_bounds = array<i64: 1>, scalar_prefetch = 0 : i64, scratch_operands = 0 : i64, tpu.core_type = #tpu.core_type<tc>, window_params = [{transform_indices = @transform_0, window_bounds = array<i64: 128, 512>}, {pipeline_mode = #tpu.pipeline_mode<synchronous>, transform_indices = @transform_1, window_bounds = array<i64: 512, 128>}, {transform_indices = @transform_2, window_bounds = array<i64: 128, 128>}, {transform_indices = @transform_3, window_bounds = array<i64: 8, 128>}]} {
    %c0 = arith.constant 0 : index
    %c0_0 = arith.constant 0 : index
    %0 = vector.load %arg1[%c0, %c0_0] : memref<128x512xbf16, #tpu.memory_space<vmem>>, vector<128x512xbf16>
    %c0_1 = arith.constant 0 : index
    %c0_2 = arith.constant 0 : index
    %1 = vector.load %arg2[%c0_1, %c0_2] : memref<512x128xbf16, #tpu.memory_space<vmem>>, vector<512x128xbf16>
    %cst = arith.constant dense<0.000000e+00> : vector<128x128xf32>
    %2 = tpu.matmul %0, %1, %cst {dimension_numbers = #tpu.dot_dimension_numbers<[1], [0], [0], [1], [0, 0, 1, 1], [], []>} : vector<128x512xbf16>, vector<512x128xbf16>, vector<128x128xf32> -> vector<128x128xf32>
    %3 = arith.truncf %2 : vector<128x128xf32> to vector<128x128xbf16>
    %c0_3 = arith.constant 0 : index
    %c0_4 = arith.constant 0 : index
    %4 = vector.load %arg3[%c0_3, %c0_4] : memref<128x128xbf16, #tpu.memory_space<vmem>>, vector<128x128xbf16>
    tpu.vector_store %arg3[%c0_3, %c0_4], %3 {strides = array<i32>} : memref<128x128xbf16, #tpu.memory_space<vmem>>, vector<128x128xbf16>,
    %cst_5 = arith.constant dense<0.000000e+00> : vector<128xf32>
    %5 = vector.multi_reduction <add>, %2, %cst_5 [0] : vector<128x128xf32> to vector<128xf32>
    %6 = vector.shape_cast %5 : vector<128xf32> to vector<1x128xf32>
    %7 = arith.mulf %2, %2 : vector<128x128xf32>
    %cst_6 = arith.constant dense<0.000000e+00> : vector<128xf32>
    %8 = vector.multi_reduction <add>, %7, %cst_6 [0] : vector<128x128xf32> to vector<128xf32>
    %9 = vector.shape_cast %8 : vector<128xf32> to vector<1x128xf32>
    %cst_7 = arith.constant 0.000000e+00 : f32
    %10 = vector.broadcast %cst_7 : f32 to vector<6x128xf32>
    %11 = tpu.concatenate %6, %9, %10 in 0 : vector<1x128xf32>, vector<1x128xf32>, vector<6x128xf32> -> vector<8x128xf32>
    %c0_8 = arith.constant 0 : index
    %c0_9 = arith.constant 0 : index
    %12 = vector.load %arg4[%c0_8, %c0_9] : memref<8x128xf32, #tpu.memory_space<vmem>>, vector<8x128xf32>
    tpu.vector_store %arg4[%c0_8, %c0_9], %11 {strides = array<i32>} : memref<8x128xf32, #tpu.memory_space<vmem>>, vector<8x128xf32>,
    return
  }
  func.func @transform_0(%arg0: i32) -> (i32, i32) {
    %c0_i32 = arith.constant 0 : i32
    %c0_i32_0 = arith.constant 0 : i32
    return %arg0, %c0_i32 : i32, i32
  }
  func.func @transform_1(%arg0: i32) -> (i32, i32) {
    %c0_i32 = arith.constant 0 : i32
    %c0_i32_0 = arith.constant 0 : i32
    %c0_i32_1 = arith.constant 0 : i32
    return %c0_i32, %c0_i32_0 : i32, i32
  }
  func.func @transform_2(%arg0: i32) -> (i32, i32) {
    %c0_i32 = arith.constant 0 : i32
    %c0_i32_0 = arith.constant 0 : i32
    return %arg0, %c0_i32 : i32, i32
  }
  func.func @transform_3(%arg0: i32) -> (i32, i32) {
    %c0_i32 = arith.constant 0 : i32
    %c0_i32_0 = arith.constant 0 : i32
    return %arg0, %c0_i32 : i32, i32
  }
}

module attributes {stable_mosaic.version = 11 : i64} {
  func.func @_scale_shift_relu_kernel(%arg0: i32, %arg1: memref<512x128xbf16, #tpu.memory_space<vmem>>, %arg2: memref<1x128xf32, #tpu.memory_space<vmem>>, %arg3: memref<1x128xf32, #tpu.memory_space<vmem>>, %arg4: memref<512x128xbf16, #tpu.memory_space<vmem>>) attributes {dimension_semantics = [#tpu.dimension_semantics<parallel>], iteration_bounds = array<i64: 1>, scalar_prefetch = 0 : i64, scratch_operands = 0 : i64, tpu.core_type = #tpu.core_type<tc>, window_params = [{transform_indices = @transform_0, window_bounds = array<i64: 512, 128>}, {pipeline_mode = #tpu.pipeline_mode<synchronous>, transform_indices = @transform_1, window_bounds = array<i64: 1, 128>}, {pipeline_mode = #tpu.pipeline_mode<synchronous>, transform_indices = @transform_2, window_bounds = array<i64: 1, 128>}, {transform_indices = @transform_3, window_bounds = array<i64: 512, 128>}]} {
    %c0 = arith.constant 0 : index
    %c0_0 = arith.constant 0 : index
    %0 = vector.load %arg1[%c0, %c0_0] : memref<512x128xbf16, #tpu.memory_space<vmem>>, vector<512x128xbf16>
    %1 = arith.extf %0 : vector<512x128xbf16> to vector<512x128xf32>
    %c0_1 = arith.constant 0 : index
    %c0_2 = arith.constant 0 : index
    %2 = vector.load %arg2[%c0_1, %c0_2] : memref<1x128xf32, #tpu.memory_space<vmem>>, vector<1x128xf32>
    %3 = vector.broadcast %2 : vector<1x128xf32> to vector<512x128xf32>
    %4 = arith.mulf %1, %3 : vector<512x128xf32>
    %c0_3 = arith.constant 0 : index
    %c0_4 = arith.constant 0 : index
    %5 = vector.load %arg3[%c0_3, %c0_4] : memref<1x128xf32, #tpu.memory_space<vmem>>, vector<1x128xf32>
    %6 = vector.broadcast %5 : vector<1x128xf32> to vector<512x128xf32>
    %7 = arith.addf %4, %6 : vector<512x128xf32>
    %cst = arith.constant 0.000000e+00 : f32
    %8 = vector.broadcast %cst : f32 to vector<512x128xf32>
    %9 = arith.maximumf %7, %8 : vector<512x128xf32>
    %10 = arith.truncf %9 : vector<512x128xf32> to vector<512x128xbf16>
    %c0_5 = arith.constant 0 : index
    %c0_6 = arith.constant 0 : index
    %11 = vector.load %arg4[%c0_5, %c0_6] : memref<512x128xbf16, #tpu.memory_space<vmem>>, vector<512x128xbf16>
    tpu.vector_store %arg4[%c0_5, %c0_6], %10 {strides = array<i32>} : memref<512x128xbf16, #tpu.memory_space<vmem>>, vector<512x128xbf16>,
    return
  }
  func.func @transform_0(%arg0: i32) -> (i32, i32) {
    %c0_i32 = arith.constant 0 : i32
    %c0_i32_0 = arith.constant 0 : i32
    return %arg0, %c0_i32 : i32, i32
  }
  func.func @transform_1(%arg0: i32) -> (i32, i32) {
    %c0_i32 = arith.constant 0 : i32
    %c0_i32_0 = arith.constant 0 : i32
    %c0_i32_1 = arith.constant 0 : i32
    return %c0_i32, %c0_i32_0 : i32, i32
  }
  func.func @transform_2(%arg0: i32) -> (i32, i32) {
    %c0_i32 = arith.constant 0 : i32
    %c0_i32_0 = arith.constant 0 : i32
    %c0_i32_1 = arith.constant 0 : i32
    return %c0_i32, %c0_i32_0 : i32, i32
  }
  func.func @transform_3(%arg0: i32) -> (i32, i32) {
    %c0_i32 = arith.constant 0 : i32
    %c0_i32_0 = arith.constant 0 : i32
    return %arg0, %c0_i32 : i32, i32
  }
}

module attributes {stable_mosaic.version = 11 : i64} {
  func.func @_matmul_stats_kernel(%arg0: i32, %arg1: memref<512x512xbf16, #tpu.memory_space<vmem>>, %arg2: memref<512x128xbf16, #tpu.memory_space<vmem>>, %arg3: memref<512x128xbf16, #tpu.memory_space<vmem>>, %arg4: memref<8x128xf32, #tpu.memory_space<vmem>>) attributes {dimension_semantics = [#tpu.dimension_semantics<parallel>], iteration_bounds = array<i64: 1>, scalar_prefetch = 0 : i64, scratch_operands = 0 : i64, tpu.core_type = #tpu.core_type<tc>, window_params = [{transform_indices = @transform_0, window_bounds = array<i64: 512, 512>}, {pipeline_mode = #tpu.pipeline_mode<synchronous>, transform_indices = @transform_1, window_bounds = array<i64: 512, 128>}, {transform_indices = @transform_2, window_bounds = array<i64: 512, 128>}, {transform_indices = @transform_3, window_bounds = array<i64: 8, 128>}]} {
    %c0 = arith.constant 0 : index
    %c0_0 = arith.constant 0 : index
    %0 = vector.load %arg1[%c0, %c0_0] : memref<512x512xbf16, #tpu.memory_space<vmem>>, vector<512x512xbf16>
    %c0_1 = arith.constant 0 : index
    %c0_2 = arith.constant 0 : index
    %1 = vector.load %arg2[%c0_1, %c0_2] : memref<512x128xbf16, #tpu.memory_space<vmem>>, vector<512x128xbf16>
    %cst = arith.constant dense<0.000000e+00> : vector<512x128xf32>
    %2 = tpu.matmul %0, %1, %cst {dimension_numbers = #tpu.dot_dimension_numbers<[1], [0], [0], [1], [0, 0, 1, 1], [], []>} : vector<512x512xbf16>, vector<512x128xbf16>, vector<512x128xf32> -> vector<512x128xf32>
    %3 = arith.truncf %2 : vector<512x128xf32> to vector<512x128xbf16>
    %c0_3 = arith.constant 0 : index
    %c0_4 = arith.constant 0 : index
    %4 = vector.load %arg3[%c0_3, %c0_4] : memref<512x128xbf16, #tpu.memory_space<vmem>>, vector<512x128xbf16>
    tpu.vector_store %arg3[%c0_3, %c0_4], %3 {strides = array<i32>} : memref<512x128xbf16, #tpu.memory_space<vmem>>, vector<512x128xbf16>,
    %cst_5 = arith.constant dense<0.000000e+00> : vector<128xf32>
    %5 = vector.multi_reduction <add>, %2, %cst_5 [0] : vector<512x128xf32> to vector<128xf32>
    %6 = vector.shape_cast %5 : vector<128xf32> to vector<1x128xf32>
    %7 = arith.mulf %2, %2 : vector<512x128xf32>
    %cst_6 = arith.constant dense<0.000000e+00> : vector<128xf32>
    %8 = vector.multi_reduction <add>, %7, %cst_6 [0] : vector<512x128xf32> to vector<128xf32>
    %9 = vector.shape_cast %8 : vector<128xf32> to vector<1x128xf32>
    %cst_7 = arith.constant 0.000000e+00 : f32
    %10 = vector.broadcast %cst_7 : f32 to vector<6x128xf32>
    %11 = tpu.concatenate %6, %9, %10 in 0 : vector<1x128xf32>, vector<1x128xf32>, vector<6x128xf32> -> vector<8x128xf32>
    %c0_8 = arith.constant 0 : index
    %c0_9 = arith.constant 0 : index
    %12 = vector.load %arg4[%c0_8, %c0_9] : memref<8x128xf32, #tpu.memory_space<vmem>>, vector<8x128xf32>
    tpu.vector_store %arg4[%c0_8, %c0_9], %11 {strides = array<i32>} : memref<8x128xf32, #tpu.memory_space<vmem>>, vector<8x128xf32>,
    return
  }
  func.func @transform_0(%arg0: i32) -> (i32, i32) {
    %c0_i32 = arith.constant 0 : i32
    %c0_i32_0 = arith.constant 0 : i32
    return %arg0, %c0_i32 : i32, i32
  }
  func.func @transform_1(%arg0: i32) -> (i32, i32) {
    %c0_i32 = arith.constant 0 : i32
    %c0_i32_0 = arith.constant 0 : i32
    %c0_i32_1 = arith.constant 0 : i32
    return %c0_i32, %c0_i32_0 : i32, i32
  }
  func.func @transform_2(%arg0: i32) -> (i32, i32) {
    %c0_i32 = arith.constant 0 : i32
    %c0_i32_0 = arith.constant 0 : i32
    return %arg0, %c0_i32 : i32, i32
  }
  func.func @transform_3(%arg0: i32) -> (i32, i32) {
    %c0_i32 = arith.constant 0 : i32
    %c0_i32_0 = arith.constant 0 : i32
    return %arg0, %c0_i32 : i32, i32
  }
}

module attributes {stable_mosaic.version = 11 : i64} {
  func.func @_scale_shift_relu_kernel(%arg0: i32, %arg1: memref<512x128xbf16, #tpu.memory_space<vmem>>, %arg2: memref<1x128xf32, #tpu.memory_space<vmem>>, %arg3: memref<1x128xf32, #tpu.memory_space<vmem>>, %arg4: memref<512x128xbf16, #tpu.memory_space<vmem>>) attributes {dimension_semantics = [#tpu.dimension_semantics<parallel>], iteration_bounds = array<i64: 4>, scalar_prefetch = 0 : i64, scratch_operands = 0 : i64, tpu.core_type = #tpu.core_type<tc>, window_params = [{transform_indices = @transform_0, window_bounds = array<i64: 512, 128>}, {pipeline_mode = #tpu.pipeline_mode<synchronous>, transform_indices = @transform_1, window_bounds = array<i64: 1, 128>}, {pipeline_mode = #tpu.pipeline_mode<synchronous>, transform_indices = @transform_2, window_bounds = array<i64: 1, 128>}, {transform_indices = @transform_3, window_bounds = array<i64: 512, 128>}]} {
    %c0 = arith.constant 0 : index
    %c0_0 = arith.constant 0 : index
    %0 = vector.load %arg1[%c0, %c0_0] : memref<512x128xbf16, #tpu.memory_space<vmem>>, vector<512x128xbf16>
    %1 = arith.extf %0 : vector<512x128xbf16> to vector<512x128xf32>
    %c0_1 = arith.constant 0 : index
    %c0_2 = arith.constant 0 : index
    %2 = vector.load %arg2[%c0_1, %c0_2] : memref<1x128xf32, #tpu.memory_space<vmem>>, vector<1x128xf32>
    %3 = vector.broadcast %2 : vector<1x128xf32> to vector<512x128xf32>
    %4 = arith.mulf %1, %3 : vector<512x128xf32>
    %c0_3 = arith.constant 0 : index
    %c0_4 = arith.constant 0 : index
    %5 = vector.load %arg3[%c0_3, %c0_4] : memref<1x128xf32, #tpu.memory_space<vmem>>, vector<1x128xf32>
    %6 = vector.broadcast %5 : vector<1x128xf32> to vector<512x128xf32>
    %7 = arith.addf %4, %6 : vector<512x128xf32>
    %cst = arith.constant 0.000000e+00 : f32
    %8 = vector.broadcast %cst : f32 to vector<512x128xf32>
    %9 = arith.maximumf %7, %8 : vector<512x128xf32>
    %10 = arith.truncf %9 : vector<512x128xf32> to vector<512x128xbf16>
    %c0_5 = arith.constant 0 : index
    %c0_6 = arith.constant 0 : index
    %11 = vector.load %arg4[%c0_5, %c0_6] : memref<512x128xbf16, #tpu.memory_space<vmem>>, vector<512x128xbf16>
    tpu.vector_store %arg4[%c0_5, %c0_6], %10 {strides = array<i32>} : memref<512x128xbf16, #tpu.memory_space<vmem>>, vector<512x128xbf16>,
    return
  }
  func.func @transform_0(%arg0: i32) -> (i32, i32) {
    %c0_i32 = arith.constant 0 : i32
    %c0_i32_0 = arith.constant 0 : i32
    return %arg0, %c0_i32 : i32, i32
  }
  func.func @transform_1(%arg0: i32) -> (i32, i32) {
    %c0_i32 = arith.constant 0 : i32
    %c0_i32_0 = arith.constant 0 : i32
    %c0_i32_1 = arith.constant 0 : i32
    return %c0_i32, %c0_i32_0 : i32, i32
  }
  func.func @transform_2(%arg0: i32) -> (i32, i32) {
    %c0_i32 = arith.constant 0 : i32
    %c0_i32_0 = arith.constant 0 : i32
    %c0_i32_1 = arith.constant 0 : i32
    return %c0_i32, %c0_i32_0 : i32, i32
  }
  func.func @transform_3(%arg0: i32) -> (i32, i32) {
    %c0_i32 = arith.constant 0 : i32
    %c0_i32_0 = arith.constant 0 : i32
    return %arg0, %c0_i32 : i32, i32
  }
}

module attributes {stable_mosaic.version = 11 : i64} {
  func.func @_matmul_kernel(%arg0: i32, %arg1: memref<512x512xbf16, #tpu.memory_space<vmem>>, %arg2: memref<512x128xbf16, #tpu.memory_space<vmem>>, %arg3: memref<512x128xbf16, #tpu.memory_space<vmem>>) attributes {dimension_semantics = [#tpu.dimension_semantics<parallel>], iteration_bounds = array<i64: 4>, scalar_prefetch = 0 : i64, scratch_operands = 0 : i64, tpu.core_type = #tpu.core_type<tc>, window_params = [{transform_indices = @transform_0, window_bounds = array<i64: 512, 512>}, {pipeline_mode = #tpu.pipeline_mode<synchronous>, transform_indices = @transform_1, window_bounds = array<i64: 512, 128>}, {transform_indices = @transform_2, window_bounds = array<i64: 512, 128>}]} {
    %c0 = arith.constant 0 : index
    %c0_0 = arith.constant 0 : index
    %0 = vector.load %arg1[%c0, %c0_0] : memref<512x512xbf16, #tpu.memory_space<vmem>>, vector<512x512xbf16>
    %c0_1 = arith.constant 0 : index
    %c0_2 = arith.constant 0 : index
    %1 = vector.load %arg2[%c0_1, %c0_2] : memref<512x128xbf16, #tpu.memory_space<vmem>>, vector<512x128xbf16>
    %cst = arith.constant dense<0.000000e+00> : vector<512x128xf32>
    %2 = tpu.matmul %0, %1, %cst {dimension_numbers = #tpu.dot_dimension_numbers<[1], [0], [0], [1], [0, 0, 1, 1], [], []>} : vector<512x512xbf16>, vector<512x128xbf16>, vector<512x128xf32> -> vector<512x128xf32>
    %3 = math.tanh %2 : vector<512x128xf32>
    %4 = arith.truncf %3 : vector<512x128xf32> to vector<512x128xbf16>
    %c0_3 = arith.constant 0 : index
    %c0_4 = arith.constant 0 : index
    %5 = vector.load %arg3[%c0_3, %c0_4] : memref<512x128xbf16, #tpu.memory_space<vmem>>, vector<512x128xbf16>
    tpu.vector_store %arg3[%c0_3, %c0_4], %4 {strides = array<i32>} : memref<512x128xbf16, #tpu.memory_space<vmem>>, vector<512x128xbf16>,
    return
  }
  func.func @transform_0(%arg0: i32) -> (i32, i32) {
    %c0_i32 = arith.constant 0 : i32
    %c0_i32_0 = arith.constant 0 : i32
    return %arg0, %c0_i32 : i32, i32
  }
  func.func @transform_1(%arg0: i32) -> (i32, i32) {
    %c0_i32 = arith.constant 0 : i32
    %c0_i32_0 = arith.constant 0 : i32
    %c0_i32_1 = arith.constant 0 : i32
    return %c0_i32, %c0_i32_0 : i32, i32
  }
  func.func @transform_2(%arg0: i32) -> (i32, i32) {
    %c0_i32 = arith.constant 0 : i32
    %c0_i32_0 = arith.constant 0 : i32
    return %arg0, %c0_i32 : i32, i32
  }
}

</mosaic_0001>

<bundles_post_ra>
// kernel: generator_forward.22
= control target key start
LH: loop header
LB: loop body
LE: loop exit
PB: predicated region body
PF: predicated region fallthrough
CT: control target
= control target key end

     0   :  { %s114_s0 = inlined_call_operand.vmem [shape: bf16[32,128], index: 0, kind: input, shape index: {}]   ;;  %s115_s1 = inlined_call_operand.vmem [shape: f32[1,128], index: 1, kind: input, shape index: {}]   ;;  %s116_s2 = inlined_call_operand.vmem [shape: f32[1,128], index: 2, kind: input, shape index: {}]   ;;  %s117_s3 = inlined_call_operand.vmem [shape: bf16[32,128], index: 3, kind: output, shape index: {}]  }
   0x1   :  { %v55_v0 = vld [vmem:[%s114_s0] sm:$0xff]   ;;  %v72_v5 = vld [vmem:[%s114_s0 + $0x8] sm:$0xff]  }
   0x2   :  { %v74_v1 = vld [vmem:[%s115_s1] ss:$0 sm:$0xff]  ;;  %v56_v2 = vunpack.c.l.bf16 %v55_v0  ;;  %v57_v3 = vunpack.c.h.bf16 %v55_v0  ;;  %v60_v6 = vunpack.c.l.bf16 %v72_v5  ;;  %v61_v7 = vunpack.c.h.bf16 %v72_v5 }
   0x3   :  { %v75_v4 = vld [vmem:[%s116_s2] ss:$0 sm:$0xff] }
   0x4   :  { %v26_v8 = vmul.f32 %v74_v1, %v56_v2  ;;  %v27_v9 = vmul.f32 %v74_v1, %v57_v3  ;;  %v28_v10 = vmul.f32 %v74_v1, %v60_v6  ;;  %v29_v11 = vmul.f32 %v74_v1, %v61_v7 }
   0x6   :  { %v34_v12 = vadd.f32 %v75_v4, %v26_v8  ;;  %v35_v13 = vadd.f32 %v75_v4, %v27_v9  ;;  %v36_v14 = vadd.f32 %v75_v4, %v28_v10  ;;  %v37_v15 = vadd.f32 %v75_v4, %v29_v11 }
   0x8   :  { %v38_v16 = vmax.f32 %v34_v12, 0.0  ;;  %v39_v17 = vmax.f32 %v35_v13, 0.0  ;;  %v40_v18 = vmax.f32 %v36_v14, 0.0  ;;  %v41_v19 = vmax.f32 %v37_v15, 0.0 }
   0xa   :  { %v65_v20 = vpack.c.bf16 %v39_v17, %v38_v16  ;;  %v70_v21 = vpack.c.bf16 %v41_v19, %v40_v18 }
   0xc   :  { %66 = vst [vmem:[%s117_s3] sm:$0xff] %v65_v20  }
   0xd   :  { %73 = vst [vmem:[%s117_s3 + $0x8] sm:$0xff] %v70_v21  }

// kernel: generator_forward.21
= control target key start
LH: loop header
LB: loop body
LE: loop exit
PB: predicated region body
PF: predicated region fallthrough
CT: control target
= control target key end

     0   :  { %vm1214_vm0 = vcmask 1040384   ;;  %vm1231_vm1 = vcmask 1041408   ;;  %s2825_s1 = inlined_call_operand.vmem [shape: bf16[128,2048], index: 1, kind: input, shape index: {}]   ;;  %s2826_s0 = inlined_call_operand.vmem [shape: bf16[8,128], index: 0, kind: input, shape index: {}]   ;;  %s2827_s2 = inlined_call_operand.vmem [shape: bf16[8,2048], index: 2, kind: output, shape index: {0}]   ;;  %s2828_s3 = inlined_call_operand.vmem [shape: f32[8,2048], index: 3, kind: output, shape index: {1}]  }
   0x1   :  { %v1722_v0 = vld [vmem:[%s2825_s1 + $0x380] sm:$0xf]  ;;  %v1896_v2 = vld [vmem:[%s2825_s1 + $0x384] sm:$0xf]  ;;  %v1730_v5 = vld [vmem:[%s2825_s1 + $0x388] sm:$0xf] }
   0x2   :  { %v1904_v1 = vld [vmem:[%s2825_s1 + $0x3bc] sm:$0xf0]  ;;  %v1724_v4 = vld [vmem:[%s2825_s1 + $0x3c0] sm:$0xf0]  ;;  %v1905_v6 = vld [vmem:[%s2825_s1 + $0x3c4] sm:$0xf0] }
   0x3   :  { %v1723_v3 = vor.u32 %v1904_v1, %v1722_v0  ;;  %v1727_v7 = vor.u32 %v1896_v2, %v1724_v4  ;;  %v1731_v8 = vor.u32 %v1905_v6, %v1730_v5  ;;  %v1897_v9 = vld [vmem:[%s2825_s1 + $0x38c] sm:$0xf]  ;;  %v1658_v11 = vld [vmem:[%s2825_s1 + $0x300] sm:$0xf]  ;;  %v1880_v14 = vld [vmem:[%s2825_s1 + $0x304] sm:$0xf] }
   0x4   :  { %v1732_v10 = vld [vmem:[%s2825_s1 + $0x3c8] sm:$0xf0]  ;;  %v1888_v13 = vld [vmem:[%s2825_s1 + $0x33c] sm:$0xf0]  ;;  %v1660_v15 = vld [vmem:[%s2825_s1 + $0x340] sm:$0xf0] }
   0x5   :  { %782 = vmatpush.bf16.msra.mxu0 %v1723_v3  ;;  %v1735_v12 = vor.u32 %v1897_v9, %v1732_v10  ;;  %795 = vmatpush.bf16.msra.mxu1 %v1727_v7  ;;  %v1659_v16 = vor.u32 %v1888_v13, %v1658_v11  ;;  %v1663_v17 = vor.u32 %v1880_v14, %v1660_v15  ;;  %v1666_v18 = vld [vmem:[%s2825_s1 + $0x308] sm:$0xf]  ;;  %v1881_v20 = vld [vmem:[%s2825_s1 + $0x30c] sm:$0xf]  ;;  %v1594_v23 = vld [vmem:[%s2825_s1 + $0x280] sm:$0xf] }
   0x6   :  { %808 = vmatpush.bf16.msra.mxu2 %v1731_v8  ;;  %v1889_v19 = vld [vmem:[%s2825_s1 + $0x344] sm:$0xf0]  ;;  %v1668_v22 = vld [vmem:[%s2825_s1 + $0x348] sm:$0xf0]  ;;  %v1872_v24 = vld [vmem:[%s2825_s1 + $0x2bc] sm:$0xf0] }
   0x7   :  { %821 = vmatpush.bf16.msra.mxu3 %v1735_v12  ;;  %v1667_v21 = vor.u32 %v1889_v19, %v1666_v18  ;;  %v1671_v25 = vor.u32 %v1881_v20, %v1668_v22  ;;  %v1864_v26 = vld [vmem:[%s2825_s1 + $0x284] sm:$0xf]  ;;  %v1602_v28 = vld [vmem:[%s2825_s1 + $0x288] sm:$0xf]  ;;  %v1595_v29 = vor.u32 %v1872_v24, %v1594_v23  ;;  %v1865_v31 = vld [vmem:[%s2825_s1 + $0x28c] sm:$0xf] }
   0x8   :  { %v1596_v27 = vld [vmem:[%s2825_s1 + $0x2c0] sm:$0xf0]  ;;  %v1873_v30 = vld [vmem:[%s2825_s1 + $0x2c4] sm:$0xf0]  ;;  %v1604_v32 = vld [vmem:[%s2825_s1 + $0x2c8] sm:$0xf0] }
   0x9   :  { %783 = vmatpush.bf16.msra.mxu0 %v1659_v16  ;;  %796 = vmatpush.bf16.msra.mxu1 %v1663_v17  ;;  %v1599_v33 = vor.u32 %v1864_v26, %v1596_v27  ;;  %v1603_v34 = vor.u32 %v1873_v30, %v1602_v28  ;;  %v1530_v35 = vld [vmem:[%s2825_s1 + $0x200] sm:$0xf]  ;;  %v1848_v37 = vld [vmem:[%s2825_s1 + $0x204] sm:$0xf]  ;;  %v1607_v38 = vor.u32 %v1865_v31, %v1604_v32  ;;  %v1538_v40 = vld [vmem:[%s2825_s1 + $0x208] sm:$0xf] }
   0xa   :  { %809 = vmatpush.bf16.msra.mxu2 %v1667_v21  ;;  %v1856_v36 = vld [vmem:[%s2825_s1 + $0x23c] sm:$0xf0]  ;;  %v1532_v39 = vld [vmem:[%s2825_s1 + $0x240] sm:$0xf0]  ;;  %v1857_v41 = vld [vmem:[%s2825_s1 + $0x244] sm:$0xf0] }
   0xb   :  { %822 = vmatpush.bf16.msra.mxu3 %v1671_v25  ;;  %v1849_v42 = vld [vmem:[%s2825_s1 + $0x20c] sm:$0xf]  ;;  %v1531_v44 = vor.u32 %v1856_v36, %v1530_v35  ;;  %v1535_v45 = vor.u32 %v1848_v37, %v1532_v39  ;;  %v1539_v46 = vor.u32 %v1857_v41, %v1538_v40  ;;  %v1466_v47 = vld [vmem:[%s2825_s1 + $0x180] sm:$0xf]  ;;  %v1832_v49 = vld [vmem:[%s2825_s1 + $0x184] sm:$0xf] }
   0xc   :  { %v1540_v43 = vld [vmem:[%s2825_s1 + $0x248] sm:$0xf0]  ;;  %v1840_v48 = vld [vmem:[%s2825_s1 + $0x1bc] sm:$0xf0]  ;;  %v1468_v51 = vld [vmem:[%s2825_s1 + $0x1c0] sm:$0xf0] }
   0xd   :  { %784 = vmatpush.bf16.msra.mxu0 %v1595_v29  ;;  %797 = vmatpush.bf16.msra.mxu1 %v1599_v33  ;;  %v1543_v50 = vor.u32 %v1849_v42, %v1540_v43  ;;  %v1474_v52 = vld [vmem:[%s2825_s1 + $0x188] sm:$0xf]  ;;  %v1833_v54 = vld [vmem:[%s2825_s1 + $0x18c] sm:$0xf]  ;;  %v1467_v56 = vor.u32 %v1840_v48, %v1466_v47  ;;  %v1471_v57 = vor.u32 %v1832_v49, %v1468_v51  ;;  %v1402_v59 = vld [vmem:[%s2825_s1 + $0x100] sm:$0xf] }
   0xe   :  { %810 = vmatpush.bf16.msra.mxu2 %v1603_v34  ;;  %v1841_v53 = vld [vmem:[%s2825_s1 + $0x1c4] sm:$0xf0]  ;;  %v1476_v55 = vld [vmem:[%s2825_s1 + $0x1c8] sm:$0xf0]  ;;  %v1824_v60 = vld [vmem:[%s2825_s1 + $0x13c] sm:$0xf0] }
   0xf   :  { %823 = vmatpush.bf16.msra.mxu3 %v1607_v38  ;;  %v1475_v58 = vor.u32 %v1841_v53, %v1474_v52  ;;  %v1816_v61 = vld [vmem:[%s2825_s1 + $0x104] sm:$0xf]  ;;  %v1479_v62 = vor.u32 %v1833_v54, %v1476_v55  ;;  %v1410_v0 = vld [vmem:[%s2825_s1 + $0x108] sm:$0xf]  ;;  %v1817_v2 = vld [vmem:[%s2825_s1 + $0x10c] sm:$0xf]  ;;  %v1403_v4 = vor.u32 %v1824_v60, %v1402_v59 }
  0x10   :  { %v1404_v63 = vld [vmem:[%s2825_s1 + $0x140] sm:$0xf0]  ;;  %v1825_v1 = vld [vmem:[%s2825_s1 + $0x144] sm:$0xf0]  ;;  %v1412_v3 = vld [vmem:[%s2825_s1 + $0x148] sm:$0xf0] }
  0x11   :  { %785 = vmatpush.bf16.msra.mxu0 %v1531_v44  ;;  %798 = vmatpush.bf16.msra.mxu1 %v1535_v45  ;;  %v1407_v5 = vor.u32 %v1816_v61, %v1404_v63  ;;  %v1411_v6 = vor.u32 %v1825_v1, %v1410_v0  ;;  %v1338_v7 = vld [vmem:[%s2825_s1 + $0x80] sm:$0xf]  ;;  %v1800_v9 = vld [vmem:[%s2825_s1 + $0x84] sm:$0xf]  ;;  %v1415_v10 = vor.u32 %v1817_v2, %v1412_v3  ;;  %v1346_v12 = vld [vmem:[%s2825_s1 + $0x88] sm:$0xf] }
  0x12   :  { %811 = vmatpush.bf16.msra.mxu2 %v1539_v46  ;;  %v1808_v8 = vld [vmem:[%s2825_s1 + $0xbc] sm:$0xf0]  ;;  %v1340_v11 = vld [vmem:[%s2825_s1 + $0xc0] sm:$0xf0]  ;;  %v1809_v13 = vld [vmem:[%s2825_s1 + $0xc4] sm:$0xf0] }
  0x13   :  { %824 = vmatpush.bf16.msra.mxu3 %v1543_v50  ;;  %v1801_v14 = vld [vmem:[%s2825_s1 + $0x8c] sm:$0xf]  ;;  %v1339_v16 = vor.u32 %v1808_v8, %v1338_v7  ;;  %v1274_v17 = vld [vmem:[%s2825_s1] sm:$0xf]  ;;  %v1343_v19 = vor.u32 %v1800_v9, %v1340_v11  ;;  %v1347_v20 = vor.u32 %v1809_v13, %v1346_v12  ;;  %v1784_v21 = vld [vmem:[%s2825_s1 + $0x4] sm:$0xf] }
  0x14   :  { %v1348_v15 = vld [vmem:[%s2825_s1 + $0xc8] sm:$0xf0]  ;;  %v1792_v18 = vld [vmem:[%s2825_s1 + $0x3c] sm:$0xf0]  ;;  %v1276_v22 = vld [vmem:[%s2825_s1 + $0x40] sm:$0xf0] }
  0x15   :  { %786 = vmatpush.bf16.msra.mxu0 %v1467_v56  ;;  %799 = vmatpush.bf16.msra.mxu1 %v1471_v57  ;;  %v1282_v23 = vld [vmem:[%s2825_s1 + $0x8] sm:$0xf]  ;;  %v1351_v24 = vor.u32 %v1801_v14, %v1348_v15  ;;  %v1785_v26 = vld [vmem:[%s2825_s1 + $0xc] sm:$0xf]  ;;  %v1738_v28 = vld [vmem:[%s2825_s1 + $0x390] sm:$0xf]  ;;  %v1275_v31 = vor.u32 %v1792_v18, %v1274_v17  ;;  %v1279_v35 = vor.u32 %v1784_v21, %v1276_v22 }
  0x16   :  { %812 = vmatpush.bf16.msra.mxu2 %v1475_v58  ;;  %v1793_v25 = vld [vmem:[%s2825_s1 + $0x44] sm:$0xf0]  ;;  %v1284_v27 = vld [vmem:[%s2825_s1 + $0x48] sm:$0xf0]  ;;  %v1906_v29 = vld [vmem:[%s2825_s1 + $0x3cc] sm:$0xf0] }
  0x17   :  { %825 = vmatpush.bf16.msra.mxu3 %v1479_v62  ;;  %v1898_v30 = vld [vmem:[%s2825_s1 + $0x394] sm:$0xf]  ;;  %v1746_v33 = vld [vmem:[%s2825_s1 + $0x398] sm:$0xf]  ;;  %v1283_v36 = vor.u32 %v1793_v25, %v1282_v23  ;;  %v1899_v37 = vld [vmem:[%s2825_s1 + $0x39c] sm:$0xf]  ;;  %v1287_v39 = vor.u32 %v1785_v26, %v1284_v27  ;;  %v1739_v40 = vor.u32 %v1906_v29, %v1738_v28 }
  0x18   :  { %v1740_v32 = vld [vmem:[%s2825_s1 + $0x3d0] sm:$0xf0]  ;;  %v1907_v34 = vld [vmem:[%s2825_s1 + $0x3d4] sm:$0xf0]  ;;  %v1748_v38 = vld [vmem:[%s2825_s1 + $0x3d8] sm:$0xf0] }
  0x19   :  { %787 = vmatpush.bf16.msra.mxu0 %v1403_v4  ;;  %800 = vmatpush.bf16.msra.mxu1 %v1407_v5  ;;  %v1743_v41 = vor.u32 %v1898_v30, %v1740_v32  ;;  %v1747_v42 = vor.u32 %v1907_v34, %v1746_v33  ;;  %v1674_v43 = vld [vmem:[%s2825_s1 + $0x310] sm:$0xf]  ;;  %v1882_v45 = vld [vmem:[%s2825_s1 + $0x314] sm:$0xf]  ;;  %v1751_v46 = vor.u32 %v1899_v37, %v1748_v38  ;;  %v1682_v48 = vld [vmem:[%s2825_s1 + $0x318] sm:$0xf] }
  0x1a   :  { %813 = vmatpush.bf16.msra.mxu2 %v1411_v6  ;;  %v1890_v44 = vld [vmem:[%s2825_s1 + $0x34c] sm:$0xf0]  ;;  %v1676_v47 = vld [vmem:[%s2825_s1 + $0x350] sm:$0xf0]  ;;  %v1891_v49 = vld [vmem:[%s2825_s1 + $0x354] sm:$0xf0] }
  0x1b   :  { %826 = vmatpush.bf16.msra.mxu3 %v1415_v10  ;;  %v1883_v50 = vld [vmem:[%s2825_s1 + $0x31c] sm:$0xf]  ;;  %v1675_v52 = vor.u32 %v1890_v44, %v1674_v43  ;;  %v1679_v53 = vor.u32 %v1882_v45, %v1676_v47  ;;  %v1683_v54 = vor.u32 %v1891_v49, %v1682_v48  ;;  %v1610_v55 = vld [vmem:[%s2825_s1 + $0x290] sm:$0xf]  ;;  %v1866_v57 = vld [vmem:[%s2825_s1 + $0x294] sm:$0xf] }
  0x1c   :  { %v1684_v51 = vld [vmem:[%s2825_s1 + $0x358] sm:$0xf0]  ;;  %v1874_v56 = vld [vmem:[%s2825_s1 + $0x2cc] sm:$0xf0]  ;;  %v1612_v59 = vld [vmem:[%s2825_s1 + $0x2d0] sm:$0xf0] }
  0x1d   :  { %788 = vmatpush.bf16.msra.mxu0 %v1339_v16  ;;  %801 = vmatpush.bf16.msra.mxu1 %v1343_v19  ;;  %v1687_v58 = vor.u32 %v1883_v50, %v1684_v51  ;;  %v1618_v60 = vld [vmem:[%s2825_s1 + $0x298] sm:$0xf]  ;;  %v1867_v62 = vld [vmem:[%s2825_s1 + $0x29c] sm:$0xf]  ;;  %v1611_v0 = vor.u32 %v1874_v56, %v1610_v55  ;;  %v2199_v1 = vld [vmem:[%s2826_s0] sm:$0xf]  ;;  %v1615_v2 = vor.u32 %v1866_v57, %v1612_v59 }
  0x1e   :  { %814 = vmatpush.bf16.msra.mxu2 %v1347_v20  ;;  %v1875_v61 = vld [vmem:[%s2825_s1 + $0x2d4] sm:$0xf0]  ;;  %v1620_v63 = vld [vmem:[%s2825_s1 + $0x2d8] sm:$0xf0]  ;;  %v1546_v4 = vld [vmem:[%s2825_s1 + $0x210] sm:$0xf] }
  0x1f   :  { %827 = vmatpush.bf16.msra.mxu3 %v1351_v24  ;;  %v1619_v3 = vor.u32 %v1875_v61, %v1618_v60  ;;  %v1858_v5 = vld [vmem:[%s2825_s1 + $0x24c] sm:$0xf0]  ;;  %v1850_v6 = vld [vmem:[%s2825_s1 + $0x214] sm:$0xf]  ;;  %v1623_v7 = vor.u32 %v1867_v62, %v1620_v63  ;;  %v1554_v9 = vld [vmem:[%s2825_s1 + $0x218] sm:$0xf] }
  0x20   :  { %v1548_v8 = vld [vmem:[%s2825_s1 + $0x250] sm:$0xf0]  ;;  %v1859_v10 = vld [vmem:[%s2825_s1 + $0x254] sm:$0xf0]  ;;  %v1851_v11 = vld [vmem:[%s2825_s1 + $0x21c] sm:$0xf]  ;;  %v1547_v13 = vor.u32 %v1858_v5, %v1546_v4 }
  0x21   :  { %789 = vmatpush.bf16.msra.mxu0 %v1275_v31  ;;  %802 = vmatpush.bf16.msra.mxu1 %v1279_v35  ;;  %v1556_v12 = vld [vmem:[%s2825_s1 + $0x258] sm:$0xf0]  ;;  %v1551_v14 = vor.u32 %v1850_v6, %v1548_v8  ;;  %v1555_v15 = vor.u32 %v1859_v10, %v1554_v9  ;;  %v1482_v16 = vld [vmem:[%s2825_s1 + $0x190] sm:$0xf]  ;;  %v1834_v18 = vld [vmem:[%s2825_s1 + $0x194] sm:$0xf] }
  0x22   :  { %815 = vmatpush.bf16.msra.mxu2 %v1283_v36  ;;  %v1842_v17 = vld [vmem:[%s2825_s1 + $0x1cc] sm:$0xf0]  ;;  %v1559_v19 = vor.u32 %v1851_v11, %v1556_v12  ;;  %v1484_v20 = vld [vmem:[%s2825_s1 + $0x1d0] sm:$0xf0]  ;;  %v1490_v21 = vld [vmem:[%s2825_s1 + $0x198] sm:$0xf] }
  0x23   :  { %828 = vmatpush.bf16.msra.mxu3 %v1287_v39  ;;  %v1843_v22 = vld [vmem:[%s2825_s1 + $0x1d4] sm:$0xf0]  ;;  %v1835_v23 = vld [vmem:[%s2825_s1 + $0x19c] sm:$0xf]  ;;  %v1483_v25 = vor.u32 %v1842_v17, %v1482_v16  ;;  %v1487_v26 = vor.u32 %v1834_v18, %v1484_v20  ;;  %v1418_v28 = vld [vmem:[%s2825_s1 + $0x110] sm:$0xf] }
  0x24   :  { %790 = vmatmul.bf16.vlgmr.msra.gmra.mxu0 %v2199_v1  ;;  %803 = vmatmul.bf16.vlgmr.msra.gmra.mxu1 %v2199_v1  ;;  %v1492_v24 = vld [vmem:[%s2825_s1 + $0x1d8] sm:$0xf0]  ;;  %v1491_v27 = vor.u32 %v1843_v22, %v1490_v21  ;;  %v1826_v29 = vld [vmem:[%s2825_s1 + $0x14c] sm:$0xf0]  ;;  %v1818_v30 = vld [vmem:[%s2825_s1 + $0x114] sm:$0xf] }
  0x25   :  { %834 = vmatpush.bf16.msrb.mxu0 %v1739_v40  ;;  %847 = vmatpush.bf16.msrb.mxu1 %v1743_v41  ;;  %v1495_v31 = vor.u32 %v1835_v23, %v1492_v24  ;;  %v1420_v32 = vld [vmem:[%s2825_s1 + $0x150] sm:$0xf0]  ;;  %v1426_v33 = vld [vmem:[%s2825_s1 + $0x118] sm:$0xf]  ;;  %v1819_v35 = vld [vmem:[%s2825_s1 + $0x11c] sm:$0xf]  ;;  %v1419_v37 = vor.u32 %v1826_v29, %v1418_v28 }
  0x26   :  { %860 = vmatpush.bf16.msrb.mxu2 %v1747_v42  ;;  %829 = vmatmul.bf16.vlgmr.msra.gmra.mxu3 %v2199_v1  ;;  %v1827_v34 = vld [vmem:[%s2825_s1 + $0x154] sm:$0xf0]  ;;  %v1428_v36 = vld [vmem:[%s2825_s1 + $0x158] sm:$0xf0]  ;;  %v1423_v38 = vor.u32 %v1818_v30, %v1420_v32  ;;  %v1354_v40 = vld [vmem:[%s2825_s1 + $0x90] sm:$0xf] }
  0x27   :  { %873 = vmatpush.bf16.msrb.mxu3 %v1751_v46  ;;  %816 = vmatmul.bf16.vlgmr.msra.gmra.mxu2 %v2199_v1  ;;  %v1427_v39 = vor.u32 %v1827_v34, %v1426_v33  ;;  %v1810_v41 = vld [vmem:[%s2825_s1 + $0xcc] sm:$0xf0]  ;;  %v1802_v42 = vld [vmem:[%s2825_s1 + $0x94] sm:$0xf]  ;;  %v1431_v43 = vor.u32 %v1819_v35, %v1428_v36  ;;  %v1362_v45 = vld [vmem:[%s2825_s1 + $0x98] sm:$0xf] }
  0x28   :  { %v1356_v44 = vld [vmem:[%s2825_s1 + $0xd0] sm:$0xf0]  ;;  %v1811_v46 = vld [vmem:[%s2825_s1 + $0xd4] sm:$0xf0]  ;;  %v1803_v47 = vld [vmem:[%s2825_s1 + $0x9c] sm:$0xf]  ;;  %v1355_v49 = vor.u32 %v1810_v41, %v1354_v40 }
  0x29   :  { %835 = vmatpush.bf16.msrb.mxu0 %v1675_v52  ;;  %848 = vmatpush.bf16.msrb.mxu1 %v1679_v53  ;;  %v1364_v48 = vld [vmem:[%s2825_s1 + $0xd8] sm:$0xf0]  ;;  %v1290_v50 = vld [vmem:[%s2825_s1 + $0x10] sm:$0xf]  ;;  %v1359_v52 = vor.u32 %v1802_v42, %v1356_v44  ;;  %v1363_v53 = vor.u32 %v1811_v46, %v1362_v45  ;;  %v1292_v55 = vld [vmem:[%s2825_s1 + $0x50] sm:$0xf0] }
  0x2a   :  { %861 = vmatpush.bf16.msrb.mxu2 %v1683_v54  ;;  %v1794_v51 = vld [vmem:[%s2825_s1 + $0x4c] sm:$0xf0]  ;;  %v1786_v54 = vld [vmem:[%s2825_s1 + $0x14] sm:$0xf]  ;;  %v1298_v56 = vld [vmem:[%s2825_s1 + $0x18] sm:$0xf]  ;;  %v1367_v57 = vor.u32 %v1803_v47, %v1364_v48 }
  0x2b   :  { %874 = vmatpush.bf16.msrb.mxu3 %v1687_v58  ;;  %v1795_v58 = vld [vmem:[%s2825_s1 + $0x54] sm:$0xf0]  ;;  %v1787_v59 = vld [vmem:[%s2825_s1 + $0x1c] sm:$0xf]  ;;  %v1754_v61 = vld [vmem:[%s2825_s1 + $0x3a0] sm:$0xf]  ;;  %v1295_v5 = vor.u32 %v1786_v54, %v1292_v55 }
  0x2c   :  { %v1300_v60 = vld [vmem:[%s2825_s1 + $0x58] sm:$0xf0]  ;;  %v1908_v62 = vld [vmem:[%s2825_s1 + $0x3dc] sm:$0xf0]  ;;  %v1900_v63 = vld [vmem:[%s2825_s1 + $0x3a4] sm:$0xf]  ;;  %v1299_v6 = vor.u32 %v1795_v58, %v1298_v56 }
  0x2d   :  { %836 = vmatpush.bf16.msrb.mxu0 %v1611_v0  ;;  %849 = vmatpush.bf16.msrb.mxu1 %v1615_v2  ;;  %v1291_v0 = vor.u32 %v1794_v51, %v1290_v50  ;;  %v1756_v2 = vld [vmem:[%s2825_s1 + $0x3e0] sm:$0xf0]  ;;  %v1909_v4 = vld [vmem:[%s2825_s1 + $0x3e4] sm:$0xf0]  ;;  %v1764_v8 = vld [vmem:[%s2825_s1 + $0x3e8] sm:$0xf0]  ;;  %v1303_v9 = vor.u32 %v1787_v59, %v1300_v60  ;;  %v1755_v10 = vor.u32 %v1908_v62, %v1754_v61 }
  0x2e   :  { %862 = vmatpush.bf16.msrb.mxu2 %v1619_v3  ;;  %v1762_v3 = vld [vmem:[%s2825_s1 + $0x3a8] sm:$0xf]  ;;  %v1759_v11 = vor.u32 %v1900_v63, %v1756_v2  ;;  %v1692_v17 = vld [vmem:[%s2825_s1 + $0x360] sm:$0xf0]  ;;  %v1885_v20 = vld [vmem:[%s2825_s1 + $0x32c] sm:$0xf] }
  0x2f   :  { %875 = vmatpush.bf16.msrb.mxu3 %v1623_v7  ;;  %v1901_v7 = vld [vmem:[%s2825_s1 + $0x3ac] sm:$0xf]  ;;  %v1763_v12 = vor.u32 %v1909_v4, %v1762_v3  ;;  %v1698_v18 = vld [vmem:[%s2825_s1 + $0x328] sm:$0xf]  ;;  %v1628_v29 = vld [vmem:[%s2825_s1 + $0x2e0] sm:$0xf0] }
  0x30   :  { %v1767_v16 = vor.u32 %v1901_v7, %v1764_v8  ;;  %v1700_v21 = vld [vmem:[%s2825_s1 + $0x368] sm:$0xf0]  ;;  %v1634_v30 = vld [vmem:[%s2825_s1 + $0x2a8] sm:$0xf]  ;;  %v1564_v41 = vld [vmem:[%s2825_s1 + $0x260] sm:$0xf0] }
  0x31   :  { %837 = vmatpush.bf16.msrb.mxu0 %v1547_v13  ;;  %850 = vmatpush.bf16.msrb.mxu1 %v1551_v14  ;;  %v1690_v13 = vld [vmem:[%s2825_s1 + $0x320] sm:$0xf]  ;;  %v1703_v28 = vor.u32 %v1885_v20, %v1700_v21  ;;  %v1869_v32 = vld [vmem:[%s2825_s1 + $0x2ac] sm:$0xf]  ;;  %v1570_v42 = vld [vmem:[%s2825_s1 + $0x228] sm:$0xf] }
  0x32   :  { %863 = vmatpush.bf16.msrb.mxu2 %v1555_v15  ;;  %v1892_v14 = vld [vmem:[%s2825_s1 + $0x35c] sm:$0xf0]  ;;  %v1884_v15 = vld [vmem:[%s2825_s1 + $0x324] sm:$0xf]  ;;  %v1636_v33 = vld [vmem:[%s2825_s1 + $0x2e8] sm:$0xf0] }
  0x33   :  { %876 = vmatpush.bf16.msrb.mxu3 %v1559_v19  ;;  %v1893_v19 = vld [vmem:[%s2825_s1 + $0x364] sm:$0xf0]  ;;  %v1691_v22 = vor.u32 %v1892_v14, %v1690_v13  ;;  %v1695_v23 = vor.u32 %v1884_v15, %v1692_v17  ;;  %v1639_v40 = vor.u32 %v1869_v32, %v1636_v33  ;;  %v1853_v44 = vld [vmem:[%s2825_s1 + $0x22c] sm:$0xf]  ;;  %v1844_v50 = vld [vmem:[%s2825_s1 + $0x1dc] sm:$0xf0] }
  0x34   :  { %v1699_v24 = vor.u32 %v1893_v19, %v1698_v18  ;;  %v1572_v45 = vld [vmem:[%s2825_s1 + $0x268] sm:$0xf0]  ;;  %v1836_v51 = vld [vmem:[%s2825_s1 + $0x1a4] sm:$0xf]  ;;  %v1506_v54 = vld [vmem:[%s2825_s1 + $0x1a8] sm:$0xf] }
  0x35   :  { %838 = vmatpush.bf16.msrb.mxu0 %v1483_v25  ;;  %851 = vmatpush.bf16.msrb.mxu1 %v1487_v26  ;;  %v1626_v25 = vld [vmem:[%s2825_s1 + $0x2a0] sm:$0xf]  ;;  %v1845_v55 = vld [vmem:[%s2825_s1 + $0x1e4] sm:$0xf0]  ;;  %v1837_v56 = vld [vmem:[%s2825_s1 + $0x1ac] sm:$0xf] }
  0x36   :  { %864 = vmatpush.bf16.msrb.mxu2 %v1491_v27  ;;  %v1876_v26 = vld [vmem:[%s2825_s1 + $0x2dc] sm:$0xf0]  ;;  %v1868_v27 = vld [vmem:[%s2825_s1 + $0x2a4] sm:$0xf]  ;;  %v1507_v60 = vor.u32 %v1845_v55, %v1506_v54  ;;  %v1442_v3 = vld [vmem:[%s2825_s1 + $0x128] sm:$0xf] }
  0x37   :  { %877 = vmatpush.bf16.msrb.mxu3 %v1495_v31  ;;  %v1877_v31 = vld [vmem:[%s2825_s1 + $0x2e4] sm:$0xf0]  ;;  %v1627_v34 = vor.u32 %v1876_v26, %v1626_v25  ;;  %v1631_v35 = vor.u32 %v1868_v27, %v1628_v29  ;;  %v1434_v61 = vld [vmem:[%s2825_s1 + $0x120] sm:$0xf]  ;;  %v1820_v63 = vld [vmem:[%s2825_s1 + $0x124] sm:$0xf] }
  0x38   :  { %v1635_v36 = vor.u32 %v1877_v31, %v1634_v30  ;;  %v1828_v62 = vld [vmem:[%s2825_s1 + $0x15c] sm:$0xf0]  ;;  %v1436_v2 = vld [vmem:[%s2825_s1 + $0x160] sm:$0xf0]  ;;  %v1829_v4 = vld [vmem:[%s2825_s1 + $0x164] sm:$0xf0] }
  0x39   :  { %839 = vmatpush.bf16.msrb.mxu0 %v1419_v37  ;;  %852 = vmatpush.bf16.msrb.mxu1 %v1423_v38  ;;  %v1562_v37 = vld [vmem:[%s2825_s1 + $0x220] sm:$0xf]  ;;  %v1435_v7 = vor.u32 %v1828_v62, %v1434_v61  ;;  %v1439_v8 = vor.u32 %v1820_v63, %v1436_v2  ;;  %v1372_v14 = vld [vmem:[%s2825_s1 + $0xe0] sm:$0xf0]  ;;  %v1378_v15 = vld [vmem:[%s2825_s1 + $0xa8] sm:$0xf] }
  0x3a   :  { %865 = vmatpush.bf16.msrb.mxu2 %v1427_v39  ;;  %v1860_v38 = vld [vmem:[%s2825_s1 + $0x25c] sm:$0xf0]  ;;  %v1852_v39 = vld [vmem:[%s2825_s1 + $0x224] sm:$0xf]  ;;  %v1805_v17 = vld [vmem:[%s2825_s1 + $0xac] sm:$0xf] }
  0x3b   :  { %878 = vmatpush.bf16.msrb.mxu3 %v1431_v43  ;;  %v1861_v43 = vld [vmem:[%s2825_s1 + $0x264] sm:$0xf0]  ;;  %v1563_v46 = vor.u32 %v1860_v38, %v1562_v37  ;;  %v1567_v47 = vor.u32 %v1852_v39, %v1564_v41  ;;  %v1380_v18 = vld [vmem:[%s2825_s1 + $0xe8] sm:$0xf0]  ;;  %v1306_v20 = vld [vmem:[%s2825_s1 + $0x20] sm:$0xf] }
  0x3c   :  { %v1571_v48 = vor.u32 %v1861_v43, %v1570_v42  ;;  %v1796_v21 = vld [vmem:[%s2825_s1 + $0x5c] sm:$0xf0]  ;;  %v1308_v25 = vld [vmem:[%s2825_s1 + $0x60] sm:$0xf0]  ;;  %v1314_v26 = vld [vmem:[%s2825_s1 + $0x28] sm:$0xf]  ;;  %v1383_v27 = vor.u32 %v1805_v17, %v1380_v18 }
  0x3d   :  { %840 = vmatpush.bf16.msrb.mxu0 %v1355_v49  ;;  %853 = vmatpush.bf16.msrb.mxu1 %v1359_v52  ;;  %v1498_v49 = vld [vmem:[%s2825_s1 + $0x1a0] sm:$0xf]  ;;  %v1575_v52 = vor.u32 %v1853_v44, %v1572_v45  ;;  %v1789_v29 = vld [vmem:[%s2825_s1 + $0x2c] sm:$0xf]  ;;  %v1770_v31 = vld [vmem:[%s2825_s1 + $0x3b0] sm:$0xf] }
  0x3e   :  { %866 = vmatpush.bf16.msrb.mxu2 %v1363_v53  ;;  %v1500_v53 = vld [vmem:[%s2825_s1 + $0x1e0] sm:$0xf0]  ;;  %v1499_v58 = vor.u32 %v1844_v50, %v1498_v49  ;;  %v1316_v30 = vld [vmem:[%s2825_s1 + $0x68] sm:$0xf0]  ;;  %v1910_v32 = vld [vmem:[%s2825_s1 + $0x3ec] sm:$0xf0] }
  0x3f   :  { %879 = vmatpush.bf16.msrb.mxu3 %v1367_v57  ;;  %v1508_v57 = vld [vmem:[%s2825_s1 + $0x1e8] sm:$0xf0]  ;;  %v1503_v59 = vor.u32 %v1836_v51, %v1500_v53  ;;  %v1902_v33 = vld [vmem:[%s2825_s1 + $0x3b4] sm:$0xf]  ;;  %v1911_v37 = vld [vmem:[%s2825_s1 + $0x3f4] sm:$0xf0]  ;;  %v1319_v42 = vor.u32 %v1789_v29, %v1316_v30  ;;  %v1771_v43 = vor.u32 %v1910_v32, %v1770_v31 }
  0x40   :  { %v1780_v41 = vld [vmem:[%s2825_s1 + $0x3f8] sm:$0xf0]  ;;  %v1708_v50 = vld [vmem:[%s2825_s1 + $0x370] sm:$0xf0]  ;;  %v1714_v51 = vld [vmem:[%s2825_s1 + $0x338] sm:$0xf] }
  0x41   :  { %841 = vmatpush.bf16.msrb.mxu0 %v1291_v0  ;;  %854 = vmatpush.bf16.msrb.mxu1 %v1295_v5  ;;  %v1511_v0 = vor.u32 %v1837_v56, %v1508_v57  ;;  %v1821_v5 = vld [vmem:[%s2825_s1 + $0x12c] sm:$0xf]  ;;  %v1887_v53 = vld [vmem:[%s2825_s1 + $0x33c] sm:$0xf]  ;;  %v1644_v62 = vld [vmem:[%s2825_s1 + $0x2f0] sm:$0xf0] }
  0x42   :  { %867 = vmatpush.bf16.msrb.mxu2 %v1299_v6  ;;  %v1444_v6 = vld [vmem:[%s2825_s1 + $0x168] sm:$0xf0]  ;;  %v1716_v54 = vld [vmem:[%s2825_s1 + $0x378] sm:$0xf0]  ;;  %v1650_v63 = vld [vmem:[%s2825_s1 + $0x2b8] sm:$0xf] }
  0x43   :  { %880 = vmatpush.bf16.msrb.mxu3 %v1303_v9  ;;  %v1443_v9 = vor.u32 %v1829_v4, %v1442_v3  ;;  %v1447_v13 = vor.u32 %v1821_v5, %v1444_v6  ;;  %v1719_v61 = vor.u32 %v1887_v53, %v1716_v54  ;;  %v1871_v2 = vld [vmem:[%s2825_s1 + $0x2bc] sm:$0xf]  ;;  %v1450_v31 = vld [vmem:[%s2825_s1 + $0x130] sm:$0xf] }
  0x44   :  { %842 = vmatmul.bf16.vlgmr.msrb.gmra.mxu0 %v2199_v1  ;;  %855 = vmatmul.bf16.vlgmr.msrb.gmra.mxu1 %v2199_v1  ;;  %v1652_v3 = vld [vmem:[%s2825_s1 + $0x2f8] sm:$0xf0]  ;;  %v1830_v32 = vld [vmem:[%s2825_s1 + $0x16c] sm:$0xf0] }
  0x45   :  { %886 = vmatpush.bf16.msra.mxu0 %v1755_v10  ;;  %899 = vmatpush.bf16.msra.mxu1 %v1759_v11  ;;  %v1370_v10 = vld [vmem:[%s2825_s1 + $0xa0] sm:$0xf] }
  0x46   :  { %912 = vmatpush.bf16.msra.mxu2 %v1763_v12  ;;  %881 = vmatmul.bf16.vlgmr.msrb.gmra.mxu3 %v2199_v1  ;;  %v1812_v11 = vld [vmem:[%s2825_s1 + $0xdc] sm:$0xf0]  ;;  %v1804_v12 = vld [vmem:[%s2825_s1 + $0xa4] sm:$0xf] }
  0x47   :  { %925 = vmatpush.bf16.msra.mxu3 %v1767_v16  ;;  %868 = vmatmul.bf16.vlgmr.msrb.gmra.mxu2 %v2199_v1  ;;  %v1813_v16 = vld [vmem:[%s2825_s1 + $0xe4] sm:$0xf0]  ;;  %v1371_v19 = vor.u32 %v1812_v11, %v1370_v10  ;;  %v1655_v10 = vor.u32 %v1871_v2, %v1652_v3  ;;  %v1580_v11 = vld [vmem:[%s2825_s1 + $0x270] sm:$0xf0] }
  0x49   :  { %887 = vmatpush.bf16.msra.mxu0 %v1691_v22  ;;  %900 = vmatpush.bf16.msra.mxu1 %v1695_v23  ;;  %v1375_v22 = vor.u32 %v1804_v12, %v1372_v14  ;;  %v1379_v23 = vor.u32 %v1813_v16, %v1378_v15  ;;  %v1586_v12 = vld [vmem:[%s2825_s1 + $0x238] sm:$0xf]  ;;  %v1855_v14 = vld [vmem:[%s2825_s1 + $0x23c] sm:$0xf] }
  0x4a   :  { %913 = vmatpush.bf16.msra.mxu2 %v1699_v24  ;;  %v1788_v24 = vld [vmem:[%s2825_s1 + $0x24] sm:$0xf]  ;;  %v1588_v15 = vld [vmem:[%s2825_s1 + $0x278] sm:$0xf0] }
  0x4b   :  { %926 = vmatpush.bf16.msra.mxu3 %v1703_v28  ;;  %v1797_v28 = vld [vmem:[%s2825_s1 + $0x64] sm:$0xf0]  ;;  %v1311_v38 = vor.u32 %v1788_v24, %v1308_v25  ;;  %v1522_v24 = vld [vmem:[%s2825_s1 + $0x1b8] sm:$0xf] }
  0x4c   :  { %v1315_v39 = vor.u32 %v1797_v28, %v1314_v26  ;;  %v1847_v25 = vld [vmem:[%s2825_s1 + $0x1f4] sm:$0xf0]  ;;  %v1839_v26 = vld [vmem:[%s2825_s1 + $0x1bc] sm:$0xf] }
  0x4d   :  { %888 = vmatpush.bf16.msra.mxu0 %v1627_v34  ;;  %901 = vmatpush.bf16.msra.mxu1 %v1631_v35  ;;  %v1307_v34 = vor.u32 %v1796_v21, %v1306_v20  ;;  %v1772_v35 = vld [vmem:[%s2825_s1 + $0x3f0] sm:$0xf0]  ;;  %v1846_v20 = vld [vmem:[%s2825_s1 + $0x1ec] sm:$0xf0]  ;;  %v1523_v30 = vor.u32 %v1847_v25, %v1522_v24 }
  0x4e   :  { %914 = vmatpush.bf16.msra.mxu2 %v1635_v36  ;;  %v1778_v36 = vld [vmem:[%s2825_s1 + $0x3b8] sm:$0xf]  ;;  %v1775_v44 = vor.u32 %v1902_v33, %v1772_v35  ;;  %v1838_v21 = vld [vmem:[%s2825_s1 + $0x1b4] sm:$0xf] }
  0x4f   :  { %927 = vmatpush.bf16.msra.mxu3 %v1639_v40  ;;  %v1903_v40 = vld [vmem:[%s2825_s1 + $0x3bc] sm:$0xf]  ;;  %v1779_v45 = vor.u32 %v1911_v37, %v1778_v36  ;;  %v1822_v33 = vld [vmem:[%s2825_s1 + $0x134] sm:$0xf]  ;;  %v1458_v36 = vld [vmem:[%s2825_s1 + $0x138] sm:$0xf] }
  0x50   :  { %v1783_v49 = vor.u32 %v1903_v40, %v1780_v41  ;;  %v1452_v35 = vld [vmem:[%s2825_s1 + $0x170] sm:$0xf0]  ;;  %v1831_v37 = vld [vmem:[%s2825_s1 + $0x174] sm:$0xf0]  ;;  %v1451_v40 = vor.u32 %v1830_v32, %v1450_v31 }
  0x51   :  { %889 = vmatpush.bf16.msra.mxu0 %v1563_v46  ;;  %902 = vmatpush.bf16.msra.mxu1 %v1567_v47  ;;  %v1706_v46 = vld [vmem:[%s2825_s1 + $0x330] sm:$0xf]  ;;  %v1455_v41 = vor.u32 %v1822_v33, %v1452_v35 }
  0x52   :  { %915 = vmatpush.bf16.msra.mxu2 %v1571_v48  ;;  %v1894_v47 = vld [vmem:[%s2825_s1 + $0x36c] sm:$0xf0]  ;;  %v1886_v48 = vld [vmem:[%s2825_s1 + $0x334] sm:$0xf] }
  0x53   :  { %928 = vmatpush.bf16.msra.mxu3 %v1575_v52  ;;  %v1895_v52 = vld [vmem:[%s2825_s1 + $0x374] sm:$0xf0]  ;;  %v1707_v55 = vor.u32 %v1894_v47, %v1706_v46  ;;  %v1711_v56 = vor.u32 %v1886_v48, %v1708_v50  ;;  %v1388_v47 = vld [vmem:[%s2825_s1 + $0xf0] sm:$0xf0]  ;;  %v1807_v50 = vld [vmem:[%s2825_s1 + $0xbc] sm:$0xf] }
  0x54   :  { %v1715_v57 = vor.u32 %v1895_v52, %v1714_v51  ;;  %v1394_v48 = vld [vmem:[%s2825_s1 + $0xb8] sm:$0xf]  ;;  %v1396_v51 = vld [vmem:[%s2825_s1 + $0xf8] sm:$0xf0] }
  0x55   :  { %890 = vmatpush.bf16.msra.mxu0 %v1499_v58  ;;  %903 = vmatpush.bf16.msra.mxu1 %v1503_v59  ;;  %v1642_v58 = vld [vmem:[%s2825_s1 + $0x2b0] sm:$0xf] }
  0x56   :  { %916 = vmatpush.bf16.msra.mxu2 %v1507_v60  ;;  %v1878_v59 = vld [vmem:[%s2825_s1 + $0x2ec] sm:$0xf0]  ;;  %v1870_v60 = vld [vmem:[%s2825_s1 + $0x2b4] sm:$0xf] }
  0x57   :  { %929 = vmatpush.bf16.msra.mxu3 %v1511_v0  ;;  %v1879_v0 = vld [vmem:[%s2825_s1 + $0x2f4] sm:$0xf0]  ;;  %v1643_v4 = vor.u32 %v1878_v59, %v1642_v58  ;;  %v1647_v5 = vor.u32 %v1870_v60, %v1644_v62  ;;  %v1399_v58 = vor.u32 %v1807_v50, %v1396_v51  ;;  %v1324_v59 = vld [vmem:[%s2825_s1 + $0x70] sm:$0xf0]  ;;  %v1791_v62 = vld [vmem:[%s2825_s1 + $0x3c] sm:$0xf] }
  0x58   :  { %v1651_v6 = vor.u32 %v1879_v0, %v1650_v63  ;;  %v1330_v60 = vld [vmem:[%s2825_s1 + $0x38] sm:$0xf]  ;;  %v1332_v63 = vld [vmem:[%s2825_s1 + $0x78] sm:$0xf0] }
  0x59   :  { %891 = vmatpush.bf16.msra.mxu0 %v1435_v7  ;;  %904 = vmatpush.bf16.msra.mxu1 %v1439_v8  ;;  %v1578_v7 = vld [vmem:[%s2825_s1 + $0x230] sm:$0xf] }
  0x5a   :  { %917 = vmatpush.bf16.msra.mxu2 %v1443_v9  ;;  %v1862_v8 = vld [vmem:[%s2825_s1 + $0x26c] sm:$0xf0]  ;;  %v1854_v9 = vld [vmem:[%s2825_s1 + $0x234] sm:$0xf] }
  0x5b   :  { %930 = vmatpush.bf16.msra.mxu3 %v1447_v13  ;;  %v1863_v13 = vld [vmem:[%s2825_s1 + $0x274] sm:$0xf0]  ;;  %v1579_v16 = vor.u32 %v1862_v8, %v1578_v7  ;;  %v1583_v17 = vor.u32 %v1854_v9, %v1580_v11 }
  0x5c   :  { %v1587_v18 = vor.u32 %v1863_v13, %v1586_v12 }
  0x5d   :  { %892 = vmatpush.bf16.msra.mxu0 %v1371_v19  ;;  %905 = vmatpush.bf16.msra.mxu1 %v1375_v22  ;;  %v1514_v19 = vld [vmem:[%s2825_s1 + $0x1b0] sm:$0xf]  ;;  %v1591_v22 = vor.u32 %v1855_v14, %v1588_v15 }
  0x5e   :  { %918 = vmatpush.bf16.msra.mxu2 %v1379_v23  ;;  %v1516_v23 = vld [vmem:[%s2825_s1 + $0x1f0] sm:$0xf0]  ;;  %v1515_v28 = vor.u32 %v1846_v20, %v1514_v19 }
  0x5f   :  { %931 = vmatpush.bf16.msra.mxu3 %v1383_v27  ;;  %v1524_v27 = vld [vmem:[%s2825_s1 + $0x1f8] sm:$0xf0]  ;;  %v1519_v29 = vor.u32 %v1838_v21, %v1516_v23 }
  0x61   :  { %893 = vmatpush.bf16.msra.mxu0 %v1307_v34  ;;  %906 = vmatpush.bf16.msra.mxu1 %v1311_v38  ;;  %v1527_v34 = vor.u32 %v1839_v26, %v1524_v27  ;;  %v1823_v38 = vld [vmem:[%s2825_s1 + $0x13c] sm:$0xf] }
  0x62   :  { %919 = vmatpush.bf16.msra.mxu2 %v1315_v39  ;;  %v1460_v39 = vld [vmem:[%s2825_s1 + $0x178] sm:$0xf0] }
  0x63   :  { %932 = vmatpush.bf16.msra.mxu3 %v1319_v42  ;;  %v1459_v42 = vor.u32 %v1831_v37, %v1458_v36  ;;  %v1463_v46 = vor.u32 %v1823_v38, %v1460_v39 }
  0x64   :  { %894 = vmatmul.bf16.vlgmr.msra.gmra.mxu0 %v2199_v1  ;;  %907 = vmatmul.bf16.vlgmr.msra.gmra.mxu1 %v2199_v1 }
  0x65   :  { %938 = vmatpush.bf16.msrb.mxu0 %v1771_v43  ;;  %951 = vmatpush.bf16.msrb.mxu1 %v1775_v44  ;;  %v1386_v43 = vld [vmem:[%s2825_s1 + $0xb0] sm:$0xf] }
  0x66   :  { %964 = vmatpush.bf16.msrb.mxu2 %v1779_v45  ;;  %933 = vmatmul.bf16.vlgmr.msra.gmra.mxu3 %v2199_v1  ;;  %v1814_v44 = vld [vmem:[%s2825_s1 + $0xec] sm:$0xf0]  ;;  %v1806_v45 = vld [vmem:[%s2825_s1 + $0xb4] sm:$0xf] }
  0x67   :  { %977 = vmatpush.bf16.msrb.mxu3 %v1783_v49  ;;  %920 = vmatmul.bf16.vlgmr.msra.gmra.mxu2 %v2199_v1  ;;  %v1815_v49 = vld [vmem:[%s2825_s1 + $0xf4] sm:$0xf0]  ;;  %v1387_v52 = vor.u32 %v1814_v44, %v1386_v43  ;;  %v1391_v53 = vor.u32 %v1806_v45, %v1388_v47 }
  0x68   :  { %v1395_v54 = vor.u32 %v1815_v49, %v1394_v48 }
  0x69   :  { %939 = vmatpush.bf16.msrb.mxu0 %v1707_v55  ;;  %952 = vmatpush.bf16.msrb.mxu1 %v1711_v56  ;;  %v1322_v55 = vld [vmem:[%s2825_s1 + $0x30] sm:$0xf] }
  0x6a   :  { %965 = vmatpush.bf16.msrb.mxu2 %v1715_v57  ;;  %v1798_v56 = vld [vmem:[%s2825_s1 + $0x6c] sm:$0xf0]  ;;  %v1790_v57 = vld [vmem:[%s2825_s1 + $0x34] sm:$0xf] }
  0x6b   :  { %978 = vmatpush.bf16.msrb.mxu3 %v1719_v61  ;;  %v1799_v61 = vld [vmem:[%s2825_s1 + $0x74] sm:$0xf0]  ;;  %v1323_v0 = vor.u32 %v1798_v56, %v1322_v55  ;;  %v1327_v2 = vor.u32 %v1790_v57, %v1324_v59 }
  0x6c   :  { %v1331_v3 = vor.u32 %v1799_v61, %v1330_v60 }
  0x6d   :  { %940 = vmatpush.bf16.msrb.mxu0 %v1643_v4  ;;  %953 = vmatpush.bf16.msrb.mxu1 %v1647_v5  ;;  %v1335_v4 = vor.u32 %v1791_v62, %v1332_v63 }
  0x6e   :  { %966 = vmatpush.bf16.msrb.mxu2 %v1651_v6 }
  0x6f   :  { %979 = vmatpush.bf16.msrb.mxu3 %v1655_v10 }
  0x71   :  { %941 = vmatpush.bf16.msrb.mxu0 %v1579_v16  ;;  %954 = vmatpush.bf16.msrb.mxu1 %v1583_v17 }
  0x72   :  { %967 = vmatpush.bf16.msrb.mxu2 %v1587_v18 }
  0x73   :  { %980 = vmatpush.bf16.msrb.mxu3 %v1591_v22 }
  0x75   :  { %942 = vmatpush.bf16.msrb.mxu0 %v1515_v28  ;;  %955 = vmatpush.bf16.msrb.mxu1 %v1519_v29 }
  0x76   :  { %968 = vmatpush.bf16.msrb.mxu2 %v1523_v30 }
  0x77   :  { %981 = vmatpush.bf16.msrb.mxu3 %v1527_v34 }
  0x79   :  { %943 = vmatpush.bf16.msrb.mxu0 %v1451_v40  ;;  %956 = vmatpush.bf16.msrb.mxu1 %v1455_v41 }
  0x7a   :  { %969 = vmatpush.bf16.msrb.mxu2 %v1459_v42 }
  0x7b   :  { %982 = vmatpush.bf16.msrb.mxu3 %v1463_v46 }
  0x7d   :  { %944 = vmatpush.bf16.msrb.mxu0 %v1387_v52  ;;  %957 = vmatpush.bf16.msrb.mxu1 %v1391_v53 }
  0x7e   :  { %970 = vmatpush.bf16.msrb.mxu2 %v1395_v54 }
  0x7f   :  { %983 = vmatpush.bf16.msrb.mxu3 %v1399_v58 }
  0x81   :  { %945 = vmatpush.bf16.msrb.mxu0 %v1323_v0  ;;  %958 = vmatpush.bf16.msrb.mxu1 %v1327_v2 }
  0x82   :  { %971 = vmatpush.bf16.msrb.mxu2 %v1331_v3 }
  0x83   :  { %984 = vmatpush.bf16.msrb.mxu3 %v1335_v4 }
  0x84   :  { %946 = vmatmul.bf16.vlgmr.msrb.gmra.mxu0 %v2199_v1  ;;  %959 = vmatmul.bf16.vlgmr.msrb.gmra.mxu1 %v2199_v1 }
  0x85   :  { %972 = vmatmul.bf16.vlgmr.msrb.gmra.mxu2 %v2199_v1 }
  0x86   :  { %985 = vmatmul.bf16.vlgmr.msrb.gmra.mxu3 %v2199_v1 }
  0xa1   :  { %v791_v5 = vpop.f32.mrf.mxu0  ;;  %v804_v8 = vpop.f32.mrf.mxu1 }
  0xa2   :  { %v1006_v6 = vrot.slane %v791_v5, 4  ;;  %v1102_v7 = vmul.f32 %v791_v5, %v791_v5  ;;  %v990_v9 = vpack.c.bf16 %v804_v8, %v791_v5  ;;  %v1012_v10 = vrot.slane %v804_v8, 4 }
  0xa3   :  { %v1103_v11 = vmul.f32 %v804_v8, %v804_v8 }
  0xa4   :  { %v1007_v12 = vadd.f32 %v1006_v6, %v791_v5  ;;  %v1118_v13 = vrot.slane %v1102_v7, 4  ;;  %998 = vst [vmem:[%s2827_s2] sm:$0xff] %v990_v9  ;;  %v1013_v14 = vadd.f32 %v1012_v10, %v804_v8 }
  0xa5   :  { %v1124_v15 = vrot.slane %v1103_v11, 4 }
  0xa6   :  { %v1008_v16 = vrot.slane %v1007_v12, 2  ;;  %v1119_v17 = vadd.f32 %v1118_v13, %v1102_v7  ;;  %v1014_v1 = vrot.slane %v1013_v14, 2 }
  0xa7   :  { %v1125_v19 = vadd.f32 %v1124_v15, %v1103_v11 }
  0xa8   :  { %v1009_v23 = vadd.f32 %v1008_v16, %v1007_v12  ;;  %v1120_v24 = vrot.slane %v1119_v17, 2  ;;  %v1015_v27 = vadd.f32 %v1014_v1, %v1013_v14 }
  0xa9   :  { %v830_v22 = vpop.f32.mrf.mxu3  ;;  %v1126_v28 = vrot.slane %v1125_v19, 2  ;;  %v793_v31 = vpop.f32.mrf.mxu0 }
  0xaa   :  { %v817_v18 = vpop.f32.mrf.mxu2  ;;  %v1024_v26 = vrot.slane %v830_v22, 4  ;;  %v1010_v32 = vrot.slane %v1009_v23, 1  ;;  %v1121_v33 = vadd.f32 %v1120_v24, %v1119_v17  ;;  %v1105_v35 = vmul.f32 %v830_v22, %v830_v22  ;;  %v806_v36 = vpop.f32.mrf.mxu1 }
  0xab   :  { %v1018_v20 = vrot.slane %v817_v18, 4  ;;  %v1104_v21 = vmul.f32 %v817_v18, %v817_v18  ;;  %v991_v25 = vpack.c.bf16 %v830_v22, %v817_v18  ;;  %v1016_v37 = vrot.slane %v1015_v27, 1 }
  0xac   :  { %v1025_v34 = vadd.f32 %v1024_v26, %v830_v22  ;;  %v1127_v38 = vadd.f32 %v1126_v28, %v1125_v19  ;;  %v1011_v41 = vadd.f32 %v1010_v32, %v1009_v23  ;;  %v1122_v42 = vrot.slane %v1121_v33, 1 }
  0xad   :  { %v1019_v29 = vadd.f32 %v1018_v20, %v817_v18  ;;  %v1130_v30 = vrot.slane %v1104_v21, 4  ;;  %999 = vst [vmem:[%s2827_s2 + $0x8] sm:$0xff] %v991_v25  ;;  %v1136_v44 = vrot.slane %v1105_v35, 4  ;;  %v1017_v45 = vadd.f32 %v1016_v37, %v1015_v27 }
  0xae   :  { %v1026_v43 = vrot.slane %v1025_v34, 2  ;;  %v1128_v46 = vrot.slane %v1127_v38, 1  ;;  %v1123_v49 = vadd.f32 %v1122_v42, %v1121_v33 }
  0xaf   :  { %v1020_v39 = vrot.slane %v1019_v29, 2  ;;  %v1131_v40 = vadd.f32 %v1130_v30, %v1104_v21  ;;  %v1137_v51 = vadd.f32 %v1136_v44, %v1105_v35 }
  0xb0   :  { %v1027_v50 = vadd.f32 %v1026_v43, %v1025_v34  ;;  %v1129_v53 = vadd.f32 %v1128_v46, %v1127_v38  ;;  %v1215_v57 = vsel %vm1214_vm0, %v1011_v41, %v1123_v49 }
  0xb1   :  { %v1021_v47 = vadd.f32 %v1020_v39, %v1019_v29  ;;  %v1132_v48 = vrot.slane %v1131_v40, 2  ;;  %v832_v56 = vpop.f32.mrf.mxu3  ;;  %v1138_v59 = vrot.slane %v1137_v51, 2  ;;  %v1232_v60 = vsel %vm1231_vm1, %v1215_v57, 0.0 }
  0xb2   :  { %v819_v52 = vpop.f32.mrf.mxu2  ;;  %v1028_v58 = vrot.slane %v1027_v50, 1  ;;  %v1216_v61 = vsel %vm1214_vm0, %v1017_v45, %v1129_v53  ;;  %1248 = vst [vmem:[%s2828_s3] sm:$0xff] %v1232_v60 }
  0xb3   :  { %v1022_v54 = vrot.slane %v1021_v47, 1  ;;  %v1133_v55 = vadd.f32 %v1132_v48, %v1131_v40  ;;  %v1233_v0 = vsel %vm1231_vm1, %v1216_v61, 0.0  ;;  %v1139_v2 = vadd.f32 %v1138_v59, %v1137_v51 }
  0xb4   :  { %1249 = vst [vmem:[%s2828_s3 + $0x8] sm:$0xff] %v1233_v0  ;;  %v1029_v4 = vadd.f32 %v1028_v58, %v1027_v50 }
  0xb5   :  { %v1023_v62 = vadd.f32 %v1022_v54, %v1021_v47  ;;  %v1134_v63 = vrot.slane %v1133_v55, 1  ;;  %v1140_v5 = vrot.slane %v1139_v2, 1 }
  0xb7   :  { %v1135_v3 = vadd.f32 %v1134_v63, %v1133_v55  ;;  %v1141_v8 = vadd.f32 %v1140_v5, %v1139_v2 }
  0xb9   :  { %v1217_v6 = vsel %vm1214_vm0, %v1023_v62, %v1135_v3  ;;  %v1218_v9 = vsel %vm1214_vm0, %v1029_v4, %v1141_v8 }
  0xba   :  { %v1234_v7 = vsel %vm1231_vm1, %v1217_v6, 0.0  ;;  %v1235_v10 = vsel %vm1231_vm1, %v1218_v9, 0.0 }
  0xbb   :  { %1250 = vst [vmem:[%s2828_s3 + $0x10] sm:$0xff] %v1234_v7 }
  0xbc   :  { %1251 = vst [vmem:[%s2828_s3 + $0x18] sm:$0xff] %v1235_v10 }
  0xc1   :  { %v843_v11 = vpop.f32.mrf.mxu0  ;;  %v856_v14 = vpop.f32.mrf.mxu1 }
  0xc2   :  { %v1030_v12 = vrot.slane %v843_v11, 4  ;;  %v1106_v13 = vmul.f32 %v843_v11, %v843_v11  ;;  %v992_v15 = vpack.c.bf16 %v856_v14, %v843_v11  ;;  %v1036_v16 = vrot.slane %v856_v14, 4 }
  0xc3   :  { %v1107_v17 = vmul.f32 %v856_v14, %v856_v14 }
  0xc4   :  { %v1031_v18 = vadd.f32 %v1030_v12, %v843_v11  ;;  %v1142_v1 = vrot.slane %v1106_v13, 4  ;;  %1000 = vst [vmem:[%s2827_s2 + $0x10] sm:$0xff] %v992_v15  ;;  %v1037_v19 = vadd.f32 %v1036_v16, %v856_v14 }
  0xc5   :  { %v1148_v20 = vrot.slane %v1107_v17, 4 }
  0xc6   :  { %v1032_v21 = vrot.slane %v1031_v18, 2  ;;  %v1143_v22 = vadd.f32 %v1142_v1, %v1106_v13  ;;  %v1038_v24 = vrot.slane %v1037_v19, 2 }
  0xc7   :  { %v1149_v25 = vadd.f32 %v1148_v20, %v1107_v17 }
  0xc8   :  { %v1033_v29 = vadd.f32 %v1032_v21, %v1031_v18  ;;  %v1144_v30 = vrot.slane %v1143_v22, 2  ;;  %v1039_v33 = vadd.f32 %v1038_v24, %v1037_v19 }
  0xc9   :  { %v882_v28 = vpop.f32.mrf.mxu3  ;;  %v1150_v34 = vrot.slane %v1149_v25, 2  ;;  %v845_v37 = vpop.f32.mrf.mxu0 }
  0xca   :  { %v869_v23 = vpop.f32.mrf.mxu2  ;;  %v1048_v32 = vrot.slane %v882_v28, 4  ;;  %v1034_v38 = vrot.slane %v1033_v29, 1  ;;  %v1145_v39 = vadd.f32 %v1144_v30, %v1143_v22  ;;  %v1109_v41 = vmul.f32 %v882_v28, %v882_v28  ;;  %v858_v42 = vpop.f32.mrf.mxu1 }
  0xcb   :  { %v1042_v26 = vrot.slane %v869_v23, 4  ;;  %v1108_v27 = vmul.f32 %v869_v23, %v869_v23  ;;  %v993_v31 = vpack.c.bf16 %v882_v28, %v869_v23  ;;  %v1040_v43 = vrot.slane %v1039_v33, 1 }
  0xcc   :  { %v1049_v40 = vadd.f32 %v1048_v32, %v882_v28  ;;  %v1151_v44 = vadd.f32 %v1150_v34, %v1149_v25  ;;  %v1035_v47 = vadd.f32 %v1034_v38, %v1033_v29  ;;  %v1146_v48 = vrot.slane %v1145_v39, 1 }
  0xcd   :  { %v1043_v35 = vadd.f32 %v1042_v26, %v869_v23  ;;  %v1154_v36 = vrot.slane %v1108_v27, 4  ;;  %1001 = vst [vmem:[%s2827_s2 + $0x18] sm:$0xff] %v993_v31  ;;  %v1160_v50 = vrot.slane %v1109_v41, 4  ;;  %v1041_v51 = vadd.f32 %v1040_v43, %v1039_v33 }
  0xce   :  { %v1050_v49 = vrot.slane %v1049_v40, 2  ;;  %v1152_v52 = vrot.slane %v1151_v44, 1  ;;  %v1147_v55 = vadd.f32 %v1146_v48, %v1145_v39 }
  0xcf   :  { %v1044_v45 = vrot.slane %v1043_v35, 2  ;;  %v1155_v46 = vadd.f32 %v1154_v36, %v1108_v27  ;;  %v1161_v57 = vadd.f32 %v1160_v50, %v1109_v41 }
  0xd0   :  { %v1051_v56 = vadd.f32 %v1050_v49, %v1049_v40  ;;  %v1153_v59 = vadd.f32 %v1152_v52, %v1151_v44  ;;  %v1219_v63 = vsel %vm1214_vm0, %v1035_v47, %v1147_v55 }
  0xd1   :  { %v1045_v53 = vadd.f32 %v1044_v45, %v1043_v35  ;;  %v1156_v54 = vrot.slane %v1155_v46, 2  ;;  %v884_v62 = vpop.f32.mrf.mxu3  ;;  %v1162_v2 = vrot.slane %v1161_v57, 2  ;;  %v1236_v3 = vsel %vm1231_vm1, %v1219_v63, 0.0 }
  0xd2   :  { %v871_v58 = vpop.f32.mrf.mxu2  ;;  %v1052_v0 = vrot.slane %v1051_v56, 1  ;;  %v1220_v4 = vsel %vm1214_vm0, %v1041_v51, %v1153_v59  ;;  %1252 = vst [vmem:[%s2828_s3 + $0x20] sm:$0xff] %v1236_v3 }
  0xd3   :  { %v1046_v60 = vrot.slane %v1045_v53, 1  ;;  %v1157_v61 = vadd.f32 %v1156_v54, %v1155_v46  ;;  %v1237_v7 = vsel %vm1231_vm1, %v1220_v4, 0.0  ;;  %v1163_v8 = vadd.f32 %v1162_v2, %v1161_v57 }
  0xd4   :  { %1253 = vst [vmem:[%s2828_s3 + $0x28] sm:$0xff] %v1237_v7  ;;  %v1053_v10 = vadd.f32 %v1052_v0, %v1051_v56 }
  0xd5   :  { %v1047_v5 = vadd.f32 %v1046_v60, %v1045_v53  ;;  %v1158_v6 = vrot.slane %v1157_v61, 1  ;;  %v1164_v11 = vrot.slane %v1163_v8, 1 }
  0xd7   :  { %v1159_v9 = vadd.f32 %v1158_v6, %v1157_v61  ;;  %v1165_v14 = vadd.f32 %v1164_v11, %v1163_v8 }
  0xd9   :  { %v1221_v12 = vsel %vm1214_vm0, %v1047_v5, %v1159_v9  ;;  %v1222_v15 = vsel %vm1214_vm0, %v1053_v10, %v1165_v14 }
  0xda   :  { %v1238_v13 = vsel %vm1231_vm1, %v1221_v12, 0.0  ;;  %v1239_v16 = vsel %vm1231_vm1, %v1222_v15, 0.0 }
  0xdb   :  { %1254 = vst [vmem:[%s2828_s3 + $0x30] sm:$0xff] %v1238_v13 }
  0xdc   :  { %1255 = vst [vmem:[%s2828_s3 + $0x38] sm:$0xff] %v1239_v16 }
  0xe1   :  { %v895_v17 = vpop.f32.mrf.mxu0  ;;  %v908_v19 = vpop.f32.mrf.mxu1 }
  0xe2   :  { %v1054_v18 = vrot.slane %v895_v17, 4  ;;  %v1110_v1 = vmul.f32 %v895_v17, %v895_v17  ;;  %v994_v20 = vpack.c.bf16 %v908_v19, %v895_v17  ;;  %v1060_v21 = vrot.slane %v908_v19, 4 }
  0xe3   :  { %v1111_v22 = vmul.f32 %v908_v19, %v908_v19 }
  0xe4   :  { %v1055_v23 = vadd.f32 %v1054_v18, %v895_v17  ;;  %v1166_v24 = vrot.slane %v1110_v1, 4  ;;  %1002 = vst [vmem:[%s2827_s2 + $0x20] sm:$0xff] %v994_v20  ;;  %v1061_v25 = vadd.f32 %v1060_v21, %v908_v19 }
  0xe5   :  { %v1172_v26 = vrot.slane %v1111_v22, 4 }
  0xe6   :  { %v1056_v27 = vrot.slane %v1055_v23, 2  ;;  %v1167_v28 = vadd.f32 %v1166_v24, %v1110_v1  ;;  %v1062_v30 = vrot.slane %v1061_v25, 2 }
  0xe7   :  { %v1173_v31 = vadd.f32 %v1172_v26, %v1111_v22 }
  0xe8   :  { %v1057_v35 = vadd.f32 %v1056_v27, %v1055_v23  ;;  %v1168_v36 = vrot.slane %v1167_v28, 2  ;;  %v1063_v39 = vadd.f32 %v1062_v30, %v1061_v25 }
  0xe9   :  { %v934_v34 = vpop.f32.mrf.mxu3  ;;  %v1174_v40 = vrot.slane %v1173_v31, 2  ;;  %v897_v43 = vpop.f32.mrf.mxu0 }
  0xea   :  { %v921_v29 = vpop.f32.mrf.mxu2  ;;  %v1072_v38 = vrot.slane %v934_v34, 4  ;;  %v1058_v44 = vrot.slane %v1057_v35, 1  ;;  %v1169_v45 = vadd.f32 %v1168_v36, %v1167_v28  ;;  %v1113_v47 = vmul.f32 %v934_v34, %v934_v34  ;;  %v910_v48 = vpop.f32.mrf.mxu1 }
  0xeb   :  { %v1066_v32 = vrot.slane %v921_v29, 4  ;;  %v1112_v33 = vmul.f32 %v921_v29, %v921_v29  ;;  %v995_v37 = vpack.c.bf16 %v934_v34, %v921_v29  ;;  %v1064_v49 = vrot.slane %v1063_v39, 1 }
  0xec   :  { %v1073_v46 = vadd.f32 %v1072_v38, %v934_v34  ;;  %v1175_v50 = vadd.f32 %v1174_v40, %v1173_v31  ;;  %v1059_v53 = vadd.f32 %v1058_v44, %v1057_v35  ;;  %v1170_v54 = vrot.slane %v1169_v45, 1 }
  0xed   :  { %v1067_v41 = vadd.f32 %v1066_v32, %v921_v29  ;;  %v1178_v42 = vrot.slane %v1112_v33, 4  ;;  %1003 = vst [vmem:[%s2827_s2 + $0x28] sm:$0xff] %v995_v37  ;;  %v1184_v56 = vrot.slane %v1113_v47, 4  ;;  %v1065_v57 = vadd.f32 %v1064_v49, %v1063_v39 }
  0xee   :  { %v1074_v55 = vrot.slane %v1073_v46, 2  ;;  %v1176_v58 = vrot.slane %v1175_v50, 1  ;;  %v1171_v61 = vadd.f32 %v1170_v54, %v1169_v45 }
  0xef   :  { %v1068_v51 = vrot.slane %v1067_v41, 2  ;;  %v1179_v52 = vadd.f32 %v1178_v42, %v1112_v33  ;;  %v1185_v63 = vadd.f32 %v1184_v56, %v1113_v47 }
  0xf0   :  { %v1075_v62 = vadd.f32 %v1074_v55, %v1073_v46  ;;  %v1177_v2 = vadd.f32 %v1176_v58, %v1175_v50  ;;  %v1223_v6 = vsel %vm1214_vm0, %v1059_v53, %v1171_v61 }
  0xf1   :  { %v1069_v59 = vadd.f32 %v1068_v51, %v1067_v41  ;;  %v1180_v60 = vrot.slane %v1179_v52, 2  ;;  %v936_v5 = vpop.f32.mrf.mxu3  ;;  %v1186_v8 = vrot.slane %v1185_v63, 2  ;;  %v1240_v9 = vsel %vm1231_vm1, %v1223_v6, 0.0 }
  0xf2   :  { %v923_v0 = vpop.f32.mrf.mxu2  ;;  %v1076_v7 = vrot.slane %v1075_v62, 1  ;;  %v1224_v10 = vsel %vm1214_vm0, %v1065_v57, %v1177_v2  ;;  %1256 = vst [vmem:[%s2828_s3 + $0x40] sm:$0xff] %v1240_v9 }
  0xf3   :  { %v1070_v3 = vrot.slane %v1069_v59, 1  ;;  %v1181_v4 = vadd.f32 %v1180_v60, %v1179_v52  ;;  %v1241_v13 = vsel %vm1231_vm1, %v1224_v10, 0.0  ;;  %v1187_v14 = vadd.f32 %v1186_v8, %v1185_v63 }
  0xf4   :  { %1257 = vst [vmem:[%s2828_s3 + $0x48] sm:$0xff] %v1241_v13  ;;  %v1077_v16 = vadd.f32 %v1076_v7, %v1075_v62 }
  0xf5   :  { %v1071_v11 = vadd.f32 %v1070_v3, %v1069_v59  ;;  %v1182_v12 = vrot.slane %v1181_v4, 1  ;;  %v1188_v17 = vrot.slane %v1187_v14, 1 }
  0xf7   :  { %v1183_v15 = vadd.f32 %v1182_v12, %v1181_v4  ;;  %v1189_v19 = vadd.f32 %v1188_v17, %v1187_v14 }
  0xf9   :  { %v1225_v18 = vsel %vm1214_vm0, %v1071_v11, %v1183_v15  ;;  %v1226_v20 = vsel %vm1214_vm0, %v1077_v16, %v1189_v19 }
  0xfa   :  { %v1242_v1 = vsel %vm1231_vm1, %v1225_v18, 0.0  ;;  %v1243_v21 = vsel %vm1231_vm1, %v1226_v20, 0.0 }
  0xfb   :  { %1258 = vst [vmem:[%s2828_s3 + $0x50] sm:$0xff] %v1242_v1 }
  0xfc   :  { %1259 = vst [vmem:[%s2828_s3 + $0x58] sm:$0xff] %v1243_v21 }
 0x101   :  { %v947_v22 = vpop.f32.mrf.mxu0  ;;  %v960_v25 = vpop.f32.mrf.mxu1 }
 0x102   :  { %v1078_v23 = vrot.slane %v947_v22, 4  ;;  %v1114_v24 = vmul.f32 %v947_v22, %v947_v22  ;;  %v996_v26 = vpack.c.bf16 %v960_v25, %v947_v22  ;;  %v1084_v27 = vrot.slane %v960_v25, 4 }
 0x103   :  { %v1115_v28 = vmul.f32 %v960_v25, %v960_v25 }
 0x104   :  { %v1079_v29 = vadd.f32 %v1078_v23, %v947_v22  ;;  %v1190_v30 = vrot.slane %v1114_v24, 4  ;;  %1004 = vst [vmem:[%s2827_s2 + $0x30] sm:$0xff] %v996_v26  ;;  %v1085_v31 = vadd.f32 %v1084_v27, %v960_v25 }
 0x105   :  { %v1196_v32 = vrot.slane %v1115_v28, 4 }
 0x106   :  { %v1080_v33 = vrot.slane %v1079_v29, 2  ;;  %v1191_v34 = vadd.f32 %v1190_v30, %v1114_v24  ;;  %v1086_v35 = vrot.slane %v1085_v31, 2 }
 0x107   :  { %v1197_v36 = vadd.f32 %v1196_v32, %v1115_v28 }
 0x108   :  { %v1081_v37 = vadd.f32 %v1080_v33, %v1079_v29  ;;  %v1192_v38 = vrot.slane %v1191_v34, 2  ;;  %v973_v39 = vpop.f32.mrf.mxu2  ;;  %v1087_v40 = vadd.f32 %v1086_v35, %v1085_v31 }
 0x109   :  { %v1198_v41 = vrot.slane %v1197_v36, 2  ;;  %v1090_v42 = vrot.slane %v973_v39, 4  ;;  %v1116_v43 = vmul.f32 %v973_v39, %v973_v39  ;;  %v986_v44 = vpop.f32.mrf.mxu3  ;;  %v949_v45 = vpop.f32.mrf.mxu0 }
 0x10a   :  { %v1082_v46 = vrot.slane %v1081_v37, 1  ;;  %v1193_v47 = vadd.f32 %v1192_v38, %v1191_v34  ;;  %v997_v48 = vpack.c.bf16 %v986_v44, %v973_v39  ;;  %v1096_v49 = vrot.slane %v986_v44, 4  ;;  %v962_v50 = vpop.f32.mrf.mxu1 }
 0x10b   :  { %v1088_v51 = vrot.slane %v1087_v40, 1  ;;  %v1199_v52 = vadd.f32 %v1198_v41, %v1197_v36  ;;  %v1091_v53 = vadd.f32 %v1090_v42, %v973_v39  ;;  %v1202_v54 = vrot.slane %v1116_v43, 4 }
 0x10c   :  { %v1194_v55 = vrot.slane %v1193_v47, 1  ;;  %1005 = vst [vmem:[%s2827_s2 + $0x38] sm:$0xff] %v997_v48  ;;  %v1097_v56 = vadd.f32 %v1096_v49, %v986_v44  ;;  %v1117_v57 = vmul.f32 %v986_v44, %v986_v44  ;;  %v1083_v61 = vadd.f32 %v1082_v46, %v1081_v37 }
 0x10d   :  { %v1200_v58 = vrot.slane %v1199_v52, 1  ;;  %v1092_v59 = vrot.slane %v1091_v53, 2  ;;  %v1203_v60 = vadd.f32 %v1202_v54, %v1116_v43  ;;  %v1089_v2 = vadd.f32 %v1088_v51, %v1087_v40 }
 0x10e   :  { %v1195_v62 = vadd.f32 %v1194_v55, %v1193_v47  ;;  %v1098_v63 = vrot.slane %v1097_v56, 2  ;;  %v1208_v0 = vrot.slane %v1117_v57, 4 }
 0x10f   :  { %v1201_v3 = vadd.f32 %v1200_v58, %v1199_v52  ;;  %v1093_v4 = vadd.f32 %v1092_v59, %v1091_v53  ;;  %v1204_v5 = vrot.slane %v1203_v60, 2 }
 0x110   :  { %v1227_v6 = vsel %vm1214_vm0, %v1083_v61, %v1195_v62  ;;  %v1099_v7 = vadd.f32 %v1098_v63, %v1097_v56  ;;  %v1209_v8 = vadd.f32 %v1208_v0, %v1117_v57  ;;  %v975_v9 = vpop.f32.mrf.mxu2 }
 0x111   :  { %v1244_v10 = vsel %vm1231_vm1, %v1227_v6, 0.0  ;;  %v1228_v11 = vsel %vm1214_vm0, %v1089_v2, %v1201_v3  ;;  %v1094_v12 = vrot.slane %v1093_v4, 1  ;;  %v1205_v13 = vadd.f32 %v1204_v5, %v1203_v60  ;;  %v988_v14 = vpop.f32.mrf.mxu3 }
 0x112   :  { %1260 = vst [vmem:[%s2828_s3 + $0x60] sm:$0xff] %v1244_v10  ;;  %v1245_v15 = vsel %vm1231_vm1, %v1228_v11, 0.0  ;;  %v1210_v16 = vrot.slane %v1209_v8, 2  ;;  %v1100_v18 = vrot.slane %v1099_v7, 1 }
 0x113   :  { %1261 = vst [vmem:[%s2828_s3 + $0x68] sm:$0xff] %v1245_v15  ;;  %v1206_v17 = vrot.slane %v1205_v13, 1  ;;  %v1095_v19 = vadd.f32 %v1094_v12, %v1093_v4 }
 0x114   :  { %v1211_v1 = vadd.f32 %v1210_v16, %v1209_v8  ;;  %v1101_v24 = vadd.f32 %v1100_v18, %v1099_v7 }
 0x115   :  { %v1207_v20 = vadd.f32 %v1206_v17, %v1205_v13 }
 0x116   :  { %v1212_v21 = vrot.slane %v1211_v1, 1 }
 0x117   :  { %v1229_v22 = vsel %vm1214_vm0, %v1095_v19, %v1207_v20 }
 0x118   :  { %v1246_v23 = vsel %vm1231_vm1, %v1229_v22, 0.0  ;;  %v1213_v25 = vadd.f32 %v1212_v21, %v1211_v1 }
 0x119   :  { %1262 = vst [vmem:[%s2828_s3 + $0x70] sm:$0xff] %v1246_v23 }
 0x11a   :  { %v1230_v26 = vsel %vm1214_vm0, %v1101_v24, %v1213_v25 }
 0x11b   :  { %v1247_v27 = vsel %vm1231_vm1, %v1230_v26, 0.0 }
 0x11c   :  { %1263 = vst [vmem:[%s2828_s3 + $0x78] sm:$0xff] %v1247_v27 }

// kernel: generator_forward.27
= control target key start
LH: loop header
LB: loop body
LE: loop exit
PB: predicated region body
PF: predicated region fallthrough
CT: control target
= control target key end

     0   :  { %s336_s0 = inlined_call_operand.vmem [shape: bf16[128,128], index: 0, kind: input, shape index: {}]   ;;  %s337_s1 = inlined_call_operand.vmem [shape: f32[1,128], index: 1, kind: input, shape index: {}]   ;;  %s338_s2 = inlined_call_operand.vmem [shape: f32[1,128], index: 2, kind: input, shape index: {}]   ;;  %s339_s3 = inlined_call_operand.vmem [shape: bf16[128,128], index: 3, kind: output, shape index: {}]  }
   0x1   :  { %v139_v0 = vld [vmem:[%s336_s0] sm:$0xff]   ;;  %v210_v5 = vld [vmem:[%s336_s0 + $0x8] sm:$0xff]   ;;  %v211_v8 = vld [vmem:[%s336_s0 + $0x10] sm:$0xff]  }
   0x2   :  { %v252_v1 = vld [vmem:[%s337_s1] ss:$0 sm:$0xff]  ;;  %v140_v2 = vunpack.c.l.bf16 %v139_v0  ;;  %v141_v3 = vunpack.c.h.bf16 %v139_v0  ;;  %v144_v6 = vunpack.c.l.bf16 %v210_v5  ;;  %v145_v7 = vunpack.c.h.bf16 %v210_v5  ;;  %v212_v9 = vld [vmem:[%s336_s0 + $0x18] sm:$0xff]   ;;  %v214_v35 = vld [vmem:[%s336_s0 + $0x28] sm:$0xff]  }
   0x3   :  { %v257_v4 = vld [vmem:[%s338_s2] ss:$0 sm:$0xff]  ;;  %v148_v12 = vunpack.c.l.bf16 %v211_v8  ;;  %v149_v13 = vunpack.c.h.bf16 %v211_v8  ;;  %v152_v16 = vunpack.c.l.bf16 %v212_v9  ;;  %v153_v17 = vunpack.c.h.bf16 %v212_v9  ;;  %v215_v40 = vld [vmem:[%s336_s0 + $0x30] sm:$0xff]   ;;  %v216_v45 = vld [vmem:[%s336_s0 + $0x38] sm:$0xff]  }
   0x4   :  { %v50_v10 = vmul.f32 %v252_v1, %v140_v2  ;;  %v51_v11 = vmul.f32 %v252_v1, %v141_v3  ;;  %v52_v14 = vmul.f32 %v252_v1, %v144_v6  ;;  %v53_v15 = vmul.f32 %v252_v1, %v145_v7  ;;  %v213_v26 = vld [vmem:[%s336_s0 + $0x20] sm:$0xff]  }
   0x5   :  { %v54_v20 = vmul.f32 %v252_v1, %v148_v12  ;;  %v55_v21 = vmul.f32 %v252_v1, %v149_v13  ;;  %v56_v24 = vmul.f32 %v252_v1, %v152_v16  ;;  %v57_v25 = vmul.f32 %v252_v1, %v153_v17 }
   0x6   :  { %v70_v18 = vadd.f32 %v257_v4, %v50_v10  ;;  %v71_v19 = vadd.f32 %v257_v4, %v51_v11  ;;  %v72_v22 = vadd.f32 %v257_v4, %v52_v14  ;;  %v73_v23 = vadd.f32 %v257_v4, %v53_v15 }
   0x7   :  { %v74_v29 = vadd.f32 %v257_v4, %v54_v20  ;;  %v75_v30 = vadd.f32 %v257_v4, %v55_v21  ;;  %v76_v33 = vadd.f32 %v257_v4, %v56_v24  ;;  %v77_v34 = vadd.f32 %v257_v4, %v57_v25 }
   0x8   :  { %v86_v27 = vmax.f32 %v70_v18, 0.0  ;;  %v87_v28 = vmax.f32 %v71_v19, 0.0  ;;  %v88_v31 = vmax.f32 %v72_v22, 0.0  ;;  %v89_v32 = vmax.f32 %v73_v23, 0.0 }
   0x9   :  { %v90_v37 = vmax.f32 %v74_v29, 0.0  ;;  %v91_v38 = vmax.f32 %v75_v30, 0.0  ;;  %v156_v39 = vunpack.c.l.bf16 %v213_v26  ;;  %v92_v42 = vmax.f32 %v76_v33, 0.0 }
   0xa   :  { %v173_v36 = vpack.c.bf16 %v87_v28, %v86_v27  ;;  %v178_v41 = vpack.c.bf16 %v89_v32, %v88_v31  ;;  %v93_v43 = vmax.f32 %v77_v34, 0.0  ;;  %v157_v44 = vunpack.c.h.bf16 %v213_v26 }
   0xb   :  { %v183_v46 = vpack.c.bf16 %v91_v38, %v90_v37  ;;  %v58_v47 = vmul.f32 %v252_v1, %v156_v39  ;;  %v160_v48 = vunpack.c.l.bf16 %v214_v35  ;;  %v161_v49 = vunpack.c.h.bf16 %v214_v35 }
   0xc   :  { %174 = vst [vmem:[%s339_s3] sm:$0xff] %v173_v36   ;;  %v188_v50 = vpack.c.bf16 %v93_v43, %v92_v42  ;;  %v59_v51 = vmul.f32 %v252_v1, %v157_v44  ;;  %v164_v52 = vunpack.c.l.bf16 %v215_v40  ;;  %v165_v53 = vunpack.c.h.bf16 %v215_v40 }
   0xd   :  { %217 = vst [vmem:[%s339_s3 + $0x8] sm:$0xff] %v178_v41   ;;  %v78_v54 = vadd.f32 %v257_v4, %v58_v47  ;;  %v60_v55 = vmul.f32 %v252_v1, %v160_v48  ;;  %v61_v56 = vmul.f32 %v252_v1, %v161_v49  ;;  %v168_v57 = vunpack.c.l.bf16 %v216_v45 }
   0xe   :  { %218 = vst [vmem:[%s339_s3 + $0x10] sm:$0xff] %v183_v46   ;;  %v79_v58 = vadd.f32 %v257_v4, %v59_v51  ;;  %v62_v59 = vmul.f32 %v252_v1, %v164_v52  ;;  %v63_v60 = vmul.f32 %v252_v1, %v165_v53  ;;  %v169_v61 = vunpack.c.h.bf16 %v216_v45 }
   0xf   :  { %219 = vst [vmem:[%s339_s3 + $0x18] sm:$0xff] %v188_v50   ;;  %v94_v62 = vmax.f32 %v78_v54, 0.0  ;;  %v80_v63 = vadd.f32 %v257_v4, %v60_v55  ;;  %v81_v0 = vadd.f32 %v257_v4, %v61_v56  ;;  %v64_v2 = vmul.f32 %v252_v1, %v168_v57 }
  0x10   :  { %v95_v3 = vmax.f32 %v79_v58, 0.0  ;;  %v82_v5 = vadd.f32 %v257_v4, %v62_v59  ;;  %v83_v6 = vadd.f32 %v257_v4, %v63_v60  ;;  %v65_v7 = vmul.f32 %v252_v1, %v169_v61 }
  0x11   :  { %v96_v8 = vmax.f32 %v80_v63, 0.0  ;;  %v97_v9 = vmax.f32 %v81_v0, 0.0  ;;  %v84_v10 = vadd.f32 %v257_v4, %v64_v2 }
  0x12   :  { %v193_v11 = vpack.c.bf16 %v95_v3, %v94_v62  ;;  %v98_v12 = vmax.f32 %v82_v5, 0.0  ;;  %v99_v13 = vmax.f32 %v83_v6, 0.0  ;;  %v85_v14 = vadd.f32 %v257_v4, %v65_v7 }
  0x13   :  { %v198_v15 = vpack.c.bf16 %v97_v9, %v96_v8  ;;  %v100_v16 = vmax.f32 %v84_v10, 0.0 }
  0x14   :  { %220 = vst [vmem:[%s339_s3 + $0x20] sm:$0xff] %v193_v11   ;;  %v203_v17 = vpack.c.bf16 %v99_v13, %v98_v12  ;;  %v101_v18 = vmax.f32 %v85_v14, 0.0 }
  0x15   :  { %221 = vst [vmem:[%s339_s3 + $0x28] sm:$0xff] %v198_v15  }
  0x16   :  { %222 = vst [vmem:[%s339_s3 + $0x30] sm:$0xff] %v203_v17   ;;  %v208_v1 = vpack.c.bf16 %v101_v18, %v100_v16 }
  0x18   :  { %223 = vst [vmem:[%s339_s3 + $0x38] sm:$0xff] %v208_v1  }

// kernel: generator_forward.26
= control target key start
LH: loop header
LB: loop body
LE: loop exit
PB: predicated region body
PF: predicated region fallthrough
CT: control target
= control target key end

     0   :  { %vm423_vm0 = vcmask 1040384   ;;  %vm425_vm1 = vcmask 1041408   ;;  %s820_s1 = inlined_call_operand.vmem [shape: bf16[512,128], index: 1, kind: input, shape index: {}]   ;;  %s821_s0 = inlined_call_operand.vmem [shape: bf16[32,512], index: 0, kind: input, shape index: {}]   ;;  %s822_s2 = inlined_call_operand.vmem [shape: bf16[32,128], index: 2, kind: output, shape index: {0}]   ;;  %s823_s3 = inlined_call_operand.vmem [shape: f32[8,128], index: 3, kind: output, shape index: {1}]  }
   0x1   :  { %v611_v0 = vld [vmem:[%s820_s1 + $0x38] sm:$0xff]  ;;  %v610_v4 = vld [vmem:[%s820_s1 + $0x30] sm:$0xff]  ;;  %v609_v8 = vld [vmem:[%s820_s1 + $0x28] sm:$0xff] }
   0x2   :  { %v619_v1 = vld [vmem:[%s820_s1 + $0x78] sm:$0xff]  ;;  %317 = vmatpush.bf16.msra.mxu0 %v611_v0  ;;  %v618_v5 = vld [vmem:[%s820_s1 + $0x70] sm:$0xff]  ;;  %v617_v9 = vld [vmem:[%s820_s1 + $0x68] sm:$0xff] }
   0x3   :  { %v627_v2 = vld [vmem:[%s820_s1 + $0xb8] sm:$0xff]  ;;  %336 = vmatpush.bf16.msra.mxu1 %v619_v1  ;;  %v626_v6 = vld [vmem:[%s820_s1 + $0xb0] sm:$0xff]  ;;  %v625_v10 = vld [vmem:[%s820_s1 + $0xa8] sm:$0xff] }
   0x4   :  { %v635_v3 = vld [vmem:[%s820_s1 + $0xf8] sm:$0xff]  ;;  %355 = vmatpush.bf16.msra.mxu2 %v627_v2  ;;  %v634_v7 = vld [vmem:[%s820_s1 + $0xf0] sm:$0xff]  ;;  %v633_v11 = vld [vmem:[%s820_s1 + $0xe8] sm:$0xff] }
   0x5   :  { %374 = vmatpush.bf16.msra.mxu3 %v635_v3  ;;  %v608_v12 = vld [vmem:[%s820_s1 + $0x20] sm:$0xff]  ;;  %v607_v16 = vld [vmem:[%s820_s1 + $0x18] sm:$0xff]  ;;  %v606_v20 = vld [vmem:[%s820_s1 + $0x10] sm:$0xff] }
   0x6   :  { %318 = vmatpush.bf16.msra.mxu0 %v610_v4  ;;  %v616_v13 = vld [vmem:[%s820_s1 + $0x60] sm:$0xff]  ;;  %v615_v17 = vld [vmem:[%s820_s1 + $0x58] sm:$0xff]  ;;  %v614_v21 = vld [vmem:[%s820_s1 + $0x50] sm:$0xff] }
   0x7   :  { %337 = vmatpush.bf16.msra.mxu1 %v618_v5  ;;  %v624_v14 = vld [vmem:[%s820_s1 + $0xa0] sm:$0xff]  ;;  %v623_v18 = vld [vmem:[%s820_s1 + $0x98] sm:$0xff]  ;;  %v622_v22 = vld [vmem:[%s820_s1 + $0x90] sm:$0xff] }
   0x8   :  { %356 = vmatpush.bf16.msra.mxu2 %v626_v6  ;;  %v632_v15 = vld [vmem:[%s820_s1 + $0xe0] sm:$0xff]  ;;  %v631_v19 = vld [vmem:[%s820_s1 + $0xd8] sm:$0xff]  ;;  %v630_v23 = vld [vmem:[%s820_s1 + $0xd0] sm:$0xff] }
   0x9   :  { %375 = vmatpush.bf16.msra.mxu3 %v634_v7  ;;  %v605_v24 = vld [vmem:[%s820_s1 + $0x8] sm:$0xff]  ;;  %v604_v28 = vld [vmem:[%s820_s1] sm:$0xff]  ;;  %v598_v33 = vld [vmem:[%s821_s0 + $0xc] sm:$0xf0] }
   0xa   :  { %319 = vmatpush.bf16.msra.mxu0 %v609_v8  ;;  %v613_v25 = vld [vmem:[%s820_s1 + $0x48] sm:$0xff]  ;;  %v612_v29 = vld [vmem:[%s820_s1 + $0x40] sm:$0xff]  ;;  %v440_v35 = vld [vmem:[%s821_s0 + $0x10] sm:$0xf0] }
   0xb   :  { %338 = vmatpush.bf16.msra.mxu1 %v617_v9  ;;  %v621_v26 = vld [vmem:[%s820_s1 + $0x88] sm:$0xff]  ;;  %v620_v30 = vld [vmem:[%s820_s1 + $0x80] sm:$0xff]  ;;  %v599_v37 = vld [vmem:[%s821_s0 + $0x14] sm:$0xf0] }
   0xc   :  { %357 = vmatpush.bf16.msra.mxu2 %v625_v10  ;;  %v629_v27 = vld [vmem:[%s820_s1 + $0xc8] sm:$0xff]  ;;  %v628_v31 = vld [vmem:[%s820_s1 + $0xc0] sm:$0xff]  ;;  %v448_v39 = vld [vmem:[%s821_s0 + $0x18] sm:$0xf0] }
   0xd   :  { %376 = vmatpush.bf16.msra.mxu3 %v633_v11  ;;  %v438_v32 = vld [vmem:[%s821_s0] sm:$0xf]  ;;  %v596_v34 = vld [vmem:[%s821_s0 + $0x4] sm:$0xf]  ;;  %v446_v36 = vld [vmem:[%s821_s0 + $0x8] sm:$0xf] }
   0xe   :  { %320 = vmatpush.bf16.msra.mxu0 %v608_v12  ;;  %v597_v38 = vld [vmem:[%s821_s0 + $0xc] sm:$0xf]  ;;  %v439_v40 = vor.u32 %v598_v33, %v438_v32  ;;  %v443_v41 = vor.u32 %v596_v34, %v440_v35  ;;  %v447_v42 = vor.u32 %v599_v37, %v446_v36  ;;  %v454_v44 = vld [vmem:[%s821_s0 + $0x20] sm:$0xf]  ;;  %v602_v45 = vld [vmem:[%s821_s0 + $0x2c] sm:$0xf0] }
   0xf   :  { %339 = vmatpush.bf16.msra.mxu1 %v616_v13  ;;  %v451_v43 = vor.u32 %v597_v38, %v448_v39  ;;  %v600_v46 = vld [vmem:[%s821_s0 + $0x24] sm:$0xf]  ;;  %v456_v47 = vld [vmem:[%s821_s0 + $0x30] sm:$0xf0]  ;;  %v462_v48 = vld [vmem:[%s821_s0 + $0x28] sm:$0xf]  ;;  %v455_v52 = vor.u32 %v602_v45, %v454_v44 }
  0x10   :  { %358 = vmatpush.bf16.msra.mxu2 %v624_v14  ;;  %v603_v49 = vld [vmem:[%s821_s0 + $0x34] sm:$0xf0]  ;;  %v601_v50 = vld [vmem:[%s821_s0 + $0x2c] sm:$0xf]  ;;  %v464_v51 = vld [vmem:[%s821_s0 + $0x38] sm:$0xf0]  ;;  %v459_v53 = vor.u32 %v600_v46, %v456_v47 }
  0x11   :  { %377 = vmatpush.bf16.msra.mxu3 %v632_v15  ;;  %v463_v54 = vor.u32 %v603_v49, %v462_v48  ;;  %v467_v55 = vor.u32 %v601_v50, %v464_v51 }
  0x12   :  { %321 = vmatpush.bf16.msra.mxu0 %v607_v16 }
  0x13   :  { %340 = vmatpush.bf16.msra.mxu1 %v615_v17 }
  0x14   :  { %359 = vmatpush.bf16.msra.mxu2 %v623_v18 }
  0x15   :  { %378 = vmatpush.bf16.msra.mxu3 %v631_v19 }
  0x16   :  { %322 = vmatpush.bf16.msra.mxu0 %v606_v20 }
  0x17   :  { %341 = vmatpush.bf16.msra.mxu1 %v614_v21 }
  0x18   :  { %360 = vmatpush.bf16.msra.mxu2 %v622_v22 }
  0x19   :  { %379 = vmatpush.bf16.msra.mxu3 %v630_v23 }
  0x1a   :  { %323 = vmatpush.bf16.msra.mxu0 %v605_v24 }
  0x1b   :  { %342 = vmatpush.bf16.msra.mxu1 %v613_v25 }
  0x1c   :  { %361 = vmatpush.bf16.msra.mxu2 %v621_v26 }
  0x1d   :  { %380 = vmatpush.bf16.msra.mxu3 %v629_v27 }
  0x1e   :  { %324 = vmatpush.bf16.msra.mxu0 %v604_v28 }
  0x1f   :  { %343 = vmatpush.bf16.msra.mxu1 %v612_v29 }
  0x20   :  { %362 = vmatpush.bf16.msra.mxu2 %v620_v30 }
  0x21   :  { %381 = vmatpush.bf16.msra.mxu3 %v628_v31  ;;  %325 = vmatmul.bf16.vlgmr.msra.gmra.mxu0 %v439_v40 }
  0x22   :  { %344 = vmatmul.bf16.vlgmr.msra.gmra.mxu1 %v443_v41 }
  0x23   :  { %363 = vmatmul.bf16.vlgmr.msra.gmra.mxu2 %v447_v42 }
  0x24   :  { %382 = vmatmul.bf16.vlgmr.msra.gmra.mxu3 %v451_v43 }
  0x31   :  { %330 = vmatmul.bf16.gmra.mxu0 %v455_v52 }
  0x32   :  { %349 = vmatmul.bf16.gmra.mxu1 %v459_v53 }
  0x33   :  { %368 = vmatmul.bf16.gmra.mxu2 %v463_v54 }
  0x34   :  { %387 = vmatmul.bf16.gmra.mxu3 %v467_v55 }
  0x9e   :  { %v326_v56 = vpop.f32.mrf.mxu0 }
  0x9f   :  { %v345_v57 = vpop.f32.mrf.mxu1 }
  0xa0   :  { %v346_v62 = vadd.f32 %v345_v57, %v326_v56 }
  0xa6   :  { %v364_v58 = vpop.f32.mrf.mxu2  ;;  %v328_v60 = vpop.f32.mrf.mxu0 }
  0xa7   :  { %v383_v59 = vpop.f32.mrf.mxu3  ;;  %v347_v61 = vpop.f32.mrf.mxu1  ;;  %v365_v63 = vadd.f32 %v364_v58, %v346_v62 }
  0xa8   :  { %v348_v0 = vadd.f32 %v347_v61, %v328_v60 }
  0xa9   :  { %v384_v6 = vadd.f32 %v383_v59, %v365_v63 }
  0xab   :  { %v410_v19 = vmul.f32 %v384_v6, %v384_v6 }
  0xae   :  { %v366_v1 = vpop.f32.mrf.mxu2  ;;  %v331_v4 = vpop.f32.mrf.mxu0 }
  0xaf   :  { %v385_v2 = vpop.f32.mrf.mxu3  ;;  %v367_v3 = vadd.f32 %v366_v1, %v348_v0  ;;  %v350_v5 = vpop.f32.mrf.mxu1 }
  0xb0   :  { %v351_v9 = vadd.f32 %v350_v5, %v331_v4 }
  0xb1   :  { %v386_v7 = vadd.f32 %v385_v2, %v367_v3 }
  0xb3   :  { %v639_v8 = vpack.c.bf16 %v386_v7, %v384_v6  ;;  %v411_v16 = vmul.f32 %v386_v7, %v386_v7  ;;  %v401_v20 = vadd.f32 %v386_v7, %v384_v6 }
  0xb5   :  { %640 = vst [vmem:[%s822_s2] sm:$0xff] %v639_v8   ;;  %v414_v24 = vadd.f32 %v411_v16, %v410_v19 }
  0xb6   :  { %v369_v10 = vpop.f32.mrf.mxu2  ;;  %v333_v13 = vpop.f32.mrf.mxu0 }
  0xb7   :  { %v388_v11 = vpop.f32.mrf.mxu3  ;;  %v370_v12 = vadd.f32 %v369_v10, %v351_v9  ;;  %v352_v14 = vpop.f32.mrf.mxu1 }
  0xb8   :  { %v353_v17 = vadd.f32 %v352_v14, %v333_v13 }
  0xb9   :  { %v389_v15 = vadd.f32 %v388_v11, %v370_v12 }
  0xbb   :  { %v412_v21 = vmul.f32 %v389_v15, %v389_v15  ;;  %v402_v25 = vadd.f32 %v401_v20, %v389_v15 }
  0xbd   :  { %v415_v27 = vadd.f32 %v414_v24, %v412_v21 }
  0xbe   :  { %v371_v18 = vpop.f32.mrf.mxu2 }
  0xbf   :  { %v372_v22 = vadd.f32 %v371_v18, %v353_v17  ;;  %v390_v23 = vpop.f32.mrf.mxu3 }
  0xc1   :  { %v391_v26 = vadd.f32 %v390_v23, %v372_v22 }
  0xc3   :  { %v644_v28 = vpack.c.bf16 %v391_v26, %v389_v15  ;;  %v403_v29 = vadd.f32 %v402_v25, %v391_v26  ;;  %v413_v30 = vmul.f32 %v391_v26, %v391_v26 }
  0xc5   :  { %646 = vst [vmem:[%s822_s2 + $0x8] sm:$0xff] %v644_v28   ;;  %v404_v31 = vrot.slane %v403_v29, 4  ;;  %v416_v32 = vadd.f32 %v415_v27, %v413_v30 }
  0xc7   :  { %v405_v33 = vadd.f32 %v404_v31, %v403_v29  ;;  %v417_v34 = vrot.slane %v416_v32, 4 }
  0xc9   :  { %v406_v35 = vrot.slane %v405_v33, 2  ;;  %v418_v36 = vadd.f32 %v417_v34, %v416_v32 }
  0xcb   :  { %v407_v37 = vadd.f32 %v406_v35, %v405_v33  ;;  %v419_v38 = vrot.slane %v418_v36, 2 }
  0xcd   :  { %v408_v39 = vrot.slane %v407_v37, 1  ;;  %v420_v40 = vadd.f32 %v419_v38, %v418_v36 }
  0xcf   :  { %v421_v41 = vrot.slane %v420_v40, 1  ;;  %v409_v42 = vadd.f32 %v408_v39, %v407_v37 }
  0xd1   :  { %v422_v43 = vadd.f32 %v421_v41, %v420_v40 }
  0xd3   :  { %v424_v44 = vsel %vm423_vm0, %v409_v42, %v422_v43 }
  0xd4   :  { %v426_v45 = vsel %vm425_vm1, %v424_v44, 0.0 }
  0xd5   :  { %427 = vst [vmem:[%s823_s3] sm:$0xff] %v426_v45 }

// kernel: generator_forward.32
= control target key start
LH: loop header
LB: loop body
LE: loop exit
PB: predicated region body
PF: predicated region fallthrough
CT: control target
= control target key end

     0   :  { %s1176_s0 = inlined_call_operand.vmem [shape: bf16[512,128], index: 0, kind: input, shape index: {}]   ;;  %s1177_s1 = inlined_call_operand.vmem [shape: f32[1,128], index: 1, kind: input, shape index: {}]   ;;  %s1178_s2 = inlined_call_operand.vmem [shape: f32[1,128], index: 2, kind: input, shape index: {}]   ;;  %s1179_s3 = inlined_call_operand.vmem [shape: bf16[512,128], index: 3, kind: output, shape index: {}]  }
   0x1   :  { %v475_v0 = vld [vmem:[%s1176_s0] sm:$0xff]   ;;  %v762_v5 = vld [vmem:[%s1176_s0 + $0x8] sm:$0xff]   ;;  %v763_v8 = vld [vmem:[%s1176_s0 + $0x10] sm:$0xff]  }
   0x2   :  { %v852_v1 = vld [vmem:[%s1177_s1] ss:$0 sm:$0xff]  ;;  %v476_v2 = vunpack.c.l.bf16 %v475_v0  ;;  %v477_v3 = vunpack.c.h.bf16 %v475_v0  ;;  %v480_v6 = vunpack.c.l.bf16 %v762_v5  ;;  %v481_v7 = vunpack.c.h.bf16 %v762_v5  ;;  %v764_v9 = vld [vmem:[%s1176_s0 + $0x18] sm:$0xff]   ;;  %v766_v35 = vld [vmem:[%s1176_s0 + $0x28] sm:$0xff]  }
   0x3   :  { %v857_v4 = vld [vmem:[%s1178_s2] ss:$0 sm:$0xff]  ;;  %v484_v12 = vunpack.c.l.bf16 %v763_v8  ;;  %v485_v13 = vunpack.c.h.bf16 %v763_v8  ;;  %v488_v16 = vunpack.c.l.bf16 %v764_v9  ;;  %v489_v17 = vunpack.c.h.bf16 %v764_v9  ;;  %v767_v40 = vld [vmem:[%s1176_s0 + $0x30] sm:$0xff]   ;;  %v768_v45 = vld [vmem:[%s1176_s0 + $0x38] sm:$0xff]  }
   0x4   :  { %v146_v10 = vmul.f32 %v852_v1, %v476_v2  ;;  %v147_v11 = vmul.f32 %v852_v1, %v477_v3  ;;  %v148_v14 = vmul.f32 %v852_v1, %v480_v6  ;;  %v149_v15 = vmul.f32 %v852_v1, %v481_v7  ;;  %v765_v26 = vld [vmem:[%s1176_s0 + $0x20] sm:$0xff]  }
   0x5   :  { %v150_v20 = vmul.f32 %v852_v1, %v484_v12  ;;  %v151_v21 = vmul.f32 %v852_v1, %v485_v13  ;;  %v152_v24 = vmul.f32 %v852_v1, %v488_v16  ;;  %v153_v25 = vmul.f32 %v852_v1, %v489_v17  ;;  %v769_v62 = vld [vmem:[%s1176_s0 + $0x40] sm:$0xff]   ;;  %v770_v13 = vld [vmem:[%s1176_s0 + $0x48] sm:$0xff]  }
   0x6   :  { %v214_v18 = vadd.f32 %v857_v4, %v146_v10  ;;  %v215_v19 = vadd.f32 %v857_v4, %v147_v11  ;;  %v216_v22 = vadd.f32 %v857_v4, %v148_v14  ;;  %v217_v23 = vadd.f32 %v857_v4, %v149_v15 }
   0x7   :  { %v218_v29 = vadd.f32 %v857_v4, %v150_v20  ;;  %v219_v30 = vadd.f32 %v857_v4, %v151_v21  ;;  %v220_v33 = vadd.f32 %v857_v4, %v152_v24  ;;  %v221_v34 = vadd.f32 %v857_v4, %v153_v25 }
   0x8   :  { %v278_v27 = vmax.f32 %v214_v18, 0.0  ;;  %v279_v28 = vmax.f32 %v215_v19, 0.0  ;;  %v280_v31 = vmax.f32 %v216_v22, 0.0  ;;  %v281_v32 = vmax.f32 %v217_v23, 0.0  ;;  %v771_v18 = vld [vmem:[%s1176_s0 + $0x50] sm:$0xff]   ;;  %v772_v23 = vld [vmem:[%s1176_s0 + $0x58] sm:$0xff]  }
   0x9   :  { %v282_v37 = vmax.f32 %v218_v29, 0.0  ;;  %v283_v38 = vmax.f32 %v219_v30, 0.0  ;;  %v492_v39 = vunpack.c.l.bf16 %v765_v26  ;;  %v284_v42 = vmax.f32 %v220_v33, 0.0 }
   0xa   :  { %v605_v36 = vpack.c.bf16 %v279_v28, %v278_v27  ;;  %v610_v41 = vpack.c.bf16 %v281_v32, %v280_v31  ;;  %v285_v43 = vmax.f32 %v221_v34, 0.0  ;;  %v493_v44 = vunpack.c.h.bf16 %v765_v26 }
   0xb   :  { %v615_v46 = vpack.c.bf16 %v283_v38, %v282_v37  ;;  %v154_v47 = vmul.f32 %v852_v1, %v492_v39  ;;  %v496_v48 = vunpack.c.l.bf16 %v766_v35  ;;  %v497_v49 = vunpack.c.h.bf16 %v766_v35 }
   0xc   :  { %606 = vst [vmem:[%s1179_s3] sm:$0xff] %v605_v36   ;;  %v620_v50 = vpack.c.bf16 %v285_v43, %v284_v42  ;;  %v155_v51 = vmul.f32 %v852_v1, %v493_v44  ;;  %v500_v52 = vunpack.c.l.bf16 %v767_v40  ;;  %v501_v53 = vunpack.c.h.bf16 %v767_v40  ;;  %v773_v36 = vld [vmem:[%s1176_s0 + $0x60] sm:$0xff]  }
   0xd   :  { %793 = vst [vmem:[%s1179_s3 + $0x8] sm:$0xff] %v610_v41   ;;  %v222_v54 = vadd.f32 %v857_v4, %v154_v47  ;;  %v156_v55 = vmul.f32 %v852_v1, %v496_v48  ;;  %v157_v56 = vmul.f32 %v852_v1, %v497_v49  ;;  %v504_v57 = vunpack.c.l.bf16 %v768_v45 }
   0xe   :  { %794 = vst [vmem:[%s1179_s3 + $0x10] sm:$0xff] %v615_v46   ;;  %v223_v58 = vadd.f32 %v857_v4, %v155_v51  ;;  %v158_v59 = vmul.f32 %v852_v1, %v500_v52  ;;  %v159_v60 = vmul.f32 %v852_v1, %v501_v53  ;;  %v505_v61 = vunpack.c.h.bf16 %v768_v45  ;;  %v774_v53 = vld [vmem:[%s1176_s0 + $0x68] sm:$0xff]  }
   0xf   :  { %795 = vst [vmem:[%s1179_s3 + $0x18] sm:$0xff] %v620_v50   ;;  %v286_v63 = vmax.f32 %v222_v54, 0.0  ;;  %v224_v0 = vadd.f32 %v857_v4, %v156_v55  ;;  %v225_v2 = vadd.f32 %v857_v4, %v157_v56  ;;  %v160_v3 = vmul.f32 %v852_v1, %v504_v57 }
  0x10   :  { %v287_v5 = vmax.f32 %v223_v58, 0.0  ;;  %v226_v6 = vadd.f32 %v857_v4, %v158_v59  ;;  %v227_v7 = vadd.f32 %v857_v4, %v159_v60  ;;  %v161_v8 = vmul.f32 %v852_v1, %v505_v61  ;;  %v775_v58 = vld [vmem:[%s1176_s0 + $0x70] sm:$0xff]  }
  0x11   :  { %v288_v9 = vmax.f32 %v224_v0, 0.0  ;;  %v289_v10 = vmax.f32 %v225_v2, 0.0  ;;  %v228_v11 = vadd.f32 %v857_v4, %v160_v3  ;;  %v508_v12 = vunpack.c.l.bf16 %v769_v62 }
  0x12   :  { %v625_v14 = vpack.c.bf16 %v287_v5, %v286_v63  ;;  %v290_v15 = vmax.f32 %v226_v6, 0.0  ;;  %v291_v16 = vmax.f32 %v227_v7, 0.0  ;;  %v229_v17 = vadd.f32 %v857_v4, %v161_v8  ;;  %v776_v63 = vld [vmem:[%s1176_s0 + $0x78] sm:$0xff]  }
  0x13   :  { %v630_v19 = vpack.c.bf16 %v289_v10, %v288_v9  ;;  %v292_v20 = vmax.f32 %v228_v11, 0.0  ;;  %v509_v21 = vunpack.c.h.bf16 %v769_v62  ;;  %v162_v22 = vmul.f32 %v852_v1, %v508_v12 }
  0x14   :  { %796 = vst [vmem:[%s1179_s3 + $0x20] sm:$0xff] %v625_v14   ;;  %v635_v24 = vpack.c.bf16 %v291_v16, %v290_v15  ;;  %v293_v25 = vmax.f32 %v229_v17, 0.0  ;;  %v512_v26 = vunpack.c.l.bf16 %v770_v13  ;;  %v513_v27 = vunpack.c.h.bf16 %v770_v13  ;;  %v777_v14 = vld [vmem:[%s1176_s0 + $0x80] sm:$0xff]  }
  0x15   :  { %797 = vst [vmem:[%s1179_s3 + $0x28] sm:$0xff] %v630_v19   ;;  %v163_v28 = vmul.f32 %v852_v1, %v509_v21  ;;  %v230_v29 = vadd.f32 %v857_v4, %v162_v22  ;;  %v516_v30 = vunpack.c.l.bf16 %v771_v18  ;;  %v517_v31 = vunpack.c.h.bf16 %v771_v18 }
  0x16   :  { %798 = vst [vmem:[%s1179_s3 + $0x30] sm:$0xff] %v635_v24   ;;  %v640_v32 = vpack.c.bf16 %v293_v25, %v292_v20  ;;  %v164_v33 = vmul.f32 %v852_v1, %v512_v26  ;;  %v165_v34 = vmul.f32 %v852_v1, %v513_v27  ;;  %v520_v35 = vunpack.c.l.bf16 %v772_v23  ;;  %v778_v27 = vld [vmem:[%s1176_s0 + $0x88] sm:$0xff]  }
  0x17   :  { %v231_v37 = vadd.f32 %v857_v4, %v163_v28  ;;  %v294_v38 = vmax.f32 %v230_v29, 0.0  ;;  %v166_v39 = vmul.f32 %v852_v1, %v516_v30  ;;  %v167_v40 = vmul.f32 %v852_v1, %v517_v31 }
  0x18   :  { %799 = vst [vmem:[%s1179_s3 + $0x38] sm:$0xff] %v640_v32   ;;  %v232_v41 = vadd.f32 %v857_v4, %v164_v33  ;;  %v233_v42 = vadd.f32 %v857_v4, %v165_v34  ;;  %v521_v43 = vunpack.c.h.bf16 %v772_v23  ;;  %v168_v44 = vmul.f32 %v852_v1, %v520_v35 }
  0x19   :  { %v295_v45 = vmax.f32 %v231_v37, 0.0  ;;  %v234_v46 = vadd.f32 %v857_v4, %v166_v39  ;;  %v235_v47 = vadd.f32 %v857_v4, %v167_v40  ;;  %v524_v48 = vunpack.c.l.bf16 %v773_v36 }
  0x1a   :  { %v296_v49 = vmax.f32 %v232_v41, 0.0  ;;  %v297_v50 = vmax.f32 %v233_v42, 0.0  ;;  %v169_v51 = vmul.f32 %v852_v1, %v521_v43  ;;  %v236_v52 = vadd.f32 %v857_v4, %v168_v44  ;;  %v780_v41 = vld [vmem:[%s1176_s0 + $0x98] sm:$0xff]  }
  0x1b   :  { %v645_v54 = vpack.c.bf16 %v295_v45, %v294_v38  ;;  %v298_v55 = vmax.f32 %v234_v46, 0.0  ;;  %v299_v56 = vmax.f32 %v235_v47, 0.0  ;;  %v525_v57 = vunpack.c.h.bf16 %v773_v36  ;;  %v779_v36 = vld [vmem:[%s1176_s0 + $0x90] sm:$0xff]  }
  0x1c   :  { %v650_v59 = vpack.c.bf16 %v297_v50, %v296_v49  ;;  %v237_v60 = vadd.f32 %v857_v4, %v169_v51  ;;  %v300_v61 = vmax.f32 %v236_v52, 0.0  ;;  %v170_v62 = vmul.f32 %v852_v1, %v524_v48 }
  0x1d   :  { %800 = vst [vmem:[%s1179_s3 + $0x40] sm:$0xff] %v645_v54   ;;  %v655_v0 = vpack.c.bf16 %v299_v56, %v298_v55  ;;  %v171_v2 = vmul.f32 %v852_v1, %v525_v57  ;;  %v528_v3 = vunpack.c.l.bf16 %v774_v53  ;;  %v529_v5 = vunpack.c.h.bf16 %v774_v53  ;;  %v781_v54 = vld [vmem:[%s1176_s0 + $0xa0] sm:$0xff]  }
  0x1e   :  { %801 = vst [vmem:[%s1179_s3 + $0x48] sm:$0xff] %v650_v59   ;;  %v301_v6 = vmax.f32 %v237_v60, 0.0  ;;  %v238_v7 = vadd.f32 %v857_v4, %v170_v62  ;;  %v532_v8 = vunpack.c.l.bf16 %v775_v58  ;;  %v533_v9 = vunpack.c.h.bf16 %v775_v58 }
  0x1f   :  { %802 = vst [vmem:[%s1179_s3 + $0x50] sm:$0xff] %v655_v0   ;;  %v239_v10 = vadd.f32 %v857_v4, %v171_v2  ;;  %v172_v11 = vmul.f32 %v852_v1, %v528_v3  ;;  %v173_v12 = vmul.f32 %v852_v1, %v529_v5  ;;  %v536_v13 = vunpack.c.l.bf16 %v776_v63  ;;  %v782_v5 = vld [vmem:[%s1176_s0 + $0xa8] sm:$0xff]  }
  0x20   :  { %v660_v15 = vpack.c.bf16 %v301_v6, %v300_v61  ;;  %v302_v16 = vmax.f32 %v238_v7, 0.0  ;;  %v174_v17 = vmul.f32 %v852_v1, %v532_v8  ;;  %v175_v18 = vmul.f32 %v852_v1, %v533_v9 }
  0x21   :  { %v303_v19 = vmax.f32 %v239_v10, 0.0  ;;  %v240_v20 = vadd.f32 %v857_v4, %v172_v11  ;;  %v241_v21 = vadd.f32 %v857_v4, %v173_v12  ;;  %v537_v22 = vunpack.c.h.bf16 %v776_v63 }
  0x22   :  { %803 = vst [vmem:[%s1179_s3 + $0x58] sm:$0xff] %v660_v15   ;;  %v242_v23 = vadd.f32 %v857_v4, %v174_v17  ;;  %v243_v24 = vadd.f32 %v857_v4, %v175_v18  ;;  %v176_v25 = vmul.f32 %v852_v1, %v536_v13  ;;  %v540_v26 = vunpack.c.l.bf16 %v777_v14 }
  0x23   :  { %v665_v28 = vpack.c.bf16 %v303_v19, %v302_v16  ;;  %v304_v29 = vmax.f32 %v240_v20, 0.0  ;;  %v305_v30 = vmax.f32 %v241_v21, 0.0  ;;  %v177_v31 = vmul.f32 %v852_v1, %v537_v22 }
  0x24   :  { %v306_v32 = vmax.f32 %v242_v23, 0.0  ;;  %v307_v33 = vmax.f32 %v243_v24, 0.0  ;;  %v244_v34 = vadd.f32 %v857_v4, %v176_v25  ;;  %v541_v35 = vunpack.c.h.bf16 %v777_v14  ;;  %v783_v14 = vld [vmem:[%s1176_s0 + $0xb0] sm:$0xff]   ;;  %v784_v23 = vld [vmem:[%s1176_s0 + $0xb8] sm:$0xff]  }
  0x25   :  { %804 = vst [vmem:[%s1179_s3 + $0x60] sm:$0xff] %v665_v28   ;;  %v670_v37 = vpack.c.bf16 %v305_v30, %v304_v29  ;;  %v245_v38 = vadd.f32 %v857_v4, %v177_v31  ;;  %v178_v39 = vmul.f32 %v852_v1, %v540_v26  ;;  %v544_v40 = vunpack.c.l.bf16 %v778_v27 }
  0x26   :  { %v675_v42 = vpack.c.bf16 %v307_v33, %v306_v32  ;;  %v308_v43 = vmax.f32 %v244_v34, 0.0  ;;  %v179_v44 = vmul.f32 %v852_v1, %v541_v35  ;;  %v545_v45 = vunpack.c.h.bf16 %v778_v27  ;;  %v785_v32 = vld [vmem:[%s1176_s0 + $0xc0] sm:$0xff]  }
  0x27   :  { %805 = vst [vmem:[%s1179_s3 + $0x68] sm:$0xff] %v670_v37   ;;  %v309_v46 = vmax.f32 %v245_v38, 0.0  ;;  %v246_v47 = vadd.f32 %v857_v4, %v178_v39  ;;  %v180_v48 = vmul.f32 %v852_v1, %v544_v40  ;;  %v548_v49 = vunpack.c.l.bf16 %v779_v36 }
  0x28   :  { %806 = vst [vmem:[%s1179_s3 + $0x70] sm:$0xff] %v675_v42   ;;  %v247_v50 = vadd.f32 %v857_v4, %v179_v44  ;;  %v181_v51 = vmul.f32 %v852_v1, %v545_v45  ;;  %v549_v52 = vunpack.c.h.bf16 %v779_v36  ;;  %v552_v53 = vunpack.c.l.bf16 %v780_v41  ;;  %v786_v45 = vld [vmem:[%s1176_s0 + $0xc8] sm:$0xff]  }
  0x29   :  { %v680_v55 = vpack.c.bf16 %v309_v46, %v308_v43  ;;  %v310_v56 = vmax.f32 %v246_v47, 0.0  ;;  %v248_v57 = vadd.f32 %v857_v4, %v180_v48  ;;  %v182_v58 = vmul.f32 %v852_v1, %v548_v49 }
  0x2a   :  { %v311_v59 = vmax.f32 %v247_v50, 0.0  ;;  %v249_v60 = vadd.f32 %v857_v4, %v181_v51  ;;  %v183_v61 = vmul.f32 %v852_v1, %v549_v52  ;;  %v553_v62 = vunpack.c.h.bf16 %v780_v41 }
  0x2b   :  { %807 = vst [vmem:[%s1179_s3 + $0x78] sm:$0xff] %v680_v55   ;;  %v312_v63 = vmax.f32 %v248_v57, 0.0  ;;  %v250_v0 = vadd.f32 %v857_v4, %v182_v58  ;;  %v184_v2 = vmul.f32 %v852_v1, %v552_v53  ;;  %v556_v3 = vunpack.c.l.bf16 %v781_v54 }
  0x2c   :  { %v685_v6 = vpack.c.bf16 %v311_v59, %v310_v56  ;;  %v313_v7 = vmax.f32 %v249_v60, 0.0  ;;  %v251_v8 = vadd.f32 %v857_v4, %v183_v61  ;;  %v185_v9 = vmul.f32 %v852_v1, %v553_v62 }
  0x2d   :  { %v314_v10 = vmax.f32 %v250_v0, 0.0  ;;  %v252_v11 = vadd.f32 %v857_v4, %v184_v2  ;;  %v557_v12 = vunpack.c.h.bf16 %v781_v54  ;;  %v186_v13 = vmul.f32 %v852_v1, %v556_v3  ;;  %v787_v54 = vld [vmem:[%s1176_s0 + $0xd0] sm:$0xff]  }
  0x2e   :  { %808 = vst [vmem:[%s1179_s3 + $0x80] sm:$0xff] %v685_v6   ;;  %v690_v15 = vpack.c.bf16 %v313_v7, %v312_v63  ;;  %v315_v16 = vmax.f32 %v251_v8, 0.0  ;;  %v253_v17 = vadd.f32 %v857_v4, %v185_v9  ;;  %v560_v18 = vunpack.c.l.bf16 %v782_v5  ;;  %v788_v63 = vld [vmem:[%s1176_s0 + $0xd8] sm:$0xff]  }
  0x2f   :  { %v316_v19 = vmax.f32 %v252_v11, 0.0  ;;  %v187_v20 = vmul.f32 %v852_v1, %v557_v12  ;;  %v254_v21 = vadd.f32 %v857_v4, %v186_v13  ;;  %v561_v22 = vunpack.c.h.bf16 %v782_v5 }
  0x30   :  { %809 = vst [vmem:[%s1179_s3 + $0x88] sm:$0xff] %v690_v15   ;;  %v695_v24 = vpack.c.bf16 %v315_v16, %v314_v10  ;;  %v317_v25 = vmax.f32 %v253_v17, 0.0  ;;  %v188_v26 = vmul.f32 %v852_v1, %v560_v18  ;;  %v564_v27 = vunpack.c.l.bf16 %v783_v14  ;;  %v789_v10 = vld [vmem:[%s1176_s0 + $0xe0] sm:$0xff]  }
  0x31   :  { %v255_v28 = vadd.f32 %v857_v4, %v187_v20  ;;  %v318_v29 = vmax.f32 %v254_v21, 0.0  ;;  %v189_v30 = vmul.f32 %v852_v1, %v561_v22  ;;  %v565_v31 = vunpack.c.h.bf16 %v783_v14 }
  0x32   :  { %810 = vst [vmem:[%s1179_s3 + $0x90] sm:$0xff] %v695_v24   ;;  %v700_v33 = vpack.c.bf16 %v317_v25, %v316_v19  ;;  %v256_v34 = vadd.f32 %v857_v4, %v188_v26  ;;  %v190_v35 = vmul.f32 %v852_v1, %v564_v27  ;;  %v568_v36 = vunpack.c.l.bf16 %v784_v23 }
  0x33   :  { %v319_v37 = vmax.f32 %v255_v28, 0.0  ;;  %v257_v38 = vadd.f32 %v857_v4, %v189_v30  ;;  %v191_v39 = vmul.f32 %v852_v1, %v565_v31  ;;  %v569_v40 = vunpack.c.h.bf16 %v784_v23  ;;  %v790_v23 = vld [vmem:[%s1176_s0 + $0xe8] sm:$0xff]  }
  0x34   :  { %811 = vst [vmem:[%s1179_s3 + $0x98] sm:$0xff] %v700_v33   ;;  %v320_v41 = vmax.f32 %v256_v34, 0.0  ;;  %v258_v42 = vadd.f32 %v857_v4, %v190_v35  ;;  %v192_v43 = vmul.f32 %v852_v1, %v568_v36  ;;  %v572_v44 = vunpack.c.l.bf16 %v785_v32 }
  0x35   :  { %v705_v46 = vpack.c.bf16 %v319_v37, %v318_v29  ;;  %v321_v47 = vmax.f32 %v257_v38, 0.0  ;;  %v259_v48 = vadd.f32 %v857_v4, %v191_v39  ;;  %v193_v49 = vmul.f32 %v852_v1, %v569_v40 }
  0x36   :  { %v322_v50 = vmax.f32 %v258_v42, 0.0  ;;  %v260_v51 = vadd.f32 %v857_v4, %v192_v43  ;;  %v573_v52 = vunpack.c.h.bf16 %v785_v32  ;;  %v194_v53 = vmul.f32 %v852_v1, %v572_v44  ;;  %v791_v32 = vld [vmem:[%s1176_s0 + $0xf0] sm:$0xff]  }
  0x37   :  { %812 = vst [vmem:[%s1179_s3 + $0xa0] sm:$0xff] %v705_v46   ;;  %v710_v55 = vpack.c.bf16 %v321_v47, %v320_v41  ;;  %v323_v56 = vmax.f32 %v259_v48, 0.0  ;;  %v261_v57 = vadd.f32 %v857_v4, %v193_v49  ;;  %v576_v58 = vunpack.c.l.bf16 %v786_v45  ;;  %v792_v41 = vld [vmem:[%s1176_s0 + $0xf8] sm:$0xff]  }
  0x38   :  { %v324_v59 = vmax.f32 %v260_v51, 0.0  ;;  %v195_v60 = vmul.f32 %v852_v1, %v573_v52  ;;  %v262_v61 = vadd.f32 %v857_v4, %v194_v53  ;;  %v577_v62 = vunpack.c.h.bf16 %v786_v45 }
  0x39   :  { %813 = vst [vmem:[%s1179_s3 + $0xa8] sm:$0xff] %v710_v55   ;;  %v715_v0 = vpack.c.bf16 %v323_v56, %v322_v50  ;;  %v325_v2 = vmax.f32 %v261_v57, 0.0  ;;  %v196_v3 = vmul.f32 %v852_v1, %v576_v58  ;;  %v580_v5 = vunpack.c.l.bf16 %v787_v54 }
  0x3a   :  { %v263_v6 = vadd.f32 %v857_v4, %v195_v60  ;;  %v326_v7 = vmax.f32 %v262_v61, 0.0  ;;  %v197_v8 = vmul.f32 %v852_v1, %v577_v62  ;;  %v581_v9 = vunpack.c.h.bf16 %v787_v54 }
  0x3b   :  { %814 = vst [vmem:[%s1179_s3 + $0xb0] sm:$0xff] %v715_v0   ;;  %v720_v11 = vpack.c.bf16 %v325_v2, %v324_v59  ;;  %v264_v12 = vadd.f32 %v857_v4, %v196_v3  ;;  %v198_v13 = vmul.f32 %v852_v1, %v580_v5  ;;  %v584_v14 = vunpack.c.l.bf16 %v788_v63 }
  0x3c   :  { %v327_v15 = vmax.f32 %v263_v6, 0.0  ;;  %v265_v16 = vadd.f32 %v857_v4, %v197_v8  ;;  %v199_v17 = vmul.f32 %v852_v1, %v581_v9  ;;  %v585_v18 = vunpack.c.h.bf16 %v788_v63 }
  0x3d   :  { %815 = vst [vmem:[%s1179_s3 + $0xb8] sm:$0xff] %v720_v11   ;;  %v328_v19 = vmax.f32 %v264_v12, 0.0  ;;  %v266_v20 = vadd.f32 %v857_v4, %v198_v13  ;;  %v200_v21 = vmul.f32 %v852_v1, %v584_v14  ;;  %v588_v22 = vunpack.c.l.bf16 %v789_v10 }
  0x3e   :  { %v725_v24 = vpack.c.bf16 %v327_v15, %v326_v7  ;;  %v329_v25 = vmax.f32 %v265_v16, 0.0  ;;  %v267_v26 = vadd.f32 %v857_v4, %v199_v17  ;;  %v201_v27 = vmul.f32 %v852_v1, %v585_v18 }
  0x3f   :  { %v330_v28 = vmax.f32 %v266_v20, 0.0  ;;  %v268_v29 = vadd.f32 %v857_v4, %v200_v21  ;;  %v589_v30 = vunpack.c.h.bf16 %v789_v10  ;;  %v202_v31 = vmul.f32 %v852_v1, %v588_v22 }
  0x40   :  { %816 = vst [vmem:[%s1179_s3 + $0xc0] sm:$0xff] %v725_v24   ;;  %v730_v33 = vpack.c.bf16 %v329_v25, %v328_v19  ;;  %v331_v34 = vmax.f32 %v267_v26, 0.0  ;;  %v269_v35 = vadd.f32 %v857_v4, %v201_v27  ;;  %v592_v36 = vunpack.c.l.bf16 %v790_v23 }
  0x41   :  { %v332_v37 = vmax.f32 %v268_v29, 0.0  ;;  %v203_v38 = vmul.f32 %v852_v1, %v589_v30  ;;  %v270_v39 = vadd.f32 %v857_v4, %v202_v31  ;;  %v593_v40 = vunpack.c.h.bf16 %v790_v23 }
  0x42   :  { %817 = vst [vmem:[%s1179_s3 + $0xc8] sm:$0xff] %v730_v33   ;;  %v735_v42 = vpack.c.bf16 %v331_v34, %v330_v28  ;;  %v333_v43 = vmax.f32 %v269_v35, 0.0  ;;  %v204_v44 = vmul.f32 %v852_v1, %v592_v36  ;;  %v596_v45 = vunpack.c.l.bf16 %v791_v32 }
  0x43   :  { %v271_v46 = vadd.f32 %v857_v4, %v203_v38  ;;  %v334_v47 = vmax.f32 %v270_v39, 0.0  ;;  %v205_v48 = vmul.f32 %v852_v1, %v593_v40  ;;  %v597_v49 = vunpack.c.h.bf16 %v791_v32 }
  0x44   :  { %818 = vst [vmem:[%s1179_s3 + $0xd0] sm:$0xff] %v735_v42   ;;  %v740_v50 = vpack.c.bf16 %v333_v43, %v332_v37  ;;  %v272_v51 = vadd.f32 %v857_v4, %v204_v44  ;;  %v206_v52 = vmul.f32 %v852_v1, %v596_v45  ;;  %v600_v53 = vunpack.c.l.bf16 %v792_v41 }
  0x45   :  { %v335_v54 = vmax.f32 %v271_v46, 0.0  ;;  %v273_v55 = vadd.f32 %v857_v4, %v205_v48  ;;  %v207_v56 = vmul.f32 %v852_v1, %v597_v49  ;;  %v601_v57 = vunpack.c.h.bf16 %v792_v41 }
  0x46   :  { %819 = vst [vmem:[%s1179_s3 + $0xd8] sm:$0xff] %v740_v50   ;;  %v336_v58 = vmax.f32 %v272_v51, 0.0  ;;  %v274_v59 = vadd.f32 %v857_v4, %v206_v52  ;;  %v208_v60 = vmul.f32 %v852_v1, %v600_v53 }
  0x47   :  { %v745_v61 = vpack.c.bf16 %v335_v54, %v334_v47  ;;  %v337_v62 = vmax.f32 %v273_v55, 0.0  ;;  %v275_v63 = vadd.f32 %v857_v4, %v207_v56  ;;  %v209_v0 = vmul.f32 %v852_v1, %v601_v57 }
  0x48   :  { %v338_v2 = vmax.f32 %v274_v59, 0.0  ;;  %v276_v3 = vadd.f32 %v857_v4, %v208_v60 }
  0x49   :  { %820 = vst [vmem:[%s1179_s3 + $0xe0] sm:$0xff] %v745_v61   ;;  %v750_v5 = vpack.c.bf16 %v337_v62, %v336_v58  ;;  %v339_v6 = vmax.f32 %v275_v63, 0.0  ;;  %v277_v7 = vadd.f32 %v857_v4, %v209_v0 }
  0x4a   :  { %v340_v8 = vmax.f32 %v276_v3, 0.0 }
  0x4b   :  { %821 = vst [vmem:[%s1179_s3 + $0xe8] sm:$0xff] %v750_v5   ;;  %v755_v9 = vpack.c.bf16 %v339_v6, %v338_v2  ;;  %v341_v10 = vmax.f32 %v277_v7, 0.0 }
  0x4d   :  { %822 = vst [vmem:[%s1179_s3 + $0xf0] sm:$0xff] %v755_v9   ;;  %v760_v1 = vpack.c.bf16 %v341_v10, %v340_v8 }
  0x4f   :  { %823 = vst [vmem:[%s1179_s3 + $0xf8] sm:$0xff] %v760_v1  }

// kernel: generator_forward.31
= control target key start
LH: loop header
LB: loop body
LE: loop exit
PB: predicated region body
PF: predicated region fallthrough
CT: control target
= control target key end

     0   :  { %vm747_vm0 = vcmask 1040384   ;;  %vm749_vm1 = vcmask 1041408   ;;  %s1474_s1 = inlined_call_operand.vmem [shape: bf16[512,128], index: 1, kind: input, shape index: {}]   ;;  %s1475_s0 = inlined_call_operand.vmem [shape: bf16[128,512], index: 0, kind: input, shape index: {}]   ;;  %s1476_s2 = inlined_call_operand.vmem [shape: bf16[128,128], index: 2, kind: output, shape index: {0}]   ;;  %s1477_s3 = inlined_call_operand.vmem [shape: f32[8,128], index: 3, kind: output, shape index: {1}]  }
   0x1   :  { %v1055_v0 = vld [vmem:[%s1474_s1 + $0x38] sm:$0xff]  ;;  %v1054_v4 = vld [vmem:[%s1474_s1 + $0x30] sm:$0xff]  ;;  %v1053_v8 = vld [vmem:[%s1474_s1 + $0x28] sm:$0xff] }
   0x2   :  { %v1063_v1 = vld [vmem:[%s1474_s1 + $0x78] sm:$0xff]  ;;  %461 = vmatpush.bf16.msra.mxu0 %v1055_v0  ;;  %v1062_v5 = vld [vmem:[%s1474_s1 + $0x70] sm:$0xff]  ;;  %v1061_v9 = vld [vmem:[%s1474_s1 + $0x68] sm:$0xff] }
   0x3   :  { %v1071_v2 = vld [vmem:[%s1474_s1 + $0xb8] sm:$0xff]  ;;  %510 = vmatpush.bf16.msra.mxu1 %v1063_v1  ;;  %v1070_v6 = vld [vmem:[%s1474_s1 + $0xb0] sm:$0xff]  ;;  %v1069_v10 = vld [vmem:[%s1474_s1 + $0xa8] sm:$0xff] }
   0x4   :  { %v1079_v3 = vld [vmem:[%s1474_s1 + $0xf8] sm:$0xff]  ;;  %559 = vmatpush.bf16.msra.mxu2 %v1071_v2  ;;  %v1078_v7 = vld [vmem:[%s1474_s1 + $0xf0] sm:$0xff]  ;;  %v1077_v11 = vld [vmem:[%s1474_s1 + $0xe8] sm:$0xff] }
   0x5   :  { %608 = vmatpush.bf16.msra.mxu3 %v1079_v3  ;;  %v1052_v12 = vld [vmem:[%s1474_s1 + $0x20] sm:$0xff]  ;;  %v1051_v16 = vld [vmem:[%s1474_s1 + $0x18] sm:$0xff]  ;;  %v1050_v20 = vld [vmem:[%s1474_s1 + $0x10] sm:$0xff] }
   0x6   :  { %462 = vmatpush.bf16.msra.mxu0 %v1054_v4  ;;  %v1060_v13 = vld [vmem:[%s1474_s1 + $0x60] sm:$0xff]  ;;  %v1059_v17 = vld [vmem:[%s1474_s1 + $0x58] sm:$0xff]  ;;  %v1058_v21 = vld [vmem:[%s1474_s1 + $0x50] sm:$0xff] }
   0x7   :  { %511 = vmatpush.bf16.msra.mxu1 %v1062_v5  ;;  %v1068_v14 = vld [vmem:[%s1474_s1 + $0xa0] sm:$0xff]  ;;  %v1067_v18 = vld [vmem:[%s1474_s1 + $0x98] sm:$0xff]  ;;  %v1066_v22 = vld [vmem:[%s1474_s1 + $0x90] sm:$0xff] }
   0x8   :  { %560 = vmatpush.bf16.msra.mxu2 %v1070_v6  ;;  %v1076_v15 = vld [vmem:[%s1474_s1 + $0xe0] sm:$0xff]  ;;  %v1075_v19 = vld [vmem:[%s1474_s1 + $0xd8] sm:$0xff]  ;;  %v1074_v23 = vld [vmem:[%s1474_s1 + $0xd0] sm:$0xff] }
   0x9   :  { %609 = vmatpush.bf16.msra.mxu3 %v1078_v7  ;;  %v1049_v24 = vld [vmem:[%s1474_s1 + $0x8] sm:$0xff]  ;;  %v1048_v28 = vld [vmem:[%s1474_s1] sm:$0xff]  ;;  %v1018_v33 = vld [vmem:[%s1475_s0 + $0xc] sm:$0xf0] }
   0xa   :  { %463 = vmatpush.bf16.msra.mxu0 %v1053_v8  ;;  %v1057_v25 = vld [vmem:[%s1474_s1 + $0x48] sm:$0xff]  ;;  %v1056_v29 = vld [vmem:[%s1474_s1 + $0x40] sm:$0xff]  ;;  %v764_v35 = vld [vmem:[%s1475_s0 + $0x10] sm:$0xf0] }
   0xb   :  { %512 = vmatpush.bf16.msra.mxu1 %v1061_v9  ;;  %v1065_v26 = vld [vmem:[%s1474_s1 + $0x88] sm:$0xff]  ;;  %v1064_v30 = vld [vmem:[%s1474_s1 + $0x80] sm:$0xff]  ;;  %v1019_v37 = vld [vmem:[%s1475_s0 + $0x14] sm:$0xf0] }
   0xc   :  { %561 = vmatpush.bf16.msra.mxu2 %v1069_v10  ;;  %v1073_v27 = vld [vmem:[%s1474_s1 + $0xc8] sm:$0xff]  ;;  %v1072_v31 = vld [vmem:[%s1474_s1 + $0xc0] sm:$0xff]  ;;  %v772_v39 = vld [vmem:[%s1475_s0 + $0x18] sm:$0xf0] }
   0xd   :  { %610 = vmatpush.bf16.msra.mxu3 %v1077_v11  ;;  %v762_v32 = vld [vmem:[%s1475_s0] sm:$0xf]  ;;  %v1016_v34 = vld [vmem:[%s1475_s0 + $0x4] sm:$0xf]  ;;  %v770_v36 = vld [vmem:[%s1475_s0 + $0x8] sm:$0xf] }
   0xe   :  { %464 = vmatpush.bf16.msra.mxu0 %v1052_v12  ;;  %v1017_v38 = vld [vmem:[%s1475_s0 + $0xc] sm:$0xf]  ;;  %v763_v40 = vor.u32 %v1018_v33, %v762_v32  ;;  %v767_v41 = vor.u32 %v1016_v34, %v764_v35  ;;  %v771_v42 = vor.u32 %v1019_v37, %v770_v36  ;;  %v778_v44 = vld [vmem:[%s1475_s0 + $0x20] sm:$0xf]  ;;  %v1022_v45 = vld [vmem:[%s1475_s0 + $0x2c] sm:$0xf0] }
   0xf   :  { %513 = vmatpush.bf16.msra.mxu1 %v1060_v13  ;;  %v775_v43 = vor.u32 %v1017_v38, %v772_v39  ;;  %v1020_v46 = vld [vmem:[%s1475_s0 + $0x24] sm:$0xf]  ;;  %v780_v47 = vld [vmem:[%s1475_s0 + $0x30] sm:$0xf0]  ;;  %v786_v48 = vld [vmem:[%s1475_s0 + $0x28] sm:$0xf]  ;;  %v779_v52 = vor.u32 %v1022_v45, %v778_v44 }
  0x10   :  { %562 = vmatpush.bf16.msra.mxu2 %v1068_v14  ;;  %v1023_v49 = vld [vmem:[%s1475_s0 + $0x34] sm:$0xf0]  ;;  %v1021_v50 = vld [vmem:[%s1475_s0 + $0x2c] sm:$0xf]  ;;  %v788_v51 = vld [vmem:[%s1475_s0 + $0x38] sm:$0xf0]  ;;  %v783_v53 = vor.u32 %v1020_v46, %v780_v47 }
  0x11   :  { %611 = vmatpush.bf16.msra.mxu3 %v1076_v15  ;;  %v787_v54 = vor.u32 %v1023_v49, %v786_v48  ;;  %v791_v55 = vor.u32 %v1021_v50, %v788_v51  ;;  %v794_v56 = vld [vmem:[%s1475_s0 + $0x40] sm:$0xf]  ;;  %v1026_v57 = vld [vmem:[%s1475_s0 + $0x4c] sm:$0xf0]  ;;  %v1024_v58 = vld [vmem:[%s1475_s0 + $0x44] sm:$0xf] }
  0x12   :  { %465 = vmatpush.bf16.msra.mxu0 %v1051_v16  ;;  %v796_v59 = vld [vmem:[%s1475_s0 + $0x50] sm:$0xf0]  ;;  %v802_v60 = vld [vmem:[%s1475_s0 + $0x48] sm:$0xf]  ;;  %v1027_v61 = vld [vmem:[%s1475_s0 + $0x54] sm:$0xf0]  ;;  %v795_v0 = vor.u32 %v1026_v57, %v794_v56 }
  0x13   :  { %514 = vmatpush.bf16.msra.mxu1 %v1059_v17  ;;  %v1025_v62 = vld [vmem:[%s1475_s0 + $0x4c] sm:$0xf]  ;;  %v804_v63 = vld [vmem:[%s1475_s0 + $0x58] sm:$0xf0]  ;;  %v799_v1 = vor.u32 %v1024_v58, %v796_v59  ;;  %v803_v2 = vor.u32 %v1027_v61, %v802_v60  ;;  %v810_v4 = vld [vmem:[%s1475_s0 + $0x60] sm:$0xf] }
  0x14   :  { %563 = vmatpush.bf16.msra.mxu2 %v1067_v18  ;;  %v807_v3 = vor.u32 %v1025_v62, %v804_v63  ;;  %v1030_v5 = vld [vmem:[%s1475_s0 + $0x6c] sm:$0xf0]  ;;  %v1028_v6 = vld [vmem:[%s1475_s0 + $0x64] sm:$0xf]  ;;  %v812_v7 = vld [vmem:[%s1475_s0 + $0x70] sm:$0xf0] }
  0x15   :  { %612 = vmatpush.bf16.msra.mxu3 %v1075_v19  ;;  %v818_v8 = vld [vmem:[%s1475_s0 + $0x68] sm:$0xf]  ;;  %v1031_v9 = vld [vmem:[%s1475_s0 + $0x74] sm:$0xf0]  ;;  %v1029_v10 = vld [vmem:[%s1475_s0 + $0x6c] sm:$0xf]  ;;  %v811_v12 = vor.u32 %v1030_v5, %v810_v4  ;;  %v815_v13 = vor.u32 %v1028_v6, %v812_v7 }
  0x16   :  { %466 = vmatpush.bf16.msra.mxu0 %v1050_v20  ;;  %v820_v11 = vld [vmem:[%s1475_s0 + $0x78] sm:$0xf0]  ;;  %v819_v14 = vor.u32 %v1031_v9, %v818_v8  ;;  %v826_v16 = vld [vmem:[%s1475_s0 + $0x80] sm:$0xf]  ;;  %v1034_v17 = vld [vmem:[%s1475_s0 + $0x8c] sm:$0xf0] }
  0x17   :  { %515 = vmatpush.bf16.msra.mxu1 %v1058_v21  ;;  %v823_v15 = vor.u32 %v1029_v10, %v820_v11  ;;  %v1032_v18 = vld [vmem:[%s1475_s0 + $0x84] sm:$0xf]  ;;  %v828_v19 = vld [vmem:[%s1475_s0 + $0x90] sm:$0xf0]  ;;  %v834_v20 = vld [vmem:[%s1475_s0 + $0x88] sm:$0xf] }
  0x18   :  { %564 = vmatpush.bf16.msra.mxu2 %v1066_v22  ;;  %v1035_v21 = vld [vmem:[%s1475_s0 + $0x94] sm:$0xf0]  ;;  %v1033_v22 = vld [vmem:[%s1475_s0 + $0x8c] sm:$0xf]  ;;  %v850_v32 = vld [vmem:[%s1475_s0 + $0xa8] sm:$0xf] }
  0x19   :  { %613 = vmatpush.bf16.msra.mxu3 %v1074_v23  ;;  %v836_v23 = vld [vmem:[%s1475_s0 + $0x98] sm:$0xf0]  ;;  %v1039_v33 = vld [vmem:[%s1475_s0 + $0xb4] sm:$0xf0]  ;;  %v1037_v34 = vld [vmem:[%s1475_s0 + $0xac] sm:$0xf] }
  0x1a   :  { %467 = vmatpush.bf16.msra.mxu0 %v1049_v24  ;;  %v827_v24 = vor.u32 %v1034_v17, %v826_v16  ;;  %v852_v35 = vld [vmem:[%s1475_s0 + $0xb8] sm:$0xf0]  ;;  %v851_v38 = vor.u32 %v1039_v33, %v850_v32  ;;  %v866_v44 = vld [vmem:[%s1475_s0 + $0xc8] sm:$0xf]  ;;  %v1043_v45 = vld [vmem:[%s1475_s0 + $0xd4] sm:$0xf0] }
  0x1b   :  { %516 = vmatpush.bf16.msra.mxu1 %v1057_v25  ;;  %v831_v25 = vor.u32 %v1032_v18, %v828_v19  ;;  %v855_v39 = vor.u32 %v1037_v34, %v852_v35  ;;  %v1041_v46 = vld [vmem:[%s1475_s0 + $0xcc] sm:$0xf]  ;;  %v868_v47 = vld [vmem:[%s1475_s0 + $0xd8] sm:$0xf0]  ;;  %v867_v50 = vor.u32 %v1043_v45, %v866_v44  ;;  %v882_v56 = vld [vmem:[%s1475_s0 + $0xe8] sm:$0xf] }
  0x1c   :  { %565 = vmatpush.bf16.msra.mxu2 %v1065_v26  ;;  %v835_v26 = vor.u32 %v1035_v21, %v834_v20  ;;  %v871_v51 = vor.u32 %v1041_v46, %v868_v47  ;;  %v1047_v57 = vld [vmem:[%s1475_s0 + $0xf4] sm:$0xf0]  ;;  %v1045_v58 = vld [vmem:[%s1475_s0 + $0xec] sm:$0xf]  ;;  %v884_v59 = vld [vmem:[%s1475_s0 + $0xf8] sm:$0xf0] }
  0x1d   :  { %614 = vmatpush.bf16.msra.mxu3 %v1073_v27  ;;  %v839_v27 = vor.u32 %v1033_v22, %v836_v23  ;;  %v883_v62 = vor.u32 %v1047_v57, %v882_v56  ;;  %v887_v63 = vor.u32 %v1045_v58, %v884_v59 }
  0x1e   :  { %468 = vmatpush.bf16.msra.mxu0 %v1048_v28  ;;  %v842_v28 = vld [vmem:[%s1475_s0 + $0xa0] sm:$0xf] }
  0x1f   :  { %517 = vmatpush.bf16.msra.mxu1 %v1056_v29  ;;  %v1038_v29 = vld [vmem:[%s1475_s0 + $0xac] sm:$0xf0] }
  0x20   :  { %566 = vmatpush.bf16.msra.mxu2 %v1064_v30  ;;  %v1036_v30 = vld [vmem:[%s1475_s0 + $0xa4] sm:$0xf]  ;;  %v843_v36 = vor.u32 %v1038_v29, %v842_v28 }
  0x21   :  { %615 = vmatpush.bf16.msra.mxu3 %v1072_v31  ;;  %469 = vmatmul.bf16.vlgmr.msra.gmra.mxu0 %v763_v40  ;;  %v844_v31 = vld [vmem:[%s1475_s0 + $0xb0] sm:$0xf0]  ;;  %v858_v40 = vld [vmem:[%s1475_s0 + $0xc0] sm:$0xf] }
  0x22   :  { %518 = vmatmul.bf16.vlgmr.msra.gmra.mxu1 %v767_v41  ;;  %v847_v37 = vor.u32 %v1036_v30, %v844_v31  ;;  %v1042_v41 = vld [vmem:[%s1475_s0 + $0xcc] sm:$0xf0] }
  0x23   :  { %567 = vmatmul.bf16.vlgmr.msra.gmra.mxu2 %v771_v42  ;;  %v1040_v42 = vld [vmem:[%s1475_s0 + $0xc4] sm:$0xf]  ;;  %v859_v48 = vor.u32 %v1042_v41, %v858_v40 }
  0x24   :  { %616 = vmatmul.bf16.vlgmr.msra.gmra.mxu3 %v775_v43  ;;  %v860_v43 = vld [vmem:[%s1475_s0 + $0xd0] sm:$0xf0] }
  0x25   :  { %v863_v49 = vor.u32 %v1040_v42, %v860_v43 }
  0x31   :  { %474 = vmatmul.bf16.gmra.mxu0 %v779_v52  ;;  %v874_v52 = vld [vmem:[%s1475_s0 + $0xe0] sm:$0xf] }
  0x32   :  { %523 = vmatmul.bf16.gmra.mxu1 %v783_v53  ;;  %v1046_v53 = vld [vmem:[%s1475_s0 + $0xec] sm:$0xf0] }
  0x33   :  { %572 = vmatmul.bf16.gmra.mxu2 %v787_v54  ;;  %v1044_v54 = vld [vmem:[%s1475_s0 + $0xe4] sm:$0xf]  ;;  %v875_v60 = vor.u32 %v1046_v53, %v874_v52 }
  0x34   :  { %621 = vmatmul.bf16.gmra.mxu3 %v791_v55  ;;  %v876_v55 = vld [vmem:[%s1475_s0 + $0xf0] sm:$0xf0] }
  0x35   :  { %v879_v61 = vor.u32 %v1044_v54, %v876_v55 }
  0x41   :  { %479 = vmatmul.bf16.gmra.mxu0 %v795_v0 }
  0x42   :  { %528 = vmatmul.bf16.gmra.mxu1 %v799_v1 }
  0x43   :  { %577 = vmatmul.bf16.gmra.mxu2 %v803_v2 }
  0x44   :  { %626 = vmatmul.bf16.gmra.mxu3 %v807_v3 }
  0x51   :  { %484 = vmatmul.bf16.gmra.mxu0 %v811_v12 }
  0x52   :  { %533 = vmatmul.bf16.gmra.mxu1 %v815_v13 }
  0x53   :  { %582 = vmatmul.bf16.gmra.mxu2 %v819_v14 }
  0x54   :  { %631 = vmatmul.bf16.gmra.mxu3 %v823_v15 }
  0x61   :  { %489 = vmatmul.bf16.gmra.mxu0 %v827_v24 }
  0x62   :  { %538 = vmatmul.bf16.gmra.mxu1 %v831_v25 }
  0x63   :  { %587 = vmatmul.bf16.gmra.mxu2 %v835_v26 }
  0x64   :  { %636 = vmatmul.bf16.gmra.mxu3 %v839_v27 }
  0x71   :  { %494 = vmatmul.bf16.gmra.mxu0 %v843_v36 }
  0x72   :  { %543 = vmatmul.bf16.gmra.mxu1 %v847_v37 }
  0x73   :  { %592 = vmatmul.bf16.gmra.mxu2 %v851_v38 }
  0x74   :  { %641 = vmatmul.bf16.gmra.mxu3 %v855_v39 }
  0x81   :  { %499 = vmatmul.bf16.gmra.mxu0 %v859_v48 }
  0x82   :  { %548 = vmatmul.bf16.gmra.mxu1 %v863_v49 }
  0x83   :  { %597 = vmatmul.bf16.gmra.mxu2 %v867_v50 }
  0x84   :  { %646 = vmatmul.bf16.gmra.mxu3 %v871_v51 }
  0x91   :  { %504 = vmatmul.bf16.gmra.mxu0 %v875_v60 }
  0x92   :  { %553 = vmatmul.bf16.gmra.mxu1 %v879_v61 }
  0x93   :  { %602 = vmatmul.bf16.gmra.mxu2 %v883_v62 }
  0x94   :  { %651 = vmatmul.bf16.gmra.mxu3 %v887_v63 }
  0x9e   :  { %v470_v0 = vpop.f32.mrf.mxu0 }
  0x9f   :  { %v519_v1 = vpop.f32.mrf.mxu1 }
  0xa0   :  { %v520_v2 = vadd.f32 %v519_v1, %v470_v0 }
  0xa6   :  { %v568_v3 = vpop.f32.mrf.mxu2  ;;  %v472_v5 = vpop.f32.mrf.mxu0 }
  0xa7   :  { %v617_v4 = vpop.f32.mrf.mxu3  ;;  %v521_v6 = vpop.f32.mrf.mxu1  ;;  %v569_v7 = vadd.f32 %v568_v3, %v520_v2 }
  0xa8   :  { %v522_v8 = vadd.f32 %v521_v6, %v472_v5 }
  0xa9   :  { %v618_v9 = vadd.f32 %v617_v4, %v569_v7 }
  0xab   :  { %v710_v16 = vmul.f32 %v618_v9, %v618_v9 }
  0xae   :  { %v570_v10 = vpop.f32.mrf.mxu2  ;;  %v475_v13 = vpop.f32.mrf.mxu0 }
  0xaf   :  { %v619_v11 = vpop.f32.mrf.mxu3  ;;  %v571_v12 = vadd.f32 %v570_v10, %v522_v8  ;;  %v524_v14 = vpop.f32.mrf.mxu1 }
  0xb0   :  { %v525_v20 = vadd.f32 %v524_v14, %v475_v13 }
  0xb1   :  { %v620_v15 = vadd.f32 %v619_v11, %v571_v12 }
  0xb3   :  { %v1083_v17 = vpack.c.bf16 %v620_v15, %v618_v9  ;;  %v689_v18 = vadd.f32 %v620_v15, %v618_v9  ;;  %v711_v19 = vmul.f32 %v620_v15, %v620_v15 }
  0xb5   :  { %1084 = vst [vmem:[%s1476_s2] sm:$0xff] %v1083_v17   ;;  %v726_v21 = vadd.f32 %v711_v19, %v710_v16 }
  0xb6   :  { %v573_v22 = vpop.f32.mrf.mxu2  ;;  %v477_v25 = vpop.f32.mrf.mxu0 }
  0xb7   :  { %v622_v23 = vpop.f32.mrf.mxu3  ;;  %v574_v24 = vadd.f32 %v573_v22, %v525_v20  ;;  %v526_v26 = vpop.f32.mrf.mxu1 }
  0xb8   :  { %v527_v31 = vadd.f32 %v526_v26, %v477_v25 }
  0xb9   :  { %v623_v27 = vadd.f32 %v622_v23, %v574_v24 }
  0xbb   :  { %v690_v28 = vadd.f32 %v689_v18, %v623_v27  ;;  %v712_v29 = vmul.f32 %v623_v27, %v623_v27 }
  0xbd   :  { %v727_v30 = vadd.f32 %v726_v21, %v712_v29 }
  0xbe   :  { %v575_v32 = vpop.f32.mrf.mxu2  ;;  %v480_v35 = vpop.f32.mrf.mxu0 }
  0xbf   :  { %v624_v33 = vpop.f32.mrf.mxu3  ;;  %v576_v34 = vadd.f32 %v575_v32, %v527_v31  ;;  %v529_v36 = vpop.f32.mrf.mxu1 }
  0xc0   :  { %v530_v46 = vadd.f32 %v529_v36, %v480_v35 }
  0xc1   :  { %v625_v37 = vadd.f32 %v624_v33, %v576_v34 }
  0xc3   :  { %v1088_v38 = vpack.c.bf16 %v625_v37, %v623_v27  ;;  %v1438_v39 = vadd.f32 %v690_v28, %v625_v37  ;;  %v713_v40 = vmul.f32 %v625_v37, %v625_v37 }
  0xc5   :  { %1120 = vst [vmem:[%s1476_s2 + $0x8] sm:$0xff] %v1088_v38   ;;  %v1443_v41 = vadd.f32 %v727_v30, %v713_v40 }
  0xc6   :  { %v578_v42 = vpop.f32.mrf.mxu2  ;;  %v482_v44 = vpop.f32.mrf.mxu0 }
  0xc7   :  { %v627_v43 = vpop.f32.mrf.mxu3  ;;  %v531_v45 = vpop.f32.mrf.mxu1  ;;  %v579_v47 = vadd.f32 %v578_v42, %v530_v46 }
  0xc8   :  { %v532_v48 = vadd.f32 %v531_v45, %v482_v44 }
  0xc9   :  { %v628_v54 = vadd.f32 %v627_v43, %v579_v47 }
  0xcb   :  { %v714_v45 = vmul.f32 %v628_v54, %v628_v54  ;;  %v692_v47 = vadd.f32 %v1438_v39, %v628_v54 }
  0xce   :  { %v580_v49 = vpop.f32.mrf.mxu2  ;;  %v485_v52 = vpop.f32.mrf.mxu0 }
  0xcf   :  { %v629_v50 = vpop.f32.mrf.mxu3  ;;  %v581_v51 = vadd.f32 %v580_v49, %v532_v48  ;;  %v534_v53 = vpop.f32.mrf.mxu1 }
  0xd0   :  { %v535_v61 = vadd.f32 %v534_v53, %v485_v52 }
  0xd1   :  { %v1445_v55 = vadd.f32 %v629_v50, %v581_v51  ;;  %v729_v50 = vadd.f32 %v1443_v41, %v714_v45 }
  0xd3   :  { %v1093_v56 = vpack.c.bf16 %v1445_v55, %v628_v54  ;;  %v715_v46 = vmul.f32 %v1445_v55, %v1445_v55 }
  0xd5   :  { %1121 = vst [vmem:[%s1476_s2 + $0x10] sm:$0xff] %v1093_v56   ;;  %v693_v56 = vadd.f32 %v692_v47, %v1445_v55 }
  0xd6   :  { %v583_v57 = vpop.f32.mrf.mxu2  ;;  %v487_v59 = vpop.f32.mrf.mxu0 }
  0xd7   :  { %v632_v58 = vpop.f32.mrf.mxu3  ;;  %v536_v60 = vpop.f32.mrf.mxu1  ;;  %v584_v62 = vadd.f32 %v583_v57, %v535_v61 }
  0xd8   :  { %v537_v63 = vadd.f32 %v536_v60, %v487_v59 }
  0xd9   :  { %v633_v5 = vadd.f32 %v632_v58, %v584_v62  ;;  %v730_v58 = vadd.f32 %v729_v50, %v715_v46 }
  0xdb   :  { %v716_v51 = vmul.f32 %v633_v5, %v633_v5  ;;  %v694_v61 = vadd.f32 %v693_v56, %v633_v5 }
  0xde   :  { %v585_v0 = vpop.f32.mrf.mxu2  ;;  %v490_v3 = vpop.f32.mrf.mxu0 }
  0xdf   :  { %v634_v1 = vpop.f32.mrf.mxu3  ;;  %v586_v2 = vadd.f32 %v585_v0, %v537_v63  ;;  %v539_v4 = vpop.f32.mrf.mxu1 }
  0xe0   :  { %v540_v12 = vadd.f32 %v539_v4, %v490_v3 }
  0xe1   :  { %v635_v6 = vadd.f32 %v634_v1, %v586_v2  ;;  %v731_v1 = vadd.f32 %v730_v58, %v716_v51 }
  0xe3   :  { %v1098_v7 = vpack.c.bf16 %v635_v6, %v633_v5  ;;  %v717_v62 = vmul.f32 %v635_v6, %v635_v6  ;;  %v695_v2 = vadd.f32 %v694_v61, %v635_v6 }
  0xe5   :  { %1122 = vst [vmem:[%s1476_s2 + $0x18] sm:$0xff] %v1098_v7   ;;  %v732_v4 = vadd.f32 %v731_v1, %v717_v62 }
  0xe6   :  { %v588_v8 = vpop.f32.mrf.mxu2  ;;  %v492_v10 = vpop.f32.mrf.mxu0 }
  0xe7   :  { %v637_v9 = vpop.f32.mrf.mxu3  ;;  %v541_v11 = vpop.f32.mrf.mxu1  ;;  %v589_v13 = vadd.f32 %v588_v8, %v540_v12 }
  0xe8   :  { %v542_v14 = vadd.f32 %v541_v11, %v492_v10 }
  0xe9   :  { %v638_v20 = vadd.f32 %v637_v9, %v589_v13 }
  0xeb   :  { %v718_v39 = vmul.f32 %v638_v20, %v638_v20  ;;  %v696_v41 = vadd.f32 %v695_v2, %v638_v20 }
  0xed   :  { %v733_v9 = vadd.f32 %v732_v4, %v718_v39 }
  0xee   :  { %v590_v15 = vpop.f32.mrf.mxu2  ;;  %v495_v18 = vpop.f32.mrf.mxu0 }
  0xef   :  { %v639_v16 = vpop.f32.mrf.mxu3  ;;  %v591_v17 = vadd.f32 %v590_v15, %v542_v14  ;;  %v544_v19 = vpop.f32.mrf.mxu1 }
  0xf0   :  { %v545_v27 = vadd.f32 %v544_v19, %v495_v18 }
  0xf1   :  { %v640_v21 = vadd.f32 %v639_v16, %v591_v17 }
  0xf3   :  { %v1103_v22 = vpack.c.bf16 %v640_v21, %v638_v20  ;;  %v719_v7 = vmul.f32 %v640_v21, %v640_v21  ;;  %v697_v10 = vadd.f32 %v696_v41, %v640_v21 }
  0xf5   :  { %1123 = vst [vmem:[%s1476_s2 + $0x20] sm:$0xff] %v1103_v22   ;;  %v734_v12 = vadd.f32 %v733_v9, %v719_v7 }
  0xf6   :  { %v593_v23 = vpop.f32.mrf.mxu2  ;;  %v497_v25 = vpop.f32.mrf.mxu0 }
  0xf7   :  { %v642_v24 = vpop.f32.mrf.mxu3  ;;  %v546_v26 = vpop.f32.mrf.mxu1  ;;  %v594_v28 = vadd.f32 %v593_v23, %v545_v27 }
  0xf8   :  { %v547_v29 = vadd.f32 %v546_v26, %v497_v25 }
  0xf9   :  { %v643_v35 = vadd.f32 %v642_v24, %v594_v28 }
  0xfb   :  { %v720_v5 = vmul.f32 %v643_v35, %v643_v35  ;;  %v698_v13 = vadd.f32 %v697_v10, %v643_v35 }
  0xfd   :  { %v735_v16 = vadd.f32 %v734_v12, %v720_v5 }
  0xfe   :  { %v595_v30 = vpop.f32.mrf.mxu2  ;;  %v500_v33 = vpop.f32.mrf.mxu0 }
  0xff   :  { %v644_v31 = vpop.f32.mrf.mxu3  ;;  %v596_v32 = vadd.f32 %v595_v30, %v547_v29  ;;  %v549_v34 = vpop.f32.mrf.mxu1 }
 0x100   :  { %v550_v44 = vadd.f32 %v549_v34, %v500_v33 }
 0x101   :  { %v645_v36 = vadd.f32 %v644_v31, %v596_v32 }
 0x103   :  { %v1108_v37 = vpack.c.bf16 %v645_v36, %v643_v35  ;;  %v721_v14 = vmul.f32 %v645_v36, %v645_v36  ;;  %v699_v17 = vadd.f32 %v698_v13, %v645_v36 }
 0x105   :  { %1124 = vst [vmem:[%s1476_s2 + $0x28] sm:$0xff] %v1108_v37   ;;  %v736_v20 = vadd.f32 %v735_v16, %v721_v14 }
 0x106   :  { %v598_v38 = vpop.f32.mrf.mxu2  ;;  %v502_v42 = vpop.f32.mrf.mxu0 }
 0x107   :  { %v647_v40 = vpop.f32.mrf.mxu3  ;;  %v551_v43 = vpop.f32.mrf.mxu1  ;;  %v599_v48 = vadd.f32 %v598_v38, %v550_v44 }
 0x108   :  { %v552_v49 = vadd.f32 %v551_v43, %v502_v42 }
 0x109   :  { %v648_v63 = vadd.f32 %v647_v40, %v599_v48 }
 0x10b   :  { %v722_v18 = vmul.f32 %v648_v63, %v648_v63  ;;  %v700_v22 = vadd.f32 %v699_v17, %v648_v63 }
 0x10d   :  { %v737_v26 = vadd.f32 %v736_v20, %v722_v18 }
 0x10e   :  { %v600_v52 = vpop.f32.mrf.mxu2  ;;  %v505_v59 = vpop.f32.mrf.mxu0 }
 0x10f   :  { %v649_v53 = vpop.f32.mrf.mxu3  ;;  %v601_v57 = vadd.f32 %v600_v52, %v552_v49  ;;  %v554_v60 = vpop.f32.mrf.mxu1 }
 0x110   :  { %v555_v3 = vadd.f32 %v554_v60, %v505_v59 }
 0x111   :  { %v650_v0 = vadd.f32 %v649_v53, %v601_v57 }
 0x113   :  { %v1113_v54 = vpack.c.bf16 %v650_v0, %v648_v63  ;;  %v723_v23 = vmul.f32 %v650_v0, %v650_v0  ;;  %v701_v27 = vadd.f32 %v700_v22, %v650_v0 }
 0x115   :  { %1125 = vst [vmem:[%s1476_s2 + $0x30] sm:$0xff] %v1113_v54   ;;  %v738_v30 = vadd.f32 %v737_v26, %v723_v23 }
 0x116   :  { %v603_v55 = vpop.f32.mrf.mxu2  ;;  %v507_v6 = vpop.f32.mrf.mxu0 }
 0x117   :  { %v652_v8 = vpop.f32.mrf.mxu3  ;;  %v604_v11 = vadd.f32 %v603_v55, %v555_v3  ;;  %v556_v15 = vpop.f32.mrf.mxu1 }
 0x118   :  { %v557_v24 = vadd.f32 %v556_v15, %v507_v6 }
 0x119   :  { %v653_v19 = vadd.f32 %v652_v8, %v604_v11 }
 0x11b   :  { %v724_v28 = vmul.f32 %v653_v19, %v653_v19  ;;  %v702_v31 = vadd.f32 %v701_v27, %v653_v19 }
 0x11d   :  { %v739_v33 = vadd.f32 %v738_v30, %v724_v28 }
 0x11e   :  { %v605_v25 = vpop.f32.mrf.mxu2 }
 0x11f   :  { %v606_v21 = vadd.f32 %v605_v25, %v557_v24  ;;  %v654_v29 = vpop.f32.mrf.mxu3 }
 0x121   :  { %v655_v32 = vadd.f32 %v654_v29, %v606_v21 }
 0x123   :  { %v1118_v34 = vpack.c.bf16 %v655_v32, %v653_v19  ;;  %v703_v35 = vadd.f32 %v702_v31, %v655_v32  ;;  %v725_v37 = vmul.f32 %v655_v32, %v655_v32 }
 0x125   :  { %1126 = vst [vmem:[%s1476_s2 + $0x38] sm:$0xff] %v1118_v34   ;;  %v704_v36 = vrot.slane %v703_v35, 4  ;;  %v740_v38 = vadd.f32 %v739_v33, %v725_v37 }
 0x127   :  { %v705_v40 = vadd.f32 %v704_v36, %v703_v35  ;;  %v741_v42 = vrot.slane %v740_v38, 4 }
 0x129   :  { %v706_v43 = vrot.slane %v705_v40, 2  ;;  %v742_v44 = vadd.f32 %v741_v42, %v740_v38 }
 0x12b   :  { %v707_v45 = vadd.f32 %v706_v43, %v705_v40  ;;  %v743_v46 = vrot.slane %v742_v44, 2 }
 0x12d   :  { %v708_v47 = vrot.slane %v707_v45, 1  ;;  %v744_v48 = vadd.f32 %v743_v46, %v742_v44 }
 0x12f   :  { %v745_v49 = vrot.slane %v744_v48, 1  ;;  %v709_v50 = vadd.f32 %v708_v47, %v707_v45 }
 0x131   :  { %v746_v51 = vadd.f32 %v745_v49, %v744_v48 }
 0x133   :  { %v748_v52 = vsel %vm747_vm0, %v709_v50, %v746_v51 }
 0x134   :  { %v750_v53 = vsel %vm749_vm1, %v748_v52, 0.0 }
 0x135   :  { %751 = vst [vmem:[%s1477_s3] sm:$0xff] %v750_v53 }

// kernel: generator_forward.36
= control target key start
LH: loop header
LB: loop body
LE: loop exit
PB: predicated region body
PF: predicated region fallthrough
CT: control target
= control target key end

     0   :  { %vm2043_vm0 = vcmask 1040384   ;;  %vm2045_vm1 = vcmask 1041408   ;;  %s4042_s1 = inlined_call_operand.vmem [shape: bf16[512,128], index: 1, kind: input, shape index: {}]   ;;  %s4043_s0 = inlined_call_operand.vmem [shape: bf16[512,512], index: 0, kind: input, shape index: {}]   ;;  %s4044_s2 = inlined_call_operand.vmem [shape: bf16[512,128], index: 2, kind: output, shape index: {0}]   ;;  %s4045_s3 = inlined_call_operand.vmem [shape: f32[8,128], index: 3, kind: output, shape index: {1}]  }
   0x1   :  { %v2831_v0 = vld [vmem:[%s4042_s1 + $0x38] sm:$0xff]  ;;  %v2830_v4 = vld [vmem:[%s4042_s1 + $0x30] sm:$0xff]  ;;  %v2829_v8 = vld [vmem:[%s4042_s1 + $0x28] sm:$0xff] }
   0x2   :  { %v2839_v1 = vld [vmem:[%s4042_s1 + $0x78] sm:$0xff]  ;;  %1037 = vmatpush.bf16.msra.mxu0 %v2831_v0  ;;  %v2838_v5 = vld [vmem:[%s4042_s1 + $0x70] sm:$0xff]  ;;  %v2837_v9 = vld [vmem:[%s4042_s1 + $0x68] sm:$0xff] }
   0x3   :  { %v2847_v2 = vld [vmem:[%s4042_s1 + $0xb8] sm:$0xff]  ;;  %1206 = vmatpush.bf16.msra.mxu1 %v2839_v1  ;;  %v2846_v6 = vld [vmem:[%s4042_s1 + $0xb0] sm:$0xff]  ;;  %v2845_v10 = vld [vmem:[%s4042_s1 + $0xa8] sm:$0xff] }
   0x4   :  { %v2855_v3 = vld [vmem:[%s4042_s1 + $0xf8] sm:$0xff]  ;;  %1375 = vmatpush.bf16.msra.mxu2 %v2847_v2  ;;  %v2854_v7 = vld [vmem:[%s4042_s1 + $0xf0] sm:$0xff]  ;;  %v2853_v11 = vld [vmem:[%s4042_s1 + $0xe8] sm:$0xff] }
   0x5   :  { %1544 = vmatpush.bf16.msra.mxu3 %v2855_v3  ;;  %v2828_v12 = vld [vmem:[%s4042_s1 + $0x20] sm:$0xff]  ;;  %v2827_v16 = vld [vmem:[%s4042_s1 + $0x18] sm:$0xff]  ;;  %v2826_v20 = vld [vmem:[%s4042_s1 + $0x10] sm:$0xff] }
   0x6   :  { %1038 = vmatpush.bf16.msra.mxu0 %v2830_v4  ;;  %v2836_v13 = vld [vmem:[%s4042_s1 + $0x60] sm:$0xff]  ;;  %v2835_v17 = vld [vmem:[%s4042_s1 + $0x58] sm:$0xff]  ;;  %v2834_v21 = vld [vmem:[%s4042_s1 + $0x50] sm:$0xff] }
   0x7   :  { %1207 = vmatpush.bf16.msra.mxu1 %v2838_v5  ;;  %v2844_v14 = vld [vmem:[%s4042_s1 + $0xa0] sm:$0xff]  ;;  %v2843_v18 = vld [vmem:[%s4042_s1 + $0x98] sm:$0xff]  ;;  %v2842_v22 = vld [vmem:[%s4042_s1 + $0x90] sm:$0xff] }
   0x8   :  { %1376 = vmatpush.bf16.msra.mxu2 %v2846_v6  ;;  %v2852_v15 = vld [vmem:[%s4042_s1 + $0xe0] sm:$0xff]  ;;  %v2851_v19 = vld [vmem:[%s4042_s1 + $0xd8] sm:$0xff]  ;;  %v2850_v23 = vld [vmem:[%s4042_s1 + $0xd0] sm:$0xff] }
   0x9   :  { %1545 = vmatpush.bf16.msra.mxu3 %v2854_v7  ;;  %v2825_v24 = vld [vmem:[%s4042_s1 + $0x8] sm:$0xff]  ;;  %v2824_v28 = vld [vmem:[%s4042_s1] sm:$0xff]  ;;  %v2698_v33 = vld [vmem:[%s4043_s0 + $0xc] sm:$0xf0] }
   0xa   :  { %1039 = vmatpush.bf16.msra.mxu0 %v2829_v8  ;;  %v2833_v25 = vld [vmem:[%s4042_s1 + $0x48] sm:$0xff]  ;;  %v2832_v29 = vld [vmem:[%s4042_s1 + $0x40] sm:$0xff]  ;;  %v2060_v35 = vld [vmem:[%s4043_s0 + $0x10] sm:$0xf0] }
   0xb   :  { %1208 = vmatpush.bf16.msra.mxu1 %v2837_v9  ;;  %v2841_v26 = vld [vmem:[%s4042_s1 + $0x88] sm:$0xff]  ;;  %v2840_v30 = vld [vmem:[%s4042_s1 + $0x80] sm:$0xff]  ;;  %v2699_v37 = vld [vmem:[%s4043_s0 + $0x14] sm:$0xf0] }
   0xc   :  { %1377 = vmatpush.bf16.msra.mxu2 %v2845_v10  ;;  %v2849_v27 = vld [vmem:[%s4042_s1 + $0xc8] sm:$0xff]  ;;  %v2848_v31 = vld [vmem:[%s4042_s1 + $0xc0] sm:$0xff]  ;;  %v2068_v39 = vld [vmem:[%s4043_s0 + $0x18] sm:$0xf0] }
   0xd   :  { %1546 = vmatpush.bf16.msra.mxu3 %v2853_v11  ;;  %v2058_v32 = vld [vmem:[%s4043_s0] sm:$0xf]  ;;  %v2696_v34 = vld [vmem:[%s4043_s0 + $0x4] sm:$0xf]  ;;  %v2066_v36 = vld [vmem:[%s4043_s0 + $0x8] sm:$0xf] }
   0xe   :  { %1040 = vmatpush.bf16.msra.mxu0 %v2828_v12  ;;  %v2697_v38 = vld [vmem:[%s4043_s0 + $0xc] sm:$0xf]  ;;  %v2059_v40 = vor.u32 %v2698_v33, %v2058_v32  ;;  %v2063_v41 = vor.u32 %v2696_v34, %v2060_v35  ;;  %v2067_v42 = vor.u32 %v2699_v37, %v2066_v36  ;;  %v2074_v44 = vld [vmem:[%s4043_s0 + $0x20] sm:$0xf]  ;;  %v2702_v45 = vld [vmem:[%s4043_s0 + $0x2c] sm:$0xf0] }
   0xf   :  { %1209 = vmatpush.bf16.msra.mxu1 %v2836_v13  ;;  %v2071_v43 = vor.u32 %v2697_v38, %v2068_v39  ;;  %v2700_v46 = vld [vmem:[%s4043_s0 + $0x24] sm:$0xf]  ;;  %v2076_v47 = vld [vmem:[%s4043_s0 + $0x30] sm:$0xf0]  ;;  %v2082_v48 = vld [vmem:[%s4043_s0 + $0x28] sm:$0xf]  ;;  %v2075_v52 = vor.u32 %v2702_v45, %v2074_v44 }
  0x10   :  { %1378 = vmatpush.bf16.msra.mxu2 %v2844_v14  ;;  %v2703_v49 = vld [vmem:[%s4043_s0 + $0x34] sm:$0xf0]  ;;  %v2701_v50 = vld [vmem:[%s4043_s0 + $0x2c] sm:$0xf]  ;;  %v2084_v51 = vld [vmem:[%s4043_s0 + $0x38] sm:$0xf0]  ;;  %v2079_v53 = vor.u32 %v2700_v46, %v2076_v47 }
  0x11   :  { %1547 = vmatpush.bf16.msra.mxu3 %v2852_v15  ;;  %v2083_v54 = vor.u32 %v2703_v49, %v2082_v48  ;;  %v2087_v55 = vor.u32 %v2701_v50, %v2084_v51  ;;  %v2090_v56 = vld [vmem:[%s4043_s0 + $0x40] sm:$0xf]  ;;  %v2706_v57 = vld [vmem:[%s4043_s0 + $0x4c] sm:$0xf0]  ;;  %v2704_v58 = vld [vmem:[%s4043_s0 + $0x44] sm:$0xf] }
  0x12   :  { %1041 = vmatpush.bf16.msra.mxu0 %v2827_v16  ;;  %v2092_v59 = vld [vmem:[%s4043_s0 + $0x50] sm:$0xf0]  ;;  %v2098_v60 = vld [vmem:[%s4043_s0 + $0x48] sm:$0xf]  ;;  %v2707_v61 = vld [vmem:[%s4043_s0 + $0x54] sm:$0xf0]  ;;  %v2091_v0 = vor.u32 %v2706_v57, %v2090_v56 }
  0x13   :  { %1210 = vmatpush.bf16.msra.mxu1 %v2835_v17  ;;  %v2705_v62 = vld [vmem:[%s4043_s0 + $0x4c] sm:$0xf]  ;;  %v2100_v63 = vld [vmem:[%s4043_s0 + $0x58] sm:$0xf0]  ;;  %v2095_v1 = vor.u32 %v2704_v58, %v2092_v59  ;;  %v2099_v2 = vor.u32 %v2707_v61, %v2098_v60  ;;  %v2106_v4 = vld [vmem:[%s4043_s0 + $0x60] sm:$0xf] }
  0x14   :  { %1379 = vmatpush.bf16.msra.mxu2 %v2843_v18  ;;  %v2103_v3 = vor.u32 %v2705_v62, %v2100_v63  ;;  %v2710_v5 = vld [vmem:[%s4043_s0 + $0x6c] sm:$0xf0]  ;;  %v2708_v6 = vld [vmem:[%s4043_s0 + $0x64] sm:$0xf]  ;;  %v2108_v7 = vld [vmem:[%s4043_s0 + $0x70] sm:$0xf0] }
  0x15   :  { %1548 = vmatpush.bf16.msra.mxu3 %v2851_v19  ;;  %v2114_v8 = vld [vmem:[%s4043_s0 + $0x68] sm:$0xf]  ;;  %v2711_v9 = vld [vmem:[%s4043_s0 + $0x74] sm:$0xf0]  ;;  %v2709_v10 = vld [vmem:[%s4043_s0 + $0x6c] sm:$0xf]  ;;  %v2107_v12 = vor.u32 %v2710_v5, %v2106_v4  ;;  %v2111_v13 = vor.u32 %v2708_v6, %v2108_v7 }
  0x16   :  { %1042 = vmatpush.bf16.msra.mxu0 %v2826_v20  ;;  %v2116_v11 = vld [vmem:[%s4043_s0 + $0x78] sm:$0xf0]  ;;  %v2115_v14 = vor.u32 %v2711_v9, %v2114_v8  ;;  %v2122_v16 = vld [vmem:[%s4043_s0 + $0x80] sm:$0xf]  ;;  %v2714_v17 = vld [vmem:[%s4043_s0 + $0x8c] sm:$0xf0] }
  0x17   :  { %1211 = vmatpush.bf16.msra.mxu1 %v2834_v21  ;;  %v2119_v15 = vor.u32 %v2709_v10, %v2116_v11  ;;  %v2712_v18 = vld [vmem:[%s4043_s0 + $0x84] sm:$0xf]  ;;  %v2124_v19 = vld [vmem:[%s4043_s0 + $0x90] sm:$0xf0]  ;;  %v2130_v20 = vld [vmem:[%s4043_s0 + $0x88] sm:$0xf] }
  0x18   :  { %1380 = vmatpush.bf16.msra.mxu2 %v2842_v22  ;;  %v2715_v21 = vld [vmem:[%s4043_s0 + $0x94] sm:$0xf0]  ;;  %v2713_v22 = vld [vmem:[%s4043_s0 + $0x8c] sm:$0xf]  ;;  %v2146_v32 = vld [vmem:[%s4043_s0 + $0xa8] sm:$0xf] }
  0x19   :  { %1549 = vmatpush.bf16.msra.mxu3 %v2850_v23  ;;  %v2132_v23 = vld [vmem:[%s4043_s0 + $0x98] sm:$0xf0]  ;;  %v2719_v33 = vld [vmem:[%s4043_s0 + $0xb4] sm:$0xf0]  ;;  %v2717_v34 = vld [vmem:[%s4043_s0 + $0xac] sm:$0xf] }
  0x1a   :  { %1043 = vmatpush.bf16.msra.mxu0 %v2825_v24  ;;  %v2123_v24 = vor.u32 %v2714_v17, %v2122_v16  ;;  %v2148_v35 = vld [vmem:[%s4043_s0 + $0xb8] sm:$0xf0]  ;;  %v2147_v38 = vor.u32 %v2719_v33, %v2146_v32  ;;  %v2162_v44 = vld [vmem:[%s4043_s0 + $0xc8] sm:$0xf]  ;;  %v2723_v45 = vld [vmem:[%s4043_s0 + $0xd4] sm:$0xf0] }
  0x1b   :  { %1212 = vmatpush.bf16.msra.mxu1 %v2833_v25  ;;  %v2127_v25 = vor.u32 %v2712_v18, %v2124_v19  ;;  %v2151_v39 = vor.u32 %v2717_v34, %v2148_v35  ;;  %v2721_v46 = vld [vmem:[%s4043_s0 + $0xcc] sm:$0xf]  ;;  %v2164_v47 = vld [vmem:[%s4043_s0 + $0xd8] sm:$0xf0]  ;;  %v2163_v50 = vor.u32 %v2723_v45, %v2162_v44  ;;  %v2178_v56 = vld [vmem:[%s4043_s0 + $0xe8] sm:$0xf] }
  0x1c   :  { %1381 = vmatpush.bf16.msra.mxu2 %v2841_v26  ;;  %v2131_v26 = vor.u32 %v2715_v21, %v2130_v20  ;;  %v2167_v51 = vor.u32 %v2721_v46, %v2164_v47  ;;  %v2727_v57 = vld [vmem:[%s4043_s0 + $0xf4] sm:$0xf0]  ;;  %v2725_v58 = vld [vmem:[%s4043_s0 + $0xec] sm:$0xf]  ;;  %v2180_v59 = vld [vmem:[%s4043_s0 + $0xf8] sm:$0xf0] }
  0x1d   :  { %1550 = vmatpush.bf16.msra.mxu3 %v2849_v27  ;;  %v2135_v27 = vor.u32 %v2713_v22, %v2132_v23  ;;  %v2179_v62 = vor.u32 %v2727_v57, %v2178_v56  ;;  %v2183_v63 = vor.u32 %v2725_v58, %v2180_v59  ;;  %v2194_v4 = vld [vmem:[%s4043_s0 + $0x108] sm:$0xf]  ;;  %v2731_v5 = vld [vmem:[%s4043_s0 + $0x114] sm:$0xf0]  ;;  %v2729_v6 = vld [vmem:[%s4043_s0 + $0x10c] sm:$0xf] }
  0x1e   :  { %1044 = vmatpush.bf16.msra.mxu0 %v2824_v28  ;;  %v2138_v28 = vld [vmem:[%s4043_s0 + $0xa0] sm:$0xf]  ;;  %v2196_v7 = vld [vmem:[%s4043_s0 + $0x118] sm:$0xf0]  ;;  %v2734_v21 = vld [vmem:[%s4043_s0 + $0x12c] sm:$0xf0] }
  0x1f   :  { %1213 = vmatpush.bf16.msra.mxu1 %v2832_v29  ;;  %v2718_v29 = vld [vmem:[%s4043_s0 + $0xac] sm:$0xf0]  ;;  %v2202_v20 = vld [vmem:[%s4043_s0 + $0x120] sm:$0xf]  ;;  %v2732_v22 = vld [vmem:[%s4043_s0 + $0x124] sm:$0xf] }
  0x20   :  { %1382 = vmatpush.bf16.msra.mxu2 %v2840_v30  ;;  %v2716_v30 = vld [vmem:[%s4043_s0 + $0xa4] sm:$0xf]  ;;  %v2139_v36 = vor.u32 %v2718_v29, %v2138_v28  ;;  %v2204_v23 = vld [vmem:[%s4043_s0 + $0x130] sm:$0xf0]  ;;  %v2203_v32 = vor.u32 %v2734_v21, %v2202_v20  ;;  %v2226_v58 = vld [vmem:[%s4043_s0 + $0x148] sm:$0xf] }
  0x21   :  { %1551 = vmatpush.bf16.msra.mxu3 %v2848_v31  ;;  %1045 = vmatmul.bf16.vlgmr.msra.gmra.mxu0 %v2059_v40  ;;  %v2140_v31 = vld [vmem:[%s4043_s0 + $0xb0] sm:$0xf0]  ;;  %v2154_v40 = vld [vmem:[%s4043_s0 + $0xc0] sm:$0xf]  ;;  %v2207_v33 = vor.u32 %v2732_v22, %v2204_v23  ;;  %v2736_v56 = vld [vmem:[%s4043_s0 + $0x144] sm:$0xf] }
  0x22   :  { %1214 = vmatmul.bf16.vlgmr.msra.gmra.mxu1 %v2063_v41  ;;  %v2143_v37 = vor.u32 %v2716_v30, %v2140_v31  ;;  %v2722_v41 = vld [vmem:[%s4043_s0 + $0xcc] sm:$0xf0]  ;;  %v2220_v57 = vld [vmem:[%s4043_s0 + $0x150] sm:$0xf0]  ;;  %v2739_v59 = vld [vmem:[%s4043_s0 + $0x154] sm:$0xf0] }
  0x23   :  { %1383 = vmatmul.bf16.vlgmr.msra.gmra.mxu2 %v2067_v42  ;;  %v2720_v42 = vld [vmem:[%s4043_s0 + $0xc4] sm:$0xf]  ;;  %v2155_v48 = vor.u32 %v2722_v41, %v2154_v40  ;;  %v2234_v21 = vld [vmem:[%s4043_s0 + $0x160] sm:$0xf]  ;;  %v2742_v22 = vld [vmem:[%s4043_s0 + $0x16c] sm:$0xf0] }
  0x24   :  { %1552 = vmatmul.bf16.vlgmr.msra.gmra.mxu3 %v2071_v43  ;;  %v2156_v43 = vld [vmem:[%s4043_s0 + $0xd0] sm:$0xf0] }
  0x25   :  { %v2159_v49 = vor.u32 %v2720_v42, %v2156_v43 }
  0x31   :  { %1050 = vmatmul.bf16.gmra.mxu0 %v2075_v52  ;;  %v2170_v52 = vld [vmem:[%s4043_s0 + $0xe0] sm:$0xf] }
  0x32   :  { %1219 = vmatmul.bf16.gmra.mxu1 %v2079_v53  ;;  %v2726_v53 = vld [vmem:[%s4043_s0 + $0xec] sm:$0xf0] }
  0x33   :  { %1388 = vmatmul.bf16.gmra.mxu2 %v2083_v54  ;;  %v2724_v54 = vld [vmem:[%s4043_s0 + $0xe4] sm:$0xf]  ;;  %v2171_v60 = vor.u32 %v2726_v53, %v2170_v52  ;;  %v2218_v52 = vld [vmem:[%s4043_s0 + $0x140] sm:$0xf]  ;;  %v2738_v53 = vld [vmem:[%s4043_s0 + $0x14c] sm:$0xf0] }
  0x34   :  { %1557 = vmatmul.bf16.gmra.mxu3 %v2087_v55  ;;  %v2172_v55 = vld [vmem:[%s4043_s0 + $0xf0] sm:$0xf0] }
  0x35   :  { %v2175_v61 = vor.u32 %v2724_v54, %v2172_v55 }
  0x41   :  { %1055 = vmatmul.bf16.gmra.mxu0 %v2091_v0  ;;  %v2186_v0 = vld [vmem:[%s4043_s0 + $0x100] sm:$0xf] }
  0x42   :  { %1224 = vmatmul.bf16.gmra.mxu1 %v2095_v1  ;;  %v2730_v1 = vld [vmem:[%s4043_s0 + $0x10c] sm:$0xf0] }
  0x43   :  { %1393 = vmatmul.bf16.gmra.mxu2 %v2099_v2  ;;  %v2728_v2 = vld [vmem:[%s4043_s0 + $0x104] sm:$0xf]  ;;  %v2187_v8 = vor.u32 %v2730_v1, %v2186_v0 }
  0x44   :  { %1562 = vmatmul.bf16.gmra.mxu3 %v2103_v3  ;;  %v2188_v3 = vld [vmem:[%s4043_s0 + $0x110] sm:$0xf0] }
  0x45   :  { %v2191_v9 = vor.u32 %v2728_v2, %v2188_v3  ;;  %v2219_v2 = vor.u32 %v2738_v53, %v2218_v52  ;;  %v2223_v3 = vor.u32 %v2736_v56, %v2220_v57 }
  0x51   :  { %1060 = vmatmul.bf16.gmra.mxu0 %v2107_v12  ;;  %v2195_v12 = vor.u32 %v2731_v5, %v2194_v4 }
  0x52   :  { %1229 = vmatmul.bf16.gmra.mxu1 %v2111_v13  ;;  %v2199_v13 = vor.u32 %v2729_v6, %v2196_v7  ;;  %v2227_v7 = vor.u32 %v2739_v59, %v2226_v58  ;;  %v2744_v58 = vld [vmem:[%s4043_s0 + $0x184] sm:$0xf]  ;;  %v2252_v59 = vld [vmem:[%s4043_s0 + $0x190] sm:$0xf0] }
  0x53   :  { %1398 = vmatmul.bf16.gmra.mxu2 %v2115_v14 }
  0x54   :  { %1567 = vmatmul.bf16.gmra.mxu3 %v2119_v15 }
  0x61   :  { %1065 = vmatmul.bf16.gmra.mxu0 %v2123_v24  ;;  %v2210_v24 = vld [vmem:[%s4043_s0 + $0x128] sm:$0xf] }
  0x62   :  { %1234 = vmatmul.bf16.gmra.mxu1 %v2127_v25  ;;  %v2735_v25 = vld [vmem:[%s4043_s0 + $0x134] sm:$0xf0] }
  0x63   :  { %1403 = vmatmul.bf16.gmra.mxu2 %v2131_v26  ;;  %v2733_v26 = vld [vmem:[%s4043_s0 + $0x12c] sm:$0xf] }
  0x64   :  { %1572 = vmatmul.bf16.gmra.mxu3 %v2135_v27  ;;  %v2212_v27 = vld [vmem:[%s4043_s0 + $0x138] sm:$0xf0] }
  0x71   :  { %1070 = vmatmul.bf16.gmra.mxu0 %v2139_v36 }
  0x72   :  { %1239 = vmatmul.bf16.gmra.mxu1 %v2143_v37  ;;  %v2211_v37 = vor.u32 %v2735_v25, %v2210_v24  ;;  %v2740_v25 = vld [vmem:[%s4043_s0 + $0x164] sm:$0xf] }
  0x73   :  { %1408 = vmatmul.bf16.gmra.mxu2 %v2147_v38  ;;  %v2215_v38 = vor.u32 %v2733_v26, %v2212_v27  ;;  %v2236_v26 = vld [vmem:[%s4043_s0 + $0x170] sm:$0xf0]  ;;  %v2242_v27 = vld [vmem:[%s4043_s0 + $0x168] sm:$0xf] }
  0x74   :  { %1577 = vmatmul.bf16.gmra.mxu3 %v2151_v39 }
  0x81   :  { %1075 = vmatmul.bf16.gmra.mxu0 %v2155_v48 }
  0x82   :  { %1244 = vmatmul.bf16.gmra.mxu1 %v2159_v49 }
  0x83   :  { %1413 = vmatmul.bf16.gmra.mxu2 %v2163_v50 }
  0x84   :  { %1582 = vmatmul.bf16.gmra.mxu3 %v2167_v51 }
  0x91   :  { %1080 = vmatmul.bf16.gmra.mxu0 %v2171_v60  ;;  %v2737_v60 = vld [vmem:[%s4043_s0 + $0x14c] sm:$0xf] }
  0x92   :  { %1249 = vmatmul.bf16.gmra.mxu1 %v2175_v61  ;;  %v2228_v61 = vld [vmem:[%s4043_s0 + $0x158] sm:$0xf0] }
  0x93   :  { %1418 = vmatmul.bf16.gmra.mxu2 %v2179_v62 }
  0x94   :  { %1587 = vmatmul.bf16.gmra.mxu3 %v2183_v63 }
  0x9e   :  { %v1046_v10 = vpop.f32.mrf.mxu0 }
  0x9f   :  { %v1215_v11 = vpop.f32.mrf.mxu1 }
  0xa0   :  { %v1216_v14 = vadd.f32 %v1215_v11, %v1046_v10 }
  0xa1   :  { %1085 = vmatmul.bf16.gmra.mxu0 %v2187_v8  ;;  %v2231_v8 = vor.u32 %v2737_v60, %v2228_v61  ;;  %v2258_v60 = vld [vmem:[%s4043_s0 + $0x188] sm:$0xf]  ;;  %v2747_v61 = vld [vmem:[%s4043_s0 + $0x194] sm:$0xf0] }
  0xa2   :  { %1254 = vmatmul.bf16.gmra.mxu1 %v2191_v9 }
  0xa3   :  { %1423 = vmatmul.bf16.gmra.mxu2 %v2195_v12 }
  0xa4   :  { %1592 = vmatmul.bf16.gmra.mxu3 %v2199_v13 }
  0xa6   :  { %v1384_v15 = vpop.f32.mrf.mxu2  ;;  %v1048_v17 = vpop.f32.mrf.mxu0 }
  0xa7   :  { %v1553_v16 = vpop.f32.mrf.mxu3  ;;  %v1217_v18 = vpop.f32.mrf.mxu1  ;;  %v1385_v19 = vadd.f32 %v1384_v15, %v1216_v14 }
  0xa8   :  { %v1218_v28 = vadd.f32 %v1217_v18, %v1048_v17 }
  0xa9   :  { %v1554_v29 = vadd.f32 %v1553_v16, %v1385_v19 }
  0xab   :  { %v1910_v40 = vmul.f32 %v1554_v29, %v1554_v29 }
  0xae   :  { %v1386_v30 = vpop.f32.mrf.mxu2  ;;  %v1051_v35 = vpop.f32.mrf.mxu0 }
  0xaf   :  { %v1555_v31 = vpop.f32.mrf.mxu3  ;;  %v1387_v34 = vadd.f32 %v1386_v30, %v1218_v28  ;;  %v1220_v36 = vpop.f32.mrf.mxu1  ;;  %v2743_v28 = vld [vmem:[%s4043_s0 + $0x174] sm:$0xf0]  ;;  %v2244_v30 = vld [vmem:[%s4043_s0 + $0x178] sm:$0xf0] }
  0xb0   :  { %v1221_v41 = vadd.f32 %v1220_v36, %v1051_v35  ;;  %v2235_v35 = vor.u32 %v2742_v22, %v2234_v21  ;;  %v2239_v36 = vor.u32 %v2740_v25, %v2236_v26 }
  0xb1   :  { %v1556_v39 = vadd.f32 %v1555_v31, %v1387_v34  ;;  %1090 = vmatmul.bf16.gmra.mxu0 %v2203_v32 }
  0xb2   :  { %1259 = vmatmul.bf16.gmra.mxu1 %v2207_v33 }
  0xb3   :  { %v2859_v42 = vpack.c.bf16 %v1556_v39, %v1554_v29  ;;  %v1841_v43 = vadd.f32 %v1556_v39, %v1554_v29  ;;  %v1911_v44 = vmul.f32 %v1556_v39, %v1556_v39  ;;  %1428 = vmatmul.bf16.gmra.mxu2 %v2211_v37  ;;  %v2741_v29 = vld [vmem:[%s4043_s0 + $0x16c] sm:$0xf] }
  0xb4   :  { %1597 = vmatmul.bf16.gmra.mxu3 %v2215_v38 }
  0xb5   :  { %2860 = vst [vmem:[%s4044_s2] sm:$0xff] %v2859_v42   ;;  %v1974_v45 = vadd.f32 %v1911_v44, %v1910_v40  ;;  %v2243_v40 = vor.u32 %v2743_v28, %v2242_v27  ;;  %v2748_v27 = vld [vmem:[%s4043_s0 + $0x1a4] sm:$0xf]  ;;  %v2268_v28 = vld [vmem:[%s4043_s0 + $0x1b0] sm:$0xf0] }
  0xb6   :  { %v1389_v46 = vpop.f32.mrf.mxu2  ;;  %v1053_v49 = vpop.f32.mrf.mxu0 }
  0xb7   :  { %v1558_v47 = vpop.f32.mrf.mxu3  ;;  %v1390_v48 = vadd.f32 %v1389_v46, %v1221_v41  ;;  %v1222_v50 = vpop.f32.mrf.mxu1  ;;  %v2247_v41 = vor.u32 %v2741_v29, %v2244_v30  ;;  %v2274_v29 = vld [vmem:[%s4043_s0 + $0x1a8] sm:$0xf]  ;;  %v2751_v30 = vld [vmem:[%s4043_s0 + $0x1b4] sm:$0xf0] }
  0xb8   :  { %v1223_v63 = vadd.f32 %v1222_v50, %v1053_v49 }
  0xb9   :  { %v1559_v51 = vadd.f32 %v1558_v47, %v1390_v48 }
  0xbb   :  { %v1842_v54 = vadd.f32 %v1841_v43, %v1559_v51  ;;  %v1912_v55 = vmul.f32 %v1559_v51, %v1559_v51 }
  0xbd   :  { %v1975_v62 = vadd.f32 %v1974_v45, %v1912_v55  ;;  %v2746_v55 = vld [vmem:[%s4043_s0 + $0x18c] sm:$0xf0] }
  0xbe   :  { %v1391_v0 = vpop.f32.mrf.mxu2  ;;  %v1056_v5 = vpop.f32.mrf.mxu0 }
  0xbf   :  { %v1560_v1 = vpop.f32.mrf.mxu3  ;;  %v1392_v4 = vadd.f32 %v1391_v0, %v1223_v63  ;;  %v1225_v6 = vpop.f32.mrf.mxu1  ;;  %v2260_v63 = vld [vmem:[%s4043_s0 + $0x198] sm:$0xf0] }
  0xc0   :  { %v1226_v10 = vadd.f32 %v1225_v6, %v1056_v5  ;;  %v2255_v5 = vor.u32 %v2744_v58, %v2252_v59 }
  0xc1   :  { %v1561_v9 = vadd.f32 %v1560_v1, %v1392_v4  ;;  %1095 = vmatmul.bf16.gmra.mxu0 %v2219_v2 }
  0xc2   :  { %1264 = vmatmul.bf16.gmra.mxu1 %v2223_v3 }
  0xc3   :  { %v2864_v11 = vpack.c.bf16 %v1561_v9, %v1559_v51  ;;  %v1843_v12 = vadd.f32 %v1842_v54, %v1561_v9  ;;  %v1913_v13 = vmul.f32 %v1561_v9, %v1561_v9  ;;  %1433 = vmatmul.bf16.gmra.mxu2 %v2227_v7  ;;  %v2250_v54 = vld [vmem:[%s4043_s0 + $0x180] sm:$0xf]  ;;  %v2259_v9 = vor.u32 %v2747_v61, %v2258_v60  ;;  %v2752_v60 = vld [vmem:[%s4043_s0 + $0x1c4] sm:$0xf]  ;;  %v2284_v61 = vld [vmem:[%s4043_s0 + $0x1d0] sm:$0xf0] }
  0xc4   :  { %1602 = vmatmul.bf16.gmra.mxu3 %v2231_v8  ;;  %v2251_v4 = vor.u32 %v2746_v55, %v2250_v54 }
  0xc5   :  { %3016 = vst [vmem:[%s4044_s2 + $0x8] sm:$0xff] %v2864_v11   ;;  %v1976_v14 = vadd.f32 %v1975_v62, %v1913_v13  ;;  %v2745_v62 = vld [vmem:[%s4043_s0 + $0x18c] sm:$0xf] }
  0xc6   :  { %v1394_v15 = vpop.f32.mrf.mxu2  ;;  %v1058_v18 = vpop.f32.mrf.mxu0 }
  0xc7   :  { %v1563_v16 = vpop.f32.mrf.mxu3  ;;  %v1395_v17 = vadd.f32 %v1394_v15, %v1226_v10  ;;  %v1227_v19 = vpop.f32.mrf.mxu1  ;;  %v2263_v10 = vor.u32 %v2745_v62, %v2260_v63  ;;  %v2290_v62 = vld [vmem:[%s4043_s0 + $0x1c8] sm:$0xf]  ;;  %v2755_v63 = vld [vmem:[%s4043_s0 + $0x1d4] sm:$0xf0] }
  0xc8   :  { %v1228_v32 = vadd.f32 %v1227_v19, %v1058_v18 }
  0xc9   :  { %v1564_v20 = vadd.f32 %v1563_v16, %v1395_v17 }
  0xcb   :  { %v1844_v23 = vadd.f32 %v1843_v12, %v1564_v20  ;;  %v1914_v24 = vmul.f32 %v1564_v20, %v1564_v20 }
  0xcd   :  { %v1977_v31 = vadd.f32 %v1976_v14, %v1914_v24  ;;  %v2750_v24 = vld [vmem:[%s4043_s0 + $0x1ac] sm:$0xf0] }
  0xce   :  { %v1396_v33 = vpop.f32.mrf.mxu2  ;;  %v1061_v38 = vpop.f32.mrf.mxu0 }
  0xcf   :  { %v1565_v34 = vpop.f32.mrf.mxu3  ;;  %v1397_v37 = vadd.f32 %v1396_v33, %v1228_v32  ;;  %v1230_v39 = vpop.f32.mrf.mxu1  ;;  %v2276_v32 = vld [vmem:[%s4043_s0 + $0x1b8] sm:$0xf0] }
  0xd0   :  { %v1231_v43 = vadd.f32 %v1230_v39, %v1061_v38  ;;  %v2271_v38 = vor.u32 %v2748_v27, %v2268_v28 }
  0xd1   :  { %v1566_v42 = vadd.f32 %v1565_v34, %v1397_v37  ;;  %1100 = vmatmul.bf16.gmra.mxu0 %v2235_v35 }
  0xd2   :  { %1269 = vmatmul.bf16.gmra.mxu1 %v2239_v36 }
  0xd3   :  { %v2869_v44 = vpack.c.bf16 %v1566_v42, %v1564_v20  ;;  %v1845_v45 = vadd.f32 %v1844_v23, %v1566_v42  ;;  %v1915_v46 = vmul.f32 %v1566_v42, %v1566_v42  ;;  %1438 = vmatmul.bf16.gmra.mxu2 %v2243_v40  ;;  %v2266_v23 = vld [vmem:[%s4043_s0 + $0x1a0] sm:$0xf]  ;;  %v2275_v42 = vor.u32 %v2751_v30, %v2274_v29  ;;  %v2756_v29 = vld [vmem:[%s4043_s0 + $0x1e4] sm:$0xf]  ;;  %v2300_v30 = vld [vmem:[%s4043_s0 + $0x1f0] sm:$0xf0] }
  0xd4   :  { %1607 = vmatmul.bf16.gmra.mxu3 %v2247_v41  ;;  %v2267_v37 = vor.u32 %v2750_v24, %v2266_v23 }
  0xd5   :  { %3017 = vst [vmem:[%s4044_s2 + $0x10] sm:$0xff] %v2869_v44   ;;  %v1978_v47 = vadd.f32 %v1977_v31, %v1915_v46  ;;  %v2749_v31 = vld [vmem:[%s4043_s0 + $0x1ac] sm:$0xf] }
  0xd6   :  { %v1399_v48 = vpop.f32.mrf.mxu2  ;;  %v1063_v51 = vpop.f32.mrf.mxu0 }
  0xd7   :  { %v1568_v49 = vpop.f32.mrf.mxu3  ;;  %v1400_v50 = vadd.f32 %v1399_v48, %v1231_v43  ;;  %v1232_v52 = vpop.f32.mrf.mxu1  ;;  %v2279_v43 = vor.u32 %v2749_v31, %v2276_v32  ;;  %v2306_v31 = vld [vmem:[%s4043_s0 + $0x1e8] sm:$0xf]  ;;  %v2759_v32 = vld [vmem:[%s4043_s0 + $0x1f4] sm:$0xf0] }
  0xd8   :  { %v1233_v1 = vadd.f32 %v1232_v52, %v1063_v51 }
  0xd9   :  { %v1569_v53 = vadd.f32 %v1568_v49, %v1400_v50 }
  0xdb   :  { %v1846_v56 = vadd.f32 %v1845_v45, %v1569_v53  ;;  %v1916_v57 = vmul.f32 %v1569_v53, %v1569_v53 }
  0xdd   :  { %v1979_v0 = vadd.f32 %v1978_v47, %v1916_v57  ;;  %v2754_v57 = vld [vmem:[%s4043_s0 + $0x1cc] sm:$0xf0] }
  0xde   :  { %v1401_v2 = vpop.f32.mrf.mxu2  ;;  %v1066_v7 = vpop.f32.mrf.mxu0 }
  0xdf   :  { %v1570_v3 = vpop.f32.mrf.mxu3  ;;  %v1402_v6 = vadd.f32 %v1401_v2, %v1233_v1  ;;  %v1235_v8 = vpop.f32.mrf.mxu1  ;;  %v2292_v1 = vld [vmem:[%s4043_s0 + $0x1d8] sm:$0xf0] }
  0xe0   :  { %v1236_v12 = vadd.f32 %v1235_v8, %v1066_v7  ;;  %v2287_v7 = vor.u32 %v2752_v60, %v2284_v61 }
  0xe1   :  { %v1571_v11 = vadd.f32 %v1570_v3, %v1402_v6  ;;  %1105 = vmatmul.bf16.gmra.mxu0 %v2251_v4 }
  0xe2   :  { %1274 = vmatmul.bf16.gmra.mxu1 %v2255_v5 }
  0xe3   :  { %v2874_v13 = vpack.c.bf16 %v1571_v11, %v1569_v53  ;;  %v1847_v14 = vadd.f32 %v1846_v56, %v1571_v11  ;;  %v1917_v15 = vmul.f32 %v1571_v11, %v1571_v11  ;;  %1443 = vmatmul.bf16.gmra.mxu2 %v2259_v9  ;;  %v2282_v56 = vld [vmem:[%s4043_s0 + $0x1c0] sm:$0xf]  ;;  %v2291_v11 = vor.u32 %v2755_v63, %v2290_v62  ;;  %v2760_v62 = vld [vmem:[%s4043_s0 + $0x204] sm:$0xf]  ;;  %v2316_v63 = vld [vmem:[%s4043_s0 + $0x210] sm:$0xf0] }
  0xe4   :  { %1612 = vmatmul.bf16.gmra.mxu3 %v2263_v10  ;;  %v2283_v6 = vor.u32 %v2754_v57, %v2282_v56 }
  0xe5   :  { %3018 = vst [vmem:[%s4044_s2 + $0x18] sm:$0xff] %v2874_v13   ;;  %v1980_v16 = vadd.f32 %v1979_v0, %v1917_v15  ;;  %v2753_v0 = vld [vmem:[%s4043_s0 + $0x1cc] sm:$0xf] }
  0xe6   :  { %v1404_v17 = vpop.f32.mrf.mxu2  ;;  %v1068_v20 = vpop.f32.mrf.mxu0 }
  0xe7   :  { %v1573_v18 = vpop.f32.mrf.mxu3  ;;  %v1405_v19 = vadd.f32 %v1404_v17, %v1236_v12  ;;  %v1237_v21 = vpop.f32.mrf.mxu1  ;;  %v2295_v12 = vor.u32 %v2753_v0, %v2292_v1  ;;  %v2322_v0 = vld [vmem:[%s4043_s0 + $0x208] sm:$0xf]  ;;  %v2763_v1 = vld [vmem:[%s4043_s0 + $0x214] sm:$0xf0] }
  0xe8   :  { %v1238_v34 = vadd.f32 %v1237_v21, %v1068_v20 }
  0xe9   :  { %v1574_v22 = vadd.f32 %v1573_v18, %v1405_v19 }
  0xeb   :  { %v1848_v25 = vadd.f32 %v1847_v14, %v1574_v22  ;;  %v1918_v26 = vmul.f32 %v1574_v22, %v1574_v22 }
  0xed   :  { %v1981_v33 = vadd.f32 %v1980_v16, %v1918_v26  ;;  %v2758_v26 = vld [vmem:[%s4043_s0 + $0x1ec] sm:$0xf0] }
  0xee   :  { %v1406_v35 = vpop.f32.mrf.mxu2  ;;  %v1071_v40 = vpop.f32.mrf.mxu0 }
  0xef   :  { %v1575_v36 = vpop.f32.mrf.mxu3  ;;  %v1407_v39 = vadd.f32 %v1406_v35, %v1238_v34  ;;  %v1240_v41 = vpop.f32.mrf.mxu1  ;;  %v2308_v34 = vld [vmem:[%s4043_s0 + $0x1f8] sm:$0xf0] }
  0xf0   :  { %v1241_v45 = vadd.f32 %v1240_v41, %v1071_v40  ;;  %v2303_v40 = vor.u32 %v2756_v29, %v2300_v30 }
  0xf1   :  { %v1576_v44 = vadd.f32 %v1575_v36, %v1407_v39  ;;  %1110 = vmatmul.bf16.gmra.mxu0 %v2267_v37 }
  0xf2   :  { %1279 = vmatmul.bf16.gmra.mxu1 %v2271_v38 }
  0xf3   :  { %v2879_v46 = vpack.c.bf16 %v1576_v44, %v1574_v22  ;;  %v1849_v47 = vadd.f32 %v1848_v25, %v1576_v44  ;;  %v1919_v48 = vmul.f32 %v1576_v44, %v1576_v44  ;;  %1448 = vmatmul.bf16.gmra.mxu2 %v2275_v42  ;;  %v2298_v25 = vld [vmem:[%s4043_s0 + $0x1e0] sm:$0xf]  ;;  %v2307_v44 = vor.u32 %v2759_v32, %v2306_v31  ;;  %v2764_v31 = vld [vmem:[%s4043_s0 + $0x224] sm:$0xf]  ;;  %v2332_v32 = vld [vmem:[%s4043_s0 + $0x230] sm:$0xf0] }
  0xf4   :  { %1617 = vmatmul.bf16.gmra.mxu3 %v2279_v43  ;;  %v2299_v39 = vor.u32 %v2758_v26, %v2298_v25 }
  0xf5   :  { %3019 = vst [vmem:[%s4044_s2 + $0x20] sm:$0xff] %v2879_v46   ;;  %v1982_v49 = vadd.f32 %v1981_v33, %v1919_v48  ;;  %v2757_v33 = vld [vmem:[%s4043_s0 + $0x1ec] sm:$0xf] }
  0xf6   :  { %v1409_v50 = vpop.f32.mrf.mxu2  ;;  %v1073_v53 = vpop.f32.mrf.mxu0 }
  0xf7   :  { %v1578_v51 = vpop.f32.mrf.mxu3  ;;  %v1410_v52 = vadd.f32 %v1409_v50, %v1241_v45  ;;  %v1242_v54 = vpop.f32.mrf.mxu1  ;;  %v2311_v45 = vor.u32 %v2757_v33, %v2308_v34  ;;  %v2338_v33 = vld [vmem:[%s4043_s0 + $0x228] sm:$0xf]  ;;  %v2767_v34 = vld [vmem:[%s4043_s0 + $0x234] sm:$0xf0] }
  0xf8   :  { %v1243_v3 = vadd.f32 %v1242_v54, %v1073_v53 }
  0xf9   :  { %v1579_v55 = vadd.f32 %v1578_v51, %v1410_v52 }
  0xfb   :  { %v1850_v58 = vadd.f32 %v1849_v47, %v1579_v55  ;;  %v1920_v59 = vmul.f32 %v1579_v55, %v1579_v55 }
  0xfd   :  { %v1983_v2 = vadd.f32 %v1982_v49, %v1920_v59  ;;  %v2762_v59 = vld [vmem:[%s4043_s0 + $0x20c] sm:$0xf0] }
  0xfe   :  { %v1411_v4 = vpop.f32.mrf.mxu2  ;;  %v1076_v9 = vpop.f32.mrf.mxu0 }
  0xff   :  { %v1580_v5 = vpop.f32.mrf.mxu3  ;;  %v1412_v8 = vadd.f32 %v1411_v4, %v1243_v3  ;;  %v1245_v10 = vpop.f32.mrf.mxu1  ;;  %v2324_v3 = vld [vmem:[%s4043_s0 + $0x218] sm:$0xf0] }
 0x100   :  { %v1246_v14 = vadd.f32 %v1245_v10, %v1076_v9  ;;  %v2319_v9 = vor.u32 %v2760_v62, %v2316_v63 }
 0x101   :  { %v1581_v13 = vadd.f32 %v1580_v5, %v1412_v8  ;;  %1115 = vmatmul.bf16.gmra.mxu0 %v2283_v6 }
 0x102   :  { %1284 = vmatmul.bf16.gmra.mxu1 %v2287_v7 }
 0x103   :  { %v2884_v15 = vpack.c.bf16 %v1581_v13, %v1579_v55  ;;  %v1851_v16 = vadd.f32 %v1850_v58, %v1581_v13  ;;  %v1921_v17 = vmul.f32 %v1581_v13, %v1581_v13  ;;  %1453 = vmatmul.bf16.gmra.mxu2 %v2291_v11  ;;  %v2314_v58 = vld [vmem:[%s4043_s0 + $0x200] sm:$0xf]  ;;  %v2323_v13 = vor.u32 %v2763_v1, %v2322_v0  ;;  %v2768_v0 = vld [vmem:[%s4043_s0 + $0x244] sm:$0xf]  ;;  %v2348_v1 = vld [vmem:[%s4043_s0 + $0x250] sm:$0xf0] }
 0x104   :  { %1622 = vmatmul.bf16.gmra.mxu3 %v2295_v12  ;;  %v2315_v8 = vor.u32 %v2762_v59, %v2314_v58 }
 0x105   :  { %3020 = vst [vmem:[%s4044_s2 + $0x28] sm:$0xff] %v2884_v15   ;;  %v1984_v18 = vadd.f32 %v1983_v2, %v1921_v17  ;;  %v2761_v2 = vld [vmem:[%s4043_s0 + $0x20c] sm:$0xf] }
 0x106   :  { %v1414_v19 = vpop.f32.mrf.mxu2  ;;  %v1078_v22 = vpop.f32.mrf.mxu0 }
 0x107   :  { %v1583_v20 = vpop.f32.mrf.mxu3  ;;  %v1415_v21 = vadd.f32 %v1414_v19, %v1246_v14  ;;  %v1247_v23 = vpop.f32.mrf.mxu1  ;;  %v2327_v14 = vor.u32 %v2761_v2, %v2324_v3  ;;  %v2354_v2 = vld [vmem:[%s4043_s0 + $0x248] sm:$0xf]  ;;  %v2771_v3 = vld [vmem:[%s4043_s0 + $0x254] sm:$0xf0] }
 0x108   :  { %v1248_v36 = vadd.f32 %v1247_v23, %v1078_v22 }
 0x109   :  { %v1584_v24 = vadd.f32 %v1583_v20, %v1415_v21 }
 0x10b   :  { %v1852_v27 = vadd.f32 %v1851_v16, %v1584_v24  ;;  %v1922_v28 = vmul.f32 %v1584_v24, %v1584_v24 }
 0x10d   :  { %v1985_v35 = vadd.f32 %v1984_v18, %v1922_v28  ;;  %v2766_v28 = vld [vmem:[%s4043_s0 + $0x22c] sm:$0xf0] }
 0x10e   :  { %v1416_v37 = vpop.f32.mrf.mxu2  ;;  %v1081_v42 = vpop.f32.mrf.mxu0 }
 0x10f   :  { %v1585_v38 = vpop.f32.mrf.mxu3  ;;  %v1417_v41 = vadd.f32 %v1416_v37, %v1248_v36  ;;  %v1250_v43 = vpop.f32.mrf.mxu1  ;;  %v2340_v36 = vld [vmem:[%s4043_s0 + $0x238] sm:$0xf0] }
 0x110   :  { %v1251_v47 = vadd.f32 %v1250_v43, %v1081_v42  ;;  %v2335_v42 = vor.u32 %v2764_v31, %v2332_v32 }
 0x111   :  { %v1586_v46 = vadd.f32 %v1585_v38, %v1417_v41  ;;  %1120 = vmatmul.bf16.gmra.mxu0 %v2299_v39 }
 0x112   :  { %1289 = vmatmul.bf16.gmra.mxu1 %v2303_v40 }
 0x113   :  { %v2889_v48 = vpack.c.bf16 %v1586_v46, %v1584_v24  ;;  %v1853_v49 = vadd.f32 %v1852_v27, %v1586_v46  ;;  %v1923_v50 = vmul.f32 %v1586_v46, %v1586_v46  ;;  %1458 = vmatmul.bf16.gmra.mxu2 %v2307_v44  ;;  %v2330_v27 = vld [vmem:[%s4043_s0 + $0x220] sm:$0xf]  ;;  %v2339_v46 = vor.u32 %v2767_v34, %v2338_v33  ;;  %v2772_v33 = vld [vmem:[%s4043_s0 + $0x264] sm:$0xf]  ;;  %v2364_v34 = vld [vmem:[%s4043_s0 + $0x270] sm:$0xf0] }
 0x114   :  { %1627 = vmatmul.bf16.gmra.mxu3 %v2311_v45  ;;  %v2331_v41 = vor.u32 %v2766_v28, %v2330_v27 }
 0x115   :  { %3021 = vst [vmem:[%s4044_s2 + $0x30] sm:$0xff] %v2889_v48   ;;  %v1986_v51 = vadd.f32 %v1985_v35, %v1923_v50  ;;  %v2765_v35 = vld [vmem:[%s4043_s0 + $0x22c] sm:$0xf] }
 0x116   :  { %v1419_v52 = vpop.f32.mrf.mxu2  ;;  %v1083_v55 = vpop.f32.mrf.mxu0 }
 0x117   :  { %v1588_v53 = vpop.f32.mrf.mxu3  ;;  %v1420_v54 = vadd.f32 %v1419_v52, %v1251_v47  ;;  %v1252_v56 = vpop.f32.mrf.mxu1  ;;  %v2343_v47 = vor.u32 %v2765_v35, %v2340_v36  ;;  %v2370_v35 = vld [vmem:[%s4043_s0 + $0x268] sm:$0xf]  ;;  %v2775_v36 = vld [vmem:[%s4043_s0 + $0x274] sm:$0xf0] }
 0x118   :  { %v1253_v5 = vadd.f32 %v1252_v56, %v1083_v55 }
 0x119   :  { %v1589_v57 = vadd.f32 %v1588_v53, %v1420_v54 }
 0x11b   :  { %v1854_v60 = vadd.f32 %v1853_v49, %v1589_v57  ;;  %v1924_v61 = vmul.f32 %v1589_v57, %v1589_v57 }
 0x11d   :  { %v1987_v4 = vadd.f32 %v1986_v51, %v1924_v61  ;;  %v2770_v61 = vld [vmem:[%s4043_s0 + $0x24c] sm:$0xf0] }
 0x11e   :  { %v1421_v6 = vpop.f32.mrf.mxu2  ;;  %v1086_v11 = vpop.f32.mrf.mxu0 }
 0x11f   :  { %v1590_v7 = vpop.f32.mrf.mxu3  ;;  %v1422_v10 = vadd.f32 %v1421_v6, %v1253_v5  ;;  %v1255_v12 = vpop.f32.mrf.mxu1  ;;  %v2356_v5 = vld [vmem:[%s4043_s0 + $0x258] sm:$0xf0] }
 0x120   :  { %v1256_v16 = vadd.f32 %v1255_v12, %v1086_v11  ;;  %v2351_v11 = vor.u32 %v2768_v0, %v2348_v1 }
 0x121   :  { %v1591_v15 = vadd.f32 %v1590_v7, %v1422_v10  ;;  %1125 = vmatmul.bf16.gmra.mxu0 %v2315_v8 }
 0x122   :  { %1294 = vmatmul.bf16.gmra.mxu1 %v2319_v9 }
 0x123   :  { %v2894_v17 = vpack.c.bf16 %v1591_v15, %v1589_v57  ;;  %v1855_v18 = vadd.f32 %v1854_v60, %v1591_v15  ;;  %v1925_v19 = vmul.f32 %v1591_v15, %v1591_v15  ;;  %1463 = vmatmul.bf16.gmra.mxu2 %v2323_v13  ;;  %v2346_v60 = vld [vmem:[%s4043_s0 + $0x240] sm:$0xf]  ;;  %v2355_v15 = vor.u32 %v2771_v3, %v2354_v2  ;;  %v2776_v2 = vld [vmem:[%s4043_s0 + $0x284] sm:$0xf]  ;;  %v2380_v3 = vld [vmem:[%s4043_s0 + $0x290] sm:$0xf0] }
 0x124   :  { %1632 = vmatmul.bf16.gmra.mxu3 %v2327_v14  ;;  %v2347_v10 = vor.u32 %v2770_v61, %v2346_v60 }
 0x125   :  { %3022 = vst [vmem:[%s4044_s2 + $0x38] sm:$0xff] %v2894_v17   ;;  %v1988_v20 = vadd.f32 %v1987_v4, %v1925_v19  ;;  %v2769_v4 = vld [vmem:[%s4043_s0 + $0x24c] sm:$0xf] }
 0x126   :  { %v1424_v21 = vpop.f32.mrf.mxu2  ;;  %v1088_v24 = vpop.f32.mrf.mxu0 }
 0x127   :  { %v1593_v22 = vpop.f32.mrf.mxu3  ;;  %v1425_v23 = vadd.f32 %v1424_v21, %v1256_v16  ;;  %v1257_v25 = vpop.f32.mrf.mxu1  ;;  %v2359_v16 = vor.u32 %v2769_v4, %v2356_v5  ;;  %v2386_v4 = vld [vmem:[%s4043_s0 + $0x288] sm:$0xf]  ;;  %v2779_v5 = vld [vmem:[%s4043_s0 + $0x294] sm:$0xf0] }
 0x128   :  { %v1258_v38 = vadd.f32 %v1257_v25, %v1088_v24 }
 0x129   :  { %v1594_v26 = vadd.f32 %v1593_v22, %v1425_v23 }
 0x12b   :  { %v1856_v29 = vadd.f32 %v1855_v18, %v1594_v26  ;;  %v1926_v30 = vmul.f32 %v1594_v26, %v1594_v26 }
 0x12d   :  { %v1989_v37 = vadd.f32 %v1988_v20, %v1926_v30  ;;  %v2774_v30 = vld [vmem:[%s4043_s0 + $0x26c] sm:$0xf0] }
 0x12e   :  { %v1426_v39 = vpop.f32.mrf.mxu2  ;;  %v1091_v44 = vpop.f32.mrf.mxu0 }
 0x12f   :  { %v1595_v40 = vpop.f32.mrf.mxu3  ;;  %v1427_v43 = vadd.f32 %v1426_v39, %v1258_v38  ;;  %v1260_v45 = vpop.f32.mrf.mxu1  ;;  %v2372_v38 = vld [vmem:[%s4043_s0 + $0x278] sm:$0xf0] }
 0x130   :  { %v1261_v49 = vadd.f32 %v1260_v45, %v1091_v44  ;;  %v2367_v44 = vor.u32 %v2772_v33, %v2364_v34 }
 0x131   :  { %v1596_v48 = vadd.f32 %v1595_v40, %v1427_v43  ;;  %1130 = vmatmul.bf16.gmra.mxu0 %v2331_v41 }
 0x132   :  { %1299 = vmatmul.bf16.gmra.mxu1 %v2335_v42 }
 0x133   :  { %v2899_v50 = vpack.c.bf16 %v1596_v48, %v1594_v26  ;;  %v1857_v51 = vadd.f32 %v1856_v29, %v1596_v48  ;;  %v1927_v52 = vmul.f32 %v1596_v48, %v1596_v48  ;;  %1468 = vmatmul.bf16.gmra.mxu2 %v2339_v46  ;;  %v2362_v29 = vld [vmem:[%s4043_s0 + $0x260] sm:$0xf]  ;;  %v2371_v48 = vor.u32 %v2775_v36, %v2370_v35  ;;  %v2780_v35 = vld [vmem:[%s4043_s0 + $0x2a4] sm:$0xf]  ;;  %v2396_v36 = vld [vmem:[%s4043_s0 + $0x2b0] sm:$0xf0] }
 0x134   :  { %1637 = vmatmul.bf16.gmra.mxu3 %v2343_v47  ;;  %v2363_v43 = vor.u32 %v2774_v30, %v2362_v29 }
 0x135   :  { %3023 = vst [vmem:[%s4044_s2 + $0x40] sm:$0xff] %v2899_v50   ;;  %v1990_v53 = vadd.f32 %v1989_v37, %v1927_v52  ;;  %v2773_v37 = vld [vmem:[%s4043_s0 + $0x26c] sm:$0xf] }
 0x136   :  { %v1429_v54 = vpop.f32.mrf.mxu2  ;;  %v1093_v57 = vpop.f32.mrf.mxu0 }
 0x137   :  { %v1598_v55 = vpop.f32.mrf.mxu3  ;;  %v1430_v56 = vadd.f32 %v1429_v54, %v1261_v49  ;;  %v1262_v58 = vpop.f32.mrf.mxu1  ;;  %v2375_v49 = vor.u32 %v2773_v37, %v2372_v38  ;;  %v2402_v37 = vld [vmem:[%s4043_s0 + $0x2a8] sm:$0xf]  ;;  %v2783_v38 = vld [vmem:[%s4043_s0 + $0x2b4] sm:$0xf0] }
 0x138   :  { %v1263_v7 = vadd.f32 %v1262_v58, %v1093_v57 }
 0x139   :  { %v1599_v59 = vadd.f32 %v1598_v55, %v1430_v56 }
 0x13b   :  { %v1858_v62 = vadd.f32 %v1857_v51, %v1599_v59  ;;  %v1928_v63 = vmul.f32 %v1599_v59, %v1599_v59 }
 0x13d   :  { %v1991_v6 = vadd.f32 %v1990_v53, %v1928_v63  ;;  %v2778_v63 = vld [vmem:[%s4043_s0 + $0x28c] sm:$0xf0] }
 0x13e   :  { %v1431_v8 = vpop.f32.mrf.mxu2  ;;  %v1096_v13 = vpop.f32.mrf.mxu0 }
 0x13f   :  { %v1600_v9 = vpop.f32.mrf.mxu3  ;;  %v1432_v12 = vadd.f32 %v1431_v8, %v1263_v7  ;;  %v1265_v14 = vpop.f32.mrf.mxu1  ;;  %v2388_v7 = vld [vmem:[%s4043_s0 + $0x298] sm:$0xf0] }
 0x140   :  { %v1266_v18 = vadd.f32 %v1265_v14, %v1096_v13  ;;  %v2383_v13 = vor.u32 %v2776_v2, %v2380_v3 }
 0x141   :  { %v1601_v17 = vadd.f32 %v1600_v9, %v1432_v12  ;;  %1135 = vmatmul.bf16.gmra.mxu0 %v2347_v10 }
 0x142   :  { %1304 = vmatmul.bf16.gmra.mxu1 %v2351_v11 }
 0x143   :  { %v2904_v19 = vpack.c.bf16 %v1601_v17, %v1599_v59  ;;  %v1859_v20 = vadd.f32 %v1858_v62, %v1601_v17  ;;  %v1929_v21 = vmul.f32 %v1601_v17, %v1601_v17  ;;  %1473 = vmatmul.bf16.gmra.mxu2 %v2355_v15  ;;  %v2378_v62 = vld [vmem:[%s4043_s0 + $0x280] sm:$0xf]  ;;  %v2387_v17 = vor.u32 %v2779_v5, %v2386_v4  ;;  %v2784_v4 = vld [vmem:[%s4043_s0 + $0x2c4] sm:$0xf]  ;;  %v2412_v5 = vld [vmem:[%s4043_s0 + $0x2d0] sm:$0xf0] }
 0x144   :  { %1642 = vmatmul.bf16.gmra.mxu3 %v2359_v16  ;;  %v2379_v12 = vor.u32 %v2778_v63, %v2378_v62 }
 0x145   :  { %3024 = vst [vmem:[%s4044_s2 + $0x48] sm:$0xff] %v2904_v19   ;;  %v1992_v22 = vadd.f32 %v1991_v6, %v1929_v21  ;;  %v2777_v6 = vld [vmem:[%s4043_s0 + $0x28c] sm:$0xf] }
 0x146   :  { %v1434_v23 = vpop.f32.mrf.mxu2  ;;  %v1098_v26 = vpop.f32.mrf.mxu0 }
 0x147   :  { %v1603_v24 = vpop.f32.mrf.mxu3  ;;  %v1435_v25 = vadd.f32 %v1434_v23, %v1266_v18  ;;  %v1267_v27 = vpop.f32.mrf.mxu1  ;;  %v2391_v18 = vor.u32 %v2777_v6, %v2388_v7  ;;  %v2418_v6 = vld [vmem:[%s4043_s0 + $0x2c8] sm:$0xf]  ;;  %v2787_v7 = vld [vmem:[%s4043_s0 + $0x2d4] sm:$0xf0] }
 0x148   :  { %v1268_v40 = vadd.f32 %v1267_v27, %v1098_v26 }
 0x149   :  { %v1604_v28 = vadd.f32 %v1603_v24, %v1435_v25 }
 0x14b   :  { %v1860_v31 = vadd.f32 %v1859_v20, %v1604_v28  ;;  %v1930_v32 = vmul.f32 %v1604_v28, %v1604_v28 }
 0x14d   :  { %v1993_v39 = vadd.f32 %v1992_v22, %v1930_v32  ;;  %v2782_v32 = vld [vmem:[%s4043_s0 + $0x2ac] sm:$0xf0] }
 0x14e   :  { %v1436_v41 = vpop.f32.mrf.mxu2  ;;  %v1101_v46 = vpop.f32.mrf.mxu0 }
 0x14f   :  { %v1605_v42 = vpop.f32.mrf.mxu3  ;;  %v1437_v45 = vadd.f32 %v1436_v41, %v1268_v40  ;;  %v1270_v47 = vpop.f32.mrf.mxu1  ;;  %v2404_v40 = vld [vmem:[%s4043_s0 + $0x2b8] sm:$0xf0] }
 0x150   :  { %v1271_v51 = vadd.f32 %v1270_v47, %v1101_v46  ;;  %v2399_v46 = vor.u32 %v2780_v35, %v2396_v36 }
 0x151   :  { %v1606_v50 = vadd.f32 %v1605_v42, %v1437_v45  ;;  %1140 = vmatmul.bf16.gmra.mxu0 %v2363_v43 }
 0x152   :  { %1309 = vmatmul.bf16.gmra.mxu1 %v2367_v44 }
 0x153   :  { %v2909_v52 = vpack.c.bf16 %v1606_v50, %v1604_v28  ;;  %v1861_v53 = vadd.f32 %v1860_v31, %v1606_v50  ;;  %v1931_v54 = vmul.f32 %v1606_v50, %v1606_v50  ;;  %1478 = vmatmul.bf16.gmra.mxu2 %v2371_v48  ;;  %v2394_v31 = vld [vmem:[%s4043_s0 + $0x2a0] sm:$0xf]  ;;  %v2403_v50 = vor.u32 %v2783_v38, %v2402_v37  ;;  %v2788_v37 = vld [vmem:[%s4043_s0 + $0x2e4] sm:$0xf]  ;;  %v2428_v38 = vld [vmem:[%s4043_s0 + $0x2f0] sm:$0xf0] }
 0x154   :  { %1647 = vmatmul.bf16.gmra.mxu3 %v2375_v49  ;;  %v2395_v45 = vor.u32 %v2782_v32, %v2394_v31 }
 0x155   :  { %3025 = vst [vmem:[%s4044_s2 + $0x50] sm:$0xff] %v2909_v52   ;;  %v1994_v55 = vadd.f32 %v1993_v39, %v1931_v54  ;;  %v2781_v39 = vld [vmem:[%s4043_s0 + $0x2ac] sm:$0xf] }
 0x156   :  { %v1439_v56 = vpop.f32.mrf.mxu2  ;;  %v1103_v59 = vpop.f32.mrf.mxu0 }
 0x157   :  { %v1608_v57 = vpop.f32.mrf.mxu3  ;;  %v1440_v58 = vadd.f32 %v1439_v56, %v1271_v51  ;;  %v1272_v60 = vpop.f32.mrf.mxu1  ;;  %v2407_v51 = vor.u32 %v2781_v39, %v2404_v40  ;;  %v2434_v39 = vld [vmem:[%s4043_s0 + $0x2e8] sm:$0xf]  ;;  %v2791_v40 = vld [vmem:[%s4043_s0 + $0x2f4] sm:$0xf0] }
 0x158   :  { %v1273_v9 = vadd.f32 %v1272_v60, %v1103_v59 }
 0x159   :  { %v1609_v61 = vadd.f32 %v1608_v57, %v1440_v58 }
 0x15b   :  { %v1862_v0 = vadd.f32 %v1861_v53, %v1609_v61  ;;  %v1932_v1 = vmul.f32 %v1609_v61, %v1609_v61 }
 0x15d   :  { %v1995_v8 = vadd.f32 %v1994_v55, %v1932_v1  ;;  %v2786_v1 = vld [vmem:[%s4043_s0 + $0x2cc] sm:$0xf0] }
 0x15e   :  { %v1441_v10 = vpop.f32.mrf.mxu2  ;;  %v1106_v15 = vpop.f32.mrf.mxu0 }
 0x15f   :  { %v1610_v11 = vpop.f32.mrf.mxu3  ;;  %v1442_v14 = vadd.f32 %v1441_v10, %v1273_v9  ;;  %v1275_v16 = vpop.f32.mrf.mxu1  ;;  %v2420_v9 = vld [vmem:[%s4043_s0 + $0x2d8] sm:$0xf0] }
 0x160   :  { %v1276_v20 = vadd.f32 %v1275_v16, %v1106_v15  ;;  %v2415_v15 = vor.u32 %v2784_v4, %v2412_v5 }
 0x161   :  { %v1611_v19 = vadd.f32 %v1610_v11, %v1442_v14  ;;  %1145 = vmatmul.bf16.gmra.mxu0 %v2379_v12 }
 0x162   :  { %1314 = vmatmul.bf16.gmra.mxu1 %v2383_v13 }
 0x163   :  { %v2914_v21 = vpack.c.bf16 %v1611_v19, %v1609_v61  ;;  %v1863_v22 = vadd.f32 %v1862_v0, %v1611_v19  ;;  %v1933_v23 = vmul.f32 %v1611_v19, %v1611_v19  ;;  %1483 = vmatmul.bf16.gmra.mxu2 %v2387_v17  ;;  %v2410_v0 = vld [vmem:[%s4043_s0 + $0x2c0] sm:$0xf]  ;;  %v2419_v19 = vor.u32 %v2787_v7, %v2418_v6  ;;  %v2792_v6 = vld [vmem:[%s4043_s0 + $0x304] sm:$0xf]  ;;  %v2444_v7 = vld [vmem:[%s4043_s0 + $0x310] sm:$0xf0] }
 0x164   :  { %1652 = vmatmul.bf16.gmra.mxu3 %v2391_v18  ;;  %v2411_v14 = vor.u32 %v2786_v1, %v2410_v0 }
 0x165   :  { %3026 = vst [vmem:[%s4044_s2 + $0x58] sm:$0xff] %v2914_v21   ;;  %v1996_v24 = vadd.f32 %v1995_v8, %v1933_v23  ;;  %v2785_v8 = vld [vmem:[%s4043_s0 + $0x2cc] sm:$0xf] }
 0x166   :  { %v1444_v25 = vpop.f32.mrf.mxu2  ;;  %v1108_v28 = vpop.f32.mrf.mxu0 }
 0x167   :  { %v1613_v26 = vpop.f32.mrf.mxu3  ;;  %v1445_v27 = vadd.f32 %v1444_v25, %v1276_v20  ;;  %v1277_v29 = vpop.f32.mrf.mxu1  ;;  %v2423_v20 = vor.u32 %v2785_v8, %v2420_v9  ;;  %v2450_v8 = vld [vmem:[%s4043_s0 + $0x308] sm:$0xf]  ;;  %v2795_v9 = vld [vmem:[%s4043_s0 + $0x314] sm:$0xf0] }
 0x168   :  { %v1278_v42 = vadd.f32 %v1277_v29, %v1108_v28 }
 0x169   :  { %v1614_v30 = vadd.f32 %v1613_v26, %v1445_v27 }
 0x16b   :  { %v1864_v33 = vadd.f32 %v1863_v22, %v1614_v30  ;;  %v1934_v34 = vmul.f32 %v1614_v30, %v1614_v30 }
 0x16d   :  { %v1997_v41 = vadd.f32 %v1996_v24, %v1934_v34  ;;  %v2790_v34 = vld [vmem:[%s4043_s0 + $0x2ec] sm:$0xf0] }
 0x16e   :  { %v1446_v43 = vpop.f32.mrf.mxu2  ;;  %v1111_v48 = vpop.f32.mrf.mxu0 }
 0x16f   :  { %v1615_v44 = vpop.f32.mrf.mxu3  ;;  %v1447_v47 = vadd.f32 %v1446_v43, %v1278_v42  ;;  %v1280_v49 = vpop.f32.mrf.mxu1  ;;  %v2436_v42 = vld [vmem:[%s4043_s0 + $0x2f8] sm:$0xf0] }
 0x170   :  { %v1281_v53 = vadd.f32 %v1280_v49, %v1111_v48  ;;  %v2431_v48 = vor.u32 %v2788_v37, %v2428_v38 }
 0x171   :  { %v1616_v52 = vadd.f32 %v1615_v44, %v1447_v47  ;;  %1150 = vmatmul.bf16.gmra.mxu0 %v2395_v45 }
 0x172   :  { %1319 = vmatmul.bf16.gmra.mxu1 %v2399_v46 }
 0x173   :  { %v2919_v54 = vpack.c.bf16 %v1616_v52, %v1614_v30  ;;  %v1865_v55 = vadd.f32 %v1864_v33, %v1616_v52  ;;  %v1935_v56 = vmul.f32 %v1616_v52, %v1616_v52  ;;  %1488 = vmatmul.bf16.gmra.mxu2 %v2403_v50  ;;  %v2426_v33 = vld [vmem:[%s4043_s0 + $0x2e0] sm:$0xf]  ;;  %v2435_v52 = vor.u32 %v2791_v40, %v2434_v39  ;;  %v2796_v39 = vld [vmem:[%s4043_s0 + $0x324] sm:$0xf]  ;;  %v2460_v40 = vld [vmem:[%s4043_s0 + $0x330] sm:$0xf0] }
 0x174   :  { %1657 = vmatmul.bf16.gmra.mxu3 %v2407_v51  ;;  %v2427_v47 = vor.u32 %v2790_v34, %v2426_v33 }
 0x175   :  { %3027 = vst [vmem:[%s4044_s2 + $0x60] sm:$0xff] %v2919_v54   ;;  %v1998_v57 = vadd.f32 %v1997_v41, %v1935_v56  ;;  %v2789_v41 = vld [vmem:[%s4043_s0 + $0x2ec] sm:$0xf] }
 0x176   :  { %v1449_v58 = vpop.f32.mrf.mxu2  ;;  %v1113_v61 = vpop.f32.mrf.mxu0 }
 0x177   :  { %v1618_v59 = vpop.f32.mrf.mxu3  ;;  %v1450_v60 = vadd.f32 %v1449_v58, %v1281_v53  ;;  %v1282_v62 = vpop.f32.mrf.mxu1  ;;  %v2439_v53 = vor.u32 %v2789_v41, %v2436_v42  ;;  %v2466_v41 = vld [vmem:[%s4043_s0 + $0x328] sm:$0xf]  ;;  %v2799_v42 = vld [vmem:[%s4043_s0 + $0x334] sm:$0xf0] }
 0x178   :  { %v1283_v11 = vadd.f32 %v1282_v62, %v1113_v61 }
 0x179   :  { %v1619_v63 = vadd.f32 %v1618_v59, %v1450_v60 }
 0x17b   :  { %v1866_v2 = vadd.f32 %v1865_v55, %v1619_v63  ;;  %v1936_v3 = vmul.f32 %v1619_v63, %v1619_v63 }
 0x17d   :  { %v1999_v10 = vadd.f32 %v1998_v57, %v1936_v3  ;;  %v2794_v3 = vld [vmem:[%s4043_s0 + $0x30c] sm:$0xf0] }
 0x17e   :  { %v1451_v12 = vpop.f32.mrf.mxu2  ;;  %v1116_v17 = vpop.f32.mrf.mxu0 }
 0x17f   :  { %v1620_v13 = vpop.f32.mrf.mxu3  ;;  %v1452_v16 = vadd.f32 %v1451_v12, %v1283_v11  ;;  %v1285_v18 = vpop.f32.mrf.mxu1  ;;  %v2452_v11 = vld [vmem:[%s4043_s0 + $0x318] sm:$0xf0] }
 0x180   :  { %v1286_v22 = vadd.f32 %v1285_v18, %v1116_v17  ;;  %v2447_v17 = vor.u32 %v2792_v6, %v2444_v7 }
 0x181   :  { %v1621_v21 = vadd.f32 %v1620_v13, %v1452_v16  ;;  %1155 = vmatmul.bf16.gmra.mxu0 %v2411_v14 }
 0x182   :  { %1324 = vmatmul.bf16.gmra.mxu1 %v2415_v15 }
 0x183   :  { %v2924_v23 = vpack.c.bf16 %v1621_v21, %v1619_v63  ;;  %v1867_v24 = vadd.f32 %v1866_v2, %v1621_v21  ;;  %v1937_v25 = vmul.f32 %v1621_v21, %v1621_v21  ;;  %1493 = vmatmul.bf16.gmra.mxu2 %v2419_v19  ;;  %v2442_v2 = vld [vmem:[%s4043_s0 + $0x300] sm:$0xf]  ;;  %v2451_v21 = vor.u32 %v2795_v9, %v2450_v8  ;;  %v2800_v8 = vld [vmem:[%s4043_s0 + $0x344] sm:$0xf]  ;;  %v2476_v9 = vld [vmem:[%s4043_s0 + $0x350] sm:$0xf0] }
 0x184   :  { %1662 = vmatmul.bf16.gmra.mxu3 %v2423_v20  ;;  %v2443_v16 = vor.u32 %v2794_v3, %v2442_v2 }
 0x185   :  { %3028 = vst [vmem:[%s4044_s2 + $0x68] sm:$0xff] %v2924_v23   ;;  %v2000_v26 = vadd.f32 %v1999_v10, %v1937_v25  ;;  %v2793_v10 = vld [vmem:[%s4043_s0 + $0x30c] sm:$0xf] }
 0x186   :  { %v1454_v27 = vpop.f32.mrf.mxu2  ;;  %v1118_v30 = vpop.f32.mrf.mxu0 }
 0x187   :  { %v1623_v28 = vpop.f32.mrf.mxu3  ;;  %v1455_v29 = vadd.f32 %v1454_v27, %v1286_v22  ;;  %v1287_v31 = vpop.f32.mrf.mxu1  ;;  %v2455_v22 = vor.u32 %v2793_v10, %v2452_v11  ;;  %v2482_v10 = vld [vmem:[%s4043_s0 + $0x348] sm:$0xf]  ;;  %v2803_v11 = vld [vmem:[%s4043_s0 + $0x354] sm:$0xf0] }
 0x188   :  { %v1288_v44 = vadd.f32 %v1287_v31, %v1118_v30 }
 0x189   :  { %v1624_v32 = vadd.f32 %v1623_v28, %v1455_v29 }
 0x18b   :  { %v1868_v35 = vadd.f32 %v1867_v24, %v1624_v32  ;;  %v1938_v36 = vmul.f32 %v1624_v32, %v1624_v32 }
 0x18d   :  { %v2001_v43 = vadd.f32 %v2000_v26, %v1938_v36  ;;  %v2798_v36 = vld [vmem:[%s4043_s0 + $0x32c] sm:$0xf0] }
 0x18e   :  { %v1456_v45 = vpop.f32.mrf.mxu2  ;;  %v1121_v50 = vpop.f32.mrf.mxu0 }
 0x18f   :  { %v1625_v46 = vpop.f32.mrf.mxu3  ;;  %v1457_v49 = vadd.f32 %v1456_v45, %v1288_v44  ;;  %v1290_v51 = vpop.f32.mrf.mxu1  ;;  %v2468_v44 = vld [vmem:[%s4043_s0 + $0x338] sm:$0xf0] }
 0x190   :  { %v1291_v55 = vadd.f32 %v1290_v51, %v1121_v50  ;;  %v2463_v50 = vor.u32 %v2796_v39, %v2460_v40 }
 0x191   :  { %v1626_v54 = vadd.f32 %v1625_v46, %v1457_v49  ;;  %1160 = vmatmul.bf16.gmra.mxu0 %v2427_v47 }
 0x192   :  { %1329 = vmatmul.bf16.gmra.mxu1 %v2431_v48 }
 0x193   :  { %v2929_v56 = vpack.c.bf16 %v1626_v54, %v1624_v32  ;;  %v1869_v57 = vadd.f32 %v1868_v35, %v1626_v54  ;;  %v1939_v58 = vmul.f32 %v1626_v54, %v1626_v54  ;;  %1498 = vmatmul.bf16.gmra.mxu2 %v2435_v52  ;;  %v2458_v35 = vld [vmem:[%s4043_s0 + $0x320] sm:$0xf]  ;;  %v2467_v54 = vor.u32 %v2799_v42, %v2466_v41  ;;  %v2804_v41 = vld [vmem:[%s4043_s0 + $0x364] sm:$0xf]  ;;  %v2492_v42 = vld [vmem:[%s4043_s0 + $0x370] sm:$0xf0] }
 0x194   :  { %1667 = vmatmul.bf16.gmra.mxu3 %v2439_v53  ;;  %v2459_v49 = vor.u32 %v2798_v36, %v2458_v35 }
 0x195   :  { %3029 = vst [vmem:[%s4044_s2 + $0x70] sm:$0xff] %v2929_v56   ;;  %v2002_v59 = vadd.f32 %v2001_v43, %v1939_v58  ;;  %v2797_v43 = vld [vmem:[%s4043_s0 + $0x32c] sm:$0xf] }
 0x196   :  { %v1459_v60 = vpop.f32.mrf.mxu2  ;;  %v1123_v63 = vpop.f32.mrf.mxu0 }
 0x197   :  { %v1628_v61 = vpop.f32.mrf.mxu3  ;;  %v1460_v62 = vadd.f32 %v1459_v60, %v1291_v55  ;;  %v1292_v0 = vpop.f32.mrf.mxu1  ;;  %v2471_v55 = vor.u32 %v2797_v43, %v2468_v44  ;;  %v2498_v43 = vld [vmem:[%s4043_s0 + $0x368] sm:$0xf]  ;;  %v2807_v44 = vld [vmem:[%s4043_s0 + $0x374] sm:$0xf0] }
 0x198   :  { %v1293_v13 = vadd.f32 %v1292_v0, %v1123_v63 }
 0x199   :  { %v1629_v1 = vadd.f32 %v1628_v61, %v1460_v62 }
 0x19b   :  { %v1870_v4 = vadd.f32 %v1869_v57, %v1629_v1  ;;  %v1940_v5 = vmul.f32 %v1629_v1, %v1629_v1 }
 0x19d   :  { %v2003_v12 = vadd.f32 %v2002_v59, %v1940_v5  ;;  %v2802_v5 = vld [vmem:[%s4043_s0 + $0x34c] sm:$0xf0] }
 0x19e   :  { %v1461_v14 = vpop.f32.mrf.mxu2  ;;  %v1126_v19 = vpop.f32.mrf.mxu0 }
 0x19f   :  { %v1630_v15 = vpop.f32.mrf.mxu3  ;;  %v1462_v18 = vadd.f32 %v1461_v14, %v1293_v13  ;;  %v1295_v20 = vpop.f32.mrf.mxu1  ;;  %v2484_v13 = vld [vmem:[%s4043_s0 + $0x358] sm:$0xf0] }
 0x1a0   :  { %v1296_v24 = vadd.f32 %v1295_v20, %v1126_v19  ;;  %v2479_v19 = vor.u32 %v2800_v8, %v2476_v9 }
 0x1a1   :  { %v1631_v23 = vadd.f32 %v1630_v15, %v1462_v18  ;;  %1165 = vmatmul.bf16.gmra.mxu0 %v2443_v16 }
 0x1a2   :  { %1334 = vmatmul.bf16.gmra.mxu1 %v2447_v17 }
 0x1a3   :  { %v2934_v25 = vpack.c.bf16 %v1631_v23, %v1629_v1  ;;  %v1871_v26 = vadd.f32 %v1870_v4, %v1631_v23  ;;  %v1941_v27 = vmul.f32 %v1631_v23, %v1631_v23  ;;  %1503 = vmatmul.bf16.gmra.mxu2 %v2451_v21  ;;  %v2474_v4 = vld [vmem:[%s4043_s0 + $0x340] sm:$0xf]  ;;  %v2483_v23 = vor.u32 %v2803_v11, %v2482_v10  ;;  %v2808_v10 = vld [vmem:[%s4043_s0 + $0x384] sm:$0xf]  ;;  %v2508_v11 = vld [vmem:[%s4043_s0 + $0x390] sm:$0xf0] }
 0x1a4   :  { %1672 = vmatmul.bf16.gmra.mxu3 %v2455_v22  ;;  %v2475_v18 = vor.u32 %v2802_v5, %v2474_v4 }
 0x1a5   :  { %3030 = vst [vmem:[%s4044_s2 + $0x78] sm:$0xff] %v2934_v25   ;;  %v2004_v28 = vadd.f32 %v2003_v12, %v1941_v27  ;;  %v2801_v12 = vld [vmem:[%s4043_s0 + $0x34c] sm:$0xf] }
 0x1a6   :  { %v1464_v29 = vpop.f32.mrf.mxu2  ;;  %v1128_v32 = vpop.f32.mrf.mxu0 }
 0x1a7   :  { %v1633_v30 = vpop.f32.mrf.mxu3  ;;  %v1465_v31 = vadd.f32 %v1464_v29, %v1296_v24  ;;  %v1297_v33 = vpop.f32.mrf.mxu1  ;;  %v2487_v24 = vor.u32 %v2801_v12, %v2484_v13  ;;  %v2514_v12 = vld [vmem:[%s4043_s0 + $0x388] sm:$0xf]  ;;  %v2811_v13 = vld [vmem:[%s4043_s0 + $0x394] sm:$0xf0] }
 0x1a8   :  { %v1298_v46 = vadd.f32 %v1297_v33, %v1128_v32 }
 0x1a9   :  { %v1634_v34 = vadd.f32 %v1633_v30, %v1465_v31 }
 0x1ab   :  { %v1872_v37 = vadd.f32 %v1871_v26, %v1634_v34  ;;  %v1942_v38 = vmul.f32 %v1634_v34, %v1634_v34 }
 0x1ad   :  { %v2005_v45 = vadd.f32 %v2004_v28, %v1942_v38  ;;  %v2806_v38 = vld [vmem:[%s4043_s0 + $0x36c] sm:$0xf0] }
 0x1ae   :  { %v1466_v47 = vpop.f32.mrf.mxu2  ;;  %v1131_v52 = vpop.f32.mrf.mxu0 }
 0x1af   :  { %v1635_v48 = vpop.f32.mrf.mxu3  ;;  %v1467_v51 = vadd.f32 %v1466_v47, %v1298_v46  ;;  %v1300_v53 = vpop.f32.mrf.mxu1  ;;  %v2500_v46 = vld [vmem:[%s4043_s0 + $0x378] sm:$0xf0] }
 0x1b0   :  { %v1301_v57 = vadd.f32 %v1300_v53, %v1131_v52  ;;  %v2495_v52 = vor.u32 %v2804_v41, %v2492_v42 }
 0x1b1   :  { %v1636_v56 = vadd.f32 %v1635_v48, %v1467_v51  ;;  %1170 = vmatmul.bf16.gmra.mxu0 %v2459_v49 }
 0x1b2   :  { %1339 = vmatmul.bf16.gmra.mxu1 %v2463_v50 }
 0x1b3   :  { %v2939_v58 = vpack.c.bf16 %v1636_v56, %v1634_v34  ;;  %v1873_v59 = vadd.f32 %v1872_v37, %v1636_v56  ;;  %v1943_v60 = vmul.f32 %v1636_v56, %v1636_v56  ;;  %1508 = vmatmul.bf16.gmra.mxu2 %v2467_v54  ;;  %v2490_v37 = vld [vmem:[%s4043_s0 + $0x360] sm:$0xf]  ;;  %v2499_v56 = vor.u32 %v2807_v44, %v2498_v43  ;;  %v2812_v43 = vld [vmem:[%s4043_s0 + $0x3a4] sm:$0xf]  ;;  %v2524_v44 = vld [vmem:[%s4043_s0 + $0x3b0] sm:$0xf0] }
 0x1b4   :  { %1677 = vmatmul.bf16.gmra.mxu3 %v2471_v55  ;;  %v2491_v51 = vor.u32 %v2806_v38, %v2490_v37 }
 0x1b5   :  { %3031 = vst [vmem:[%s4044_s2 + $0x80] sm:$0xff] %v2939_v58   ;;  %v2006_v61 = vadd.f32 %v2005_v45, %v1943_v60  ;;  %v2805_v45 = vld [vmem:[%s4043_s0 + $0x36c] sm:$0xf] }
 0x1b6   :  { %v1469_v62 = vpop.f32.mrf.mxu2  ;;  %v1133_v1 = vpop.f32.mrf.mxu0 }
 0x1b7   :  { %v1638_v63 = vpop.f32.mrf.mxu3  ;;  %v1470_v0 = vadd.f32 %v1469_v62, %v1301_v57  ;;  %v1302_v2 = vpop.f32.mrf.mxu1  ;;  %v2503_v57 = vor.u32 %v2805_v45, %v2500_v46  ;;  %v2530_v45 = vld [vmem:[%s4043_s0 + $0x3a8] sm:$0xf]  ;;  %v2815_v46 = vld [vmem:[%s4043_s0 + $0x3b4] sm:$0xf0] }
 0x1b8   :  { %v1303_v15 = vadd.f32 %v1302_v2, %v1133_v1 }
 0x1b9   :  { %v1639_v3 = vadd.f32 %v1638_v63, %v1470_v0 }
 0x1bb   :  { %v1874_v6 = vadd.f32 %v1873_v59, %v1639_v3  ;;  %v1944_v7 = vmul.f32 %v1639_v3, %v1639_v3 }
 0x1bd   :  { %v2007_v14 = vadd.f32 %v2006_v61, %v1944_v7  ;;  %v2810_v7 = vld [vmem:[%s4043_s0 + $0x38c] sm:$0xf0] }
 0x1be   :  { %v1471_v16 = vpop.f32.mrf.mxu2  ;;  %v1136_v21 = vpop.f32.mrf.mxu0 }
 0x1bf   :  { %v1640_v17 = vpop.f32.mrf.mxu3  ;;  %v1472_v20 = vadd.f32 %v1471_v16, %v1303_v15  ;;  %v1305_v22 = vpop.f32.mrf.mxu1  ;;  %v2516_v15 = vld [vmem:[%s4043_s0 + $0x398] sm:$0xf0] }
 0x1c0   :  { %v1306_v26 = vadd.f32 %v1305_v22, %v1136_v21  ;;  %v2511_v21 = vor.u32 %v2808_v10, %v2508_v11 }
 0x1c1   :  { %v1641_v25 = vadd.f32 %v1640_v17, %v1472_v20  ;;  %1175 = vmatmul.bf16.gmra.mxu0 %v2475_v18 }
 0x1c2   :  { %1344 = vmatmul.bf16.gmra.mxu1 %v2479_v19 }
 0x1c3   :  { %v2944_v27 = vpack.c.bf16 %v1641_v25, %v1639_v3  ;;  %v1875_v28 = vadd.f32 %v1874_v6, %v1641_v25  ;;  %v1945_v29 = vmul.f32 %v1641_v25, %v1641_v25  ;;  %1513 = vmatmul.bf16.gmra.mxu2 %v2483_v23  ;;  %v2506_v6 = vld [vmem:[%s4043_s0 + $0x380] sm:$0xf]  ;;  %v2515_v25 = vor.u32 %v2811_v13, %v2514_v12  ;;  %v2816_v12 = vld [vmem:[%s4043_s0 + $0x3c4] sm:$0xf]  ;;  %v2540_v13 = vld [vmem:[%s4043_s0 + $0x3d0] sm:$0xf0] }
 0x1c4   :  { %1682 = vmatmul.bf16.gmra.mxu3 %v2487_v24  ;;  %v2507_v20 = vor.u32 %v2810_v7, %v2506_v6 }
 0x1c5   :  { %3032 = vst [vmem:[%s4044_s2 + $0x88] sm:$0xff] %v2944_v27   ;;  %v2008_v30 = vadd.f32 %v2007_v14, %v1945_v29  ;;  %v2809_v14 = vld [vmem:[%s4043_s0 + $0x38c] sm:$0xf] }
 0x1c6   :  { %v1474_v31 = vpop.f32.mrf.mxu2  ;;  %v1138_v34 = vpop.f32.mrf.mxu0 }
 0x1c7   :  { %v1643_v32 = vpop.f32.mrf.mxu3  ;;  %v1475_v33 = vadd.f32 %v1474_v31, %v1306_v26  ;;  %v1307_v35 = vpop.f32.mrf.mxu1  ;;  %v2519_v26 = vor.u32 %v2809_v14, %v2516_v15  ;;  %v2546_v14 = vld [vmem:[%s4043_s0 + $0x3c8] sm:$0xf]  ;;  %v2819_v15 = vld [vmem:[%s4043_s0 + $0x3d4] sm:$0xf0] }
 0x1c8   :  { %v1308_v48 = vadd.f32 %v1307_v35, %v1138_v34 }
 0x1c9   :  { %v1644_v36 = vadd.f32 %v1643_v32, %v1475_v33 }
 0x1cb   :  { %v1876_v39 = vadd.f32 %v1875_v28, %v1644_v36  ;;  %v1946_v40 = vmul.f32 %v1644_v36, %v1644_v36 }
 0x1cd   :  { %v2009_v47 = vadd.f32 %v2008_v30, %v1946_v40  ;;  %v2814_v40 = vld [vmem:[%s4043_s0 + $0x3ac] sm:$0xf0] }
 0x1ce   :  { %v1476_v49 = vpop.f32.mrf.mxu2  ;;  %v1141_v54 = vpop.f32.mrf.mxu0 }
 0x1cf   :  { %v1645_v50 = vpop.f32.mrf.mxu3  ;;  %v1477_v53 = vadd.f32 %v1476_v49, %v1308_v48  ;;  %v1310_v55 = vpop.f32.mrf.mxu1  ;;  %v2532_v48 = vld [vmem:[%s4043_s0 + $0x3b8] sm:$0xf0] }
 0x1d0   :  { %v1311_v59 = vadd.f32 %v1310_v55, %v1141_v54  ;;  %v2527_v54 = vor.u32 %v2812_v43, %v2524_v44 }
 0x1d1   :  { %v1646_v58 = vadd.f32 %v1645_v50, %v1477_v53  ;;  %1180 = vmatmul.bf16.gmra.mxu0 %v2491_v51 }
 0x1d2   :  { %1349 = vmatmul.bf16.gmra.mxu1 %v2495_v52 }
 0x1d3   :  { %v2949_v60 = vpack.c.bf16 %v1646_v58, %v1644_v36  ;;  %v1877_v61 = vadd.f32 %v1876_v39, %v1646_v58  ;;  %v1947_v62 = vmul.f32 %v1646_v58, %v1646_v58  ;;  %1518 = vmatmul.bf16.gmra.mxu2 %v2499_v56  ;;  %v2522_v39 = vld [vmem:[%s4043_s0 + $0x3a0] sm:$0xf]  ;;  %v2531_v58 = vor.u32 %v2815_v46, %v2530_v45  ;;  %v2820_v45 = vld [vmem:[%s4043_s0 + $0x3e4] sm:$0xf]  ;;  %v2556_v46 = vld [vmem:[%s4043_s0 + $0x3f0] sm:$0xf0] }
 0x1d4   :  { %1687 = vmatmul.bf16.gmra.mxu3 %v2503_v57  ;;  %v2523_v53 = vor.u32 %v2814_v40, %v2522_v39 }
 0x1d5   :  { %3033 = vst [vmem:[%s4044_s2 + $0x90] sm:$0xff] %v2949_v60   ;;  %v2010_v63 = vadd.f32 %v2009_v47, %v1947_v62  ;;  %v2813_v47 = vld [vmem:[%s4043_s0 + $0x3ac] sm:$0xf] }
 0x1d6   :  { %v1479_v0 = vpop.f32.mrf.mxu2  ;;  %v1143_v3 = vpop.f32.mrf.mxu0 }
 0x1d7   :  { %v1648_v1 = vpop.f32.mrf.mxu3  ;;  %v1480_v2 = vadd.f32 %v1479_v0, %v1311_v59  ;;  %v1312_v4 = vpop.f32.mrf.mxu1  ;;  %v2535_v59 = vor.u32 %v2813_v47, %v2532_v48  ;;  %v2562_v47 = vld [vmem:[%s4043_s0 + $0x3e8] sm:$0xf]  ;;  %v2823_v48 = vld [vmem:[%s4043_s0 + $0x3f4] sm:$0xf0] }
 0x1d8   :  { %v1313_v17 = vadd.f32 %v1312_v4, %v1143_v3 }
 0x1d9   :  { %v1649_v5 = vadd.f32 %v1648_v1, %v1480_v2 }
 0x1db   :  { %v1878_v8 = vadd.f32 %v1877_v61, %v1649_v5  ;;  %v1948_v9 = vmul.f32 %v1649_v5, %v1649_v5 }
 0x1dd   :  { %v2011_v16 = vadd.f32 %v2010_v63, %v1948_v9  ;;  %v2818_v9 = vld [vmem:[%s4043_s0 + $0x3cc] sm:$0xf0] }
 0x1de   :  { %v1481_v18 = vpop.f32.mrf.mxu2  ;;  %v1146_v23 = vpop.f32.mrf.mxu0 }
 0x1df   :  { %v1650_v19 = vpop.f32.mrf.mxu3  ;;  %v1482_v22 = vadd.f32 %v1481_v18, %v1313_v17  ;;  %v1315_v24 = vpop.f32.mrf.mxu1  ;;  %v2548_v17 = vld [vmem:[%s4043_s0 + $0x3d8] sm:$0xf0] }
 0x1e0   :  { %v1316_v28 = vadd.f32 %v1315_v24, %v1146_v23  ;;  %v2543_v23 = vor.u32 %v2816_v12, %v2540_v13 }
 0x1e1   :  { %v1651_v27 = vadd.f32 %v1650_v19, %v1482_v22  ;;  %1185 = vmatmul.bf16.gmra.mxu0 %v2507_v20 }
 0x1e2   :  { %1354 = vmatmul.bf16.gmra.mxu1 %v2511_v21 }
 0x1e3   :  { %v2954_v29 = vpack.c.bf16 %v1651_v27, %v1649_v5  ;;  %v1879_v30 = vadd.f32 %v1878_v8, %v1651_v27  ;;  %v1949_v31 = vmul.f32 %v1651_v27, %v1651_v27  ;;  %1523 = vmatmul.bf16.gmra.mxu2 %v2515_v25  ;;  %v2538_v8 = vld [vmem:[%s4043_s0 + $0x3c0] sm:$0xf]  ;;  %v2547_v27 = vor.u32 %v2819_v15, %v2546_v14 }
 0x1e4   :  { %1692 = vmatmul.bf16.gmra.mxu3 %v2519_v26  ;;  %v2539_v22 = vor.u32 %v2818_v9, %v2538_v8 }
 0x1e5   :  { %3034 = vst [vmem:[%s4044_s2 + $0x98] sm:$0xff] %v2954_v29   ;;  %v2012_v32 = vadd.f32 %v2011_v16, %v1949_v31  ;;  %v2817_v16 = vld [vmem:[%s4043_s0 + $0x3cc] sm:$0xf] }
 0x1e6   :  { %v1484_v33 = vpop.f32.mrf.mxu2  ;;  %v1148_v36 = vpop.f32.mrf.mxu0 }
 0x1e7   :  { %v1653_v34 = vpop.f32.mrf.mxu3  ;;  %v1485_v35 = vadd.f32 %v1484_v33, %v1316_v28  ;;  %v1317_v37 = vpop.f32.mrf.mxu1  ;;  %v2551_v28 = vor.u32 %v2817_v16, %v2548_v17 }
 0x1e8   :  { %v1318_v50 = vadd.f32 %v1317_v37, %v1148_v36 }
 0x1e9   :  { %v1654_v38 = vadd.f32 %v1653_v34, %v1485_v35 }
 0x1eb   :  { %v1880_v41 = vadd.f32 %v1879_v30, %v1654_v38  ;;  %v1950_v42 = vmul.f32 %v1654_v38, %v1654_v38 }
 0x1ed   :  { %v2013_v49 = vadd.f32 %v2012_v32, %v1950_v42  ;;  %v2822_v42 = vld [vmem:[%s4043_s0 + $0x3ec] sm:$0xf0] }
 0x1ee   :  { %v1486_v51 = vpop.f32.mrf.mxu2  ;;  %v1151_v56 = vpop.f32.mrf.mxu0 }
 0x1ef   :  { %v1655_v52 = vpop.f32.mrf.mxu3  ;;  %v1487_v55 = vadd.f32 %v1486_v51, %v1318_v50  ;;  %v1320_v57 = vpop.f32.mrf.mxu1  ;;  %v2564_v50 = vld [vmem:[%s4043_s0 + $0x3f8] sm:$0xf0] }
 0x1f0   :  { %v1321_v61 = vadd.f32 %v1320_v57, %v1151_v56  ;;  %v2559_v56 = vor.u32 %v2820_v45, %v2556_v46 }
 0x1f1   :  { %v1656_v60 = vadd.f32 %v1655_v52, %v1487_v55  ;;  %1190 = vmatmul.bf16.gmra.mxu0 %v2523_v53 }
 0x1f2   :  { %1359 = vmatmul.bf16.gmra.mxu1 %v2527_v54 }
 0x1f3   :  { %v2959_v62 = vpack.c.bf16 %v1656_v60, %v1654_v38  ;;  %v1881_v63 = vadd.f32 %v1880_v41, %v1656_v60  ;;  %v1951_v0 = vmul.f32 %v1656_v60, %v1656_v60  ;;  %1528 = vmatmul.bf16.gmra.mxu2 %v2531_v58  ;;  %v2554_v41 = vld [vmem:[%s4043_s0 + $0x3e0] sm:$0xf]  ;;  %v2563_v60 = vor.u32 %v2823_v48, %v2562_v47 }
 0x1f4   :  { %1697 = vmatmul.bf16.gmra.mxu3 %v2535_v59  ;;  %v2555_v55 = vor.u32 %v2822_v42, %v2554_v41 }
 0x1f5   :  { %3035 = vst [vmem:[%s4044_s2 + $0xa0] sm:$0xff] %v2959_v62   ;;  %v2014_v1 = vadd.f32 %v2013_v49, %v1951_v0  ;;  %v2821_v49 = vld [vmem:[%s4043_s0 + $0x3ec] sm:$0xf] }
 0x1f6   :  { %v1489_v2 = vpop.f32.mrf.mxu2  ;;  %v1153_v5 = vpop.f32.mrf.mxu0 }
 0x1f7   :  { %v1658_v3 = vpop.f32.mrf.mxu3  ;;  %v1490_v4 = vadd.f32 %v1489_v2, %v1321_v61  ;;  %v1322_v6 = vpop.f32.mrf.mxu1  ;;  %v2567_v61 = vor.u32 %v2821_v49, %v2564_v50 }
 0x1f8   :  { %v1323_v19 = vadd.f32 %v1322_v6, %v1153_v5 }
 0x1f9   :  { %v1659_v7 = vadd.f32 %v1658_v3, %v1490_v4 }
 0x1fb   :  { %v1882_v10 = vadd.f32 %v1881_v63, %v1659_v7  ;;  %v1952_v11 = vmul.f32 %v1659_v7, %v1659_v7 }
 0x1fd   :  { %v2015_v18 = vadd.f32 %v2014_v1, %v1952_v11 }
 0x1fe   :  { %v1491_v20 = vpop.f32.mrf.mxu2  ;;  %v1156_v25 = vpop.f32.mrf.mxu0 }
 0x1ff   :  { %v1660_v21 = vpop.f32.mrf.mxu3  ;;  %v1492_v24 = vadd.f32 %v1491_v20, %v1323_v19  ;;  %v1325_v26 = vpop.f32.mrf.mxu1 }
 0x200   :  { %v1326_v30 = vadd.f32 %v1325_v26, %v1156_v25 }
 0x201   :  { %v1661_v29 = vadd.f32 %v1660_v21, %v1492_v24  ;;  %1195 = vmatmul.bf16.gmra.mxu0 %v2539_v22 }
 0x202   :  { %1364 = vmatmul.bf16.gmra.mxu1 %v2543_v23 }
 0x203   :  { %v2964_v31 = vpack.c.bf16 %v1661_v29, %v1659_v7  ;;  %v1883_v32 = vadd.f32 %v1882_v10, %v1661_v29  ;;  %v1953_v33 = vmul.f32 %v1661_v29, %v1661_v29  ;;  %1533 = vmatmul.bf16.gmra.mxu2 %v2547_v27 }
 0x204   :  { %1702 = vmatmul.bf16.gmra.mxu3 %v2551_v28 }
 0x205   :  { %3036 = vst [vmem:[%s4044_s2 + $0xa8] sm:$0xff] %v2964_v31   ;;  %v2016_v34 = vadd.f32 %v2015_v18, %v1953_v33 }
 0x206   :  { %v1494_v35 = vpop.f32.mrf.mxu2  ;;  %v1158_v38 = vpop.f32.mrf.mxu0 }
 0x207   :  { %v1663_v36 = vpop.f32.mrf.mxu3  ;;  %v1495_v37 = vadd.f32 %v1494_v35, %v1326_v30  ;;  %v1327_v39 = vpop.f32.mrf.mxu1 }
 0x208   :  { %v1328_v52 = vadd.f32 %v1327_v39, %v1158_v38 }
 0x209   :  { %v1664_v40 = vadd.f32 %v1663_v36, %v1495_v37 }
 0x20b   :  { %v1884_v43 = vadd.f32 %v1883_v32, %v1664_v40  ;;  %v1954_v44 = vmul.f32 %v1664_v40, %v1664_v40 }
 0x20d   :  { %v2017_v51 = vadd.f32 %v2016_v34, %v1954_v44 }
 0x20e   :  { %v1496_v53 = vpop.f32.mrf.mxu2  ;;  %v1161_v58 = vpop.f32.mrf.mxu0 }
 0x20f   :  { %v1665_v54 = vpop.f32.mrf.mxu3  ;;  %v1497_v57 = vadd.f32 %v1496_v53, %v1328_v52  ;;  %v1330_v59 = vpop.f32.mrf.mxu1 }
 0x210   :  { %v1331_v63 = vadd.f32 %v1330_v59, %v1161_v58 }
 0x211   :  { %v1666_v62 = vadd.f32 %v1665_v54, %v1497_v57  ;;  %1200 = vmatmul.bf16.gmra.mxu0 %v2555_v55 }
 0x212   :  { %1369 = vmatmul.bf16.gmra.mxu1 %v2559_v56 }
 0x213   :  { %v2969_v0 = vpack.c.bf16 %v1666_v62, %v1664_v40  ;;  %v1885_v1 = vadd.f32 %v1884_v43, %v1666_v62  ;;  %v1955_v2 = vmul.f32 %v1666_v62, %v1666_v62  ;;  %1538 = vmatmul.bf16.gmra.mxu2 %v2563_v60 }
 0x214   :  { %1707 = vmatmul.bf16.gmra.mxu3 %v2567_v61 }
 0x215   :  { %3037 = vst [vmem:[%s4044_s2 + $0xb0] sm:$0xff] %v2969_v0   ;;  %v2018_v3 = vadd.f32 %v2017_v51, %v1955_v2 }
 0x216   :  { %v1499_v4 = vpop.f32.mrf.mxu2  ;;  %v1163_v7 = vpop.f32.mrf.mxu0 }
 0x217   :  { %v1668_v5 = vpop.f32.mrf.mxu3  ;;  %v1500_v6 = vadd.f32 %v1499_v4, %v1331_v63  ;;  %v1332_v8 = vpop.f32.mrf.mxu1 }
 0x218   :  { %v1333_v13 = vadd.f32 %v1332_v8, %v1163_v7 }
 0x219   :  { %v1669_v9 = vadd.f32 %v1668_v5, %v1500_v6 }
 0x21b   :  { %v1886_v10 = vadd.f32 %v1885_v1, %v1669_v9  ;;  %v1956_v11 = vmul.f32 %v1669_v9, %v1669_v9 }
 0x21d   :  { %v2019_v12 = vadd.f32 %v2018_v3, %v1956_v11 }
 0x21e   :  { %v1501_v14 = vpop.f32.mrf.mxu2  ;;  %v1166_v17 = vpop.f32.mrf.mxu0 }
 0x21f   :  { %v1670_v15 = vpop.f32.mrf.mxu3  ;;  %v1502_v16 = vadd.f32 %v1501_v14, %v1333_v13  ;;  %v1335_v18 = vpop.f32.mrf.mxu1 }
 0x220   :  { %v1336_v23 = vadd.f32 %v1335_v18, %v1166_v17 }
 0x221   :  { %v1671_v19 = vadd.f32 %v1670_v15, %v1502_v16 }
 0x223   :  { %v2974_v20 = vpack.c.bf16 %v1671_v19, %v1669_v9  ;;  %v1887_v21 = vadd.f32 %v1886_v10, %v1671_v19  ;;  %v1957_v22 = vmul.f32 %v1671_v19, %v1671_v19 }
 0x225   :  { %3038 = vst [vmem:[%s4044_s2 + $0xb8] sm:$0xff] %v2974_v20   ;;  %v2020_v24 = vadd.f32 %v2019_v12, %v1957_v22 }
 0x226   :  { %v1504_v25 = vpop.f32.mrf.mxu2  ;;  %v1168_v28 = vpop.f32.mrf.mxu0 }
 0x227   :  { %v1673_v26 = vpop.f32.mrf.mxu3  ;;  %v1505_v27 = vadd.f32 %v1504_v25, %v1336_v23  ;;  %v1337_v29 = vpop.f32.mrf.mxu1 }
 0x228   :  { %v1338_v34 = vadd.f32 %v1337_v29, %v1168_v28 }
 0x229   :  { %v1674_v30 = vadd.f32 %v1673_v26, %v1505_v27 }
 0x22b   :  { %v1888_v31 = vadd.f32 %v1887_v21, %v1674_v30  ;;  %v1958_v32 = vmul.f32 %v1674_v30, %v1674_v30 }
 0x22d   :  { %v2021_v33 = vadd.f32 %v2020_v24, %v1958_v32 }
 0x22e   :  { %v1506_v35 = vpop.f32.mrf.mxu2  ;;  %v1171_v38 = vpop.f32.mrf.mxu0 }
 0x22f   :  { %v1675_v36 = vpop.f32.mrf.mxu3  ;;  %v1507_v37 = vadd.f32 %v1506_v35, %v1338_v34  ;;  %v1340_v39 = vpop.f32.mrf.mxu1 }
 0x230   :  { %v1341_v44 = vadd.f32 %v1340_v39, %v1171_v38 }
 0x231   :  { %v1676_v40 = vadd.f32 %v1675_v36, %v1507_v37 }
 0x233   :  { %v2979_v41 = vpack.c.bf16 %v1676_v40, %v1674_v30  ;;  %v1889_v42 = vadd.f32 %v1888_v31, %v1676_v40  ;;  %v1959_v43 = vmul.f32 %v1676_v40, %v1676_v40 }
 0x235   :  { %3039 = vst [vmem:[%s4044_s2 + $0xc0] sm:$0xff] %v2979_v41   ;;  %v2022_v45 = vadd.f32 %v2021_v33, %v1959_v43 }
 0x236   :  { %v1509_v46 = vpop.f32.mrf.mxu2  ;;  %v1173_v49 = vpop.f32.mrf.mxu0 }
 0x237   :  { %v1678_v47 = vpop.f32.mrf.mxu3  ;;  %v1510_v48 = vadd.f32 %v1509_v46, %v1341_v44  ;;  %v1342_v50 = vpop.f32.mrf.mxu1 }
 0x238   :  { %v1343_v55 = vadd.f32 %v1342_v50, %v1173_v49 }
 0x239   :  { %v1679_v51 = vadd.f32 %v1678_v47, %v1510_v48 }
 0x23b   :  { %v1890_v52 = vadd.f32 %v1889_v42, %v1679_v51  ;;  %v1960_v53 = vmul.f32 %v1679_v51, %v1679_v51 }
 0x23d   :  { %v2023_v54 = vadd.f32 %v2022_v45, %v1960_v53 }
 0x23e   :  { %v1511_v56 = vpop.f32.mrf.mxu2  ;;  %v1176_v59 = vpop.f32.mrf.mxu0 }
 0x23f   :  { %v1680_v57 = vpop.f32.mrf.mxu3  ;;  %v1512_v58 = vadd.f32 %v1511_v56, %v1343_v55  ;;  %v1345_v60 = vpop.f32.mrf.mxu1 }
 0x240   :  { %v1346_v6 = vadd.f32 %v1345_v60, %v1176_v59 }
 0x241   :  { %v1681_v61 = vadd.f32 %v1680_v57, %v1512_v58 }
 0x243   :  { %v2984_v62 = vpack.c.bf16 %v1681_v61, %v1679_v51  ;;  %v4006_v63 = vadd.f32 %v1890_v52, %v1681_v61  ;;  %v1961_v0 = vmul.f32 %v1681_v61, %v1681_v61 }
 0x245   :  { %3040 = vst [vmem:[%s4044_s2 + $0xc8] sm:$0xff] %v2984_v62   ;;  %v4011_v1 = vadd.f32 %v2023_v54, %v1961_v0 }
 0x246   :  { %v1514_v2 = vpop.f32.mrf.mxu2  ;;  %v1178_v4 = vpop.f32.mrf.mxu0 }
 0x247   :  { %v1683_v3 = vpop.f32.mrf.mxu3  ;;  %v1347_v5 = vpop.f32.mrf.mxu1  ;;  %v1515_v7 = vadd.f32 %v1514_v2, %v1346_v6 }
 0x248   :  { %v1348_v8 = vadd.f32 %v1347_v5, %v1178_v4 }
 0x249   :  { %v1684_v14 = vadd.f32 %v1683_v3, %v1515_v7 }
 0x24b   :  { %v1962_v5 = vmul.f32 %v1684_v14, %v1684_v14  ;;  %v1892_v7 = vadd.f32 %v4006_v63, %v1684_v14 }
 0x24e   :  { %v1516_v9 = vpop.f32.mrf.mxu2  ;;  %v1181_v12 = vpop.f32.mrf.mxu0 }
 0x24f   :  { %v1685_v10 = vpop.f32.mrf.mxu3  ;;  %v1517_v11 = vadd.f32 %v1516_v9, %v1348_v8  ;;  %v1350_v13 = vpop.f32.mrf.mxu1 }
 0x250   :  { %v1351_v21 = vadd.f32 %v1350_v13, %v1181_v12 }
 0x251   :  { %v4013_v15 = vadd.f32 %v1685_v10, %v1517_v11  ;;  %v2025_v10 = vadd.f32 %v4011_v1, %v1962_v5 }
 0x253   :  { %v2989_v16 = vpack.c.bf16 %v4013_v15, %v1684_v14  ;;  %v1963_v6 = vmul.f32 %v4013_v15, %v4013_v15 }
 0x255   :  { %3041 = vst [vmem:[%s4044_s2 + $0xd0] sm:$0xff] %v2989_v16   ;;  %v1893_v16 = vadd.f32 %v1892_v7, %v4013_v15 }
 0x256   :  { %v1519_v17 = vpop.f32.mrf.mxu2  ;;  %v1183_v19 = vpop.f32.mrf.mxu0 }
 0x257   :  { %v1688_v18 = vpop.f32.mrf.mxu3  ;;  %v1352_v20 = vpop.f32.mrf.mxu1  ;;  %v1520_v22 = vadd.f32 %v1519_v17, %v1351_v21 }
 0x258   :  { %v1353_v23 = vadd.f32 %v1352_v20, %v1183_v19 }
 0x259   :  { %v1689_v29 = vadd.f32 %v1688_v18, %v1520_v22  ;;  %v2026_v18 = vadd.f32 %v2025_v10, %v1963_v6 }
 0x25b   :  { %v1964_v11 = vmul.f32 %v1689_v29, %v1689_v29  ;;  %v1894_v21 = vadd.f32 %v1893_v16, %v1689_v29 }
 0x25e   :  { %v1521_v24 = vpop.f32.mrf.mxu2  ;;  %v1186_v27 = vpop.f32.mrf.mxu0 }
 0x25f   :  { %v1690_v25 = vpop.f32.mrf.mxu3  ;;  %v1522_v26 = vadd.f32 %v1521_v24, %v1353_v23  ;;  %v1355_v28 = vpop.f32.mrf.mxu1 }
 0x260   :  { %v1356_v36 = vadd.f32 %v1355_v28, %v1186_v27 }
 0x261   :  { %v1691_v30 = vadd.f32 %v1690_v25, %v1522_v26  ;;  %v2027_v25 = vadd.f32 %v2026_v18, %v1964_v11 }
 0x263   :  { %v2994_v31 = vpack.c.bf16 %v1691_v30, %v1689_v29  ;;  %v1965_v22 = vmul.f32 %v1691_v30, %v1691_v30  ;;  %v1895_v26 = vadd.f32 %v1894_v21, %v1691_v30 }
 0x265   :  { %3042 = vst [vmem:[%s4044_s2 + $0xd8] sm:$0xff] %v2994_v31   ;;  %v2028_v28 = vadd.f32 %v2027_v25, %v1965_v22 }
 0x266   :  { %v1524_v32 = vpop.f32.mrf.mxu2  ;;  %v1188_v34 = vpop.f32.mrf.mxu0 }
 0x267   :  { %v1693_v33 = vpop.f32.mrf.mxu3  ;;  %v1357_v35 = vpop.f32.mrf.mxu1  ;;  %v1525_v37 = vadd.f32 %v1524_v32, %v1356_v36 }
 0x268   :  { %v1358_v38 = vadd.f32 %v1357_v35, %v1188_v34 }
 0x269   :  { %v1694_v44 = vadd.f32 %v1693_v33, %v1525_v37 }
 0x26b   :  { %v1966_v63 = vmul.f32 %v1694_v44, %v1694_v44  ;;  %v1896_v1 = vadd.f32 %v1895_v26, %v1694_v44 }
 0x26d   :  { %v2029_v33 = vadd.f32 %v2028_v28, %v1966_v63 }
 0x26e   :  { %v1526_v39 = vpop.f32.mrf.mxu2  ;;  %v1191_v42 = vpop.f32.mrf.mxu0 }
 0x26f   :  { %v1695_v40 = vpop.f32.mrf.mxu3  ;;  %v1527_v41 = vadd.f32 %v1526_v39, %v1358_v38  ;;  %v1360_v43 = vpop.f32.mrf.mxu1 }
 0x270   :  { %v1361_v51 = vadd.f32 %v1360_v43, %v1191_v42 }
 0x271   :  { %v1696_v45 = vadd.f32 %v1695_v40, %v1527_v41 }
 0x273   :  { %v2999_v46 = vpack.c.bf16 %v1696_v45, %v1694_v44  ;;  %v1967_v31 = vmul.f32 %v1696_v45, %v1696_v45  ;;  %v1897_v34 = vadd.f32 %v1896_v1, %v1696_v45 }
 0x275   :  { %3043 = vst [vmem:[%s4044_s2 + $0xe0] sm:$0xff] %v2999_v46   ;;  %v2030_v36 = vadd.f32 %v2029_v33, %v1967_v31 }
 0x276   :  { %v1529_v47 = vpop.f32.mrf.mxu2  ;;  %v1193_v49 = vpop.f32.mrf.mxu0 }
 0x277   :  { %v1698_v48 = vpop.f32.mrf.mxu3  ;;  %v1362_v50 = vpop.f32.mrf.mxu1  ;;  %v1530_v52 = vadd.f32 %v1529_v47, %v1361_v51 }
 0x278   :  { %v1363_v53 = vadd.f32 %v1362_v50, %v1193_v49 }
 0x279   :  { %v1699_v59 = vadd.f32 %v1698_v48, %v1530_v52 }
 0x27b   :  { %v1968_v29 = vmul.f32 %v1699_v59, %v1699_v59  ;;  %v1898_v37 = vadd.f32 %v1897_v34, %v1699_v59 }
 0x27d   :  { %v2031_v40 = vadd.f32 %v2030_v36, %v1968_v29 }
 0x27e   :  { %v1531_v54 = vpop.f32.mrf.mxu2  ;;  %v1196_v57 = vpop.f32.mrf.mxu0 }
 0x27f   :  { %v1700_v55 = vpop.f32.mrf.mxu3  ;;  %v1532_v56 = vadd.f32 %v1531_v54, %v1363_v53  ;;  %v1365_v58 = vpop.f32.mrf.mxu1 }
 0x280   :  { %v1366_v4 = vadd.f32 %v1365_v58, %v1196_v57 }
 0x281   :  { %v1701_v60 = vadd.f32 %v1700_v55, %v1532_v56 }
 0x283   :  { %v3004_v61 = vpack.c.bf16 %v1701_v60, %v1699_v59  ;;  %v1969_v38 = vmul.f32 %v1701_v60, %v1701_v60  ;;  %v1899_v41 = vadd.f32 %v1898_v37, %v1701_v60 }
 0x285   :  { %3044 = vst [vmem:[%s4044_s2 + $0xe8] sm:$0xff] %v3004_v61   ;;  %v2032_v44 = vadd.f32 %v2031_v40, %v1969_v38 }
 0x286   :  { %v1534_v62 = vpop.f32.mrf.mxu2  ;;  %v1198_v2 = vpop.f32.mrf.mxu0 }
 0x287   :  { %v1703_v0 = vpop.f32.mrf.mxu3  ;;  %v1367_v3 = vpop.f32.mrf.mxu1  ;;  %v1535_v8 = vadd.f32 %v1534_v62, %v1366_v4 }
 0x288   :  { %v1368_v9 = vadd.f32 %v1367_v3, %v1198_v2 }
 0x289   :  { %v1704_v23 = vadd.f32 %v1703_v0, %v1535_v8 }
 0x28b   :  { %v1970_v42 = vmul.f32 %v1704_v23, %v1704_v23  ;;  %v1900_v46 = vadd.f32 %v1899_v41, %v1704_v23 }
 0x28d   :  { %v2033_v50 = vadd.f32 %v2032_v44, %v1970_v42 }
 0x28e   :  { %v1536_v12 = vpop.f32.mrf.mxu2  ;;  %v1201_v19 = vpop.f32.mrf.mxu0 }
 0x28f   :  { %v1705_v13 = vpop.f32.mrf.mxu3  ;;  %v1537_v17 = vadd.f32 %v1536_v12, %v1368_v9  ;;  %v1370_v20 = vpop.f32.mrf.mxu1 }
 0x290   :  { %v1371_v27 = vadd.f32 %v1370_v20, %v1201_v19 }
 0x291   :  { %v1706_v24 = vadd.f32 %v1705_v13, %v1537_v17 }
 0x293   :  { %v3009_v14 = vpack.c.bf16 %v1706_v24, %v1704_v23  ;;  %v1971_v47 = vmul.f32 %v1706_v24, %v1706_v24  ;;  %v1901_v51 = vadd.f32 %v1900_v46, %v1706_v24 }
 0x295   :  { %3045 = vst [vmem:[%s4044_s2 + $0xf0] sm:$0xff] %v3009_v14   ;;  %v2034_v54 = vadd.f32 %v2033_v50, %v1971_v47 }
 0x296   :  { %v1539_v15 = vpop.f32.mrf.mxu2  ;;  %v1203_v30 = vpop.f32.mrf.mxu0 }
 0x297   :  { %v1708_v32 = vpop.f32.mrf.mxu3  ;;  %v1540_v35 = vadd.f32 %v1539_v15, %v1371_v27  ;;  %v1372_v39 = vpop.f32.mrf.mxu1 }
 0x298   :  { %v1373_v48 = vadd.f32 %v1372_v39, %v1203_v30 }
 0x299   :  { %v1709_v43 = vadd.f32 %v1708_v32, %v1540_v35 }
 0x29b   :  { %v1972_v52 = vmul.f32 %v1709_v43, %v1709_v43  ;;  %v1902_v55 = vadd.f32 %v1901_v51, %v1709_v43 }
 0x29d   :  { %v2035_v57 = vadd.f32 %v2034_v54, %v1972_v52 }
 0x29e   :  { %v1541_v49 = vpop.f32.mrf.mxu2 }
 0x29f   :  { %v1542_v45 = vadd.f32 %v1541_v49, %v1373_v48  ;;  %v1710_v53 = vpop.f32.mrf.mxu3 }
 0x2a1   :  { %v1711_v56 = vadd.f32 %v1710_v53, %v1542_v45 }
 0x2a3   :  { %v3014_v58 = vpack.c.bf16 %v1711_v56, %v1709_v43  ;;  %v1903_v59 = vadd.f32 %v1902_v55, %v1711_v56  ;;  %v1973_v61 = vmul.f32 %v1711_v56, %v1711_v56 }
 0x2a5   :  { %3046 = vst [vmem:[%s4044_s2 + $0xf8] sm:$0xff] %v3014_v58   ;;  %v1904_v60 = vrot.slane %v1903_v59, 4  ;;  %v2036_v62 = vadd.f32 %v2035_v57, %v1973_v61 }
 0x2a7   :  { %v1905_v0 = vadd.f32 %v1904_v60, %v1903_v59  ;;  %v2037_v2 = vrot.slane %v2036_v62, 4 }
 0x2a9   :  { %v1906_v3 = vrot.slane %v1905_v0, 2  ;;  %v2038_v4 = vadd.f32 %v2037_v2, %v2036_v62 }
 0x2ab   :  { %v1907_v5 = vadd.f32 %v1906_v3, %v1905_v0  ;;  %v2039_v6 = vrot.slane %v2038_v4, 2 }
 0x2ad   :  { %v1908_v7 = vrot.slane %v1907_v5, 1  ;;  %v2040_v8 = vadd.f32 %v2039_v6, %v2038_v4 }
 0x2af   :  { %v2041_v9 = vrot.slane %v2040_v8, 1  ;;  %v1909_v10 = vadd.f32 %v1908_v7, %v1907_v5 }
 0x2b1   :  { %v2042_v11 = vadd.f32 %v2041_v9, %v2040_v8 }
 0x2b3   :  { %v2044_v12 = vsel %vm2043_vm0, %v1909_v10, %v2042_v11 }
 0x2b4   :  { %v2046_v13 = vsel %vm2045_vm1, %v2044_v12, 0.0 }
 0x2b5   :  { %2047 = vst [vmem:[%s4045_s3] sm:$0xff] %v2046_v13 }

// kernel: generator_forward.37
= control target key start
LH: loop header
LB: loop body
LE: loop exit
PB: predicated region body
PF: predicated region fallthrough
CT: control target
= control target key end

     0   :  { %s1085_s12 = smov 0   ;;  %s1315_s0 = inlined_call_operand.vmem [shape: bf16[2048,128], index: 0, kind: input, shape index: {}]   ;;  %s1316_s1 = inlined_call_operand.vmem [shape: f32[1,128], index: 1, kind: input, shape index: {}]   ;;  %s1317_s2 = inlined_call_operand.vmem [shape: f32[1,128], index: 2, kind: input, shape index: {}]   ;;  %s1318_s3 = inlined_call_operand.vmem [shape: bf16[2048,128], index: 3, kind: output, shape index: {}]  }
   0x1 LB: > { %s686_s13 = sadd.s32 4294967295, %s1063_s12   ;;  %p690_p0 = scmp.ge.s32.totalorder %s1063_s12, 1  ;;  %s1063_s12 = sphi %s1085_s12, %s13_s12  }
   0x2   : > { %p138_p1 = scmp.lt.s32.totalorder %s1063_s12, 5 }
   0x4   : > { %p139_p2 = pnand %p690_p0, %p138_p1 }
   0x5   : > { %s691_s14 = sshll.u32 (!%p139_p2), %s686_s13, 6 }
   0x6   : > { %142 = sbr.rel (%p139_p2) target bundleno = 93 (0x5d), region = 32  ;;  %p163_p3 = scmp.lt.s32.totalorder (!%p139_p2), %s691_s14, 255 }
   0xb   : > { %s1320_s14 = smov (!%p163_p3, %s691_s14), 255  ;;  %v1106_v0 = vld [vmem:[%s1316_s1] ss:$0 sm:$0xff] }
   0xc   : > { %s692_s15 = sshll.u32 %s1320_s14, 2  ;;  %v1114_v6 = vld [vmem:[%s1317_s2] ss:$0 sm:$0xff] }
   0xd   : > { %s1101_s18 = scalar_lea.vmem %s1315_s0, %s692_s15  ;;  %s1140_s25 = scalar_lea.vmem %s1318_s3, %s692_s15 }
   0xe   : > { %v698_v1 = vld [vmem:[%s1101_s18] sm:$0xff]   ;;  %v985_v2 = vld [vmem:[%s1101_s18 + $0x8] sm:$0xff]   ;;  %v986_v3 = vld [vmem:[%s1101_s18 + $0x10] sm:$0xff]  }
   0xf   : > { %v699_v4 = vunpack.c.l.bf16 %v698_v1  ;;  %v700_v5 = vunpack.c.h.bf16 %v698_v1  ;;  %v703_v7 = vunpack.c.l.bf16 %v985_v2  ;;  %v704_v8 = vunpack.c.h.bf16 %v985_v2  ;;  %v987_v9 = vld [vmem:[%s1101_s18 + $0x18] sm:$0xff]   ;;  %v988_v30 = vld [vmem:[%s1101_s18 + $0x20] sm:$0xff]   ;;  %v989_v35 = vld [vmem:[%s1101_s18 + $0x28] sm:$0xff]  }
  0x10   : > { %v707_v10 = vunpack.c.l.bf16 %v986_v3  ;;  %v708_v11 = vunpack.c.h.bf16 %v986_v3  ;;  %v711_v12 = vunpack.c.l.bf16 %v987_v9  ;;  %v712_v13 = vunpack.c.h.bf16 %v987_v9  ;;  %v990_v40 = vld [vmem:[%s1101_s18 + $0x30] sm:$0xff]   ;;  %v991_v45 = vld [vmem:[%s1101_s18 + $0x38] sm:$0xff]   ;;  %v992_v3 = vld [vmem:[%s1101_s18 + $0x40] sm:$0xff]  }
  0x11   : > { %v306_v14 = vmul.f32 %v1106_v0, %v699_v4  ;;  %v307_v15 = vmul.f32 %v1106_v0, %v700_v5  ;;  %v308_v16 = vmul.f32 %v1106_v0, %v703_v7  ;;  %v309_v17 = vmul.f32 %v1106_v0, %v704_v8 }
  0x12   : > { %v310_v18 = vmul.f32 %v1106_v0, %v707_v10  ;;  %v311_v19 = vmul.f32 %v1106_v0, %v708_v11  ;;  %v312_v20 = vmul.f32 %v1106_v0, %v711_v12  ;;  %v313_v21 = vmul.f32 %v1106_v0, %v712_v13  ;;  %v993_v13 = vld [vmem:[%s1101_s18 + $0x48] sm:$0xff]  }
  0x13   : > { %v374_v22 = vadd.f32 %v1114_v6, %v306_v14  ;;  %v375_v23 = vadd.f32 %v1114_v6, %v307_v15  ;;  %v376_v24 = vadd.f32 %v1114_v6, %v308_v16  ;;  %v377_v25 = vadd.f32 %v1114_v6, %v309_v17 }
  0x14   : > { %v378_v26 = vadd.f32 %v1114_v6, %v310_v18  ;;  %v379_v27 = vadd.f32 %v1114_v6, %v311_v19  ;;  %v380_v28 = vadd.f32 %v1114_v6, %v312_v20  ;;  %v381_v29 = vadd.f32 %v1114_v6, %v313_v21  ;;  %v994_v18 = vld [vmem:[%s1101_s18 + $0x50] sm:$0xff]  }
  0x15   : > { %v438_v31 = vmax.f32 %v374_v22, 0.0  ;;  %v439_v32 = vmax.f32 %v375_v23, 0.0  ;;  %v440_v33 = vmax.f32 %v376_v24, 0.0  ;;  %v441_v34 = vmax.f32 %v377_v25, 0.0  ;;  %v995_v23 = vld [vmem:[%s1101_s18 + $0x58] sm:$0xff]  }
  0x16   : > { %v442_v36 = vmax.f32 %v378_v26, 0.0  ;;  %v443_v37 = vmax.f32 %v379_v27, 0.0  ;;  %v444_v38 = vmax.f32 %v380_v28, 0.0  ;;  %v445_v39 = vmax.f32 %v381_v29, 0.0 }
  0x17   : > { %v828_v41 = vpack.c.bf16 %v439_v32, %v438_v31  ;;  %v833_v42 = vpack.c.bf16 %v441_v34, %v440_v33  ;;  %v715_v43 = vunpack.c.l.bf16 %v988_v30  ;;  %v716_v44 = vunpack.c.h.bf16 %v988_v30 }
  0x18   : > { %v838_v46 = vpack.c.bf16 %v443_v37, %v442_v36  ;;  %v843_v47 = vpack.c.bf16 %v445_v39, %v444_v38  ;;  %v719_v48 = vunpack.c.l.bf16 %v989_v35  ;;  %v720_v49 = vunpack.c.h.bf16 %v989_v35 }
  0x19   : > { %829 = vst [vmem:[%s1140_s25] sm:$0xff] %v828_v41   ;;  %v314_v50 = vmul.f32 %v1106_v0, %v715_v43  ;;  %v315_v51 = vmul.f32 %v1106_v0, %v716_v44  ;;  %v723_v52 = vunpack.c.l.bf16 %v990_v40  ;;  %v724_v53 = vunpack.c.h.bf16 %v990_v40  ;;  %v996_v40 = vld [vmem:[%s1101_s18 + $0x60] sm:$0xff]  }
  0x1a   : > { %1016 = vst [vmem:[%s1140_s25 + $0x8] sm:$0xff] %v833_v42   ;;  %v316_v54 = vmul.f32 %v1106_v0, %v719_v48  ;;  %v317_v55 = vmul.f32 %v1106_v0, %v720_v49  ;;  %v727_v56 = vunpack.c.l.bf16 %v991_v45  ;;  %v728_v57 = vunpack.c.h.bf16 %v991_v45 }
  0x1b   : > { %1017 = vst [vmem:[%s1140_s25 + $0x10] sm:$0xff] %v838_v46   ;;  %v382_v58 = vadd.f32 %v1114_v6, %v314_v50  ;;  %v383_v59 = vadd.f32 %v1114_v6, %v315_v51  ;;  %v318_v60 = vmul.f32 %v1106_v0, %v723_v52  ;;  %v319_v61 = vmul.f32 %v1106_v0, %v724_v53  ;;  %v997_v53 = vld [vmem:[%s1101_s18 + $0x68] sm:$0xff]  }
  0x1c   : > { %1018 = vst [vmem:[%s1140_s25 + $0x18] sm:$0xff] %v843_v47   ;;  %v384_v62 = vadd.f32 %v1114_v6, %v316_v54  ;;  %v385_v63 = vadd.f32 %v1114_v6, %v317_v55  ;;  %v320_v1 = vmul.f32 %v1106_v0, %v727_v56  ;;  %v321_v2 = vmul.f32 %v1106_v0, %v728_v57 }
  0x1d   : > { %v446_v4 = vmax.f32 %v382_v58, 0.0  ;;  %v447_v5 = vmax.f32 %v383_v59, 0.0  ;;  %v386_v7 = vadd.f32 %v1114_v6, %v318_v60  ;;  %v387_v8 = vadd.f32 %v1114_v6, %v319_v61  ;;  %v998_v58 = vld [vmem:[%s1101_s18 + $0x70] sm:$0xff]  }
  0x1e   : > { %v448_v9 = vmax.f32 %v384_v62, 0.0  ;;  %v449_v10 = vmax.f32 %v385_v63, 0.0  ;;  %v388_v11 = vadd.f32 %v1114_v6, %v320_v1  ;;  %v389_v12 = vadd.f32 %v1114_v6, %v321_v2  ;;  %v999_v63 = vld [vmem:[%s1101_s18 + $0x78] sm:$0xff]  }
  0x1f   : > { %v848_v14 = vpack.c.bf16 %v447_v5, %v446_v4  ;;  %v450_v15 = vmax.f32 %v386_v7, 0.0  ;;  %v451_v16 = vmax.f32 %v387_v8, 0.0  ;;  %v731_v17 = vunpack.c.l.bf16 %v992_v3 }
  0x20   : > { %v853_v19 = vpack.c.bf16 %v449_v10, %v448_v9  ;;  %v452_v20 = vmax.f32 %v388_v11, 0.0  ;;  %v453_v21 = vmax.f32 %v389_v12, 0.0  ;;  %v732_v22 = vunpack.c.h.bf16 %v992_v3 }
  0x21   : > { %1019 = vst [vmem:[%s1140_s25 + $0x20] sm:$0xff] %v848_v14   ;;  %v858_v24 = vpack.c.bf16 %v451_v16, %v450_v15  ;;  %v322_v25 = vmul.f32 %v1106_v0, %v731_v17  ;;  %v735_v26 = vunpack.c.l.bf16 %v993_v13  ;;  %v736_v27 = vunpack.c.h.bf16 %v993_v13  ;;  %v1000_v14 = vld [vmem:[%s1101_s18 + $0x80] sm:$0xff]  }
  0x22   : > { %1020 = vst [vmem:[%s1140_s25 + $0x28] sm:$0xff] %v853_v19   ;;  %v863_v28 = vpack.c.bf16 %v453_v21, %v452_v20  ;;  %v323_v29 = vmul.f32 %v1106_v0, %v732_v22  ;;  %v739_v30 = vunpack.c.l.bf16 %v994_v18  ;;  %v740_v31 = vunpack.c.h.bf16 %v994_v18 }
  0x23   : > { %1021 = vst [vmem:[%s1140_s25 + $0x30] sm:$0xff] %v858_v24   ;;  %v390_v32 = vadd.f32 %v1114_v6, %v322_v25  ;;  %v324_v33 = vmul.f32 %v1106_v0, %v735_v26  ;;  %v325_v34 = vmul.f32 %v1106_v0, %v736_v27  ;;  %v743_v35 = vunpack.c.l.bf16 %v995_v23 }
  0x24   : > { %1022 = vst [vmem:[%s1140_s25 + $0x38] sm:$0xff] %v863_v28   ;;  %v391_v36 = vadd.f32 %v1114_v6, %v323_v29  ;;  %v326_v37 = vmul.f32 %v1106_v0, %v739_v30  ;;  %v327_v38 = vmul.f32 %v1106_v0, %v740_v31  ;;  %v744_v39 = vunpack.c.h.bf16 %v995_v23  ;;  %v1001_v31 = vld [vmem:[%s1101_s18 + $0x88] sm:$0xff]  }
  0x25   : > { %v454_v41 = vmax.f32 %v390_v32, 0.0  ;;  %v392_v42 = vadd.f32 %v1114_v6, %v324_v33  ;;  %v393_v43 = vadd.f32 %v1114_v6, %v325_v34  ;;  %v328_v44 = vmul.f32 %v1106_v0, %v743_v35 }
  0x26   : > { %v455_v45 = vmax.f32 %v391_v36, 0.0  ;;  %v394_v46 = vadd.f32 %v1114_v6, %v326_v37  ;;  %v395_v47 = vadd.f32 %v1114_v6, %v327_v38  ;;  %v329_v48 = vmul.f32 %v1106_v0, %v744_v39  ;;  %v1002_v36 = vld [vmem:[%s1101_s18 + $0x90] sm:$0xff]  }
  0x27   : > { %v456_v49 = vmax.f32 %v392_v42, 0.0  ;;  %v457_v50 = vmax.f32 %v393_v43, 0.0  ;;  %v396_v51 = vadd.f32 %v1114_v6, %v328_v44  ;;  %v747_v52 = vunpack.c.l.bf16 %v996_v40 }
  0x28   : > { %v868_v54 = vpack.c.bf16 %v455_v45, %v454_v41  ;;  %v458_v55 = vmax.f32 %v394_v46, 0.0  ;;  %v459_v56 = vmax.f32 %v395_v47, 0.0  ;;  %v397_v57 = vadd.f32 %v1114_v6, %v329_v48  ;;  %v1003_v41 = vld [vmem:[%s1101_s18 + $0x98] sm:$0xff]  }
  0x29   : > { %v873_v59 = vpack.c.bf16 %v457_v50, %v456_v49  ;;  %v460_v60 = vmax.f32 %v396_v51, 0.0  ;;  %v748_v61 = vunpack.c.h.bf16 %v996_v40  ;;  %v330_v62 = vmul.f32 %v1106_v0, %v747_v52 }
  0x2a   : > { %1023 = vst [vmem:[%s1140_s25 + $0x40] sm:$0xff] %v868_v54   ;;  %v878_v1 = vpack.c.bf16 %v459_v56, %v458_v55  ;;  %v461_v2 = vmax.f32 %v397_v57, 0.0  ;;  %v751_v3 = vunpack.c.l.bf16 %v997_v53  ;;  %v752_v4 = vunpack.c.h.bf16 %v997_v53  ;;  %v1004_v54 = vld [vmem:[%s1101_s18 + $0xa0] sm:$0xff]  }
  0x2b   : > { %1024 = vst [vmem:[%s1140_s25 + $0x48] sm:$0xff] %v873_v59   ;;  %v331_v5 = vmul.f32 %v1106_v0, %v748_v61  ;;  %v398_v7 = vadd.f32 %v1114_v6, %v330_v62  ;;  %v755_v8 = vunpack.c.l.bf16 %v998_v58  ;;  %v756_v9 = vunpack.c.h.bf16 %v998_v58 }
  0x2c   : > { %1025 = vst [vmem:[%s1140_s25 + $0x50] sm:$0xff] %v878_v1   ;;  %v883_v10 = vpack.c.bf16 %v461_v2, %v460_v60  ;;  %v332_v11 = vmul.f32 %v1106_v0, %v751_v3  ;;  %v333_v12 = vmul.f32 %v1106_v0, %v752_v4  ;;  %v759_v13 = vunpack.c.l.bf16 %v999_v63  ;;  %v1005_v4 = vld [vmem:[%s1101_s18 + $0xa8] sm:$0xff]  }
  0x2d   : > { %v399_v15 = vadd.f32 %v1114_v6, %v331_v5  ;;  %v462_v16 = vmax.f32 %v398_v7, 0.0  ;;  %v334_v17 = vmul.f32 %v1106_v0, %v755_v8  ;;  %v335_v18 = vmul.f32 %v1106_v0, %v756_v9 }
  0x2e   : > { %1026 = vst [vmem:[%s1140_s25 + $0x58] sm:$0xff] %v883_v10   ;;  %v400_v19 = vadd.f32 %v1114_v6, %v332_v11  ;;  %v401_v20 = vadd.f32 %v1114_v6, %v333_v12  ;;  %v760_v21 = vunpack.c.h.bf16 %v999_v63  ;;  %v336_v22 = vmul.f32 %v1106_v0, %v759_v13 }
  0x2f   : > { %v463_v23 = vmax.f32 %v399_v15, 0.0  ;;  %v402_v24 = vadd.f32 %v1114_v6, %v334_v17  ;;  %v403_v25 = vadd.f32 %v1114_v6, %v335_v18  ;;  %v763_v26 = vunpack.c.l.bf16 %v1000_v14 }
  0x30   : > { %v464_v27 = vmax.f32 %v400_v19, 0.0  ;;  %v465_v28 = vmax.f32 %v401_v20, 0.0  ;;  %v337_v29 = vmul.f32 %v1106_v0, %v760_v21  ;;  %v404_v30 = vadd.f32 %v1114_v6, %v336_v22  ;;  %v1007_v19 = vld [vmem:[%s1101_s18 + $0xb8] sm:$0xff]  }
  0x31   : > { %v888_v32 = vpack.c.bf16 %v463_v23, %v462_v16  ;;  %v466_v33 = vmax.f32 %v402_v24, 0.0  ;;  %v467_v34 = vmax.f32 %v403_v25, 0.0  ;;  %v764_v35 = vunpack.c.h.bf16 %v1000_v14  ;;  %v1006_v14 = vld [vmem:[%s1101_s18 + $0xb0] sm:$0xff]  }
  0x32   : > { %v893_v37 = vpack.c.bf16 %v465_v28, %v464_v27  ;;  %v405_v38 = vadd.f32 %v1114_v6, %v337_v29  ;;  %v468_v39 = vmax.f32 %v404_v30, 0.0  ;;  %v338_v40 = vmul.f32 %v1106_v0, %v763_v26 }
  0x33   : > { %1027 = vst [vmem:[%s1140_s25 + $0x60] sm:$0xff] %v888_v32   ;;  %v898_v42 = vpack.c.bf16 %v467_v34, %v466_v33  ;;  %v339_v43 = vmul.f32 %v1106_v0, %v764_v35  ;;  %v767_v44 = vunpack.c.l.bf16 %v1001_v31  ;;  %v768_v45 = vunpack.c.h.bf16 %v1001_v31  ;;  %v1008_v32 = vld [vmem:[%s1101_s18 + $0xc0] sm:$0xff]  }
  0x34   : > { %1028 = vst [vmem:[%s1140_s25 + $0x68] sm:$0xff] %v893_v37   ;;  %v469_v46 = vmax.f32 %v405_v38, 0.0  ;;  %v406_v47 = vadd.f32 %v1114_v6, %v338_v40  ;;  %v771_v48 = vunpack.c.l.bf16 %v1002_v36  ;;  %v772_v49 = vunpack.c.h.bf16 %v1002_v36 }
  0x35   : > { %1029 = vst [vmem:[%s1140_s25 + $0x70] sm:$0xff] %v898_v42   ;;  %v407_v50 = vadd.f32 %v1114_v6, %v339_v43  ;;  %v340_v51 = vmul.f32 %v1106_v0, %v767_v44  ;;  %v341_v52 = vmul.f32 %v1106_v0, %v768_v45  ;;  %v775_v53 = vunpack.c.l.bf16 %v1003_v41  ;;  %v1009_v45 = vld [vmem:[%s1101_s18 + $0xc8] sm:$0xff]  }
  0x36   : > { %v903_v55 = vpack.c.bf16 %v469_v46, %v468_v39  ;;  %v470_v56 = vmax.f32 %v406_v47, 0.0  ;;  %v342_v57 = vmul.f32 %v1106_v0, %v771_v48  ;;  %v343_v58 = vmul.f32 %v1106_v0, %v772_v49 }
  0x37   : > { %v471_v59 = vmax.f32 %v407_v50, 0.0  ;;  %v408_v60 = vadd.f32 %v1114_v6, %v340_v51  ;;  %v409_v61 = vadd.f32 %v1114_v6, %v341_v52  ;;  %v776_v62 = vunpack.c.h.bf16 %v1003_v41 }
  0x38   : > { %1030 = vst [vmem:[%s1140_s25 + $0x78] sm:$0xff] %v903_v55   ;;  %v410_v63 = vadd.f32 %v1114_v6, %v342_v57  ;;  %v411_v1 = vadd.f32 %v1114_v6, %v343_v58  ;;  %v344_v2 = vmul.f32 %v1106_v0, %v775_v53  ;;  %v779_v3 = vunpack.c.l.bf16 %v1004_v54 }
  0x39   : > { %v908_v5 = vpack.c.bf16 %v471_v59, %v470_v56  ;;  %v472_v7 = vmax.f32 %v408_v60, 0.0  ;;  %v473_v8 = vmax.f32 %v409_v61, 0.0  ;;  %v345_v9 = vmul.f32 %v1106_v0, %v776_v62 }
  0x3a   : > { %v474_v10 = vmax.f32 %v410_v63, 0.0  ;;  %v475_v11 = vmax.f32 %v411_v1, 0.0  ;;  %v412_v12 = vadd.f32 %v1114_v6, %v344_v2  ;;  %v780_v13 = vunpack.c.h.bf16 %v1004_v54  ;;  %v1010_v54 = vld [vmem:[%s1101_s18 + $0xd0] sm:$0xff]   ;;  %v1011_v63 = vld [vmem:[%s1101_s18 + $0xd8] sm:$0xff]  }
  0x3b   : > { %1031 = vst [vmem:[%s1140_s25 + $0x80] sm:$0xff] %v908_v5   ;;  %v913_v15 = vpack.c.bf16 %v473_v8, %v472_v7  ;;  %v413_v16 = vadd.f32 %v1114_v6, %v345_v9  ;;  %v346_v17 = vmul.f32 %v1106_v0, %v779_v3  ;;  %v783_v18 = vunpack.c.l.bf16 %v1005_v4 }
  0x3c   : > { %v918_v20 = vpack.c.bf16 %v475_v11, %v474_v10  ;;  %v476_v21 = vmax.f32 %v412_v12, 0.0  ;;  %v347_v22 = vmul.f32 %v1106_v0, %v780_v13  ;;  %v784_v23 = vunpack.c.h.bf16 %v1005_v4  ;;  %v1012_v10 = vld [vmem:[%s1101_s18 + $0xe0] sm:$0xff]  }
  0x3d   : > { %1032 = vst [vmem:[%s1140_s25 + $0x88] sm:$0xff] %v913_v15   ;;  %v477_v24 = vmax.f32 %v413_v16, 0.0  ;;  %v414_v25 = vadd.f32 %v1114_v6, %v346_v17  ;;  %v348_v26 = vmul.f32 %v1106_v0, %v783_v18  ;;  %v787_v27 = vunpack.c.l.bf16 %v1006_v14 }
  0x3e   : > { %1033 = vst [vmem:[%s1140_s25 + $0x90] sm:$0xff] %v918_v20   ;;  %v415_v28 = vadd.f32 %v1114_v6, %v347_v22  ;;  %v349_v29 = vmul.f32 %v1106_v0, %v784_v23  ;;  %v788_v30 = vunpack.c.h.bf16 %v1006_v14  ;;  %v791_v31 = vunpack.c.l.bf16 %v1007_v19  ;;  %v1013_v23 = vld [vmem:[%s1101_s18 + $0xe8] sm:$0xff]  }
  0x3f   : > { %v923_v33 = vpack.c.bf16 %v477_v24, %v476_v21  ;;  %v478_v34 = vmax.f32 %v414_v25, 0.0  ;;  %v416_v35 = vadd.f32 %v1114_v6, %v348_v26  ;;  %v350_v36 = vmul.f32 %v1106_v0, %v787_v27 }
  0x40   : > { %v479_v37 = vmax.f32 %v415_v28, 0.0  ;;  %v417_v38 = vadd.f32 %v1114_v6, %v349_v29  ;;  %v351_v39 = vmul.f32 %v1106_v0, %v788_v30  ;;  %v792_v40 = vunpack.c.h.bf16 %v1007_v19 }
  0x41   : > { %1034 = vst [vmem:[%s1140_s25 + $0x98] sm:$0xff] %v923_v33   ;;  %v480_v41 = vmax.f32 %v416_v35, 0.0  ;;  %v418_v42 = vadd.f32 %v1114_v6, %v350_v36  ;;  %v352_v43 = vmul.f32 %v1106_v0, %v791_v31  ;;  %v795_v44 = vunpack.c.l.bf16 %v1008_v32 }
  0x42   : > { %v928_v46 = vpack.c.bf16 %v479_v37, %v478_v34  ;;  %v481_v47 = vmax.f32 %v417_v38, 0.0  ;;  %v419_v48 = vadd.f32 %v1114_v6, %v351_v39  ;;  %v353_v49 = vmul.f32 %v1106_v0, %v792_v40 }
  0x43   : > { %v482_v50 = vmax.f32 %v418_v42, 0.0  ;;  %v420_v51 = vadd.f32 %v1114_v6, %v352_v43  ;;  %v796_v52 = vunpack.c.h.bf16 %v1008_v32  ;;  %v354_v53 = vmul.f32 %v1106_v0, %v795_v44  ;;  %v1014_v32 = vld [vmem:[%s1101_s18 + $0xf0] sm:$0xff]  }
  0x44   : > { %1035 = vst [vmem:[%s1140_s25 + $0xa0] sm:$0xff] %v928_v46   ;;  %v933_v55 = vpack.c.bf16 %v481_v47, %v480_v41  ;;  %v483_v56 = vmax.f32 %v419_v48, 0.0  ;;  %v421_v57 = vadd.f32 %v1114_v6, %v353_v49  ;;  %v799_v58 = vunpack.c.l.bf16 %v1009_v45  ;;  %v1015_v41 = vld [vmem:[%s1101_s18 + $0xf8] sm:$0xff]  }
  0x45   : > { %v484_v59 = vmax.f32 %v420_v51, 0.0  ;;  %v355_v60 = vmul.f32 %v1106_v0, %v796_v52  ;;  %v422_v61 = vadd.f32 %v1114_v6, %v354_v53  ;;  %v800_v62 = vunpack.c.h.bf16 %v1009_v45 }
  0x46   : > { %1036 = vst [vmem:[%s1140_s25 + $0xa8] sm:$0xff] %v933_v55   ;;  %v938_v1 = vpack.c.bf16 %v483_v56, %v482_v50  ;;  %v485_v2 = vmax.f32 %v421_v57, 0.0  ;;  %v356_v3 = vmul.f32 %v1106_v0, %v799_v58  ;;  %v803_v4 = vunpack.c.l.bf16 %v1010_v54 }
  0x47   : > { %v423_v5 = vadd.f32 %v1114_v6, %v355_v60  ;;  %v486_v7 = vmax.f32 %v422_v61, 0.0  ;;  %v357_v8 = vmul.f32 %v1106_v0, %v800_v62  ;;  %v804_v9 = vunpack.c.h.bf16 %v1010_v54 }
  0x48   : > { %1037 = vst [vmem:[%s1140_s25 + $0xb0] sm:$0xff] %v938_v1   ;;  %v943_v11 = vpack.c.bf16 %v485_v2, %v484_v59  ;;  %v424_v12 = vadd.f32 %v1114_v6, %v356_v3  ;;  %v358_v13 = vmul.f32 %v1106_v0, %v803_v4  ;;  %v807_v14 = vunpack.c.l.bf16 %v1011_v63 }
  0x49   : > { %v487_v15 = vmax.f32 %v423_v5, 0.0  ;;  %v425_v16 = vadd.f32 %v1114_v6, %v357_v8  ;;  %v359_v17 = vmul.f32 %v1106_v0, %v804_v9  ;;  %v808_v18 = vunpack.c.h.bf16 %v1011_v63 }
  0x4a   : > { %1038 = vst [vmem:[%s1140_s25 + $0xb8] sm:$0xff] %v943_v11   ;;  %v488_v19 = vmax.f32 %v424_v12, 0.0  ;;  %v426_v20 = vadd.f32 %v1114_v6, %v358_v13  ;;  %v360_v21 = vmul.f32 %v1106_v0, %v807_v14  ;;  %v811_v22 = vunpack.c.l.bf16 %v1012_v10 }
  0x4b   : > { %v948_v24 = vpack.c.bf16 %v487_v15, %v486_v7  ;;  %v489_v25 = vmax.f32 %v425_v16, 0.0  ;;  %v427_v26 = vadd.f32 %v1114_v6, %v359_v17  ;;  %v361_v27 = vmul.f32 %v1106_v0, %v808_v18 }
  0x4c   : > { %v490_v28 = vmax.f32 %v426_v20, 0.0  ;;  %v428_v29 = vadd.f32 %v1114_v6, %v360_v21  ;;  %v812_v30 = vunpack.c.h.bf16 %v1012_v10  ;;  %v362_v31 = vmul.f32 %v1106_v0, %v811_v22 }
  0x4d   : > { %1039 = vst [vmem:[%s1140_s25 + $0xc0] sm:$0xff] %v948_v24   ;;  %v953_v33 = vpack.c.bf16 %v489_v25, %v488_v19  ;;  %v491_v34 = vmax.f32 %v427_v26, 0.0  ;;  %v429_v35 = vadd.f32 %v1114_v6, %v361_v27  ;;  %v815_v36 = vunpack.c.l.bf16 %v1013_v23 }
  0x4e   : > { %v492_v37 = vmax.f32 %v428_v29, 0.0  ;;  %v363_v38 = vmul.f32 %v1106_v0, %v812_v30  ;;  %v430_v39 = vadd.f32 %v1114_v6, %v362_v31  ;;  %v816_v40 = vunpack.c.h.bf16 %v1013_v23 }
  0x4f   : > { %1040 = vst [vmem:[%s1140_s25 + $0xc8] sm:$0xff] %v953_v33   ;;  %v958_v42 = vpack.c.bf16 %v491_v34, %v490_v28  ;;  %v493_v43 = vmax.f32 %v429_v35, 0.0  ;;  %v364_v44 = vmul.f32 %v1106_v0, %v815_v36  ;;  %v819_v45 = vunpack.c.l.bf16 %v1014_v32 }
  0x50   : > { %v431_v46 = vadd.f32 %v1114_v6, %v363_v38  ;;  %v494_v47 = vmax.f32 %v430_v39, 0.0  ;;  %v365_v48 = vmul.f32 %v1106_v0, %v816_v40  ;;  %v820_v49 = vunpack.c.h.bf16 %v1014_v32 }
  0x51   : > { %1041 = vst [vmem:[%s1140_s25 + $0xd0] sm:$0xff] %v958_v42   ;;  %v963_v50 = vpack.c.bf16 %v493_v43, %v492_v37  ;;  %v432_v51 = vadd.f32 %v1114_v6, %v364_v44  ;;  %v366_v52 = vmul.f32 %v1106_v0, %v819_v45  ;;  %v823_v53 = vunpack.c.l.bf16 %v1015_v41 }
  0x52   : > { %v495_v54 = vmax.f32 %v431_v46, 0.0  ;;  %v433_v55 = vadd.f32 %v1114_v6, %v365_v48  ;;  %v367_v56 = vmul.f32 %v1106_v0, %v820_v49  ;;  %v824_v57 = vunpack.c.h.bf16 %v1015_v41 }
  0x53   : > { %1042 = vst [vmem:[%s1140_s25 + $0xd8] sm:$0xff] %v963_v50   ;;  %v496_v58 = vmax.f32 %v432_v51, 0.0  ;;  %v434_v59 = vadd.f32 %v1114_v6, %v366_v52  ;;  %v368_v60 = vmul.f32 %v1106_v0, %v823_v53 }
  0x54   : > { %v968_v61 = vpack.c.bf16 %v495_v54, %v494_v47  ;;  %v497_v62 = vmax.f32 %v433_v55, 0.0  ;;  %v435_v63 = vadd.f32 %v1114_v6, %v367_v56  ;;  %v369_v1 = vmul.f32 %v1106_v0, %v824_v57 }
  0x55   : > { %v498_v2 = vmax.f32 %v434_v59, 0.0  ;;  %v436_v3 = vadd.f32 %v1114_v6, %v368_v60 }
  0x56   : > { %1043 = vst [vmem:[%s1140_s25 + $0xe0] sm:$0xff] %v968_v61   ;;  %v973_v4 = vpack.c.bf16 %v497_v62, %v496_v58  ;;  %v499_v5 = vmax.f32 %v435_v63, 0.0  ;;  %v437_v7 = vadd.f32 %v1114_v6, %v369_v1 }
  0x57   : > { %v500_v8 = vmax.f32 %v436_v3, 0.0 }
  0x58   : > { %1044 = vst [vmem:[%s1140_s25 + $0xe8] sm:$0xff] %v973_v4   ;;  %v978_v9 = vpack.c.bf16 %v499_v5, %v498_v2  ;;  %v501_v10 = vmax.f32 %v437_v7, 0.0 }
  0x5a   : > { %1045 = vst [vmem:[%s1140_s25 + $0xf0] sm:$0xff] %v978_v9   ;;  %v983_v11 = vpack.c.bf16 %v501_v10, %v500_v8 }
  0x5c   : > { %1046 = vst [vmem:[%s1140_s25 + $0xf8] sm:$0xff] %v983_v11  }
  0x5d PF: > { %s13_s12 = sadd.s32 1, %s1063_s12  }
  0x5e   : > { %p10_p4 = scmp.ge.s32.totalorder %s13_s12, 6  }
  0x60   :  { %12 = sbr.rel (!%p10_p4) target bundleno = 1 (0x1), region = 62 }

// kernel: generator_forward.38
= control target key start
LH: loop header
LB: loop body
LE: loop exit
PB: predicated region body
PF: predicated region fallthrough
CT: control target
= control target key end

     0   :  { %s3261_s9 = smov 0   ;;  %s3670_s0 = inlined_call_operand.vmem [shape: bf16[2048,512], index: 0, kind: input, shape index: {}]   ;;  %s3671_s1 = inlined_call_operand.vmem [shape: bf16[512,128], index: 1, kind: input, shape index: {}]   ;;  %s3672_s2 = inlined_call_operand.vmem [shape: bf16[2048,128], index: 2, kind: output, shape index: {}]  }
   0x1 LB: > { %s2098_s10 = sadd.s32 4294967295, %s3244_s9   ;;  %p2102_p0 = scmp.ge.s32.totalorder %s3244_s9, 1  ;;  %s3244_s9 = sphi %s3261_s9, %s12_s9  }
   0x2   : > { %p114_p1 = scmp.lt.s32.totalorder %s3244_s9, 5 }
   0x4   : > { %p115_p2 = pnand %p2102_p0, %p114_p1 }
   0x5   : > { %s2103_s7 = sshll.u32 (!%p115_p2), %s2098_s10, 6 }
   0x6   : > { %118 = sbr.rel (%p115_p2) target bundleno = 695 (0x2b7), region = 28  ;;  %p138_p3 = scmp.lt.s32.totalorder (!%p115_p2), %s2103_s7, 255 }
   0xb   : > { %v2886_v0 = vld [vmem:[%s3671_s1 + $0x38] sm:$0xff]  ;;  %v2885_v4 = vld [vmem:[%s3671_s1 + $0x30] sm:$0xff]  ;;  %v2884_v8 = vld [vmem:[%s3671_s1 + $0x28] sm:$0xff]  ;;  %s3674_s7 = smov (!%p138_p3, %s2103_s7), 255 }
   0xc   : > { %v2894_v1 = vld [vmem:[%s3671_s1 + $0x78] sm:$0xff]  ;;  %1174 = vmatpush.bf16.msra.mxu0 %v2886_v0  ;;  %v2893_v5 = vld [vmem:[%s3671_s1 + $0x70] sm:$0xff]  ;;  %v2892_v9 = vld [vmem:[%s3671_s1 + $0x68] sm:$0xff]  ;;  %s2750_s5 = sshll.u32 %s3674_s7, 4  ;;  %s2107_s27 = sshll.u32 %s3674_s7, 2 }
   0xd   : > { %v2902_v2 = vld [vmem:[%s3671_s1 + $0xb8] sm:$0xff]  ;;  %1343 = vmatpush.bf16.msra.mxu1 %v2894_v1  ;;  %v2901_v6 = vld [vmem:[%s3671_s1 + $0xb0] sm:$0xff]  ;;  %v2900_v10 = vld [vmem:[%s3671_s1 + $0xa8] sm:$0xff]  ;;  %s3353_s15 = scalar_lea.vmem %s3670_s0, %s2750_s5  ;;  %s3457_s30 = scalar_lea.vmem %s3672_s2, %s2107_s27 }
   0xe   : > { %v2910_v3 = vld [vmem:[%s3671_s1 + $0xf8] sm:$0xff]  ;;  %1512 = vmatpush.bf16.msra.mxu2 %v2902_v2  ;;  %v2909_v7 = vld [vmem:[%s3671_s1 + $0xf0] sm:$0xff]  ;;  %v2908_v11 = vld [vmem:[%s3671_s1 + $0xe8] sm:$0xff] }
   0xf   : > { %1681 = vmatpush.bf16.msra.mxu3 %v2910_v3  ;;  %v2883_v12 = vld [vmem:[%s3671_s1 + $0x20] sm:$0xff]  ;;  %v2882_v16 = vld [vmem:[%s3671_s1 + $0x18] sm:$0xff]  ;;  %v2881_v20 = vld [vmem:[%s3671_s1 + $0x10] sm:$0xff] }
  0x10   : > { %1175 = vmatpush.bf16.msra.mxu0 %v2885_v4  ;;  %v2891_v13 = vld [vmem:[%s3671_s1 + $0x60] sm:$0xff]  ;;  %v2890_v17 = vld [vmem:[%s3671_s1 + $0x58] sm:$0xff]  ;;  %v2889_v21 = vld [vmem:[%s3671_s1 + $0x50] sm:$0xff] }
  0x11   : > { %1344 = vmatpush.bf16.msra.mxu1 %v2893_v5  ;;  %v2899_v14 = vld [vmem:[%s3671_s1 + $0xa0] sm:$0xff]  ;;  %v2898_v18 = vld [vmem:[%s3671_s1 + $0x98] sm:$0xff]  ;;  %v2897_v22 = vld [vmem:[%s3671_s1 + $0x90] sm:$0xff] }
  0x12   : > { %1513 = vmatpush.bf16.msra.mxu2 %v2901_v6  ;;  %v2907_v15 = vld [vmem:[%s3671_s1 + $0xe0] sm:$0xff]  ;;  %v2906_v19 = vld [vmem:[%s3671_s1 + $0xd8] sm:$0xff]  ;;  %v2905_v23 = vld [vmem:[%s3671_s1 + $0xd0] sm:$0xff] }
  0x13   : > { %1682 = vmatpush.bf16.msra.mxu3 %v2909_v7  ;;  %v2880_v24 = vld [vmem:[%s3671_s1 + $0x8] sm:$0xff]  ;;  %v2879_v28 = vld [vmem:[%s3671_s1] sm:$0xff]  ;;  %v2753_v33 = vld [vmem:[%s3353_s15 + $0xc] sm:$0xf0] }
  0x14   : > { %1176 = vmatpush.bf16.msra.mxu0 %v2884_v8  ;;  %v2888_v25 = vld [vmem:[%s3671_s1 + $0x48] sm:$0xff]  ;;  %v2887_v29 = vld [vmem:[%s3671_s1 + $0x40] sm:$0xff]  ;;  %v2112_v35 = vld [vmem:[%s3353_s15 + $0x10] sm:$0xf0] }
  0x15   : > { %1345 = vmatpush.bf16.msra.mxu1 %v2892_v9  ;;  %v2896_v26 = vld [vmem:[%s3671_s1 + $0x88] sm:$0xff]  ;;  %v2895_v30 = vld [vmem:[%s3671_s1 + $0x80] sm:$0xff]  ;;  %v2754_v37 = vld [vmem:[%s3353_s15 + $0x14] sm:$0xf0] }
  0x16   : > { %1514 = vmatpush.bf16.msra.mxu2 %v2900_v10  ;;  %v2904_v27 = vld [vmem:[%s3671_s1 + $0xc8] sm:$0xff]  ;;  %v2903_v31 = vld [vmem:[%s3671_s1 + $0xc0] sm:$0xff]  ;;  %v2120_v39 = vld [vmem:[%s3353_s15 + $0x18] sm:$0xf0] }
  0x17   : > { %1683 = vmatpush.bf16.msra.mxu3 %v2908_v11  ;;  %v2110_v32 = vld [vmem:[%s3353_s15] sm:$0xf]  ;;  %v2751_v34 = vld [vmem:[%s3353_s15 + $0x4] sm:$0xf]  ;;  %v2118_v36 = vld [vmem:[%s3353_s15 + $0x8] sm:$0xf] }
  0x18   : > { %1177 = vmatpush.bf16.msra.mxu0 %v2883_v12  ;;  %v2752_v38 = vld [vmem:[%s3353_s15 + $0xc] sm:$0xf]  ;;  %v2111_v40 = vor.u32 %v2753_v33, %v2110_v32  ;;  %v2115_v41 = vor.u32 %v2751_v34, %v2112_v35  ;;  %v2119_v42 = vor.u32 %v2754_v37, %v2118_v36  ;;  %v2126_v44 = vld [vmem:[%s3353_s15 + $0x20] sm:$0xf]  ;;  %v2757_v45 = vld [vmem:[%s3353_s15 + $0x2c] sm:$0xf0] }
  0x19   : > { %1346 = vmatpush.bf16.msra.mxu1 %v2891_v13  ;;  %v2123_v43 = vor.u32 %v2752_v38, %v2120_v39  ;;  %v2755_v46 = vld [vmem:[%s3353_s15 + $0x24] sm:$0xf]  ;;  %v2128_v47 = vld [vmem:[%s3353_s15 + $0x30] sm:$0xf0]  ;;  %v2134_v48 = vld [vmem:[%s3353_s15 + $0x28] sm:$0xf]  ;;  %v2127_v52 = vor.u32 %v2757_v45, %v2126_v44 }
  0x1a   : > { %1515 = vmatpush.bf16.msra.mxu2 %v2899_v14  ;;  %v2758_v49 = vld [vmem:[%s3353_s15 + $0x34] sm:$0xf0]  ;;  %v2756_v50 = vld [vmem:[%s3353_s15 + $0x2c] sm:$0xf]  ;;  %v2136_v51 = vld [vmem:[%s3353_s15 + $0x38] sm:$0xf0]  ;;  %v2131_v53 = vor.u32 %v2755_v46, %v2128_v47 }
  0x1b   : > { %1684 = vmatpush.bf16.msra.mxu3 %v2907_v15  ;;  %v2135_v54 = vor.u32 %v2758_v49, %v2134_v48  ;;  %v2139_v55 = vor.u32 %v2756_v50, %v2136_v51  ;;  %v2142_v56 = vld [vmem:[%s3353_s15 + $0x40] sm:$0xf]  ;;  %v2761_v57 = vld [vmem:[%s3353_s15 + $0x4c] sm:$0xf0]  ;;  %v2759_v58 = vld [vmem:[%s3353_s15 + $0x44] sm:$0xf] }
  0x1c   : > { %1178 = vmatpush.bf16.msra.mxu0 %v2882_v16  ;;  %v2144_v59 = vld [vmem:[%s3353_s15 + $0x50] sm:$0xf0]  ;;  %v2150_v60 = vld [vmem:[%s3353_s15 + $0x48] sm:$0xf]  ;;  %v2762_v61 = vld [vmem:[%s3353_s15 + $0x54] sm:$0xf0]  ;;  %v2143_v0 = vor.u32 %v2761_v57, %v2142_v56 }
  0x1d   : > { %1347 = vmatpush.bf16.msra.mxu1 %v2890_v17  ;;  %v2760_v62 = vld [vmem:[%s3353_s15 + $0x4c] sm:$0xf]  ;;  %v2152_v63 = vld [vmem:[%s3353_s15 + $0x58] sm:$0xf0]  ;;  %v2147_v1 = vor.u32 %v2759_v58, %v2144_v59  ;;  %v2151_v2 = vor.u32 %v2762_v61, %v2150_v60  ;;  %v2158_v4 = vld [vmem:[%s3353_s15 + $0x60] sm:$0xf] }
  0x1e   : > { %1516 = vmatpush.bf16.msra.mxu2 %v2898_v18  ;;  %v2155_v3 = vor.u32 %v2760_v62, %v2152_v63  ;;  %v2765_v5 = vld [vmem:[%s3353_s15 + $0x6c] sm:$0xf0]  ;;  %v2763_v6 = vld [vmem:[%s3353_s15 + $0x64] sm:$0xf]  ;;  %v2160_v7 = vld [vmem:[%s3353_s15 + $0x70] sm:$0xf0] }
  0x1f   : > { %1685 = vmatpush.bf16.msra.mxu3 %v2906_v19  ;;  %v2166_v8 = vld [vmem:[%s3353_s15 + $0x68] sm:$0xf]  ;;  %v2766_v9 = vld [vmem:[%s3353_s15 + $0x74] sm:$0xf0]  ;;  %v2764_v10 = vld [vmem:[%s3353_s15 + $0x6c] sm:$0xf]  ;;  %v2159_v12 = vor.u32 %v2765_v5, %v2158_v4  ;;  %v2163_v13 = vor.u32 %v2763_v6, %v2160_v7 }
  0x20   : > { %1179 = vmatpush.bf16.msra.mxu0 %v2881_v20  ;;  %v2168_v11 = vld [vmem:[%s3353_s15 + $0x78] sm:$0xf0]  ;;  %v2167_v14 = vor.u32 %v2766_v9, %v2166_v8  ;;  %v2174_v16 = vld [vmem:[%s3353_s15 + $0x80] sm:$0xf]  ;;  %v2769_v17 = vld [vmem:[%s3353_s15 + $0x8c] sm:$0xf0] }
  0x21   : > { %1348 = vmatpush.bf16.msra.mxu1 %v2889_v21  ;;  %v2171_v15 = vor.u32 %v2764_v10, %v2168_v11  ;;  %v2767_v18 = vld [vmem:[%s3353_s15 + $0x84] sm:$0xf]  ;;  %v2176_v19 = vld [vmem:[%s3353_s15 + $0x90] sm:$0xf0]  ;;  %v2182_v20 = vld [vmem:[%s3353_s15 + $0x88] sm:$0xf] }
  0x22   : > { %1517 = vmatpush.bf16.msra.mxu2 %v2897_v22  ;;  %v2770_v21 = vld [vmem:[%s3353_s15 + $0x94] sm:$0xf0]  ;;  %v2768_v22 = vld [vmem:[%s3353_s15 + $0x8c] sm:$0xf]  ;;  %v2198_v32 = vld [vmem:[%s3353_s15 + $0xa8] sm:$0xf] }
  0x23   : > { %1686 = vmatpush.bf16.msra.mxu3 %v2905_v23  ;;  %v2184_v23 = vld [vmem:[%s3353_s15 + $0x98] sm:$0xf0]  ;;  %v2774_v33 = vld [vmem:[%s3353_s15 + $0xb4] sm:$0xf0]  ;;  %v2772_v34 = vld [vmem:[%s3353_s15 + $0xac] sm:$0xf] }
  0x24   : > { %1180 = vmatpush.bf16.msra.mxu0 %v2880_v24  ;;  %v2175_v24 = vor.u32 %v2769_v17, %v2174_v16  ;;  %v2200_v35 = vld [vmem:[%s3353_s15 + $0xb8] sm:$0xf0]  ;;  %v2199_v38 = vor.u32 %v2774_v33, %v2198_v32  ;;  %v2214_v44 = vld [vmem:[%s3353_s15 + $0xc8] sm:$0xf]  ;;  %v2778_v45 = vld [vmem:[%s3353_s15 + $0xd4] sm:$0xf0] }
  0x25   : > { %1349 = vmatpush.bf16.msra.mxu1 %v2888_v25  ;;  %v2179_v25 = vor.u32 %v2767_v18, %v2176_v19  ;;  %v2203_v39 = vor.u32 %v2772_v34, %v2200_v35  ;;  %v2776_v46 = vld [vmem:[%s3353_s15 + $0xcc] sm:$0xf]  ;;  %v2216_v47 = vld [vmem:[%s3353_s15 + $0xd8] sm:$0xf0]  ;;  %v2215_v50 = vor.u32 %v2778_v45, %v2214_v44  ;;  %v2230_v56 = vld [vmem:[%s3353_s15 + $0xe8] sm:$0xf] }
  0x26   : > { %1518 = vmatpush.bf16.msra.mxu2 %v2896_v26  ;;  %v2183_v26 = vor.u32 %v2770_v21, %v2182_v20  ;;  %v2219_v51 = vor.u32 %v2776_v46, %v2216_v47  ;;  %v2782_v57 = vld [vmem:[%s3353_s15 + $0xf4] sm:$0xf0]  ;;  %v2780_v58 = vld [vmem:[%s3353_s15 + $0xec] sm:$0xf]  ;;  %v2232_v59 = vld [vmem:[%s3353_s15 + $0xf8] sm:$0xf0] }
  0x27   : > { %1687 = vmatpush.bf16.msra.mxu3 %v2904_v27  ;;  %v2187_v27 = vor.u32 %v2768_v22, %v2184_v23  ;;  %v2231_v62 = vor.u32 %v2782_v57, %v2230_v56  ;;  %v2235_v63 = vor.u32 %v2780_v58, %v2232_v59  ;;  %v2246_v4 = vld [vmem:[%s3353_s15 + $0x108] sm:$0xf]  ;;  %v2786_v5 = vld [vmem:[%s3353_s15 + $0x114] sm:$0xf0]  ;;  %v2784_v6 = vld [vmem:[%s3353_s15 + $0x10c] sm:$0xf] }
  0x28   : > { %1181 = vmatpush.bf16.msra.mxu0 %v2879_v28  ;;  %v2190_v28 = vld [vmem:[%s3353_s15 + $0xa0] sm:$0xf]  ;;  %v2248_v7 = vld [vmem:[%s3353_s15 + $0x118] sm:$0xf0]  ;;  %v2789_v21 = vld [vmem:[%s3353_s15 + $0x12c] sm:$0xf0] }
  0x29   : > { %1350 = vmatpush.bf16.msra.mxu1 %v2887_v29  ;;  %v2773_v29 = vld [vmem:[%s3353_s15 + $0xac] sm:$0xf0]  ;;  %v2254_v20 = vld [vmem:[%s3353_s15 + $0x120] sm:$0xf]  ;;  %v2787_v22 = vld [vmem:[%s3353_s15 + $0x124] sm:$0xf] }
  0x2a   : > { %1519 = vmatpush.bf16.msra.mxu2 %v2895_v30  ;;  %v2771_v30 = vld [vmem:[%s3353_s15 + $0xa4] sm:$0xf]  ;;  %v2191_v36 = vor.u32 %v2773_v29, %v2190_v28  ;;  %v2256_v23 = vld [vmem:[%s3353_s15 + $0x130] sm:$0xf0]  ;;  %v2255_v32 = vor.u32 %v2789_v21, %v2254_v20  ;;  %v2280_v56 = vld [vmem:[%s3353_s15 + $0x158] sm:$0xf0] }
  0x2b   : > { %1688 = vmatpush.bf16.msra.mxu3 %v2903_v31  ;;  %1182 = vmatmul.bf16.vlgmr.msra.gmra.mxu0 %v2111_v40  ;;  %v2192_v31 = vld [vmem:[%s3353_s15 + $0xb0] sm:$0xf0]  ;;  %v2206_v40 = vld [vmem:[%s3353_s15 + $0xc0] sm:$0xf]  ;;  %v2259_v33 = vor.u32 %v2787_v22, %v2256_v23  ;;  %v2796_v20 = vld [vmem:[%s3353_s15 + $0x16c] sm:$0xf] }
  0x2c   : > { %1351 = vmatmul.bf16.vlgmr.msra.gmra.mxu1 %v2115_v41  ;;  %v2195_v37 = vor.u32 %v2771_v30, %v2192_v31  ;;  %v2777_v41 = vld [vmem:[%s3353_s15 + $0xcc] sm:$0xf0]  ;;  %v2296_v21 = vld [vmem:[%s3353_s15 + $0x178] sm:$0xf0] }
  0x2d   : > { %1520 = vmatmul.bf16.vlgmr.msra.gmra.mxu2 %v2119_v42  ;;  %v2775_v42 = vld [vmem:[%s3353_s15 + $0xc4] sm:$0xf]  ;;  %v2207_v48 = vor.u32 %v2777_v41, %v2206_v40 }
  0x2e   : > { %1689 = vmatmul.bf16.vlgmr.msra.gmra.mxu3 %v2123_v43  ;;  %v2208_v43 = vld [vmem:[%s3353_s15 + $0xd0] sm:$0xf0] }
  0x2f   : > { %v2211_v49 = vor.u32 %v2775_v42, %v2208_v43 }
  0x3b   : > { %1187 = vmatmul.bf16.gmra.mxu0 %v2127_v52  ;;  %v2222_v52 = vld [vmem:[%s3353_s15 + $0xe0] sm:$0xf] }
  0x3c   : > { %1356 = vmatmul.bf16.gmra.mxu1 %v2131_v53  ;;  %v2781_v53 = vld [vmem:[%s3353_s15 + $0xec] sm:$0xf0] }
  0x3d   : > { %1525 = vmatmul.bf16.gmra.mxu2 %v2135_v54  ;;  %v2779_v54 = vld [vmem:[%s3353_s15 + $0xe4] sm:$0xf]  ;;  %v2223_v60 = vor.u32 %v2781_v53, %v2222_v52  ;;  %v2272_v52 = vld [vmem:[%s3353_s15 + $0x150] sm:$0xf0]  ;;  %v2278_v53 = vld [vmem:[%s3353_s15 + $0x148] sm:$0xf] }
  0x3e   : > { %1694 = vmatmul.bf16.gmra.mxu3 %v2139_v55  ;;  %v2224_v55 = vld [vmem:[%s3353_s15 + $0xf0] sm:$0xf0] }
  0x3f   : > { %v2227_v61 = vor.u32 %v2779_v54, %v2224_v55  ;;  %v2794_v54 = vld [vmem:[%s3353_s15 + $0x154] sm:$0xf0]  ;;  %v2792_v55 = vld [vmem:[%s3353_s15 + $0x14c] sm:$0xf] }
  0x4b   : > { %1192 = vmatmul.bf16.gmra.mxu0 %v2143_v0  ;;  %v2238_v0 = vld [vmem:[%s3353_s15 + $0x100] sm:$0xf] }
  0x4c   : > { %1361 = vmatmul.bf16.gmra.mxu1 %v2147_v1  ;;  %v2785_v1 = vld [vmem:[%s3353_s15 + $0x10c] sm:$0xf0] }
  0x4d   : > { %1530 = vmatmul.bf16.gmra.mxu2 %v2151_v2  ;;  %v2783_v2 = vld [vmem:[%s3353_s15 + $0x104] sm:$0xf]  ;;  %v2239_v8 = vor.u32 %v2785_v1, %v2238_v0 }
  0x4e   : > { %1699 = vmatmul.bf16.gmra.mxu3 %v2155_v3  ;;  %v2240_v3 = vld [vmem:[%s3353_s15 + $0x110] sm:$0xf0] }
  0x4f   : > { %v2243_v9 = vor.u32 %v2783_v2, %v2240_v3  ;;  %v2279_v2 = vor.u32 %v2794_v54, %v2278_v53  ;;  %v2283_v3 = vor.u32 %v2792_v55, %v2280_v56 }
  0x5b   : > { %1197 = vmatmul.bf16.gmra.mxu0 %v2159_v12  ;;  %v2247_v12 = vor.u32 %v2786_v5, %v2246_v4 }
  0x5c   : > { %1366 = vmatmul.bf16.gmra.mxu1 %v2163_v13  ;;  %v2251_v13 = vor.u32 %v2784_v6, %v2248_v7 }
  0x5d   : > { %1535 = vmatmul.bf16.gmra.mxu2 %v2167_v14 }
  0x5e   : > { %1704 = vmatmul.bf16.gmra.mxu3 %v2171_v15 }
  0x6b   : > { %1202 = vmatmul.bf16.gmra.mxu0 %v2175_v24  ;;  %v2262_v24 = vld [vmem:[%s3353_s15 + $0x128] sm:$0xf] }
  0x6c   : > { %1371 = vmatmul.bf16.gmra.mxu1 %v2179_v25  ;;  %v2790_v25 = vld [vmem:[%s3353_s15 + $0x134] sm:$0xf0] }
  0x6d   : > { %1540 = vmatmul.bf16.gmra.mxu2 %v2183_v26  ;;  %v2788_v26 = vld [vmem:[%s3353_s15 + $0x12c] sm:$0xf] }
  0x6e   : > { %1709 = vmatmul.bf16.gmra.mxu3 %v2187_v27  ;;  %v2264_v27 = vld [vmem:[%s3353_s15 + $0x138] sm:$0xf0] }
  0x7b   : > { %1207 = vmatmul.bf16.gmra.mxu0 %v2191_v36 }
  0x7c   : > { %1376 = vmatmul.bf16.gmra.mxu1 %v2195_v37  ;;  %v2263_v37 = vor.u32 %v2790_v25, %v2262_v24 }
  0x7d   : > { %1545 = vmatmul.bf16.gmra.mxu2 %v2199_v38  ;;  %v2267_v38 = vor.u32 %v2788_v26, %v2264_v27 }
  0x7e   : > { %1714 = vmatmul.bf16.gmra.mxu3 %v2203_v39 }
  0x8b   : > { %1212 = vmatmul.bf16.gmra.mxu0 %v2207_v48 }
  0x8c   : > { %1381 = vmatmul.bf16.gmra.mxu1 %v2211_v49  ;;  %v2270_v49 = vld [vmem:[%s3353_s15 + $0x140] sm:$0xf] }
  0x8d   : > { %1550 = vmatmul.bf16.gmra.mxu2 %v2215_v50  ;;  %v2793_v50 = vld [vmem:[%s3353_s15 + $0x14c] sm:$0xf0] }
  0x8e   : > { %1719 = vmatmul.bf16.gmra.mxu3 %v2219_v51  ;;  %v2791_v51 = vld [vmem:[%s3353_s15 + $0x144] sm:$0xf] }
  0x9b   : > { %1217 = vmatmul.bf16.gmra.mxu0 %v2223_v60 }
  0x9c   : > { %1386 = vmatmul.bf16.gmra.mxu1 %v2227_v61  ;;  %v2271_v61 = vor.u32 %v2793_v50, %v2270_v49  ;;  %v2800_v49 = vld [vmem:[%s3353_s15 + $0x18c] sm:$0xf]  ;;  %v2312_v50 = vld [vmem:[%s3353_s15 + $0x198] sm:$0xf0] }
  0x9d   : > { %1555 = vmatmul.bf16.gmra.mxu2 %v2231_v62  ;;  %v2275_v62 = vor.u32 %v2791_v51, %v2272_v52 }
  0x9e   : > { %1724 = vmatmul.bf16.gmra.mxu3 %v2235_v63 }
  0xa8   : > { %v1183_v10 = vpop.f32.mrf.mxu0 }
  0xa9   : > { %v1352_v11 = vpop.f32.mrf.mxu1 }
  0xaa   : > { %v1353_v14 = vadd.f32 %v1352_v11, %v1183_v10 }
  0xab   : > { %1222 = vmatmul.bf16.gmra.mxu0 %v2239_v8 }
  0xac   : > { %1391 = vmatmul.bf16.gmra.mxu1 %v2243_v9 }
  0xad   : > { %1560 = vmatmul.bf16.gmra.mxu2 %v2247_v12 }
  0xae   : > { %1729 = vmatmul.bf16.gmra.mxu3 %v2251_v13 }
  0xb0   : > { %v1521_v15 = vpop.f32.mrf.mxu2  ;;  %v1185_v17 = vpop.f32.mrf.mxu0 }
  0xb1   : > { %v1690_v16 = vpop.f32.mrf.mxu3  ;;  %v1354_v18 = vpop.f32.mrf.mxu1  ;;  %v1522_v19 = vadd.f32 %v1521_v15, %v1353_v14  ;;  %v2286_v14 = vld [vmem:[%s3353_s15 + $0x160] sm:$0xf]  ;;  %v2797_v15 = vld [vmem:[%s3353_s15 + $0x16c] sm:$0xf0] }
  0xb2   : > { %v1355_v28 = vadd.f32 %v1354_v18, %v1185_v17  ;;  %v2288_v17 = vld [vmem:[%s3353_s15 + $0x170] sm:$0xf0]  ;;  %v2294_v18 = vld [vmem:[%s3353_s15 + $0x168] sm:$0xf]  ;;  %v2287_v26 = vor.u32 %v2797_v15, %v2286_v14  ;;  %v2804_v14 = vld [vmem:[%s3353_s15 + $0x1ac] sm:$0xf] }
  0xb3   : > { %v1691_v29 = vadd.f32 %v1690_v16, %v1522_v19  ;;  %v2795_v16 = vld [vmem:[%s3353_s15 + $0x164] sm:$0xf]  ;;  %v2798_v19 = vld [vmem:[%s3353_s15 + $0x174] sm:$0xf0]  ;;  %v2328_v15 = vld [vmem:[%s3353_s15 + $0x1b8] sm:$0xf0] }
  0xb4   : > { %v2291_v27 = vor.u32 %v2795_v16, %v2288_v17 }
  0xb5   : > { %3110 = vtanh.f32 %v1691_v29 }
  0xb8   : > { %v1523_v30 = vpop.f32.mrf.mxu2  ;;  %v1188_v35 = vpop.f32.mrf.mxu0 }
  0xb9   : > { %v1692_v31 = vpop.f32.mrf.mxu3  ;;  %v1524_v34 = vadd.f32 %v1523_v30, %v1355_v28  ;;  %v1357_v36 = vpop.f32.mrf.mxu1 }
  0xba   : > { %v1358_v40 = vadd.f32 %v1357_v36, %v1188_v35 }
  0xbb   : > { %v1693_v39 = vadd.f32 %v1692_v31, %v1524_v34  ;;  %1227 = vmatmul.bf16.gmra.mxu0 %v2255_v32  ;;  %v3111_v45 = vpop.eup %3110  ;;  %v2295_v31 = vor.u32 %v2798_v19, %v2294_v18  ;;  %v2299_v32 = vor.u32 %v2796_v20, %v2296_v21 }
  0xbc   : > { %1396 = vmatmul.bf16.gmra.mxu1 %v2259_v33 }
  0xbd   : > { %3112 = vtanh.f32 %v1693_v39  ;;  %1565 = vmatmul.bf16.gmra.mxu2 %v2263_v37 }
  0xbe   : > { %1734 = vmatmul.bf16.gmra.mxu3 %v2267_v38 }
  0xc0   : > { %v1526_v41 = vpop.f32.mrf.mxu2  ;;  %v1190_v43 = vpop.f32.mrf.mxu0 }
  0xc1   : > { %v1695_v42 = vpop.f32.mrf.mxu3  ;;  %v1359_v44 = vpop.f32.mrf.mxu1  ;;  %v1527_v48 = vadd.f32 %v1526_v41, %v1358_v40 }
  0xc2   : > { %v1360_v57 = vadd.f32 %v1359_v44, %v1190_v43  ;;  %v2302_v43 = vld [vmem:[%s3353_s15 + $0x180] sm:$0xf]  ;;  %v2801_v44 = vld [vmem:[%s3353_s15 + $0x18c] sm:$0xf0] }
  0xc3   : > { %v3113_v46 = vpop.eup %3112  ;;  %v1696_v58 = vadd.f32 %v1695_v42, %v1527_v48  ;;  %v2802_v48 = vld [vmem:[%s3353_s15 + $0x194] sm:$0xf0]  ;;  %v2303_v55 = vor.u32 %v2801_v44, %v2302_v43  ;;  %v2808_v43 = vld [vmem:[%s3353_s15 + $0x1cc] sm:$0xf]  ;;  %v2344_v44 = vld [vmem:[%s3353_s15 + $0x1d8] sm:$0xf0] }
  0xc4   : > { %v2914_v47 = vpack.c.bf16 %v3113_v46, %v3111_v45  ;;  %v2799_v45 = vld [vmem:[%s3353_s15 + $0x184] sm:$0xf]  ;;  %v2304_v46 = vld [vmem:[%s3353_s15 + $0x190] sm:$0xf0] }
  0xc5   : > { %3114 = vtanh.f32 %v1696_v58  ;;  %v2307_v56 = vor.u32 %v2799_v45, %v2304_v46 }
  0xc6   : > { %2915 = vst [vmem:[%s3457_s30] sm:$0xff] %v2914_v47   ;;  %v2310_v47 = vld [vmem:[%s3353_s15 + $0x188] sm:$0xf] }
  0xc8   : > { %v1528_v59 = vpop.f32.mrf.mxu2  ;;  %v1193_v0 = vpop.f32.mrf.mxu0 }
  0xc9   : > { %v1697_v60 = vpop.f32.mrf.mxu3  ;;  %v1529_v63 = vadd.f32 %v1528_v59, %v1360_v57  ;;  %v1362_v1 = vpop.f32.mrf.mxu1 }
  0xca   : > { %v1363_v5 = vadd.f32 %v1362_v1, %v1193_v0 }
  0xcb   : > { %v1698_v4 = vadd.f32 %v1697_v60, %v1529_v63  ;;  %1232 = vmatmul.bf16.gmra.mxu0 %v2271_v61  ;;  %v3115_v10 = vpop.eup %3114  ;;  %v2311_v60 = vor.u32 %v2802_v48, %v2310_v47  ;;  %v2315_v61 = vor.u32 %v2800_v49, %v2312_v50 }
  0xcc   : > { %1401 = vmatmul.bf16.gmra.mxu1 %v2275_v62 }
  0xcd   : > { %3116 = vtanh.f32 %v1698_v4  ;;  %1570 = vmatmul.bf16.gmra.mxu2 %v2279_v2 }
  0xce   : > { %1739 = vmatmul.bf16.gmra.mxu3 %v2283_v3 }
  0xd0   : > { %v1531_v6 = vpop.f32.mrf.mxu2  ;;  %v1195_v8 = vpop.f32.mrf.mxu0 }
  0xd1   : > { %v1700_v7 = vpop.f32.mrf.mxu3  ;;  %v1364_v9 = vpop.f32.mrf.mxu1  ;;  %v1532_v13 = vadd.f32 %v1531_v6, %v1363_v5 }
  0xd2   : > { %v1365_v22 = vadd.f32 %v1364_v9, %v1195_v8  ;;  %v2318_v8 = vld [vmem:[%s3353_s15 + $0x1a0] sm:$0xf]  ;;  %v2805_v9 = vld [vmem:[%s3353_s15 + $0x1ac] sm:$0xf0] }
  0xd3   : > { %v3117_v11 = vpop.eup %3116  ;;  %v1701_v23 = vadd.f32 %v1700_v7, %v1532_v13  ;;  %v2806_v13 = vld [vmem:[%s3353_s15 + $0x1b4] sm:$0xf0]  ;;  %v2319_v20 = vor.u32 %v2805_v9, %v2318_v8  ;;  %v2812_v8 = vld [vmem:[%s3353_s15 + $0x1ec] sm:$0xf]  ;;  %v2360_v9 = vld [vmem:[%s3353_s15 + $0x1f8] sm:$0xf0] }
  0xd4   : > { %v2919_v12 = vpack.c.bf16 %v3117_v11, %v3115_v10  ;;  %v2803_v10 = vld [vmem:[%s3353_s15 + $0x1a4] sm:$0xf]  ;;  %v2320_v11 = vld [vmem:[%s3353_s15 + $0x1b0] sm:$0xf0] }
  0xd5   : > { %3118 = vtanh.f32 %v1701_v23  ;;  %v2323_v21 = vor.u32 %v2803_v10, %v2320_v11 }
  0xd6   : > { %3071 = vst [vmem:[%s3457_s30 + $0x8] sm:$0xff] %v2919_v12   ;;  %v2326_v12 = vld [vmem:[%s3353_s15 + $0x1a8] sm:$0xf] }
  0xd8   : > { %v1533_v24 = vpop.f32.mrf.mxu2  ;;  %v1198_v29 = vpop.f32.mrf.mxu0 }
  0xd9   : > { %v1702_v25 = vpop.f32.mrf.mxu3  ;;  %v1534_v28 = vadd.f32 %v1533_v24, %v1365_v22  ;;  %v1367_v30 = vpop.f32.mrf.mxu1 }
  0xda   : > { %v1368_v34 = vadd.f32 %v1367_v30, %v1198_v29 }
  0xdb   : > { %v1703_v33 = vadd.f32 %v1702_v25, %v1534_v28  ;;  %1237 = vmatmul.bf16.gmra.mxu0 %v2287_v26  ;;  %v3119_v39 = vpop.eup %3118  ;;  %v2327_v25 = vor.u32 %v2806_v13, %v2326_v12  ;;  %v2331_v26 = vor.u32 %v2804_v14, %v2328_v15 }
  0xdc   : > { %1406 = vmatmul.bf16.gmra.mxu1 %v2291_v27 }
  0xdd   : > { %3120 = vtanh.f32 %v1703_v33  ;;  %1575 = vmatmul.bf16.gmra.mxu2 %v2295_v31 }
  0xde   : > { %1744 = vmatmul.bf16.gmra.mxu3 %v2299_v32 }
  0xe0   : > { %v1536_v35 = vpop.f32.mrf.mxu2  ;;  %v1200_v37 = vpop.f32.mrf.mxu0 }
  0xe1   : > { %v1705_v36 = vpop.f32.mrf.mxu3  ;;  %v1369_v38 = vpop.f32.mrf.mxu1  ;;  %v1537_v42 = vadd.f32 %v1536_v35, %v1368_v34 }
  0xe2   : > { %v1370_v51 = vadd.f32 %v1369_v38, %v1200_v37  ;;  %v2334_v37 = vld [vmem:[%s3353_s15 + $0x1c0] sm:$0xf]  ;;  %v2809_v38 = vld [vmem:[%s3353_s15 + $0x1cc] sm:$0xf0] }
  0xe3   : > { %v3121_v40 = vpop.eup %3120  ;;  %v1706_v52 = vadd.f32 %v1705_v36, %v1537_v42  ;;  %v2810_v42 = vld [vmem:[%s3353_s15 + $0x1d4] sm:$0xf0]  ;;  %v2335_v49 = vor.u32 %v2809_v38, %v2334_v37  ;;  %v2816_v37 = vld [vmem:[%s3353_s15 + $0x20c] sm:$0xf]  ;;  %v2376_v38 = vld [vmem:[%s3353_s15 + $0x218] sm:$0xf0] }
  0xe4   : > { %v2924_v41 = vpack.c.bf16 %v3121_v40, %v3119_v39  ;;  %v2807_v39 = vld [vmem:[%s3353_s15 + $0x1c4] sm:$0xf]  ;;  %v2336_v40 = vld [vmem:[%s3353_s15 + $0x1d0] sm:$0xf0] }
  0xe5   : > { %3122 = vtanh.f32 %v1706_v52  ;;  %v2339_v50 = vor.u32 %v2807_v39, %v2336_v40 }
  0xe6   : > { %3072 = vst [vmem:[%s3457_s30 + $0x10] sm:$0xff] %v2924_v41   ;;  %v2342_v41 = vld [vmem:[%s3353_s15 + $0x1c8] sm:$0xf] }
  0xe8   : > { %v1538_v53 = vpop.f32.mrf.mxu2  ;;  %v1203_v58 = vpop.f32.mrf.mxu0 }
  0xe9   : > { %v1707_v54 = vpop.f32.mrf.mxu3  ;;  %v1539_v57 = vadd.f32 %v1538_v53, %v1370_v51  ;;  %v1372_v59 = vpop.f32.mrf.mxu1 }
  0xea   : > { %v1373_v63 = vadd.f32 %v1372_v59, %v1203_v58 }
  0xeb   : > { %v1708_v62 = vadd.f32 %v1707_v54, %v1539_v57  ;;  %1242 = vmatmul.bf16.gmra.mxu0 %v2303_v55  ;;  %v3123_v4 = vpop.eup %3122  ;;  %v2343_v54 = vor.u32 %v2810_v42, %v2342_v41  ;;  %v2347_v55 = vor.u32 %v2808_v43, %v2344_v44 }
  0xec   : > { %1411 = vmatmul.bf16.gmra.mxu1 %v2307_v56 }
  0xed   : > { %3124 = vtanh.f32 %v1708_v62  ;;  %1580 = vmatmul.bf16.gmra.mxu2 %v2311_v60 }
  0xee   : > { %1749 = vmatmul.bf16.gmra.mxu3 %v2315_v61 }
  0xf0   : > { %v1541_v0 = vpop.f32.mrf.mxu2  ;;  %v1205_v2 = vpop.f32.mrf.mxu0 }
  0xf1   : > { %v1710_v1 = vpop.f32.mrf.mxu3  ;;  %v1374_v3 = vpop.f32.mrf.mxu1  ;;  %v1542_v7 = vadd.f32 %v1541_v0, %v1373_v63 }
  0xf2   : > { %v1375_v16 = vadd.f32 %v1374_v3, %v1205_v2  ;;  %v2350_v2 = vld [vmem:[%s3353_s15 + $0x1e0] sm:$0xf]  ;;  %v2813_v3 = vld [vmem:[%s3353_s15 + $0x1ec] sm:$0xf0] }
  0xf3   : > { %v3125_v5 = vpop.eup %3124  ;;  %v1711_v17 = vadd.f32 %v1710_v1, %v1542_v7  ;;  %v2814_v7 = vld [vmem:[%s3353_s15 + $0x1f4] sm:$0xf0]  ;;  %v2351_v14 = vor.u32 %v2813_v3, %v2350_v2  ;;  %v2820_v2 = vld [vmem:[%s3353_s15 + $0x22c] sm:$0xf]  ;;  %v2392_v3 = vld [vmem:[%s3353_s15 + $0x238] sm:$0xf0] }
  0xf4   : > { %v2929_v6 = vpack.c.bf16 %v3125_v5, %v3123_v4  ;;  %v2811_v4 = vld [vmem:[%s3353_s15 + $0x1e4] sm:$0xf]  ;;  %v2352_v5 = vld [vmem:[%s3353_s15 + $0x1f0] sm:$0xf0] }
  0xf5   : > { %3126 = vtanh.f32 %v1711_v17  ;;  %v2355_v15 = vor.u32 %v2811_v4, %v2352_v5 }
  0xf6   : > { %3073 = vst [vmem:[%s3457_s30 + $0x18] sm:$0xff] %v2929_v6   ;;  %v2358_v6 = vld [vmem:[%s3353_s15 + $0x1e8] sm:$0xf] }
  0xf8   : > { %v1543_v18 = vpop.f32.mrf.mxu2  ;;  %v1208_v23 = vpop.f32.mrf.mxu0 }
  0xf9   : > { %v1712_v19 = vpop.f32.mrf.mxu3  ;;  %v1544_v22 = vadd.f32 %v1543_v18, %v1375_v16  ;;  %v1377_v24 = vpop.f32.mrf.mxu1 }
  0xfa   : > { %v1378_v28 = vadd.f32 %v1377_v24, %v1208_v23 }
  0xfb   : > { %v1713_v27 = vadd.f32 %v1712_v19, %v1544_v22  ;;  %1247 = vmatmul.bf16.gmra.mxu0 %v2319_v20  ;;  %v3127_v33 = vpop.eup %3126  ;;  %v2359_v19 = vor.u32 %v2814_v7, %v2358_v6  ;;  %v2363_v20 = vor.u32 %v2812_v8, %v2360_v9 }
  0xfc   : > { %1416 = vmatmul.bf16.gmra.mxu1 %v2323_v21 }
  0xfd   : > { %3128 = vtanh.f32 %v1713_v27  ;;  %1585 = vmatmul.bf16.gmra.mxu2 %v2327_v25 }
  0xfe   : > { %1754 = vmatmul.bf16.gmra.mxu3 %v2331_v26 }
 0x100   : > { %v1546_v29 = vpop.f32.mrf.mxu2  ;;  %v1210_v31 = vpop.f32.mrf.mxu0 }
 0x101   : > { %v1715_v30 = vpop.f32.mrf.mxu3  ;;  %v1379_v32 = vpop.f32.mrf.mxu1  ;;  %v1547_v36 = vadd.f32 %v1546_v29, %v1378_v28 }
 0x102   : > { %v1380_v45 = vadd.f32 %v1379_v32, %v1210_v31  ;;  %v2366_v31 = vld [vmem:[%s3353_s15 + $0x200] sm:$0xf]  ;;  %v2817_v32 = vld [vmem:[%s3353_s15 + $0x20c] sm:$0xf0] }
 0x103   : > { %v3129_v34 = vpop.eup %3128  ;;  %v1716_v46 = vadd.f32 %v1715_v30, %v1547_v36  ;;  %v2818_v36 = vld [vmem:[%s3353_s15 + $0x214] sm:$0xf0]  ;;  %v2367_v43 = vor.u32 %v2817_v32, %v2366_v31  ;;  %v2824_v31 = vld [vmem:[%s3353_s15 + $0x24c] sm:$0xf]  ;;  %v2408_v32 = vld [vmem:[%s3353_s15 + $0x258] sm:$0xf0] }
 0x104   : > { %v2934_v35 = vpack.c.bf16 %v3129_v34, %v3127_v33  ;;  %v2815_v33 = vld [vmem:[%s3353_s15 + $0x204] sm:$0xf]  ;;  %v2368_v34 = vld [vmem:[%s3353_s15 + $0x210] sm:$0xf0] }
 0x105   : > { %3130 = vtanh.f32 %v1716_v46  ;;  %v2371_v44 = vor.u32 %v2815_v33, %v2368_v34 }
 0x106   : > { %3074 = vst [vmem:[%s3457_s30 + $0x20] sm:$0xff] %v2934_v35   ;;  %v2374_v35 = vld [vmem:[%s3353_s15 + $0x208] sm:$0xf] }
 0x108   : > { %v1548_v47 = vpop.f32.mrf.mxu2  ;;  %v1213_v52 = vpop.f32.mrf.mxu0 }
 0x109   : > { %v1717_v48 = vpop.f32.mrf.mxu3  ;;  %v1549_v51 = vadd.f32 %v1548_v47, %v1380_v45  ;;  %v1382_v53 = vpop.f32.mrf.mxu1 }
 0x10a   : > { %v1383_v57 = vadd.f32 %v1382_v53, %v1213_v52 }
 0x10b   : > { %v1718_v56 = vadd.f32 %v1717_v48, %v1549_v51  ;;  %1252 = vmatmul.bf16.gmra.mxu0 %v2335_v49  ;;  %v3131_v62 = vpop.eup %3130  ;;  %v2375_v48 = vor.u32 %v2818_v36, %v2374_v35  ;;  %v2379_v49 = vor.u32 %v2816_v37, %v2376_v38 }
 0x10c   : > { %1421 = vmatmul.bf16.gmra.mxu1 %v2339_v50 }
 0x10d   : > { %3132 = vtanh.f32 %v1718_v56  ;;  %1590 = vmatmul.bf16.gmra.mxu2 %v2343_v54 }
 0x10e   : > { %1759 = vmatmul.bf16.gmra.mxu3 %v2347_v55 }
 0x110   : > { %v1551_v58 = vpop.f32.mrf.mxu2  ;;  %v1215_v60 = vpop.f32.mrf.mxu0 }
 0x111   : > { %v1720_v59 = vpop.f32.mrf.mxu3  ;;  %v1384_v61 = vpop.f32.mrf.mxu1  ;;  %v1552_v1 = vadd.f32 %v1551_v58, %v1383_v57 }
 0x112   : > { %v1385_v10 = vadd.f32 %v1384_v61, %v1215_v60  ;;  %v2382_v60 = vld [vmem:[%s3353_s15 + $0x220] sm:$0xf]  ;;  %v2821_v61 = vld [vmem:[%s3353_s15 + $0x22c] sm:$0xf0] }
 0x113   : > { %v3133_v63 = vpop.eup %3132  ;;  %v1721_v11 = vadd.f32 %v1720_v59, %v1552_v1  ;;  %v2822_v1 = vld [vmem:[%s3353_s15 + $0x234] sm:$0xf0]  ;;  %v2383_v8 = vor.u32 %v2821_v61, %v2382_v60  ;;  %v2828_v60 = vld [vmem:[%s3353_s15 + $0x26c] sm:$0xf]  ;;  %v2424_v61 = vld [vmem:[%s3353_s15 + $0x278] sm:$0xf0] }
 0x114   : > { %v2939_v0 = vpack.c.bf16 %v3133_v63, %v3131_v62  ;;  %v2819_v62 = vld [vmem:[%s3353_s15 + $0x224] sm:$0xf]  ;;  %v2384_v63 = vld [vmem:[%s3353_s15 + $0x230] sm:$0xf0] }
 0x115   : > { %3134 = vtanh.f32 %v1721_v11  ;;  %v2387_v9 = vor.u32 %v2819_v62, %v2384_v63 }
 0x116   : > { %3075 = vst [vmem:[%s3457_s30 + $0x28] sm:$0xff] %v2939_v0   ;;  %v2390_v0 = vld [vmem:[%s3353_s15 + $0x228] sm:$0xf] }
 0x118   : > { %v1553_v12 = vpop.f32.mrf.mxu2  ;;  %v1218_v17 = vpop.f32.mrf.mxu0 }
 0x119   : > { %v1722_v13 = vpop.f32.mrf.mxu3  ;;  %v1554_v16 = vadd.f32 %v1553_v12, %v1385_v10  ;;  %v1387_v18 = vpop.f32.mrf.mxu1 }
 0x11a   : > { %v1388_v22 = vadd.f32 %v1387_v18, %v1218_v17 }
 0x11b   : > { %v1723_v21 = vadd.f32 %v1722_v13, %v1554_v16  ;;  %1257 = vmatmul.bf16.gmra.mxu0 %v2351_v14  ;;  %v3135_v27 = vpop.eup %3134  ;;  %v2391_v13 = vor.u32 %v2822_v1, %v2390_v0  ;;  %v2395_v14 = vor.u32 %v2820_v2, %v2392_v3 }
 0x11c   : > { %1426 = vmatmul.bf16.gmra.mxu1 %v2355_v15 }
 0x11d   : > { %3136 = vtanh.f32 %v1723_v21  ;;  %1595 = vmatmul.bf16.gmra.mxu2 %v2359_v19 }
 0x11e   : > { %1764 = vmatmul.bf16.gmra.mxu3 %v2363_v20 }
 0x120   : > { %v1556_v23 = vpop.f32.mrf.mxu2  ;;  %v1220_v25 = vpop.f32.mrf.mxu0 }
 0x121   : > { %v1725_v24 = vpop.f32.mrf.mxu3  ;;  %v1389_v26 = vpop.f32.mrf.mxu1  ;;  %v1557_v30 = vadd.f32 %v1556_v23, %v1388_v22 }
 0x122   : > { %v1390_v39 = vadd.f32 %v1389_v26, %v1220_v25  ;;  %v2398_v25 = vld [vmem:[%s3353_s15 + $0x240] sm:$0xf]  ;;  %v2825_v26 = vld [vmem:[%s3353_s15 + $0x24c] sm:$0xf0] }
 0x123   : > { %v3137_v28 = vpop.eup %3136  ;;  %v1726_v40 = vadd.f32 %v1725_v24, %v1557_v30  ;;  %v2826_v30 = vld [vmem:[%s3353_s15 + $0x254] sm:$0xf0]  ;;  %v2399_v37 = vor.u32 %v2825_v26, %v2398_v25  ;;  %v2832_v25 = vld [vmem:[%s3353_s15 + $0x28c] sm:$0xf]  ;;  %v2440_v26 = vld [vmem:[%s3353_s15 + $0x298] sm:$0xf0] }
 0x124   : > { %v2944_v29 = vpack.c.bf16 %v3137_v28, %v3135_v27  ;;  %v2823_v27 = vld [vmem:[%s3353_s15 + $0x244] sm:$0xf]  ;;  %v2400_v28 = vld [vmem:[%s3353_s15 + $0x250] sm:$0xf0] }
 0x125   : > { %3138 = vtanh.f32 %v1726_v40  ;;  %v2403_v38 = vor.u32 %v2823_v27, %v2400_v28 }
 0x126   : > { %3076 = vst [vmem:[%s3457_s30 + $0x30] sm:$0xff] %v2944_v29   ;;  %v2406_v29 = vld [vmem:[%s3353_s15 + $0x248] sm:$0xf] }
 0x128   : > { %v1558_v41 = vpop.f32.mrf.mxu2  ;;  %v1223_v46 = vpop.f32.mrf.mxu0 }
 0x129   : > { %v1727_v42 = vpop.f32.mrf.mxu3  ;;  %v1559_v45 = vadd.f32 %v1558_v41, %v1390_v39  ;;  %v1392_v47 = vpop.f32.mrf.mxu1 }
 0x12a   : > { %v1393_v51 = vadd.f32 %v1392_v47, %v1223_v46 }
 0x12b   : > { %v1728_v50 = vadd.f32 %v1727_v42, %v1559_v45  ;;  %1262 = vmatmul.bf16.gmra.mxu0 %v2367_v43  ;;  %v3139_v56 = vpop.eup %3138  ;;  %v2407_v42 = vor.u32 %v2826_v30, %v2406_v29  ;;  %v2411_v43 = vor.u32 %v2824_v31, %v2408_v32 }
 0x12c   : > { %1431 = vmatmul.bf16.gmra.mxu1 %v2371_v44 }
 0x12d   : > { %3140 = vtanh.f32 %v1728_v50  ;;  %1600 = vmatmul.bf16.gmra.mxu2 %v2375_v48 }
 0x12e   : > { %1769 = vmatmul.bf16.gmra.mxu3 %v2379_v49 }
 0x130   : > { %v1561_v52 = vpop.f32.mrf.mxu2  ;;  %v1225_v54 = vpop.f32.mrf.mxu0 }
 0x131   : > { %v1730_v53 = vpop.f32.mrf.mxu3  ;;  %v1394_v55 = vpop.f32.mrf.mxu1  ;;  %v1562_v59 = vadd.f32 %v1561_v52, %v1393_v51 }
 0x132   : > { %v1395_v4 = vadd.f32 %v1394_v55, %v1225_v54  ;;  %v2414_v54 = vld [vmem:[%s3353_s15 + $0x260] sm:$0xf]  ;;  %v2829_v55 = vld [vmem:[%s3353_s15 + $0x26c] sm:$0xf0] }
 0x133   : > { %v3141_v57 = vpop.eup %3140  ;;  %v1731_v5 = vadd.f32 %v1730_v53, %v1562_v59  ;;  %v2830_v59 = vld [vmem:[%s3353_s15 + $0x274] sm:$0xf0]  ;;  %v2415_v2 = vor.u32 %v2829_v55, %v2414_v54  ;;  %v2836_v54 = vld [vmem:[%s3353_s15 + $0x2ac] sm:$0xf]  ;;  %v2456_v55 = vld [vmem:[%s3353_s15 + $0x2b8] sm:$0xf0] }
 0x134   : > { %v2949_v58 = vpack.c.bf16 %v3141_v57, %v3139_v56  ;;  %v2827_v56 = vld [vmem:[%s3353_s15 + $0x264] sm:$0xf]  ;;  %v2416_v57 = vld [vmem:[%s3353_s15 + $0x270] sm:$0xf0] }
 0x135   : > { %3142 = vtanh.f32 %v1731_v5  ;;  %v2419_v3 = vor.u32 %v2827_v56, %v2416_v57 }
 0x136   : > { %3077 = vst [vmem:[%s3457_s30 + $0x38] sm:$0xff] %v2949_v58   ;;  %v2422_v58 = vld [vmem:[%s3353_s15 + $0x268] sm:$0xf] }
 0x138   : > { %v1563_v6 = vpop.f32.mrf.mxu2  ;;  %v1228_v11 = vpop.f32.mrf.mxu0 }
 0x139   : > { %v1732_v7 = vpop.f32.mrf.mxu3  ;;  %v1564_v10 = vadd.f32 %v1563_v6, %v1395_v4  ;;  %v1397_v12 = vpop.f32.mrf.mxu1 }
 0x13a   : > { %v1398_v16 = vadd.f32 %v1397_v12, %v1228_v11 }
 0x13b   : > { %v1733_v15 = vadd.f32 %v1732_v7, %v1564_v10  ;;  %1267 = vmatmul.bf16.gmra.mxu0 %v2383_v8  ;;  %v3143_v21 = vpop.eup %3142  ;;  %v2423_v7 = vor.u32 %v2830_v59, %v2422_v58  ;;  %v2427_v8 = vor.u32 %v2828_v60, %v2424_v61 }
 0x13c   : > { %1436 = vmatmul.bf16.gmra.mxu1 %v2387_v9 }
 0x13d   : > { %3144 = vtanh.f32 %v1733_v15  ;;  %1605 = vmatmul.bf16.gmra.mxu2 %v2391_v13 }
 0x13e   : > { %1774 = vmatmul.bf16.gmra.mxu3 %v2395_v14 }
 0x140   : > { %v1566_v17 = vpop.f32.mrf.mxu2  ;;  %v1230_v19 = vpop.f32.mrf.mxu0 }
 0x141   : > { %v1735_v18 = vpop.f32.mrf.mxu3  ;;  %v1399_v20 = vpop.f32.mrf.mxu1  ;;  %v1567_v24 = vadd.f32 %v1566_v17, %v1398_v16 }
 0x142   : > { %v1400_v33 = vadd.f32 %v1399_v20, %v1230_v19  ;;  %v2430_v19 = vld [vmem:[%s3353_s15 + $0x280] sm:$0xf]  ;;  %v2833_v20 = vld [vmem:[%s3353_s15 + $0x28c] sm:$0xf0] }
 0x143   : > { %v3145_v22 = vpop.eup %3144  ;;  %v1736_v34 = vadd.f32 %v1735_v18, %v1567_v24  ;;  %v2834_v24 = vld [vmem:[%s3353_s15 + $0x294] sm:$0xf0]  ;;  %v2431_v31 = vor.u32 %v2833_v20, %v2430_v19  ;;  %v2840_v19 = vld [vmem:[%s3353_s15 + $0x2cc] sm:$0xf]  ;;  %v2472_v20 = vld [vmem:[%s3353_s15 + $0x2d8] sm:$0xf0] }
 0x144   : > { %v2954_v23 = vpack.c.bf16 %v3145_v22, %v3143_v21  ;;  %v2831_v21 = vld [vmem:[%s3353_s15 + $0x284] sm:$0xf]  ;;  %v2432_v22 = vld [vmem:[%s3353_s15 + $0x290] sm:$0xf0] }
 0x145   : > { %3146 = vtanh.f32 %v1736_v34  ;;  %v2435_v32 = vor.u32 %v2831_v21, %v2432_v22 }
 0x146   : > { %3078 = vst [vmem:[%s3457_s30 + $0x40] sm:$0xff] %v2954_v23   ;;  %v2438_v23 = vld [vmem:[%s3353_s15 + $0x288] sm:$0xf] }
 0x148   : > { %v1568_v35 = vpop.f32.mrf.mxu2  ;;  %v1233_v40 = vpop.f32.mrf.mxu0 }
 0x149   : > { %v1737_v36 = vpop.f32.mrf.mxu3  ;;  %v1569_v39 = vadd.f32 %v1568_v35, %v1400_v33  ;;  %v1402_v41 = vpop.f32.mrf.mxu1 }
 0x14a   : > { %v1403_v45 = vadd.f32 %v1402_v41, %v1233_v40 }
 0x14b   : > { %v1738_v44 = vadd.f32 %v1737_v36, %v1569_v39  ;;  %1272 = vmatmul.bf16.gmra.mxu0 %v2399_v37  ;;  %v3147_v50 = vpop.eup %3146  ;;  %v2439_v36 = vor.u32 %v2834_v24, %v2438_v23  ;;  %v2443_v37 = vor.u32 %v2832_v25, %v2440_v26 }
 0x14c   : > { %1441 = vmatmul.bf16.gmra.mxu1 %v2403_v38 }
 0x14d   : > { %3148 = vtanh.f32 %v1738_v44  ;;  %1610 = vmatmul.bf16.gmra.mxu2 %v2407_v42 }
 0x14e   : > { %1779 = vmatmul.bf16.gmra.mxu3 %v2411_v43 }
 0x150   : > { %v1571_v46 = vpop.f32.mrf.mxu2  ;;  %v1235_v48 = vpop.f32.mrf.mxu0 }
 0x151   : > { %v1740_v47 = vpop.f32.mrf.mxu3  ;;  %v1404_v49 = vpop.f32.mrf.mxu1  ;;  %v1572_v53 = vadd.f32 %v1571_v46, %v1403_v45 }
 0x152   : > { %v1405_v62 = vadd.f32 %v1404_v49, %v1235_v48  ;;  %v2446_v48 = vld [vmem:[%s3353_s15 + $0x2a0] sm:$0xf]  ;;  %v2837_v49 = vld [vmem:[%s3353_s15 + $0x2ac] sm:$0xf0] }
 0x153   : > { %v3149_v51 = vpop.eup %3148  ;;  %v1741_v63 = vadd.f32 %v1740_v47, %v1572_v53  ;;  %v2838_v53 = vld [vmem:[%s3353_s15 + $0x2b4] sm:$0xf0]  ;;  %v2447_v60 = vor.u32 %v2837_v49, %v2446_v48  ;;  %v2844_v48 = vld [vmem:[%s3353_s15 + $0x2ec] sm:$0xf]  ;;  %v2488_v49 = vld [vmem:[%s3353_s15 + $0x2f8] sm:$0xf0] }
 0x154   : > { %v2959_v52 = vpack.c.bf16 %v3149_v51, %v3147_v50  ;;  %v2835_v50 = vld [vmem:[%s3353_s15 + $0x2a4] sm:$0xf]  ;;  %v2448_v51 = vld [vmem:[%s3353_s15 + $0x2b0] sm:$0xf0] }
 0x155   : > { %3150 = vtanh.f32 %v1741_v63  ;;  %v2451_v61 = vor.u32 %v2835_v50, %v2448_v51 }
 0x156   : > { %3079 = vst [vmem:[%s3457_s30 + $0x48] sm:$0xff] %v2959_v52   ;;  %v2454_v52 = vld [vmem:[%s3353_s15 + $0x2a8] sm:$0xf] }
 0x158   : > { %v1573_v0 = vpop.f32.mrf.mxu2  ;;  %v1238_v5 = vpop.f32.mrf.mxu0 }
 0x159   : > { %v1742_v1 = vpop.f32.mrf.mxu3  ;;  %v1574_v4 = vadd.f32 %v1573_v0, %v1405_v62  ;;  %v1407_v6 = vpop.f32.mrf.mxu1 }
 0x15a   : > { %v1408_v10 = vadd.f32 %v1407_v6, %v1238_v5 }
 0x15b   : > { %v1743_v9 = vadd.f32 %v1742_v1, %v1574_v4  ;;  %1277 = vmatmul.bf16.gmra.mxu0 %v2415_v2  ;;  %v3151_v15 = vpop.eup %3150  ;;  %v2455_v1 = vor.u32 %v2838_v53, %v2454_v52  ;;  %v2459_v2 = vor.u32 %v2836_v54, %v2456_v55 }
 0x15c   : > { %1446 = vmatmul.bf16.gmra.mxu1 %v2419_v3 }
 0x15d   : > { %3152 = vtanh.f32 %v1743_v9  ;;  %1615 = vmatmul.bf16.gmra.mxu2 %v2423_v7 }
 0x15e   : > { %1784 = vmatmul.bf16.gmra.mxu3 %v2427_v8 }
 0x160   : > { %v1576_v11 = vpop.f32.mrf.mxu2  ;;  %v1240_v13 = vpop.f32.mrf.mxu0 }
 0x161   : > { %v1745_v12 = vpop.f32.mrf.mxu3  ;;  %v1409_v14 = vpop.f32.mrf.mxu1  ;;  %v1577_v18 = vadd.f32 %v1576_v11, %v1408_v10 }
 0x162   : > { %v1410_v27 = vadd.f32 %v1409_v14, %v1240_v13  ;;  %v2462_v13 = vld [vmem:[%s3353_s15 + $0x2c0] sm:$0xf]  ;;  %v2841_v14 = vld [vmem:[%s3353_s15 + $0x2cc] sm:$0xf0] }
 0x163   : > { %v3153_v16 = vpop.eup %3152  ;;  %v1746_v28 = vadd.f32 %v1745_v12, %v1577_v18  ;;  %v2842_v18 = vld [vmem:[%s3353_s15 + $0x2d4] sm:$0xf0]  ;;  %v2463_v25 = vor.u32 %v2841_v14, %v2462_v13  ;;  %v2848_v13 = vld [vmem:[%s3353_s15 + $0x30c] sm:$0xf]  ;;  %v2504_v14 = vld [vmem:[%s3353_s15 + $0x318] sm:$0xf0] }
 0x164   : > { %v2964_v17 = vpack.c.bf16 %v3153_v16, %v3151_v15  ;;  %v2839_v15 = vld [vmem:[%s3353_s15 + $0x2c4] sm:$0xf]  ;;  %v2464_v16 = vld [vmem:[%s3353_s15 + $0x2d0] sm:$0xf0] }
 0x165   : > { %3154 = vtanh.f32 %v1746_v28  ;;  %v2467_v26 = vor.u32 %v2839_v15, %v2464_v16 }
 0x166   : > { %3080 = vst [vmem:[%s3457_s30 + $0x50] sm:$0xff] %v2964_v17   ;;  %v2470_v17 = vld [vmem:[%s3353_s15 + $0x2c8] sm:$0xf] }
 0x168   : > { %v1578_v29 = vpop.f32.mrf.mxu2  ;;  %v1243_v34 = vpop.f32.mrf.mxu0 }
 0x169   : > { %v1747_v30 = vpop.f32.mrf.mxu3  ;;  %v1579_v33 = vadd.f32 %v1578_v29, %v1410_v27  ;;  %v1412_v35 = vpop.f32.mrf.mxu1 }
 0x16a   : > { %v1413_v39 = vadd.f32 %v1412_v35, %v1243_v34 }
 0x16b   : > { %v1748_v38 = vadd.f32 %v1747_v30, %v1579_v33  ;;  %1282 = vmatmul.bf16.gmra.mxu0 %v2431_v31  ;;  %v3155_v44 = vpop.eup %3154  ;;  %v2471_v30 = vor.u32 %v2842_v18, %v2470_v17  ;;  %v2475_v31 = vor.u32 %v2840_v19, %v2472_v20 }
 0x16c   : > { %1451 = vmatmul.bf16.gmra.mxu1 %v2435_v32 }
 0x16d   : > { %3156 = vtanh.f32 %v1748_v38  ;;  %1620 = vmatmul.bf16.gmra.mxu2 %v2439_v36 }
 0x16e   : > { %1789 = vmatmul.bf16.gmra.mxu3 %v2443_v37 }
 0x170   : > { %v1581_v40 = vpop.f32.mrf.mxu2  ;;  %v1245_v42 = vpop.f32.mrf.mxu0 }
 0x171   : > { %v1750_v41 = vpop.f32.mrf.mxu3  ;;  %v1414_v43 = vpop.f32.mrf.mxu1  ;;  %v1582_v47 = vadd.f32 %v1581_v40, %v1413_v39 }
 0x172   : > { %v1415_v56 = vadd.f32 %v1414_v43, %v1245_v42  ;;  %v2478_v42 = vld [vmem:[%s3353_s15 + $0x2e0] sm:$0xf]  ;;  %v2845_v43 = vld [vmem:[%s3353_s15 + $0x2ec] sm:$0xf0] }
 0x173   : > { %v3157_v45 = vpop.eup %3156  ;;  %v1751_v57 = vadd.f32 %v1750_v41, %v1582_v47  ;;  %v2846_v47 = vld [vmem:[%s3353_s15 + $0x2f4] sm:$0xf0]  ;;  %v2479_v54 = vor.u32 %v2845_v43, %v2478_v42  ;;  %v2852_v42 = vld [vmem:[%s3353_s15 + $0x32c] sm:$0xf]  ;;  %v2520_v43 = vld [vmem:[%s3353_s15 + $0x338] sm:$0xf0] }
 0x174   : > { %v2969_v46 = vpack.c.bf16 %v3157_v45, %v3155_v44  ;;  %v2843_v44 = vld [vmem:[%s3353_s15 + $0x2e4] sm:$0xf]  ;;  %v2480_v45 = vld [vmem:[%s3353_s15 + $0x2f0] sm:$0xf0] }
 0x175   : > { %3158 = vtanh.f32 %v1751_v57  ;;  %v2483_v55 = vor.u32 %v2843_v44, %v2480_v45 }
 0x176   : > { %3081 = vst [vmem:[%s3457_s30 + $0x58] sm:$0xff] %v2969_v46   ;;  %v2486_v46 = vld [vmem:[%s3353_s15 + $0x2e8] sm:$0xf] }
 0x178   : > { %v1583_v58 = vpop.f32.mrf.mxu2  ;;  %v1248_v63 = vpop.f32.mrf.mxu0 }
 0x179   : > { %v1752_v59 = vpop.f32.mrf.mxu3  ;;  %v1584_v62 = vadd.f32 %v1583_v58, %v1415_v56  ;;  %v1417_v0 = vpop.f32.mrf.mxu1 }
 0x17a   : > { %v1418_v4 = vadd.f32 %v1417_v0, %v1248_v63 }
 0x17b   : > { %v1753_v3 = vadd.f32 %v1752_v59, %v1584_v62  ;;  %1287 = vmatmul.bf16.gmra.mxu0 %v2447_v60  ;;  %v3159_v9 = vpop.eup %3158  ;;  %v2487_v59 = vor.u32 %v2846_v47, %v2486_v46  ;;  %v2491_v60 = vor.u32 %v2844_v48, %v2488_v49 }
 0x17c   : > { %1456 = vmatmul.bf16.gmra.mxu1 %v2451_v61 }
 0x17d   : > { %3160 = vtanh.f32 %v1753_v3  ;;  %1625 = vmatmul.bf16.gmra.mxu2 %v2455_v1 }
 0x17e   : > { %1794 = vmatmul.bf16.gmra.mxu3 %v2459_v2 }
 0x180   : > { %v1586_v5 = vpop.f32.mrf.mxu2  ;;  %v1250_v7 = vpop.f32.mrf.mxu0 }
 0x181   : > { %v1755_v6 = vpop.f32.mrf.mxu3  ;;  %v1419_v8 = vpop.f32.mrf.mxu1  ;;  %v1587_v12 = vadd.f32 %v1586_v5, %v1418_v4 }
 0x182   : > { %v1420_v21 = vadd.f32 %v1419_v8, %v1250_v7  ;;  %v2494_v7 = vld [vmem:[%s3353_s15 + $0x300] sm:$0xf]  ;;  %v2849_v8 = vld [vmem:[%s3353_s15 + $0x30c] sm:$0xf0] }
 0x183   : > { %v3161_v10 = vpop.eup %3160  ;;  %v1756_v22 = vadd.f32 %v1755_v6, %v1587_v12  ;;  %v2850_v12 = vld [vmem:[%s3353_s15 + $0x314] sm:$0xf0]  ;;  %v2495_v19 = vor.u32 %v2849_v8, %v2494_v7  ;;  %v2856_v7 = vld [vmem:[%s3353_s15 + $0x34c] sm:$0xf]  ;;  %v2536_v8 = vld [vmem:[%s3353_s15 + $0x358] sm:$0xf0] }
 0x184   : > { %v2974_v11 = vpack.c.bf16 %v3161_v10, %v3159_v9  ;;  %v2847_v9 = vld [vmem:[%s3353_s15 + $0x304] sm:$0xf]  ;;  %v2496_v10 = vld [vmem:[%s3353_s15 + $0x310] sm:$0xf0] }
 0x185   : > { %3162 = vtanh.f32 %v1756_v22  ;;  %v2499_v20 = vor.u32 %v2847_v9, %v2496_v10 }
 0x186   : > { %3082 = vst [vmem:[%s3457_s30 + $0x60] sm:$0xff] %v2974_v11   ;;  %v2502_v11 = vld [vmem:[%s3353_s15 + $0x308] sm:$0xf] }
 0x188   : > { %v1588_v23 = vpop.f32.mrf.mxu2  ;;  %v1253_v28 = vpop.f32.mrf.mxu0 }
 0x189   : > { %v1757_v24 = vpop.f32.mrf.mxu3  ;;  %v1589_v27 = vadd.f32 %v1588_v23, %v1420_v21  ;;  %v1422_v29 = vpop.f32.mrf.mxu1 }
 0x18a   : > { %v1423_v33 = vadd.f32 %v1422_v29, %v1253_v28 }
 0x18b   : > { %v1758_v32 = vadd.f32 %v1757_v24, %v1589_v27  ;;  %1292 = vmatmul.bf16.gmra.mxu0 %v2463_v25  ;;  %v3163_v38 = vpop.eup %3162  ;;  %v2503_v24 = vor.u32 %v2850_v12, %v2502_v11  ;;  %v2507_v25 = vor.u32 %v2848_v13, %v2504_v14 }
 0x18c   : > { %1461 = vmatmul.bf16.gmra.mxu1 %v2467_v26 }
 0x18d   : > { %3164 = vtanh.f32 %v1758_v32  ;;  %1630 = vmatmul.bf16.gmra.mxu2 %v2471_v30 }
 0x18e   : > { %1799 = vmatmul.bf16.gmra.mxu3 %v2475_v31 }
 0x190   : > { %v1591_v34 = vpop.f32.mrf.mxu2  ;;  %v1255_v36 = vpop.f32.mrf.mxu0 }
 0x191   : > { %v1760_v35 = vpop.f32.mrf.mxu3  ;;  %v1424_v37 = vpop.f32.mrf.mxu1  ;;  %v1592_v41 = vadd.f32 %v1591_v34, %v1423_v33 }
 0x192   : > { %v1425_v50 = vadd.f32 %v1424_v37, %v1255_v36  ;;  %v2510_v36 = vld [vmem:[%s3353_s15 + $0x320] sm:$0xf]  ;;  %v2853_v37 = vld [vmem:[%s3353_s15 + $0x32c] sm:$0xf0] }
 0x193   : > { %v3165_v39 = vpop.eup %3164  ;;  %v1761_v51 = vadd.f32 %v1760_v35, %v1592_v41  ;;  %v2854_v41 = vld [vmem:[%s3353_s15 + $0x334] sm:$0xf0]  ;;  %v2511_v48 = vor.u32 %v2853_v37, %v2510_v36  ;;  %v2860_v36 = vld [vmem:[%s3353_s15 + $0x36c] sm:$0xf]  ;;  %v2552_v37 = vld [vmem:[%s3353_s15 + $0x378] sm:$0xf0] }
 0x194   : > { %v2979_v40 = vpack.c.bf16 %v3165_v39, %v3163_v38  ;;  %v2851_v38 = vld [vmem:[%s3353_s15 + $0x324] sm:$0xf]  ;;  %v2512_v39 = vld [vmem:[%s3353_s15 + $0x330] sm:$0xf0] }
 0x195   : > { %3166 = vtanh.f32 %v1761_v51  ;;  %v2515_v49 = vor.u32 %v2851_v38, %v2512_v39 }
 0x196   : > { %3083 = vst [vmem:[%s3457_s30 + $0x68] sm:$0xff] %v2979_v40   ;;  %v2518_v40 = vld [vmem:[%s3353_s15 + $0x328] sm:$0xf] }
 0x198   : > { %v1593_v52 = vpop.f32.mrf.mxu2  ;;  %v1258_v57 = vpop.f32.mrf.mxu0 }
 0x199   : > { %v1762_v53 = vpop.f32.mrf.mxu3  ;;  %v1594_v56 = vadd.f32 %v1593_v52, %v1425_v50  ;;  %v1427_v58 = vpop.f32.mrf.mxu1 }
 0x19a   : > { %v1428_v62 = vadd.f32 %v1427_v58, %v1258_v57 }
 0x19b   : > { %v1763_v61 = vadd.f32 %v1762_v53, %v1594_v56  ;;  %1297 = vmatmul.bf16.gmra.mxu0 %v2479_v54  ;;  %v3167_v3 = vpop.eup %3166  ;;  %v2519_v53 = vor.u32 %v2854_v41, %v2518_v40  ;;  %v2523_v54 = vor.u32 %v2852_v42, %v2520_v43 }
 0x19c   : > { %1466 = vmatmul.bf16.gmra.mxu1 %v2483_v55 }
 0x19d   : > { %3168 = vtanh.f32 %v1763_v61  ;;  %1635 = vmatmul.bf16.gmra.mxu2 %v2487_v59 }
 0x19e   : > { %1804 = vmatmul.bf16.gmra.mxu3 %v2491_v60 }
 0x1a0   : > { %v1596_v63 = vpop.f32.mrf.mxu2  ;;  %v1260_v1 = vpop.f32.mrf.mxu0 }
 0x1a1   : > { %v1765_v0 = vpop.f32.mrf.mxu3  ;;  %v1429_v2 = vpop.f32.mrf.mxu1  ;;  %v1597_v6 = vadd.f32 %v1596_v63, %v1428_v62 }
 0x1a2   : > { %v1430_v15 = vadd.f32 %v1429_v2, %v1260_v1  ;;  %v2526_v1 = vld [vmem:[%s3353_s15 + $0x340] sm:$0xf]  ;;  %v2857_v2 = vld [vmem:[%s3353_s15 + $0x34c] sm:$0xf0] }
 0x1a3   : > { %v3169_v4 = vpop.eup %3168  ;;  %v1766_v16 = vadd.f32 %v1765_v0, %v1597_v6  ;;  %v2858_v6 = vld [vmem:[%s3353_s15 + $0x354] sm:$0xf0]  ;;  %v2527_v13 = vor.u32 %v2857_v2, %v2526_v1  ;;  %v2864_v1 = vld [vmem:[%s3353_s15 + $0x38c] sm:$0xf]  ;;  %v2568_v2 = vld [vmem:[%s3353_s15 + $0x398] sm:$0xf0] }
 0x1a4   : > { %v2984_v5 = vpack.c.bf16 %v3169_v4, %v3167_v3  ;;  %v2855_v3 = vld [vmem:[%s3353_s15 + $0x344] sm:$0xf]  ;;  %v2528_v4 = vld [vmem:[%s3353_s15 + $0x350] sm:$0xf0] }
 0x1a5   : > { %3170 = vtanh.f32 %v1766_v16  ;;  %v2531_v14 = vor.u32 %v2855_v3, %v2528_v4 }
 0x1a6   : > { %3084 = vst [vmem:[%s3457_s30 + $0x70] sm:$0xff] %v2984_v5   ;;  %v2534_v5 = vld [vmem:[%s3353_s15 + $0x348] sm:$0xf] }
 0x1a8   : > { %v1598_v17 = vpop.f32.mrf.mxu2  ;;  %v1263_v22 = vpop.f32.mrf.mxu0 }
 0x1a9   : > { %v1767_v18 = vpop.f32.mrf.mxu3  ;;  %v1599_v21 = vadd.f32 %v1598_v17, %v1430_v15  ;;  %v1432_v23 = vpop.f32.mrf.mxu1 }
 0x1aa   : > { %v1433_v27 = vadd.f32 %v1432_v23, %v1263_v22 }
 0x1ab   : > { %v1768_v26 = vadd.f32 %v1767_v18, %v1599_v21  ;;  %1302 = vmatmul.bf16.gmra.mxu0 %v2495_v19  ;;  %v3171_v32 = vpop.eup %3170  ;;  %v2535_v18 = vor.u32 %v2858_v6, %v2534_v5  ;;  %v2539_v19 = vor.u32 %v2856_v7, %v2536_v8 }
 0x1ac   : > { %1471 = vmatmul.bf16.gmra.mxu1 %v2499_v20 }
 0x1ad   : > { %3172 = vtanh.f32 %v1768_v26  ;;  %1640 = vmatmul.bf16.gmra.mxu2 %v2503_v24 }
 0x1ae   : > { %1809 = vmatmul.bf16.gmra.mxu3 %v2507_v25 }
 0x1b0   : > { %v1601_v28 = vpop.f32.mrf.mxu2  ;;  %v1265_v30 = vpop.f32.mrf.mxu0 }
 0x1b1   : > { %v1770_v29 = vpop.f32.mrf.mxu3  ;;  %v1434_v31 = vpop.f32.mrf.mxu1  ;;  %v1602_v35 = vadd.f32 %v1601_v28, %v1433_v27 }
 0x1b2   : > { %v1435_v44 = vadd.f32 %v1434_v31, %v1265_v30  ;;  %v2542_v30 = vld [vmem:[%s3353_s15 + $0x360] sm:$0xf]  ;;  %v2861_v31 = vld [vmem:[%s3353_s15 + $0x36c] sm:$0xf0] }
 0x1b3   : > { %v3173_v33 = vpop.eup %3172  ;;  %v1771_v45 = vadd.f32 %v1770_v29, %v1602_v35  ;;  %v2862_v35 = vld [vmem:[%s3353_s15 + $0x374] sm:$0xf0]  ;;  %v2543_v42 = vor.u32 %v2861_v31, %v2542_v30  ;;  %v2868_v30 = vld [vmem:[%s3353_s15 + $0x3ac] sm:$0xf]  ;;  %v2584_v31 = vld [vmem:[%s3353_s15 + $0x3b8] sm:$0xf0] }
 0x1b4   : > { %v2989_v34 = vpack.c.bf16 %v3173_v33, %v3171_v32  ;;  %v2859_v32 = vld [vmem:[%s3353_s15 + $0x364] sm:$0xf]  ;;  %v2544_v33 = vld [vmem:[%s3353_s15 + $0x370] sm:$0xf0] }
 0x1b5   : > { %3174 = vtanh.f32 %v1771_v45  ;;  %v2547_v43 = vor.u32 %v2859_v32, %v2544_v33 }
 0x1b6   : > { %3085 = vst [vmem:[%s3457_s30 + $0x78] sm:$0xff] %v2989_v34   ;;  %v2550_v34 = vld [vmem:[%s3353_s15 + $0x368] sm:$0xf] }
 0x1b8   : > { %v1603_v46 = vpop.f32.mrf.mxu2  ;;  %v1268_v51 = vpop.f32.mrf.mxu0 }
 0x1b9   : > { %v1772_v47 = vpop.f32.mrf.mxu3  ;;  %v1604_v50 = vadd.f32 %v1603_v46, %v1435_v44  ;;  %v1437_v52 = vpop.f32.mrf.mxu1 }
 0x1ba   : > { %v1438_v56 = vadd.f32 %v1437_v52, %v1268_v51 }
 0x1bb   : > { %v1773_v55 = vadd.f32 %v1772_v47, %v1604_v50  ;;  %1307 = vmatmul.bf16.gmra.mxu0 %v2511_v48  ;;  %v3175_v61 = vpop.eup %3174  ;;  %v2551_v47 = vor.u32 %v2862_v35, %v2550_v34  ;;  %v2555_v48 = vor.u32 %v2860_v36, %v2552_v37 }
 0x1bc   : > { %1476 = vmatmul.bf16.gmra.mxu1 %v2515_v49 }
 0x1bd   : > { %3176 = vtanh.f32 %v1773_v55  ;;  %1645 = vmatmul.bf16.gmra.mxu2 %v2519_v53 }
 0x1be   : > { %1814 = vmatmul.bf16.gmra.mxu3 %v2523_v54 }
 0x1c0   : > { %v1606_v57 = vpop.f32.mrf.mxu2  ;;  %v1270_v59 = vpop.f32.mrf.mxu0 }
 0x1c1   : > { %v1775_v58 = vpop.f32.mrf.mxu3  ;;  %v1439_v60 = vpop.f32.mrf.mxu1  ;;  %v1607_v0 = vadd.f32 %v1606_v57, %v1438_v56 }
 0x1c2   : > { %v1440_v9 = vadd.f32 %v1439_v60, %v1270_v59  ;;  %v2558_v59 = vld [vmem:[%s3353_s15 + $0x380] sm:$0xf]  ;;  %v2865_v60 = vld [vmem:[%s3353_s15 + $0x38c] sm:$0xf0] }
 0x1c3   : > { %v3177_v62 = vpop.eup %3176  ;;  %v1776_v10 = vadd.f32 %v1775_v58, %v1607_v0  ;;  %v2866_v0 = vld [vmem:[%s3353_s15 + $0x394] sm:$0xf0]  ;;  %v2559_v7 = vor.u32 %v2865_v60, %v2558_v59  ;;  %v2872_v59 = vld [vmem:[%s3353_s15 + $0x3cc] sm:$0xf]  ;;  %v2600_v60 = vld [vmem:[%s3353_s15 + $0x3d8] sm:$0xf0] }
 0x1c4   : > { %v2994_v63 = vpack.c.bf16 %v3177_v62, %v3175_v61  ;;  %v2863_v61 = vld [vmem:[%s3353_s15 + $0x384] sm:$0xf]  ;;  %v2560_v62 = vld [vmem:[%s3353_s15 + $0x390] sm:$0xf0] }
 0x1c5   : > { %3178 = vtanh.f32 %v1776_v10  ;;  %v2563_v8 = vor.u32 %v2863_v61, %v2560_v62 }
 0x1c6   : > { %3086 = vst [vmem:[%s3457_s30 + $0x80] sm:$0xff] %v2994_v63   ;;  %v2566_v63 = vld [vmem:[%s3353_s15 + $0x388] sm:$0xf] }
 0x1c8   : > { %v1608_v11 = vpop.f32.mrf.mxu2  ;;  %v1273_v16 = vpop.f32.mrf.mxu0 }
 0x1c9   : > { %v1777_v12 = vpop.f32.mrf.mxu3  ;;  %v1609_v15 = vadd.f32 %v1608_v11, %v1440_v9  ;;  %v1442_v17 = vpop.f32.mrf.mxu1 }
 0x1ca   : > { %v1443_v21 = vadd.f32 %v1442_v17, %v1273_v16 }
 0x1cb   : > { %v1778_v20 = vadd.f32 %v1777_v12, %v1609_v15  ;;  %1312 = vmatmul.bf16.gmra.mxu0 %v2527_v13  ;;  %v3179_v26 = vpop.eup %3178  ;;  %v2567_v12 = vor.u32 %v2866_v0, %v2566_v63  ;;  %v2571_v13 = vor.u32 %v2864_v1, %v2568_v2 }
 0x1cc   : > { %1481 = vmatmul.bf16.gmra.mxu1 %v2531_v14 }
 0x1cd   : > { %3180 = vtanh.f32 %v1778_v20  ;;  %1650 = vmatmul.bf16.gmra.mxu2 %v2535_v18 }
 0x1ce   : > { %1819 = vmatmul.bf16.gmra.mxu3 %v2539_v19 }
 0x1d0   : > { %v1611_v22 = vpop.f32.mrf.mxu2  ;;  %v1275_v24 = vpop.f32.mrf.mxu0 }
 0x1d1   : > { %v1780_v23 = vpop.f32.mrf.mxu3  ;;  %v1444_v25 = vpop.f32.mrf.mxu1  ;;  %v1612_v29 = vadd.f32 %v1611_v22, %v1443_v21 }
 0x1d2   : > { %v1445_v38 = vadd.f32 %v1444_v25, %v1275_v24  ;;  %v2574_v24 = vld [vmem:[%s3353_s15 + $0x3a0] sm:$0xf]  ;;  %v2869_v25 = vld [vmem:[%s3353_s15 + $0x3ac] sm:$0xf0] }
 0x1d3   : > { %v3181_v27 = vpop.eup %3180  ;;  %v1781_v39 = vadd.f32 %v1780_v23, %v1612_v29  ;;  %v2870_v29 = vld [vmem:[%s3353_s15 + $0x3b4] sm:$0xf0]  ;;  %v2575_v36 = vor.u32 %v2869_v25, %v2574_v24  ;;  %v2876_v24 = vld [vmem:[%s3353_s15 + $0x3ec] sm:$0xf]  ;;  %v2616_v25 = vld [vmem:[%s3353_s15 + $0x3f8] sm:$0xf0] }
 0x1d4   : > { %v2999_v28 = vpack.c.bf16 %v3181_v27, %v3179_v26  ;;  %v2867_v26 = vld [vmem:[%s3353_s15 + $0x3a4] sm:$0xf]  ;;  %v2576_v27 = vld [vmem:[%s3353_s15 + $0x3b0] sm:$0xf0] }
 0x1d5   : > { %3182 = vtanh.f32 %v1781_v39  ;;  %v2579_v37 = vor.u32 %v2867_v26, %v2576_v27 }
 0x1d6   : > { %3087 = vst [vmem:[%s3457_s30 + $0x88] sm:$0xff] %v2999_v28   ;;  %v2582_v28 = vld [vmem:[%s3353_s15 + $0x3a8] sm:$0xf] }
 0x1d8   : > { %v1613_v40 = vpop.f32.mrf.mxu2  ;;  %v1278_v45 = vpop.f32.mrf.mxu0 }
 0x1d9   : > { %v1782_v41 = vpop.f32.mrf.mxu3  ;;  %v1614_v44 = vadd.f32 %v1613_v40, %v1445_v38  ;;  %v1447_v46 = vpop.f32.mrf.mxu1 }
 0x1da   : > { %v1448_v50 = vadd.f32 %v1447_v46, %v1278_v45 }
 0x1db   : > { %v1783_v49 = vadd.f32 %v1782_v41, %v1614_v44  ;;  %1317 = vmatmul.bf16.gmra.mxu0 %v2543_v42  ;;  %v3183_v55 = vpop.eup %3182  ;;  %v2583_v41 = vor.u32 %v2870_v29, %v2582_v28  ;;  %v2587_v42 = vor.u32 %v2868_v30, %v2584_v31 }
 0x1dc   : > { %1486 = vmatmul.bf16.gmra.mxu1 %v2547_v43 }
 0x1dd   : > { %3184 = vtanh.f32 %v1783_v49  ;;  %1655 = vmatmul.bf16.gmra.mxu2 %v2551_v47 }
 0x1de   : > { %1824 = vmatmul.bf16.gmra.mxu3 %v2555_v48 }
 0x1e0   : > { %v1616_v51 = vpop.f32.mrf.mxu2  ;;  %v1280_v53 = vpop.f32.mrf.mxu0 }
 0x1e1   : > { %v1785_v52 = vpop.f32.mrf.mxu3  ;;  %v1449_v54 = vpop.f32.mrf.mxu1  ;;  %v1617_v58 = vadd.f32 %v1616_v51, %v1448_v50 }
 0x1e2   : > { %v1450_v3 = vadd.f32 %v1449_v54, %v1280_v53  ;;  %v2590_v53 = vld [vmem:[%s3353_s15 + $0x3c0] sm:$0xf]  ;;  %v2873_v54 = vld [vmem:[%s3353_s15 + $0x3cc] sm:$0xf0] }
 0x1e3   : > { %v3185_v56 = vpop.eup %3184  ;;  %v1786_v4 = vadd.f32 %v1785_v52, %v1617_v58  ;;  %v2874_v58 = vld [vmem:[%s3353_s15 + $0x3d4] sm:$0xf0]  ;;  %v2591_v1 = vor.u32 %v2873_v54, %v2590_v53 }
 0x1e4   : > { %v3004_v57 = vpack.c.bf16 %v3185_v56, %v3183_v55  ;;  %v2871_v55 = vld [vmem:[%s3353_s15 + $0x3c4] sm:$0xf]  ;;  %v2592_v56 = vld [vmem:[%s3353_s15 + $0x3d0] sm:$0xf0] }
 0x1e5   : > { %3186 = vtanh.f32 %v1786_v4  ;;  %v2595_v2 = vor.u32 %v2871_v55, %v2592_v56 }
 0x1e6   : > { %3088 = vst [vmem:[%s3457_s30 + $0x90] sm:$0xff] %v3004_v57   ;;  %v2598_v57 = vld [vmem:[%s3353_s15 + $0x3c8] sm:$0xf] }
 0x1e8   : > { %v1618_v5 = vpop.f32.mrf.mxu2  ;;  %v1283_v10 = vpop.f32.mrf.mxu0 }
 0x1e9   : > { %v1787_v6 = vpop.f32.mrf.mxu3  ;;  %v1619_v9 = vadd.f32 %v1618_v5, %v1450_v3  ;;  %v1452_v11 = vpop.f32.mrf.mxu1 }
 0x1ea   : > { %v1453_v15 = vadd.f32 %v1452_v11, %v1283_v10 }
 0x1eb   : > { %v1788_v14 = vadd.f32 %v1787_v6, %v1619_v9  ;;  %1322 = vmatmul.bf16.gmra.mxu0 %v2559_v7  ;;  %v3187_v20 = vpop.eup %3186  ;;  %v2599_v6 = vor.u32 %v2874_v58, %v2598_v57  ;;  %v2603_v7 = vor.u32 %v2872_v59, %v2600_v60 }
 0x1ec   : > { %1491 = vmatmul.bf16.gmra.mxu1 %v2563_v8 }
 0x1ed   : > { %3188 = vtanh.f32 %v1788_v14  ;;  %1660 = vmatmul.bf16.gmra.mxu2 %v2567_v12 }
 0x1ee   : > { %1829 = vmatmul.bf16.gmra.mxu3 %v2571_v13 }
 0x1f0   : > { %v1621_v16 = vpop.f32.mrf.mxu2  ;;  %v1285_v18 = vpop.f32.mrf.mxu0 }
 0x1f1   : > { %v1790_v17 = vpop.f32.mrf.mxu3  ;;  %v1454_v19 = vpop.f32.mrf.mxu1  ;;  %v1622_v23 = vadd.f32 %v1621_v16, %v1453_v15 }
 0x1f2   : > { %v1455_v32 = vadd.f32 %v1454_v19, %v1285_v18  ;;  %v2606_v18 = vld [vmem:[%s3353_s15 + $0x3e0] sm:$0xf]  ;;  %v2877_v19 = vld [vmem:[%s3353_s15 + $0x3ec] sm:$0xf0] }
 0x1f3   : > { %v3189_v21 = vpop.eup %3188  ;;  %v1791_v33 = vadd.f32 %v1790_v17, %v1622_v23  ;;  %v2878_v23 = vld [vmem:[%s3353_s15 + $0x3f4] sm:$0xf0]  ;;  %v2607_v30 = vor.u32 %v2877_v19, %v2606_v18 }
 0x1f4   : > { %v3009_v22 = vpack.c.bf16 %v3189_v21, %v3187_v20  ;;  %v2875_v20 = vld [vmem:[%s3353_s15 + $0x3e4] sm:$0xf]  ;;  %v2608_v21 = vld [vmem:[%s3353_s15 + $0x3f0] sm:$0xf0] }
 0x1f5   : > { %3190 = vtanh.f32 %v1791_v33  ;;  %v2611_v31 = vor.u32 %v2875_v20, %v2608_v21 }
 0x1f6   : > { %3089 = vst [vmem:[%s3457_s30 + $0x98] sm:$0xff] %v3009_v22   ;;  %v2614_v22 = vld [vmem:[%s3353_s15 + $0x3e8] sm:$0xf] }
 0x1f8   : > { %v1623_v34 = vpop.f32.mrf.mxu2  ;;  %v1288_v39 = vpop.f32.mrf.mxu0 }
 0x1f9   : > { %v1792_v35 = vpop.f32.mrf.mxu3  ;;  %v1624_v38 = vadd.f32 %v1623_v34, %v1455_v32  ;;  %v1457_v40 = vpop.f32.mrf.mxu1 }
 0x1fa   : > { %v1458_v44 = vadd.f32 %v1457_v40, %v1288_v39 }
 0x1fb   : > { %v1793_v43 = vadd.f32 %v1792_v35, %v1624_v38  ;;  %1327 = vmatmul.bf16.gmra.mxu0 %v2575_v36  ;;  %v3191_v49 = vpop.eup %3190  ;;  %v2615_v35 = vor.u32 %v2878_v23, %v2614_v22  ;;  %v2619_v36 = vor.u32 %v2876_v24, %v2616_v25 }
 0x1fc   : > { %1496 = vmatmul.bf16.gmra.mxu1 %v2579_v37 }
 0x1fd   : > { %3192 = vtanh.f32 %v1793_v43  ;;  %1665 = vmatmul.bf16.gmra.mxu2 %v2583_v41 }
 0x1fe   : > { %1834 = vmatmul.bf16.gmra.mxu3 %v2587_v42 }
 0x200   : > { %v1626_v45 = vpop.f32.mrf.mxu2  ;;  %v1290_v47 = vpop.f32.mrf.mxu0 }
 0x201   : > { %v1795_v46 = vpop.f32.mrf.mxu3  ;;  %v1459_v48 = vpop.f32.mrf.mxu1  ;;  %v1627_v52 = vadd.f32 %v1626_v45, %v1458_v44 }
 0x202   : > { %v1460_v61 = vadd.f32 %v1459_v48, %v1290_v47 }
 0x203   : > { %v3193_v50 = vpop.eup %3192  ;;  %v1796_v62 = vadd.f32 %v1795_v46, %v1627_v52 }
 0x204   : > { %v3014_v51 = vpack.c.bf16 %v3193_v50, %v3191_v49 }
 0x205   : > { %3194 = vtanh.f32 %v1796_v62 }
 0x206   : > { %3090 = vst [vmem:[%s3457_s30 + $0xa0] sm:$0xff] %v3014_v51  }
 0x208   : > { %v1628_v63 = vpop.f32.mrf.mxu2  ;;  %v1293_v4 = vpop.f32.mrf.mxu0 }
 0x209   : > { %v1797_v0 = vpop.f32.mrf.mxu3  ;;  %v1629_v3 = vadd.f32 %v1628_v63, %v1460_v61  ;;  %v1462_v5 = vpop.f32.mrf.mxu1 }
 0x20a   : > { %v1463_v9 = vadd.f32 %v1462_v5, %v1293_v4 }
 0x20b   : > { %v1798_v8 = vadd.f32 %v1797_v0, %v1629_v3  ;;  %1332 = vmatmul.bf16.gmra.mxu0 %v2591_v1  ;;  %v3195_v14 = vpop.eup %3194 }
 0x20c   : > { %1501 = vmatmul.bf16.gmra.mxu1 %v2595_v2 }
 0x20d   : > { %3196 = vtanh.f32 %v1798_v8  ;;  %1670 = vmatmul.bf16.gmra.mxu2 %v2599_v6 }
 0x20e   : > { %1839 = vmatmul.bf16.gmra.mxu3 %v2603_v7 }
 0x210   : > { %v1631_v10 = vpop.f32.mrf.mxu2  ;;  %v1295_v12 = vpop.f32.mrf.mxu0 }
 0x211   : > { %v1800_v11 = vpop.f32.mrf.mxu3  ;;  %v1464_v13 = vpop.f32.mrf.mxu1  ;;  %v1632_v17 = vadd.f32 %v1631_v10, %v1463_v9 }
 0x212   : > { %v1465_v26 = vadd.f32 %v1464_v13, %v1295_v12 }
 0x213   : > { %v3197_v15 = vpop.eup %3196  ;;  %v1801_v27 = vadd.f32 %v1800_v11, %v1632_v17 }
 0x214   : > { %v3019_v16 = vpack.c.bf16 %v3197_v15, %v3195_v14 }
 0x215   : > { %3198 = vtanh.f32 %v1801_v27 }
 0x216   : > { %3091 = vst [vmem:[%s3457_s30 + $0xa8] sm:$0xff] %v3019_v16  }
 0x218   : > { %v1633_v28 = vpop.f32.mrf.mxu2  ;;  %v1298_v33 = vpop.f32.mrf.mxu0 }
 0x219   : > { %v1802_v29 = vpop.f32.mrf.mxu3  ;;  %v1634_v32 = vadd.f32 %v1633_v28, %v1465_v26  ;;  %v1467_v34 = vpop.f32.mrf.mxu1 }
 0x21a   : > { %v1468_v38 = vadd.f32 %v1467_v34, %v1298_v33 }
 0x21b   : > { %v1803_v37 = vadd.f32 %v1802_v29, %v1634_v32  ;;  %1337 = vmatmul.bf16.gmra.mxu0 %v2607_v30  ;;  %v3199_v43 = vpop.eup %3198 }
 0x21c   : > { %1506 = vmatmul.bf16.gmra.mxu1 %v2611_v31 }
 0x21d   : > { %3200 = vtanh.f32 %v1803_v37  ;;  %1675 = vmatmul.bf16.gmra.mxu2 %v2615_v35 }
 0x21e   : > { %1844 = vmatmul.bf16.gmra.mxu3 %v2619_v36 }
 0x220   : > { %v1636_v39 = vpop.f32.mrf.mxu2  ;;  %v1300_v41 = vpop.f32.mrf.mxu0 }
 0x221   : > { %v1805_v40 = vpop.f32.mrf.mxu3  ;;  %v1469_v42 = vpop.f32.mrf.mxu1  ;;  %v1637_v46 = vadd.f32 %v1636_v39, %v1468_v38 }
 0x222   : > { %v1470_v47 = vadd.f32 %v1469_v42, %v1300_v41 }
 0x223   : > { %v3201_v44 = vpop.eup %3200  ;;  %v1806_v48 = vadd.f32 %v1805_v40, %v1637_v46 }
 0x224   : > { %v3024_v45 = vpack.c.bf16 %v3201_v44, %v3199_v43 }
 0x225   : > { %3202 = vtanh.f32 %v1806_v48 }
 0x226   : > { %3092 = vst [vmem:[%s3457_s30 + $0xb0] sm:$0xff] %v3024_v45  }
 0x228   : > { %v1638_v49 = vpop.f32.mrf.mxu2  ;;  %v1303_v52 = vpop.f32.mrf.mxu0 }
 0x229   : > { %v1807_v50 = vpop.f32.mrf.mxu3  ;;  %v1639_v51 = vadd.f32 %v1638_v49, %v1470_v47  ;;  %v1472_v53 = vpop.f32.mrf.mxu1 }
 0x22a   : > { %v1473_v55 = vadd.f32 %v1472_v53, %v1303_v52 }
 0x22b   : > { %v1808_v54 = vadd.f32 %v1807_v50, %v1639_v51  ;;  %v3203_v60 = vpop.eup %3202 }
 0x22d   : > { %3204 = vtanh.f32 %v1808_v54 }
 0x230   : > { %v1641_v56 = vpop.f32.mrf.mxu2  ;;  %v1305_v58 = vpop.f32.mrf.mxu0 }
 0x231   : > { %v1810_v57 = vpop.f32.mrf.mxu3  ;;  %v1474_v59 = vpop.f32.mrf.mxu1  ;;  %v1642_v63 = vadd.f32 %v1641_v56, %v1473_v55 }
 0x232   : > { %v1475_v0 = vadd.f32 %v1474_v59, %v1305_v58 }
 0x233   : > { %v3205_v61 = vpop.eup %3204  ;;  %v1811_v1 = vadd.f32 %v1810_v57, %v1642_v63 }
 0x234   : > { %v3029_v62 = vpack.c.bf16 %v3205_v61, %v3203_v60 }
 0x235   : > { %3206 = vtanh.f32 %v1811_v1 }
 0x236   : > { %3093 = vst [vmem:[%s3457_s30 + $0xb8] sm:$0xff] %v3029_v62  }
 0x238   : > { %v1643_v2 = vpop.f32.mrf.mxu2  ;;  %v1308_v5 = vpop.f32.mrf.mxu0 }
 0x239   : > { %v1812_v3 = vpop.f32.mrf.mxu3  ;;  %v1644_v4 = vadd.f32 %v1643_v2, %v1475_v0  ;;  %v1477_v6 = vpop.f32.mrf.mxu1 }
 0x23a   : > { %v1478_v8 = vadd.f32 %v1477_v6, %v1308_v5 }
 0x23b   : > { %v1813_v7 = vadd.f32 %v1812_v3, %v1644_v4  ;;  %v3207_v13 = vpop.eup %3206 }
 0x23d   : > { %3208 = vtanh.f32 %v1813_v7 }
 0x240   : > { %v1646_v9 = vpop.f32.mrf.mxu2  ;;  %v1310_v11 = vpop.f32.mrf.mxu0 }
 0x241   : > { %v1815_v10 = vpop.f32.mrf.mxu3  ;;  %v1479_v12 = vpop.f32.mrf.mxu1  ;;  %v1647_v16 = vadd.f32 %v1646_v9, %v1478_v8 }
 0x242   : > { %v1480_v17 = vadd.f32 %v1479_v12, %v1310_v11 }
 0x243   : > { %v3209_v14 = vpop.eup %3208  ;;  %v1816_v18 = vadd.f32 %v1815_v10, %v1647_v16 }
 0x244   : > { %v3034_v15 = vpack.c.bf16 %v3209_v14, %v3207_v13 }
 0x245   : > { %3210 = vtanh.f32 %v1816_v18 }
 0x246   : > { %3094 = vst [vmem:[%s3457_s30 + $0xc0] sm:$0xff] %v3034_v15  }
 0x248   : > { %v1648_v19 = vpop.f32.mrf.mxu2  ;;  %v1313_v22 = vpop.f32.mrf.mxu0 }
 0x249   : > { %v1817_v20 = vpop.f32.mrf.mxu3  ;;  %v1649_v21 = vadd.f32 %v1648_v19, %v1480_v17  ;;  %v1482_v23 = vpop.f32.mrf.mxu1 }
 0x24a   : > { %v1483_v25 = vadd.f32 %v1482_v23, %v1313_v22 }
 0x24b   : > { %v1818_v24 = vadd.f32 %v1817_v20, %v1649_v21  ;;  %v3211_v30 = vpop.eup %3210 }
 0x24d   : > { %3212 = vtanh.f32 %v1818_v24 }
 0x250   : > { %v1651_v26 = vpop.f32.mrf.mxu2  ;;  %v1315_v28 = vpop.f32.mrf.mxu0 }
 0x251   : > { %v1820_v27 = vpop.f32.mrf.mxu3  ;;  %v1484_v29 = vpop.f32.mrf.mxu1  ;;  %v1652_v33 = vadd.f32 %v1651_v26, %v1483_v25 }
 0x252   : > { %v1485_v34 = vadd.f32 %v1484_v29, %v1315_v28 }
 0x253   : > { %v3213_v31 = vpop.eup %3212  ;;  %v1821_v35 = vadd.f32 %v1820_v27, %v1652_v33 }
 0x254   : > { %v3039_v32 = vpack.c.bf16 %v3213_v31, %v3211_v30 }
 0x255   : > { %3214 = vtanh.f32 %v1821_v35 }
 0x256   : > { %3095 = vst [vmem:[%s3457_s30 + $0xc8] sm:$0xff] %v3039_v32  }
 0x258   : > { %v1653_v36 = vpop.f32.mrf.mxu2  ;;  %v1318_v39 = vpop.f32.mrf.mxu0 }
 0x259   : > { %v1822_v37 = vpop.f32.mrf.mxu3  ;;  %v1654_v38 = vadd.f32 %v1653_v36, %v1485_v34  ;;  %v1487_v40 = vpop.f32.mrf.mxu1 }
 0x25a   : > { %v1488_v42 = vadd.f32 %v1487_v40, %v1318_v39 }
 0x25b   : > { %v1823_v41 = vadd.f32 %v1822_v37, %v1654_v38  ;;  %v3215_v47 = vpop.eup %3214 }
 0x25d   : > { %3216 = vtanh.f32 %v1823_v41 }
 0x260   : > { %v1656_v43 = vpop.f32.mrf.mxu2  ;;  %v1320_v45 = vpop.f32.mrf.mxu0 }
 0x261   : > { %v1825_v44 = vpop.f32.mrf.mxu3  ;;  %v1489_v46 = vpop.f32.mrf.mxu1  ;;  %v1657_v50 = vadd.f32 %v1656_v43, %v1488_v42 }
 0x262   : > { %v1490_v51 = vadd.f32 %v1489_v46, %v1320_v45 }
 0x263   : > { %v3217_v48 = vpop.eup %3216  ;;  %v1826_v52 = vadd.f32 %v1825_v44, %v1657_v50 }
 0x264   : > { %v3044_v49 = vpack.c.bf16 %v3217_v48, %v3215_v47 }
 0x265   : > { %3218 = vtanh.f32 %v1826_v52 }
 0x266   : > { %3096 = vst [vmem:[%s3457_s30 + $0xd0] sm:$0xff] %v3044_v49  }
 0x268   : > { %v1658_v53 = vpop.f32.mrf.mxu2  ;;  %v1323_v56 = vpop.f32.mrf.mxu0 }
 0x269   : > { %v1827_v54 = vpop.f32.mrf.mxu3  ;;  %v1659_v55 = vadd.f32 %v1658_v53, %v1490_v51  ;;  %v1492_v57 = vpop.f32.mrf.mxu1 }
 0x26a   : > { %v1493_v59 = vadd.f32 %v1492_v57, %v1323_v56 }
 0x26b   : > { %v1828_v58 = vadd.f32 %v1827_v54, %v1659_v55  ;;  %v3219_v0 = vpop.eup %3218 }
 0x26d   : > { %3220 = vtanh.f32 %v1828_v58 }
 0x270   : > { %v1661_v60 = vpop.f32.mrf.mxu2  ;;  %v1325_v62 = vpop.f32.mrf.mxu0 }
 0x271   : > { %v1830_v61 = vpop.f32.mrf.mxu3  ;;  %v1494_v63 = vpop.f32.mrf.mxu1  ;;  %v1662_v3 = vadd.f32 %v1661_v60, %v1493_v59 }
 0x272   : > { %v1495_v4 = vadd.f32 %v1494_v63, %v1325_v62 }
 0x273   : > { %v3221_v1 = vpop.eup %3220  ;;  %v1831_v5 = vadd.f32 %v1830_v61, %v1662_v3 }
 0x274   : > { %v3049_v2 = vpack.c.bf16 %v3221_v1, %v3219_v0 }
 0x275   : > { %3222 = vtanh.f32 %v1831_v5 }
 0x276   : > { %3097 = vst [vmem:[%s3457_s30 + $0xd8] sm:$0xff] %v3049_v2  }
 0x278   : > { %v1663_v6 = vpop.f32.mrf.mxu2  ;;  %v1328_v9 = vpop.f32.mrf.mxu0 }
 0x279   : > { %v1832_v7 = vpop.f32.mrf.mxu3  ;;  %v1664_v8 = vadd.f32 %v1663_v6, %v1495_v4  ;;  %v1497_v10 = vpop.f32.mrf.mxu1 }
 0x27a   : > { %v1498_v12 = vadd.f32 %v1497_v10, %v1328_v9 }
 0x27b   : > { %v1833_v11 = vadd.f32 %v1832_v7, %v1664_v8  ;;  %v3223_v17 = vpop.eup %3222 }
 0x27d   : > { %3224 = vtanh.f32 %v1833_v11 }
 0x280   : > { %v1666_v13 = vpop.f32.mrf.mxu2  ;;  %v1330_v15 = vpop.f32.mrf.mxu0 }
 0x281   : > { %v1835_v14 = vpop.f32.mrf.mxu3  ;;  %v1499_v16 = vpop.f32.mrf.mxu1  ;;  %v1667_v20 = vadd.f32 %v1666_v13, %v1498_v12 }
 0x282   : > { %v1500_v21 = vadd.f32 %v1499_v16, %v1330_v15 }
 0x283   : > { %v3225_v18 = vpop.eup %3224  ;;  %v1836_v22 = vadd.f32 %v1835_v14, %v1667_v20 }
 0x284   : > { %v3054_v19 = vpack.c.bf16 %v3225_v18, %v3223_v17 }
 0x285   : > { %3226 = vtanh.f32 %v1836_v22 }
 0x286   : > { %3098 = vst [vmem:[%s3457_s30 + $0xe0] sm:$0xff] %v3054_v19  }
 0x288   : > { %v1668_v23 = vpop.f32.mrf.mxu2  ;;  %v1333_v26 = vpop.f32.mrf.mxu0 }
 0x289   : > { %v1837_v24 = vpop.f32.mrf.mxu3  ;;  %v1669_v25 = vadd.f32 %v1668_v23, %v1500_v21  ;;  %v1502_v27 = vpop.f32.mrf.mxu1 }
 0x28a   : > { %v1503_v29 = vadd.f32 %v1502_v27, %v1333_v26 }
 0x28b   : > { %v1838_v28 = vadd.f32 %v1837_v24, %v1669_v25  ;;  %v3227_v34 = vpop.eup %3226 }
 0x28d   : > { %3228 = vtanh.f32 %v1838_v28 }
 0x290   : > { %v1671_v30 = vpop.f32.mrf.mxu2  ;;  %v1335_v32 = vpop.f32.mrf.mxu0 }
 0x291   : > { %v1840_v31 = vpop.f32.mrf.mxu3  ;;  %v1504_v33 = vpop.f32.mrf.mxu1  ;;  %v1672_v37 = vadd.f32 %v1671_v30, %v1503_v29 }
 0x292   : > { %v1505_v38 = vadd.f32 %v1504_v33, %v1335_v32 }
 0x293   : > { %v3229_v35 = vpop.eup %3228  ;;  %v1841_v39 = vadd.f32 %v1840_v31, %v1672_v37 }
 0x294   : > { %v3059_v36 = vpack.c.bf16 %v3229_v35, %v3227_v34 }
 0x295   : > { %3230 = vtanh.f32 %v1841_v39 }
 0x296   : > { %3099 = vst [vmem:[%s3457_s30 + $0xe8] sm:$0xff] %v3059_v36  }
 0x298   : > { %v1673_v40 = vpop.f32.mrf.mxu2  ;;  %v1338_v43 = vpop.f32.mrf.mxu0 }
 0x299   : > { %v1842_v41 = vpop.f32.mrf.mxu3  ;;  %v1674_v42 = vadd.f32 %v1673_v40, %v1505_v38  ;;  %v1507_v44 = vpop.f32.mrf.mxu1 }
 0x29a   : > { %v1508_v46 = vadd.f32 %v1507_v44, %v1338_v43 }
 0x29b   : > { %v1843_v45 = vadd.f32 %v1842_v41, %v1674_v42  ;;  %v3231_v49 = vpop.eup %3230 }
 0x29d   : > { %3232 = vtanh.f32 %v1843_v45 }
 0x2a0   : > { %v1676_v47 = vpop.f32.mrf.mxu2  ;;  %v1340_v53 = vpop.f32.mrf.mxu0 }
 0x2a1   : > { %v1845_v48 = vpop.f32.mrf.mxu3  ;;  %v1677_v52 = vadd.f32 %v1676_v47, %v1508_v46  ;;  %v1509_v54 = vpop.f32.mrf.mxu1 }
 0x2a2   : > { %v1510_v55 = vadd.f32 %v1509_v54, %v1340_v53 }
 0x2a3   : > { %v3233_v50 = vpop.eup %3232  ;;  %v1846_v56 = vadd.f32 %v1845_v48, %v1677_v52 }
 0x2a4   : > { %v3064_v51 = vpack.c.bf16 %v3233_v50, %v3231_v49 }
 0x2a5   : > { %3234 = vtanh.f32 %v1846_v56 }
 0x2a6   : > { %3100 = vst [vmem:[%s3457_s30 + $0xf0] sm:$0xff] %v3064_v51  }
 0x2a8   : > { %v1678_v57 = vpop.f32.mrf.mxu2 }
 0x2a9   : > { %v1679_v58 = vadd.f32 %v1678_v57, %v1510_v55  ;;  %v1847_v59 = vpop.f32.mrf.mxu3 }
 0x2ab   : > { %v1848_v60 = vadd.f32 %v1847_v59, %v1679_v58  ;;  %v3235_v61 = vpop.eup %3234 }
 0x2ad   : > { %3236 = vtanh.f32 %v1848_v60 }
 0x2b3   : > { %v3237_v62 = vpop.eup %3236 }
 0x2b4   : > { %v3069_v63 = vpack.c.bf16 %v3237_v62, %v3235_v61 }
 0x2b6   : > { %3101 = vst [vmem:[%s3457_s30 + $0xf8] sm:$0xff] %v3069_v63  }
 0x2b7 PF: > { %s12_s9 = sadd.s32 1, %s3244_s9  }
 0x2b8   : > { %p9_p4 = scmp.ge.s32.totalorder %s12_s9, 6  }
 0x2ba   :  { %11 = sbr.rel (!%p9_p4) target bundleno = 1 (0x1), region = 58 }

</bundles_post_ra>
